<compile_context>
chip_gen: v5e
topology: v5e:2x2
jax: 0.10.0
libtpu: 0.0.40
codegen_flags: <defaults>
</compile_context>

<pallas_src>
import functools
import math

import jax
import jax.numpy as jnp
from jax.experimental import pallas as pl
from jax.experimental.pallas import tpu as pltpu


# ----------------------------- helpers ----------------------------------------

def _pick_tile(s, bytes_per_token, budget_bytes=8 << 20):
    """Largest multiple of 128 dividing s whose double-buffered working set fits budget."""
    if s % 128 != 0:
        return s
    cap = max(128, ((budget_bytes // (2 * bytes_per_token)) // 128) * 128)
    best, t = 128, 128
    while t <= min(s, cap):
        if s % t == 0:
            best = t
        t += 128
    return best


# ----------------------------- Pallas kernels ---------------------------------

def _deconv_fold_kernel(x_ref, w_ref, o_ref):
    """Stride-r transposed conv (with the x_up half of the 1x1 conv pre-folded
    into the weights) as a single MXU matmul over a token tile.

    x_ref: (1, Cin, tS) f32   w_ref: (C*r^3, Cin) bf16   o_ref: (1, C*r^3, tS) bf16
    """
    x = x_ref[0].astype(jnp.bfloat16)
    acc = jnp.dot(w_ref[...], x, preferred_element_type=jnp.float32)
    o_ref[0] = acc.astype(o_ref.dtype)


def _fused_cat1x1_gn_kernel(xu_ref, ft_ref, wb_ref, b_ref, g_ref, bt_ref, o_ref,
                            *, eps, inv_n):
    """Fused (folded) cat + 1x1 transposed conv + bias + GroupNorm(num_groups=1).

    xu_ref: (1, C, S') bf16  -- x_up already transformed by the 1x1's first half
    ft_ref: (1, C, S') f32   -- skip feature
    wb_ref: (C, C)     bf16  -- second half of the 1x1 weight (applies to feature)
    b_ref:  (C, 1)     f32   -- folded bias (b2 + wa @ b1)
    g_ref/bt_ref: (C, 1) f32 -- GroupNorm affine
    o_ref:  (1, C, S') f32
    """
    ft = ft_ref[0].astype(jnp.bfloat16)
    y = jnp.dot(wb_ref[...], ft, preferred_element_type=jnp.float32)
    y = y + xu_ref[0].astype(jnp.float32) + b_ref[...]

    # GroupNorm(num_groups=1): per-sample stats over (C, S'), biased variance.
    row_sum = jnp.sum(y, axis=-1, keepdims=True)           # (C, 1)
    mean = jnp.sum(row_sum, axis=0, keepdims=True) * inv_n  # (1, 1)
    d = y - mean
    row_sq = jnp.sum(d * d, axis=-1, keepdims=True)
    var = jnp.sum(row_sq, axis=0, keepdims=True) * inv_n
    inv = jax.lax.rsqrt(var + eps)                          # EUP
    o_ref[0] = (d * inv * g_ref[...] + bt_ref[...]).astype(o_ref.dtype)


# ----------------------------- module forward ----------------------------------

def transposed_conv_layer(x, feature, params, r):
    """Forward of TransposedConvLayer (head is unused by the torch module)."""
    B, Cin, D, H, W = x.shape
    C = params["w1"].shape[1]
    R3 = r ** 3
    S = D * H * W
    Sp = S * R3
    hp = jax.lax.Precision.HIGHEST

    # --- fold the x_up half (wa) of the 1x1 conv into the deconv weights -------
    # ConvTranspose3d(2C, C, 1): out[o] = sum_in w2[in, o] * cat[in] + b2[o]
    w2m = params["w2"].reshape(2 * C, C).T                   # (C_out, 2C_in)
    wa, wb = w2m[:, :C], w2m[:, C:]                          # (C, C) each
    w1m = params["w1"].reshape(Cin, C, R3)                   # (Cin, C_out1, R3)
    w_fold = jnp.einsum("oc,ick->oki", wa, w1m, precision=hp)  # (C, R3, Cin)
    w_fold = w_fold.reshape(C * R3, Cin).astype(jnp.bfloat16)
    b_eff = (params["b2"] + jnp.dot(wa, params["b1"], precision=hp)).reshape(C, 1)
    wb_bf = wb.astype(jnp.bfloat16)

    # --- kernel 1: stride-r deconv (folded) as one matmul, tokens on lanes ------
    xs = x.reshape(B, Cin, S)
    tS = _pick_tile(S, bytes_per_token=Cin * 4 + C * R3 * 2)
    yp = pl.pallas_call(
        _deconv_fold_kernel,
        out_shape=jax.ShapeDtypeStruct((B, C * R3, S), jnp.bfloat16),
        grid=(B, S // tS),
        in_specs=[
            pl.BlockSpec((1, Cin, tS), lambda b, i: (b, 0, i)),
            pl.BlockSpec((C * R3, Cin), lambda b, i: (0, 0)),
        ],
        out_specs=pl.BlockSpec((1, C * R3, tS), lambda b, i: (b, 0, i)),
        compiler_params=pltpu.CompilerParams(
            dimension_semantics=("parallel", "parallel")),
    )(xs, w_fold)

    # Unpatchify (inherent r^3 interleave of the stride-r transposed conv): a single
    # XLA transpose on the bf16 intermediate.
    # TODO(synk): move this interleave on-chip (strided VMEM stores in the deconv
    # epilogue) if xprof shows it dominating at production volumes.
    xu = yp.reshape(B, C, r, r, r, D, H, W)
    xu = jnp.transpose(xu, (0, 1, 5, 2, 6, 3, 7, 4)).reshape(B, C, Sp)

    # --- kernel 2: fused (cat + 1x1 conv + bias) + GroupNorm, one step per sample --
    fs = feature.reshape(B, C, Sp)
    # TODO(synk): whole-sample block per grid step; for very large decoder volumes
    # (esp. v7x's 64 MiB VMEM) this needs an S'-tiled two-pass variant carrying
    # running sum / sum-of-squares in scratch.
    out = pl.pallas_call(
        functools.partial(_fused_cat1x1_gn_kernel, eps=1e-5, inv_n=1.0 / (C * Sp)),
        out_shape=jax.ShapeDtypeStruct((B, C, Sp), jnp.float32),
        grid=(B,),
        in_specs=[
            pl.BlockSpec((1, C, Sp), lambda b: (b, 0, 0)),
            pl.BlockSpec((1, C, Sp), lambda b: (b, 0, 0)),
            pl.BlockSpec((C, C), lambda b: (0, 0)),
            pl.BlockSpec((C, 1), lambda b: (0, 0)),
            pl.BlockSpec((C, 1), lambda b: (0, 0)),
            pl.BlockSpec((C, 1), lambda b: (0, 0)),
        ],
        out_specs=pl.BlockSpec((1, C, Sp), lambda b: (b, 0, 0)),
        compiler_params=pltpu.CompilerParams(dimension_semantics=("parallel",)),
    )(xu, fs, wb_bf, b_eff.astype(jnp.float32),
      params["gamma"].reshape(C, 1), params["beta"].reshape(C, 1))

    return out.reshape(B, C, D * r, H * r, W * r)


# ----------------------------- params & reference ------------------------------

def init_params(key, dim_in, dim_out, r):
    k1, k2, k3, k4 = jax.random.split(key, 4)
    bnd1 = 1.0 / math.sqrt(dim_in * r ** 3)
    bnd2 = 1.0 / math.sqrt(2 * dim_out)
    return {
        # ConvTranspose3d weight layout: (in_channels, out_channels, kD, kH, kW)
        "w1": jax.random.uniform(k1, (dim_in, dim_out, r, r, r), jnp.float32, -bnd1, bnd1),
        "b1": jax.random.uniform(k2, (dim_out,), jnp.float32, -bnd1, bnd1),
        "w2": jax.random.uniform(k3, (2 * dim_out, dim_out, 1, 1, 1), jnp.float32, -bnd2, bnd2),
        "b2": jax.random.uniform(k4, (dim_out,), jnp.float32, -bnd2, bnd2),
        # GroupNorm affine (torch default init: weight=1, bias=0)
        "gamma": jnp.ones((dim_out,), jnp.float32),
        "beta": jnp.zeros((dim_out,), jnp.float32),
    }


def reference_forward(x, feature, params, r):
    """Pure-JAX f32 reference of the torch module (for a sanity check)."""
    B, Cin, D, H, W = x.shape
    Cout = params["w1"].shape[1]
    hp = jax.lax.Precision.HIGHEST
    y = jnp.einsum("bcdhw,coijk->bodihjwk", x, params["w1"], precision=hp)
    y = y.reshape(B, Cout, D * r, H * r, W * r) + params["b1"].reshape(1, Cout, 1, 1, 1)
    cat = jnp.concatenate([y, feature], axis=1)
    w2 = params["w2"].reshape(2 * Cout, Cout)
    z = jnp.einsum("bcdhw,co->bodhw", cat, w2, precision=hp)
    z = z + params["b2"].reshape(1, Cout, 1, 1, 1)
    mean = z.mean(axis=(1, 2, 3, 4), keepdims=True)
    var = z.var(axis=(1, 2, 3, 4), keepdims=True)
    zn = (z - mean) * jax.lax.rsqrt(var + 1e-5)
    return zn * params["gamma"].reshape(1, Cout, 1, 1, 1) + params["beta"].reshape(1, Cout, 1, 1, 1)


# ----------------------------- main ---------------------------------------------

if __name__ == "__main__":
    dim_in, dim_out, head, r = 96, 48, 2, 2     # head is unused by the reference module
    B, D, H, W = 2, 8, 8, 8

    key = jax.random.PRNGKey(0)
    kp, kx, kf = jax.random.split(key, 3)
    params = init_params(kp, dim_in, dim_out, r)
    x = jax.random.normal(kx, (B, dim_in, D, H, W), jnp.float32)
    feature = jax.random.normal(kf, (B, dim_out, D * r, H * r, W * r), jnp.float32)

    fwd = jax.jit(functools.partial(transposed_conv_layer, r=r))
    out = fwd(x, feature, params)
    jax.block_until_ready(out)

    assert out.shape == (B, dim_out, D * r, H * r, W * r)
    ref = reference_forward(x, feature, params, r)
    rel_err = float(jnp.linalg.norm(out - ref) / (jnp.linalg.norm(ref) + 1e-6))
    assert rel_err < 0.05, f"relative error too large: {rel_err}"
    print("KERNEL_OK")
</pallas_src>

<mosaic_0001>
module attributes {stable_mosaic.version = 11 : i64} {
  func.func @_deconv_fold_kernel(%arg0: i32, %arg1: i32, %arg2: memref<1x96x512xf32, #tpu.memory_space<vmem>>, %arg3: memref<384x96xbf16, #tpu.memory_space<vmem>>, %arg4: memref<1x384x512xbf16, #tpu.memory_space<vmem>>) attributes {dimension_semantics = [#tpu.dimension_semantics<parallel>, #tpu.dimension_semantics<parallel>], iteration_bounds = array<i64: 2, 1>, scalar_prefetch = 0 : i64, scratch_operands = 0 : i64, tpu.core_type = #tpu.core_type<tc>, window_params = [{transform_indices = @transform_0, window_bounds = array<i64: 1, 96, 512>}, {pipeline_mode = #tpu.pipeline_mode<synchronous>, transform_indices = @transform_1, window_bounds = array<i64: 384, 96>}, {transform_indices = @transform_2, window_bounds = array<i64: 1, 384, 512>}]} {
    %c0 = arith.constant 0 : index
    %c0_0 = arith.constant 0 : index
    %c0_1 = arith.constant 0 : index
    %0 = vector.load %arg2[%c0, %c0_0, %c0_1] : memref<1x96x512xf32, #tpu.memory_space<vmem>>, vector<1x96x512xf32>
    %1 = vector.shape_cast %0 : vector<1x96x512xf32> to vector<96x512xf32>
    %2 = arith.truncf %1 : vector<96x512xf32> to vector<96x512xbf16>
    %c0_2 = arith.constant 0 : index
    %c0_3 = arith.constant 0 : index
    %3 = vector.load %arg3[%c0_2, %c0_3] : memref<384x96xbf16, #tpu.memory_space<vmem>>, vector<384x96xbf16>
    %cst = arith.constant dense<0.000000e+00> : vector<384x512xf32>
    %4 = tpu.matmul %3, %2, %cst {dimension_numbers = #tpu.dot_dimension_numbers<[1], [0], [0], [1], [0, 0, 1, 1], [], []>} : vector<384x96xbf16>, vector<96x512xbf16>, vector<384x512xf32> -> vector<384x512xf32>
    %5 = arith.truncf %4 : vector<384x512xf32> to vector<384x512xbf16>
    %c0_4 = arith.constant 0 : index
    %c0_5 = arith.constant 0 : index
    %c0_6 = arith.constant 0 : index
    %6 = vector.load %arg4[%c0_4, %c0_5, %c0_6] : memref<1x384x512xbf16, #tpu.memory_space<vmem>>, vector<1x384x512xbf16>
    %7 = vector.shape_cast %6 : vector<1x384x512xbf16> to vector<384x512xbf16>
    %8 = vector.shape_cast %5 : vector<384x512xbf16> to vector<1x384x512xbf16>
    tpu.vector_store %arg4[%c0_4, %c0_5, %c0_6], %8 {strides = array<i32>} : memref<1x384x512xbf16, #tpu.memory_space<vmem>>, vector<1x384x512xbf16>,
    return
  }
  func.func @transform_0(%arg0: i32, %arg1: i32) -> (i32, i32, i32) {
    %c0_i32 = arith.constant 0 : i32
    %c0_i32_0 = arith.constant 0 : i32
    return %arg0, %c0_i32, %arg1 : i32, i32, i32
  }
  func.func @transform_1(%arg0: i32, %arg1: i32) -> (i32, i32) {
    %c0_i32 = arith.constant 0 : i32
    %c0_i32_0 = arith.constant 0 : i32
    %c0_i32_1 = arith.constant 0 : i32
    return %c0_i32, %c0_i32_0 : i32, i32
  }
  func.func @transform_2(%arg0: i32, %arg1: i32) -> (i32, i32, i32) {
    %c0_i32 = arith.constant 0 : i32
    %c0_i32_0 = arith.constant 0 : i32
    return %arg0, %c0_i32, %arg1 : i32, i32, i32
  }
}

module attributes {stable_mosaic.version = 11 : i64} {
  func.func @_fused_cat1x1_gn_kernel(%arg0: i32, %arg1: memref<1x48x4096xbf16, #tpu.memory_space<vmem>>, %arg2: memref<1x48x4096xf32, #tpu.memory_space<vmem>>, %arg3: memref<48x48xbf16, #tpu.memory_space<vmem>>, %arg4: memref<48x1xf32, #tpu.memory_space<vmem>>, %arg5: memref<48x1xf32, #tpu.memory_space<vmem>>, %arg6: memref<48x1xf32, #tpu.memory_space<vmem>>, %arg7: memref<1x48x4096xf32, #tpu.memory_space<vmem>>) attributes {dimension_semantics = [#tpu.dimension_semantics<parallel>], iteration_bounds = array<i64: 2>, scalar_prefetch = 0 : i64, scratch_operands = 0 : i64, tpu.core_type = #tpu.core_type<tc>, window_params = [{transform_indices = @transform_0, window_bounds = array<i64: 1, 48, 4096>}, {transform_indices = @transform_1, window_bounds = array<i64: 1, 48, 4096>}, {pipeline_mode = #tpu.pipeline_mode<synchronous>, transform_indices = @transform_2, window_bounds = array<i64: 48, 48>}, {pipeline_mode = #tpu.pipeline_mode<synchronous>, transform_indices = @transform_3, window_bounds = array<i64: 48, 1>}, {pipeline_mode = #tpu.pipeline_mode<synchronous>, transform_indices = @transform_4, window_bounds = array<i64: 48, 1>}, {pipeline_mode = #tpu.pipeline_mode<synchronous>, transform_indices = @transform_5, window_bounds = array<i64: 48, 1>}, {transform_indices = @transform_6, window_bounds = array<i64: 1, 48, 4096>}]} {
    %c0 = arith.constant 0 : index
    %c0_0 = arith.constant 0 : index
    %c0_1 = arith.constant 0 : index
    %0 = vector.load %arg2[%c0, %c0_0, %c0_1] : memref<1x48x4096xf32, #tpu.memory_space<vmem>>, vector<1x48x4096xf32>
    %1 = vector.shape_cast %0 : vector<1x48x4096xf32> to vector<48x4096xf32>
    %2 = arith.truncf %1 : vector<48x4096xf32> to vector<48x4096xbf16>
    %c0_2 = arith.constant 0 : index
    %c0_3 = arith.constant 0 : index
    %3 = vector.load %arg3[%c0_2, %c0_3] : memref<48x48xbf16, #tpu.memory_space<vmem>>, vector<48x48xbf16>
    %cst = arith.constant dense<0.000000e+00> : vector<48x4096xf32>
    %4 = tpu.matmul %3, %2, %cst {dimension_numbers = #tpu.dot_dimension_numbers<[1], [0], [0], [1], [0, 0, 1, 1], [], []>} : vector<48x48xbf16>, vector<48x4096xbf16>, vector<48x4096xf32> -> vector<48x4096xf32>
    %c0_4 = arith.constant 0 : index
    %c0_5 = arith.constant 0 : index
    %c0_6 = arith.constant 0 : index
    %5 = vector.load %arg1[%c0_4, %c0_5, %c0_6] : memref<1x48x4096xbf16, #tpu.memory_space<vmem>>, vector<1x48x4096xbf16>
    %6 = vector.shape_cast %5 : vector<1x48x4096xbf16> to vector<48x4096xbf16>
    %7 = arith.extf %6 : vector<48x4096xbf16> to vector<48x4096xf32>
    %8 = arith.addf %4, %7 : vector<48x4096xf32>
    %c0_7 = arith.constant 0 : index
    %c0_8 = arith.constant 0 : index
    %9 = vector.load %arg4[%c0_7, %c0_8] : memref<48x1xf32, #tpu.memory_space<vmem>>, vector<48x1xf32>
    %10 = vector.broadcast %9 : vector<48x1xf32> to vector<48x4096xf32>
    %11 = arith.addf %8, %10 : vector<48x4096xf32>
    %cst_9 = arith.constant dense<0.000000e+00> : vector<48xf32>
    %12 = vector.multi_reduction <add>, %11, %cst_9 [1] : vector<48x4096xf32> to vector<48xf32>
    %13 = vector.shape_cast %12 : vector<48xf32> to vector<48x1xf32>
    %cst_10 = arith.constant dense<0.000000e+00> : vector<1xf32>
    %14 = vector.multi_reduction <add>, %13, %cst_10 [0] : vector<48x1xf32> to vector<1xf32>
    %15 = vector.shape_cast %14 : vector<1xf32> to vector<1x1xf32>
    %cst_11 = arith.constant 5.08626317E-6 : f32
    %16 = vector.broadcast %cst_11 : f32 to vector<1x1xf32>
    %17 = arith.mulf %15, %16 : vector<1x1xf32>
    %18 = vector.broadcast %17 : vector<1x1xf32> to vector<48x4096xf32>
    %19 = arith.subf %11, %18 : vector<48x4096xf32>
    %20 = arith.mulf %19, %19 : vector<48x4096xf32>
    %cst_12 = arith.constant dense<0.000000e+00> : vector<48xf32>
    %21 = vector.multi_reduction <add>, %20, %cst_12 [1] : vector<48x4096xf32> to vector<48xf32>
    %22 = vector.shape_cast %21 : vector<48xf32> to vector<48x1xf32>
    %cst_13 = arith.constant dense<0.000000e+00> : vector<1xf32>
    %23 = vector.multi_reduction <add>, %22, %cst_13 [0] : vector<48x1xf32> to vector<1xf32>
    %24 = vector.shape_cast %23 : vector<1xf32> to vector<1x1xf32>
    %cst_14 = arith.constant 5.08626317E-6 : f32
    %25 = vector.broadcast %cst_14 : f32 to vector<1x1xf32>
    %26 = arith.mulf %24, %25 : vector<1x1xf32>
    %cst_15 = arith.constant 9.99999974E-6 : f32
    %27 = vector.broadcast %cst_15 : f32 to vector<1x1xf32>
    %28 = arith.addf %26, %27 : vector<1x1xf32>
    %29 = math.rsqrt %28 : vector<1x1xf32>
    %30 = vector.broadcast %29 : vector<1x1xf32> to vector<48x4096xf32>
    %31 = arith.mulf %19, %30 : vector<48x4096xf32>
    %c0_16 = arith.constant 0 : index
    %c0_17 = arith.constant 0 : index
    %32 = vector.load %arg5[%c0_16, %c0_17] : memref<48x1xf32, #tpu.memory_space<vmem>>, vector<48x1xf32>
    %33 = vector.broadcast %32 : vector<48x1xf32> to vector<48x4096xf32>
    %34 = arith.mulf %31, %33 : vector<48x4096xf32>
    %c0_18 = arith.constant 0 : index
    %c0_19 = arith.constant 0 : index
    %35 = vector.load %arg6[%c0_18, %c0_19] : memref<48x1xf32, #tpu.memory_space<vmem>>, vector<48x1xf32>
    %36 = vector.broadcast %35 : vector<48x1xf32> to vector<48x4096xf32>
    %37 = arith.addf %34, %36 : vector<48x4096xf32>
    %c0_20 = arith.constant 0 : index
    %c0_21 = arith.constant 0 : index
    %c0_22 = arith.constant 0 : index
    %38 = vector.load %arg7[%c0_20, %c0_21, %c0_22] : memref<1x48x4096xf32, #tpu.memory_space<vmem>>, vector<1x48x4096xf32>
    %39 = vector.shape_cast %38 : vector<1x48x4096xf32> to vector<48x4096xf32>
    %40 = vector.shape_cast %37 : vector<48x4096xf32> to vector<1x48x4096xf32>
    tpu.vector_store %arg7[%c0_20, %c0_21, %c0_22], %40 {strides = array<i32>} : memref<1x48x4096xf32, #tpu.memory_space<vmem>>, vector<1x48x4096xf32>,
    return
  }
  func.func @transform_0(%arg0: i32) -> (i32, i32, i32) {
    %c0_i32 = arith.constant 0 : i32
    %c0_i32_0 = arith.constant 0 : i32
    %c0_i32_1 = arith.constant 0 : i32
    return %arg0, %c0_i32, %c0_i32_0 : i32, i32, i32
  }
  func.func @transform_1(%arg0: i32) -> (i32, i32, i32) {
    %c0_i32 = arith.constant 0 : i32
    %c0_i32_0 = arith.constant 0 : i32
    %c0_i32_1 = arith.constant 0 : i32
    return %arg0, %c0_i32, %c0_i32_0 : i32, i32, i32
  }
  func.func @transform_2(%arg0: i32) -> (i32, i32) {
    %c0_i32 = arith.constant 0 : i32
    %c0_i32_0 = arith.constant 0 : i32
    %c0_i32_1 = arith.constant 0 : i32
    return %c0_i32, %c0_i32_0 : i32, i32
  }
  func.func @transform_3(%arg0: i32) -> (i32, i32) {
    %c0_i32 = arith.constant 0 : i32
    %c0_i32_0 = arith.constant 0 : i32
    %c0_i32_1 = arith.constant 0 : i32
    return %c0_i32, %c0_i32_0 : i32, i32
  }
  func.func @transform_4(%arg0: i32) -> (i32, i32) {
    %c0_i32 = arith.constant 0 : i32
    %c0_i32_0 = arith.constant 0 : i32
    %c0_i32_1 = arith.constant 0 : i32
    return %c0_i32, %c0_i32_0 : i32, i32
  }
  func.func @transform_5(%arg0: i32) -> (i32, i32) {
    %c0_i32 = arith.constant 0 : i32
    %c0_i32_0 = arith.constant 0 : i32
    %c0_i32_1 = arith.constant 0 : i32
    return %c0_i32, %c0_i32_0 : i32, i32
  }
  func.func @transform_6(%arg0: i32) -> (i32, i32, i32) {
    %c0_i32 = arith.constant 0 : i32
    %c0_i32_0 = arith.constant 0 : i32
    %c0_i32_1 = arith.constant 0 : i32
    return %arg0, %c0_i32, %c0_i32_0 : i32, i32, i32
  }
}

</mosaic_0001>

<bundles_post_ra>
// kernel: transposed_conv_layer.2
= control target key start
LH: loop header
LB: loop body
LE: loop exit
PB: predicated region body
PF: predicated region fallthrough
CT: control target
= control target key end

     0   :  { %s1582_s9 = smov 0   ;;  %s1584_s10 = smov 0   ;;  %s1935_s0 = inlined_call_operand.vmem [shape: f32[2,96,512], index: 0, kind: input, shape index: {}]   ;;  %s1936_s1 = inlined_call_operand.vmem [shape: bf16[384,96], index: 1, kind: input, shape index: {}]   ;;  %s1937_s2 = inlined_call_operand.vmem [shape: bf16[2,384,512], index: 2, kind: output, shape index: {}]  }
   0x1   :  { %s1586_s11 = smov 0  }
   0x2 LB: > { %s24_s12 = sadd.s32 1, %s1561_s10  ;;  %p1296_p0 = scmp.ge.s32.totalorder %s1565_s11, 1  ;;  %s1565_s11 = sphi %s1586_s11, %s12_s11   ;;  %s1561_s10 = sphi %s1584_s10, %s1939_s10   ;;  %s1557_s9 = sphi %s1582_s9, %s1938_s9  }
   0x3   : > { %p26_p1 = scmp.ge.s32.totalorder %s24_s12, 2  ;;  %p133_p2 = scmp.lt.s32.totalorder %s1565_s11, 3 }
   0x5   : > { %s1941_s12 = smov (%p26_p1, %s24_s12), 0  ;;  %p134_p3 = pnand %p1296_p0, %p133_p2 }
   0x6   : > { %p164_p4 = scmp.lt.s32.totalorder (!%p134_p3), %s1557_s9, 1 }
   0x7   : > { %137 = sbr.rel (%p134_p3) target bundleno = 556 (0x22c), region = 28 }
   0xc   : > { %s1943_s9 = smov (!%p164_p4, %s1557_s9), 1  ;;  %vm424_vm0 = vcmask 785408  }
   0xd   : > { %s1517_s13 = smul.u32 384, %s1943_s9 }
   0xe   : > { %s1518_s5 = smul.u32 768, %s1943_s9 }
   0xf   : > { %s1606_s16 = scalar_lea.vmem %s1935_s0, %s1517_s13 }
  0x10   : > { %v224_v0 = vld [vmem:[%s1606_s16 + $0x140] sm:$0xff]  ;;  %v225_v2 = vld [vmem:[%s1606_s16 + $0x148] sm:$0xff]  ;;  %v226_v5 = vld [vmem:[%s1606_s16 + $0x150] sm:$0xff]  ;;  %s1719_s14 = scalar_lea.vmem %s1937_s2, %s1518_s5 }
  0x11   : > { %v228_v1 = vld [vmem:[%s1606_s16 + $0x160] sm:$0xff]  ;;  %v229_v4 = vld [vmem:[%s1606_s16 + $0x168] sm:$0xff]  ;;  %v230_v6 = vld [vmem:[%s1606_s16 + $0x170] sm:$0xff] }
  0x12   : > { %v252_v3 = vpack.c.bf16 %v228_v1, %v224_v0  ;;  %v253_v7 = vpack.c.bf16 %v229_v4, %v225_v2  ;;  %v254_v8 = vpack.c.bf16 %v230_v6, %v226_v5  ;;  %v227_v9 = vld [vmem:[%s1606_s16 + $0x158] sm:$0xff]  ;;  %v216_v11 = vld [vmem:[%s1606_s16 + $0x100] sm:$0xff]  ;;  %v217_v14 = vld [vmem:[%s1606_s16 + $0x108] sm:$0xff] }
  0x13   : > { %v231_v10 = vld [vmem:[%s1606_s16 + $0x178] sm:$0xff]  ;;  %v220_v13 = vld [vmem:[%s1606_s16 + $0x120] sm:$0xff]  ;;  %v221_v15 = vld [vmem:[%s1606_s16 + $0x128] sm:$0xff] }
  0x14   : > { %499 = vmatpush.bf16.msra.mxu0 %v252_v3  ;;  %v255_v12 = vpack.c.bf16 %v231_v10, %v227_v9  ;;  %628 = vmatpush.bf16.msra.mxu1 %v253_v7  ;;  %v248_v16 = vpack.c.bf16 %v220_v13, %v216_v11  ;;  %v249_v17 = vpack.c.bf16 %v221_v15, %v217_v14  ;;  %v218_v18 = vld [vmem:[%s1606_s16 + $0x110] sm:$0xff]  ;;  %v219_v20 = vld [vmem:[%s1606_s16 + $0x118] sm:$0xff]  ;;  %v208_v23 = vld [vmem:[%s1606_s16 + $0xc0] sm:$0xff] }
  0x15   : > { %757 = vmatpush.bf16.msra.mxu2 %v254_v8  ;;  %v222_v19 = vld [vmem:[%s1606_s16 + $0x130] sm:$0xff]  ;;  %v223_v22 = vld [vmem:[%s1606_s16 + $0x138] sm:$0xff]  ;;  %v212_v24 = vld [vmem:[%s1606_s16 + $0xe0] sm:$0xff] }
  0x16   : > { %886 = vmatpush.bf16.msra.mxu3 %v255_v12  ;;  %v250_v21 = vpack.c.bf16 %v222_v19, %v218_v18  ;;  %v251_v25 = vpack.c.bf16 %v223_v22, %v219_v20  ;;  %v209_v26 = vld [vmem:[%s1606_s16 + $0xc8] sm:$0xff]  ;;  %v210_v28 = vld [vmem:[%s1606_s16 + $0xd0] sm:$0xff]  ;;  %v244_v29 = vpack.c.bf16 %v212_v24, %v208_v23  ;;  %v211_v31 = vld [vmem:[%s1606_s16 + $0xd8] sm:$0xff] }
  0x17   : > { %v213_v27 = vld [vmem:[%s1606_s16 + $0xe8] sm:$0xff]  ;;  %v214_v30 = vld [vmem:[%s1606_s16 + $0xf0] sm:$0xff]  ;;  %v215_v32 = vld [vmem:[%s1606_s16 + $0xf8] sm:$0xff] }
  0x18   : > { %500 = vmatpush.bf16.msra.mxu0 %v248_v16  ;;  %629 = vmatpush.bf16.msra.mxu1 %v249_v17  ;;  %v245_v33 = vpack.c.bf16 %v213_v27, %v209_v26  ;;  %v246_v34 = vpack.c.bf16 %v214_v30, %v210_v28  ;;  %v200_v35 = vld [vmem:[%s1606_s16 + $0x80] sm:$0xff]  ;;  %v201_v37 = vld [vmem:[%s1606_s16 + $0x88] sm:$0xff]  ;;  %v247_v38 = vpack.c.bf16 %v215_v32, %v211_v31  ;;  %v202_v40 = vld [vmem:[%s1606_s16 + $0x90] sm:$0xff] }
  0x19   : > { %758 = vmatpush.bf16.msra.mxu2 %v250_v21  ;;  %v204_v36 = vld [vmem:[%s1606_s16 + $0xa0] sm:$0xff]  ;;  %v205_v39 = vld [vmem:[%s1606_s16 + $0xa8] sm:$0xff]  ;;  %v206_v41 = vld [vmem:[%s1606_s16 + $0xb0] sm:$0xff] }
  0x1a   : > { %887 = vmatpush.bf16.msra.mxu3 %v251_v25  ;;  %v203_v42 = vld [vmem:[%s1606_s16 + $0x98] sm:$0xff]  ;;  %v240_v44 = vpack.c.bf16 %v204_v36, %v200_v35  ;;  %v241_v45 = vpack.c.bf16 %v205_v39, %v201_v37  ;;  %v242_v46 = vpack.c.bf16 %v206_v41, %v202_v40  ;;  %v192_v47 = vld [vmem:[%s1606_s16 + $0x40] sm:$0xff]  ;;  %v193_v49 = vld [vmem:[%s1606_s16 + $0x48] sm:$0xff] }
  0x1b   : > { %v207_v43 = vld [vmem:[%s1606_s16 + $0xb8] sm:$0xff]  ;;  %v196_v48 = vld [vmem:[%s1606_s16 + $0x60] sm:$0xff]  ;;  %v197_v51 = vld [vmem:[%s1606_s16 + $0x68] sm:$0xff] }
  0x1c   : > { %501 = vmatpush.bf16.msra.mxu0 %v244_v29  ;;  %630 = vmatpush.bf16.msra.mxu1 %v245_v33  ;;  %v243_v50 = vpack.c.bf16 %v207_v43, %v203_v42  ;;  %v194_v52 = vld [vmem:[%s1606_s16 + $0x50] sm:$0xff]  ;;  %v195_v54 = vld [vmem:[%s1606_s16 + $0x58] sm:$0xff]  ;;  %v236_v56 = vpack.c.bf16 %v196_v48, %v192_v47  ;;  %v237_v57 = vpack.c.bf16 %v197_v51, %v193_v49  ;;  %v184_v59 = vld [vmem:[%s1606_s16] sm:$0xff] }
  0x1d   : > { %759 = vmatpush.bf16.msra.mxu2 %v246_v34  ;;  %v198_v53 = vld [vmem:[%s1606_s16 + $0x70] sm:$0xff]  ;;  %v199_v55 = vld [vmem:[%s1606_s16 + $0x78] sm:$0xff]  ;;  %v188_v60 = vld [vmem:[%s1606_s16 + $0x20] sm:$0xff] }
  0x1e   : > { %888 = vmatpush.bf16.msra.mxu3 %v247_v38  ;;  %v238_v58 = vpack.c.bf16 %v198_v53, %v194_v52  ;;  %v185_v61 = vld [vmem:[%s1606_s16 + $0x8] sm:$0xff]  ;;  %v239_v62 = vpack.c.bf16 %v199_v55, %v195_v54  ;;  %v186_v0 = vld [vmem:[%s1606_s16 + $0x10] sm:$0xff]  ;;  %v187_v2 = vld [vmem:[%s1606_s16 + $0x18] sm:$0xff]  ;;  %v232_v4 = vpack.c.bf16 %v188_v60, %v184_v59 }
  0x1f   : > { %v189_v63 = vld [vmem:[%s1606_s16 + $0x28] sm:$0xff]  ;;  %v190_v1 = vld [vmem:[%s1606_s16 + $0x30] sm:$0xff]  ;;  %v191_v3 = vld [vmem:[%s1606_s16 + $0x38] sm:$0xff] }
  0x20   : > { %502 = vmatpush.bf16.msra.mxu0 %v240_v44  ;;  %631 = vmatpush.bf16.msra.mxu1 %v241_v45  ;;  %v233_v5 = vpack.c.bf16 %v189_v63, %v185_v61  ;;  %v234_v6 = vpack.c.bf16 %v190_v1, %v186_v0  ;;  %v235_v7 = vpack.c.bf16 %v191_v3, %v187_v2  ;;  %v1493_v8 = vld [vmem:[%s1936_s1] sm:$0xff]  ;;  %v1494_v9 = vld [vmem:[%s1936_s1 + $0x8] sm:$0xff]  ;;  %v1495_v10 = vld [vmem:[%s1936_s1 + $0x10] sm:$0xff] }
  0x21   : > { %760 = vmatpush.bf16.msra.mxu2 %v242_v46  ;;  %v1496_v11 = vld [vmem:[%s1936_s1 + $0x18] sm:$0xff]  ;;  %v1497_v12 = vld [vmem:[%s1936_s1 + $0x20] sm:$0xff]  ;;  %v1498_v13 = vld [vmem:[%s1936_s1 + $0x28] sm:$0xff] }
  0x22   : > { %889 = vmatpush.bf16.msra.mxu3 %v243_v50  ;;  %v1499_v14 = vld [vmem:[%s1936_s1 + $0x30] sm:$0xff]  ;;  %v1500_v15 = vld [vmem:[%s1936_s1 + $0x38] sm:$0xff]  ;;  %v1501_v16 = vld [vmem:[%s1936_s1 + $0x40] sm:$0xff] }
  0x23   : > { %v1502_v27 = vld [vmem:[%s1936_s1 + $0x48] sm:$0xff]  ;;  %v1503_v40 = vld [vmem:[%s1936_s1 + $0x50] sm:$0xff]  ;;  %v1504_v53 = vld [vmem:[%s1936_s1 + $0x58] sm:$0xff] }
  0x24   : > { %503 = vmatpush.bf16.msra.mxu0 %v236_v56  ;;  %632 = vmatpush.bf16.msra.mxu1 %v237_v57  ;;  %v1505_v2 = vld [vmem:[%s1936_s1 + $0x60] sm:$0xff] }
  0x25   : > { %761 = vmatpush.bf16.msra.mxu2 %v238_v58 }
  0x26   : > { %890 = vmatpush.bf16.msra.mxu3 %v239_v62 }
  0x28   : > { %504 = vmatpush.bf16.msra.mxu0 %v232_v4  ;;  %633 = vmatpush.bf16.msra.mxu1 %v233_v5 }
  0x29   : > { %762 = vmatpush.bf16.msra.mxu2 %v234_v6 }
  0x2a   : > { %891 = vmatpush.bf16.msra.mxu3 %v235_v7 }
  0x2b   : > { %1395 = vmatmul.msk.bf16.vlgmr.msra.gmra.mxu0 %vm424_vm0, %v1493_v8  ;;  %1419 = vmatmul.msk.bf16.vlgmr.msra.gmra.mxu1 %vm424_vm0, %v1493_v8 }
  0x2c   : > { %1443 = vmatmul.msk.bf16.vlgmr.msra.gmra.mxu2 %vm424_vm0, %v1493_v8 }
  0x2d   : > { %1467 = vmatmul.msk.bf16.vlgmr.msra.gmra.mxu3 %vm424_vm0, %v1493_v8 }
  0x3b   : > { %1396 = vmatmul.msk.bf16.gmra.mxu0 %vm424_vm0, %v1494_v9  ;;  %1420 = vmatmul.msk.bf16.gmra.mxu1 %vm424_vm0, %v1494_v9 }
  0x3c   : > { %1444 = vmatmul.msk.bf16.gmra.mxu2 %vm424_vm0, %v1494_v9 }
  0x3d   : > { %1468 = vmatmul.msk.bf16.gmra.mxu3 %vm424_vm0, %v1494_v9 }
  0x4b   : > { %1397 = vmatmul.msk.bf16.gmra.mxu0 %vm424_vm0, %v1495_v10  ;;  %1421 = vmatmul.msk.bf16.gmra.mxu1 %vm424_vm0, %v1495_v10 }
  0x4c   : > { %1445 = vmatmul.msk.bf16.gmra.mxu2 %vm424_vm0, %v1495_v10 }
  0x4d   : > { %1469 = vmatmul.msk.bf16.gmra.mxu3 %vm424_vm0, %v1495_v10 }
  0x5b   : > { %1398 = vmatmul.msk.bf16.gmra.mxu0 %vm424_vm0, %v1496_v11  ;;  %1422 = vmatmul.msk.bf16.gmra.mxu1 %vm424_vm0, %v1496_v11 }
  0x5c   : > { %1446 = vmatmul.msk.bf16.gmra.mxu2 %vm424_vm0, %v1496_v11 }
  0x5d   : > { %1470 = vmatmul.msk.bf16.gmra.mxu3 %vm424_vm0, %v1496_v11 }
  0x6b   : > { %1399 = vmatmul.msk.bf16.gmra.mxu0 %vm424_vm0, %v1497_v12  ;;  %1423 = vmatmul.msk.bf16.gmra.mxu1 %vm424_vm0, %v1497_v12 }
  0x6c   : > { %1447 = vmatmul.msk.bf16.gmra.mxu2 %vm424_vm0, %v1497_v12 }
  0x6d   : > { %1471 = vmatmul.msk.bf16.gmra.mxu3 %vm424_vm0, %v1497_v12 }
  0x7b   : > { %1400 = vmatmul.msk.bf16.gmra.mxu0 %vm424_vm0, %v1498_v13  ;;  %1424 = vmatmul.msk.bf16.gmra.mxu1 %vm424_vm0, %v1498_v13 }
  0x7c   : > { %1448 = vmatmul.msk.bf16.gmra.mxu2 %vm424_vm0, %v1498_v13 }
  0x7d   : > { %1472 = vmatmul.msk.bf16.gmra.mxu3 %vm424_vm0, %v1498_v13 }
  0x8b   : > { %1401 = vmatmul.msk.bf16.gmra.mxu0 %vm424_vm0, %v1499_v14  ;;  %1425 = vmatmul.msk.bf16.gmra.mxu1 %vm424_vm0, %v1499_v14 }
  0x8c   : > { %1449 = vmatmul.msk.bf16.gmra.mxu2 %vm424_vm0, %v1499_v14 }
  0x8d   : > { %1473 = vmatmul.msk.bf16.gmra.mxu3 %vm424_vm0, %v1499_v14 }
  0x9b   : > { %1402 = vmatmul.msk.bf16.gmra.mxu0 %vm424_vm0, %v1500_v15  ;;  %1426 = vmatmul.msk.bf16.gmra.mxu1 %vm424_vm0, %v1500_v15 }
  0x9c   : > { %1450 = vmatmul.msk.bf16.gmra.mxu2 %vm424_vm0, %v1500_v15 }
  0x9d   : > { %1474 = vmatmul.msk.bf16.gmra.mxu3 %vm424_vm0, %v1500_v15  ;;  %v1506_v15 = vld [vmem:[%s1936_s1 + $0x68] sm:$0xff] }
  0xa8   : > { %v506_v17 = vpop.f32.mrf.mxu0  ;;  %v635_v18 = vpop.f32.mrf.mxu1 }
  0xa9   : > { %v1013_v19 = vpack.c.bf16 %v635_v18, %v506_v17 }
  0xab   : > { %1403 = vmatmul.msk.bf16.gmra.mxu0 %vm424_vm0, %v1501_v16  ;;  %1109 = vst [vmem:[%s1719_s14] sm:$0xff] %v1013_v19  ;;  %1427 = vmatmul.msk.bf16.gmra.mxu1 %vm424_vm0, %v1501_v16 }
  0xac   : > { %1451 = vmatmul.msk.bf16.gmra.mxu2 %vm424_vm0, %v1501_v16 }
  0xad   : > { %1475 = vmatmul.msk.bf16.gmra.mxu3 %vm424_vm0, %v1501_v16 }
  0xaf   : > { %v764_v20 = vpop.f32.mrf.mxu2 }
  0xb0   : > { %v893_v21 = vpop.f32.mrf.mxu3  ;;  %v508_v22 = vpop.f32.mrf.mxu0 }
  0xb1   : > { %v1014_v23 = vpack.c.bf16 %v893_v21, %v764_v20  ;;  %v637_v24 = vpop.f32.mrf.mxu1 }
  0xb2   : > { %v1015_v25 = vpack.c.bf16 %v637_v24, %v508_v22 }
  0xb3   : > { %1110 = vst [vmem:[%s1719_s14 + $0x8] sm:$0xff] %v1014_v23 }
  0xb4   : > { %1111 = vst [vmem:[%s1719_s14 + $0x10] sm:$0xff] %v1015_v25 }
  0xb7   : > { %v766_v26 = vpop.f32.mrf.mxu2 }
  0xb8   : > { %v895_v28 = vpop.f32.mrf.mxu3  ;;  %v511_v29 = vpop.f32.mrf.mxu0 }
  0xb9   : > { %v1016_v30 = vpack.c.bf16 %v895_v28, %v766_v26  ;;  %v640_v31 = vpop.f32.mrf.mxu1  ;;  %v1507_v28 = vld [vmem:[%s1936_s1 + $0x70] sm:$0xff] }
  0xba   : > { %v1017_v32 = vpack.c.bf16 %v640_v31, %v511_v29 }
  0xbb   : > { %1112 = vst [vmem:[%s1719_s14 + $0x18] sm:$0xff] %v1016_v30  ;;  %1404 = vmatmul.msk.bf16.gmra.mxu0 %vm424_vm0, %v1502_v27  ;;  %1428 = vmatmul.msk.bf16.gmra.mxu1 %vm424_vm0, %v1502_v27 }
  0xbc   : > { %1113 = vst [vmem:[%s1719_s14 + $0x20] sm:$0xff] %v1017_v32  ;;  %1452 = vmatmul.msk.bf16.gmra.mxu2 %vm424_vm0, %v1502_v27 }
  0xbd   : > { %1476 = vmatmul.msk.bf16.gmra.mxu3 %vm424_vm0, %v1502_v27 }
  0xbf   : > { %v769_v33 = vpop.f32.mrf.mxu2 }
  0xc0   : > { %v898_v34 = vpop.f32.mrf.mxu3  ;;  %v513_v35 = vpop.f32.mrf.mxu0 }
  0xc1   : > { %v1018_v36 = vpack.c.bf16 %v898_v34, %v769_v33  ;;  %v642_v37 = vpop.f32.mrf.mxu1 }
  0xc2   : > { %v1019_v38 = vpack.c.bf16 %v642_v37, %v513_v35 }
  0xc3   : > { %1114 = vst [vmem:[%s1719_s14 + $0x28] sm:$0xff] %v1018_v36 }
  0xc4   : > { %1115 = vst [vmem:[%s1719_s14 + $0x30] sm:$0xff] %v1019_v38 }
  0xc7   : > { %v771_v39 = vpop.f32.mrf.mxu2 }
  0xc8   : > { %v900_v41 = vpop.f32.mrf.mxu3  ;;  %v516_v42 = vpop.f32.mrf.mxu0 }
  0xc9   : > { %v1020_v43 = vpack.c.bf16 %v900_v41, %v771_v39  ;;  %v645_v44 = vpop.f32.mrf.mxu1  ;;  %v1508_v41 = vld [vmem:[%s1936_s1 + $0x78] sm:$0xff] }
  0xca   : > { %v1021_v45 = vpack.c.bf16 %v645_v44, %v516_v42 }
  0xcb   : > { %1116 = vst [vmem:[%s1719_s14 + $0x38] sm:$0xff] %v1020_v43  ;;  %1405 = vmatmul.msk.bf16.gmra.mxu0 %vm424_vm0, %v1503_v40  ;;  %1429 = vmatmul.msk.bf16.gmra.mxu1 %vm424_vm0, %v1503_v40 }
  0xcc   : > { %1117 = vst [vmem:[%s1719_s14 + $0x40] sm:$0xff] %v1021_v45  ;;  %1453 = vmatmul.msk.bf16.gmra.mxu2 %vm424_vm0, %v1503_v40 }
  0xcd   : > { %1477 = vmatmul.msk.bf16.gmra.mxu3 %vm424_vm0, %v1503_v40 }
  0xcf   : > { %v774_v46 = vpop.f32.mrf.mxu2 }
  0xd0   : > { %v903_v47 = vpop.f32.mrf.mxu3  ;;  %v518_v48 = vpop.f32.mrf.mxu0 }
  0xd1   : > { %v1022_v49 = vpack.c.bf16 %v903_v47, %v774_v46  ;;  %v647_v50 = vpop.f32.mrf.mxu1 }
  0xd2   : > { %v1023_v51 = vpack.c.bf16 %v647_v50, %v518_v48 }
  0xd3   : > { %1118 = vst [vmem:[%s1719_s14 + $0x48] sm:$0xff] %v1022_v49 }
  0xd4   : > { %1119 = vst [vmem:[%s1719_s14 + $0x50] sm:$0xff] %v1023_v51 }
  0xd7   : > { %v776_v52 = vpop.f32.mrf.mxu2 }
  0xd8   : > { %v905_v54 = vpop.f32.mrf.mxu3  ;;  %v521_v55 = vpop.f32.mrf.mxu0 }
  0xd9   : > { %v1024_v56 = vpack.c.bf16 %v905_v54, %v776_v52  ;;  %v650_v57 = vpop.f32.mrf.mxu1  ;;  %v1509_v54 = vld [vmem:[%s1936_s1 + $0x80] sm:$0xff] }
  0xda   : > { %v1025_v58 = vpack.c.bf16 %v650_v57, %v521_v55 }
  0xdb   : > { %1120 = vst [vmem:[%s1719_s14 + $0x58] sm:$0xff] %v1024_v56  ;;  %1406 = vmatmul.msk.bf16.gmra.mxu0 %vm424_vm0, %v1504_v53  ;;  %1430 = vmatmul.msk.bf16.gmra.mxu1 %vm424_vm0, %v1504_v53 }
  0xdc   : > { %1121 = vst [vmem:[%s1719_s14 + $0x60] sm:$0xff] %v1025_v58  ;;  %1454 = vmatmul.msk.bf16.gmra.mxu2 %vm424_vm0, %v1504_v53 }
  0xdd   : > { %1478 = vmatmul.msk.bf16.gmra.mxu3 %vm424_vm0, %v1504_v53 }
  0xdf   : > { %v779_v59 = vpop.f32.mrf.mxu2 }
  0xe0   : > { %v908_v60 = vpop.f32.mrf.mxu3  ;;  %v523_v61 = vpop.f32.mrf.mxu0 }
  0xe1   : > { %v1026_v62 = vpack.c.bf16 %v908_v60, %v779_v59  ;;  %v652_v63 = vpop.f32.mrf.mxu1 }
  0xe2   : > { %v1027_v0 = vpack.c.bf16 %v652_v63, %v523_v61 }
  0xe3   : > { %1122 = vst [vmem:[%s1719_s14 + $0x68] sm:$0xff] %v1026_v62 }
  0xe4   : > { %1123 = vst [vmem:[%s1719_s14 + $0x70] sm:$0xff] %v1027_v0 }
  0xe7   : > { %v781_v1 = vpop.f32.mrf.mxu2 }
  0xe8   : > { %v910_v3 = vpop.f32.mrf.mxu3  ;;  %v526_v4 = vpop.f32.mrf.mxu0 }
  0xe9   : > { %v1028_v5 = vpack.c.bf16 %v910_v3, %v781_v1  ;;  %v655_v6 = vpop.f32.mrf.mxu1  ;;  %v1510_v3 = vld [vmem:[%s1936_s1 + $0x88] sm:$0xff] }
  0xea   : > { %v1029_v7 = vpack.c.bf16 %v655_v6, %v526_v4 }
  0xeb   : > { %1124 = vst [vmem:[%s1719_s14 + $0x78] sm:$0xff] %v1028_v5  ;;  %1407 = vmatmul.msk.bf16.gmra.mxu0 %vm424_vm0, %v1505_v2  ;;  %1431 = vmatmul.msk.bf16.gmra.mxu1 %vm424_vm0, %v1505_v2 }
  0xec   : > { %1125 = vst [vmem:[%s1719_s14 + $0x80] sm:$0xff] %v1029_v7  ;;  %1455 = vmatmul.msk.bf16.gmra.mxu2 %vm424_vm0, %v1505_v2 }
  0xed   : > { %1479 = vmatmul.msk.bf16.gmra.mxu3 %vm424_vm0, %v1505_v2 }
  0xef   : > { %v784_v8 = vpop.f32.mrf.mxu2 }
  0xf0   : > { %v913_v9 = vpop.f32.mrf.mxu3  ;;  %v528_v10 = vpop.f32.mrf.mxu0 }
  0xf1   : > { %v1030_v11 = vpack.c.bf16 %v913_v9, %v784_v8  ;;  %v657_v12 = vpop.f32.mrf.mxu1 }
  0xf2   : > { %v1031_v13 = vpack.c.bf16 %v657_v12, %v528_v10 }
  0xf3   : > { %1126 = vst [vmem:[%s1719_s14 + $0x88] sm:$0xff] %v1030_v11 }
  0xf4   : > { %1127 = vst [vmem:[%s1719_s14 + $0x90] sm:$0xff] %v1031_v13 }
  0xf7   : > { %v786_v14 = vpop.f32.mrf.mxu2 }
  0xf8   : > { %v915_v16 = vpop.f32.mrf.mxu3  ;;  %v531_v17 = vpop.f32.mrf.mxu0 }
  0xf9   : > { %v1032_v18 = vpack.c.bf16 %v915_v16, %v786_v14  ;;  %v660_v19 = vpop.f32.mrf.mxu1  ;;  %v1511_v16 = vld [vmem:[%s1936_s1 + $0x90] sm:$0xff] }
  0xfa   : > { %v1033_v20 = vpack.c.bf16 %v660_v19, %v531_v17 }
  0xfb   : > { %1128 = vst [vmem:[%s1719_s14 + $0x98] sm:$0xff] %v1032_v18  ;;  %1408 = vmatmul.msk.bf16.gmra.mxu0 %vm424_vm0, %v1506_v15  ;;  %1432 = vmatmul.msk.bf16.gmra.mxu1 %vm424_vm0, %v1506_v15 }
  0xfc   : > { %1129 = vst [vmem:[%s1719_s14 + $0xa0] sm:$0xff] %v1033_v20  ;;  %1456 = vmatmul.msk.bf16.gmra.mxu2 %vm424_vm0, %v1506_v15 }
  0xfd   : > { %1480 = vmatmul.msk.bf16.gmra.mxu3 %vm424_vm0, %v1506_v15 }
  0xff   : > { %v789_v21 = vpop.f32.mrf.mxu2 }
 0x100   : > { %v918_v22 = vpop.f32.mrf.mxu3  ;;  %v533_v23 = vpop.f32.mrf.mxu0 }
 0x101   : > { %v1034_v24 = vpack.c.bf16 %v918_v22, %v789_v21  ;;  %v662_v25 = vpop.f32.mrf.mxu1 }
 0x102   : > { %v1035_v26 = vpack.c.bf16 %v662_v25, %v533_v23 }
 0x103   : > { %1130 = vst [vmem:[%s1719_s14 + $0xa8] sm:$0xff] %v1034_v24 }
 0x104   : > { %1131 = vst [vmem:[%s1719_s14 + $0xb0] sm:$0xff] %v1035_v26 }
 0x107   : > { %v791_v27 = vpop.f32.mrf.mxu2 }
 0x108   : > { %v920_v29 = vpop.f32.mrf.mxu3  ;;  %v536_v30 = vpop.f32.mrf.mxu0 }
 0x109   : > { %v1036_v31 = vpack.c.bf16 %v920_v29, %v791_v27  ;;  %v665_v32 = vpop.f32.mrf.mxu1  ;;  %v1512_v29 = vld [vmem:[%s1936_s1 + $0x98] sm:$0xff] }
 0x10a   : > { %v1037_v33 = vpack.c.bf16 %v665_v32, %v536_v30 }
 0x10b   : > { %1132 = vst [vmem:[%s1719_s14 + $0xb8] sm:$0xff] %v1036_v31  ;;  %1409 = vmatmul.msk.bf16.gmra.mxu0 %vm424_vm0, %v1507_v28  ;;  %1433 = vmatmul.msk.bf16.gmra.mxu1 %vm424_vm0, %v1507_v28 }
 0x10c   : > { %1133 = vst [vmem:[%s1719_s14 + $0xc0] sm:$0xff] %v1037_v33  ;;  %1457 = vmatmul.msk.bf16.gmra.mxu2 %vm424_vm0, %v1507_v28 }
 0x10d   : > { %1481 = vmatmul.msk.bf16.gmra.mxu3 %vm424_vm0, %v1507_v28 }
 0x10f   : > { %v794_v34 = vpop.f32.mrf.mxu2 }
 0x110   : > { %v923_v35 = vpop.f32.mrf.mxu3  ;;  %v538_v36 = vpop.f32.mrf.mxu0 }
 0x111   : > { %v1038_v37 = vpack.c.bf16 %v923_v35, %v794_v34  ;;  %v667_v38 = vpop.f32.mrf.mxu1 }
 0x112   : > { %v1039_v39 = vpack.c.bf16 %v667_v38, %v538_v36 }
 0x113   : > { %1134 = vst [vmem:[%s1719_s14 + $0xc8] sm:$0xff] %v1038_v37 }
 0x114   : > { %1135 = vst [vmem:[%s1719_s14 + $0xd0] sm:$0xff] %v1039_v39 }
 0x117   : > { %v796_v40 = vpop.f32.mrf.mxu2 }
 0x118   : > { %v925_v42 = vpop.f32.mrf.mxu3  ;;  %v541_v43 = vpop.f32.mrf.mxu0 }
 0x119   : > { %v1040_v44 = vpack.c.bf16 %v925_v42, %v796_v40  ;;  %v670_v45 = vpop.f32.mrf.mxu1  ;;  %v1513_v42 = vld [vmem:[%s1936_s1 + $0xa0] sm:$0xff] }
 0x11a   : > { %v1041_v46 = vpack.c.bf16 %v670_v45, %v541_v43 }
 0x11b   : > { %1136 = vst [vmem:[%s1719_s14 + $0xd8] sm:$0xff] %v1040_v44  ;;  %1410 = vmatmul.msk.bf16.gmra.mxu0 %vm424_vm0, %v1508_v41  ;;  %1434 = vmatmul.msk.bf16.gmra.mxu1 %vm424_vm0, %v1508_v41 }
 0x11c   : > { %1137 = vst [vmem:[%s1719_s14 + $0xe0] sm:$0xff] %v1041_v46  ;;  %1458 = vmatmul.msk.bf16.gmra.mxu2 %vm424_vm0, %v1508_v41 }
 0x11d   : > { %1482 = vmatmul.msk.bf16.gmra.mxu3 %vm424_vm0, %v1508_v41 }
 0x11f   : > { %v799_v47 = vpop.f32.mrf.mxu2 }
 0x120   : > { %v928_v48 = vpop.f32.mrf.mxu3  ;;  %v543_v49 = vpop.f32.mrf.mxu0 }
 0x121   : > { %v1042_v50 = vpack.c.bf16 %v928_v48, %v799_v47  ;;  %v672_v51 = vpop.f32.mrf.mxu1 }
 0x122   : > { %v1043_v52 = vpack.c.bf16 %v672_v51, %v543_v49 }
 0x123   : > { %1138 = vst [vmem:[%s1719_s14 + $0xe8] sm:$0xff] %v1042_v50 }
 0x124   : > { %1139 = vst [vmem:[%s1719_s14 + $0xf0] sm:$0xff] %v1043_v52 }
 0x127   : > { %v801_v53 = vpop.f32.mrf.mxu2 }
 0x128   : > { %v930_v55 = vpop.f32.mrf.mxu3  ;;  %v546_v56 = vpop.f32.mrf.mxu0 }
 0x129   : > { %v1044_v57 = vpack.c.bf16 %v930_v55, %v801_v53  ;;  %v675_v58 = vpop.f32.mrf.mxu1  ;;  %v1514_v55 = vld [vmem:[%s1936_s1 + $0xa8] sm:$0xff] }
 0x12a   : > { %v1045_v59 = vpack.c.bf16 %v675_v58, %v546_v56 }
 0x12b   : > { %1140 = vst [vmem:[%s1719_s14 + $0xf8] sm:$0xff] %v1044_v57  ;;  %1411 = vmatmul.msk.bf16.gmra.mxu0 %vm424_vm0, %v1509_v54  ;;  %1435 = vmatmul.msk.bf16.gmra.mxu1 %vm424_vm0, %v1509_v54 }
 0x12c   : > { %1141 = vst [vmem:[%s1719_s14 + $0x100] sm:$0xff] %v1045_v59  ;;  %1459 = vmatmul.msk.bf16.gmra.mxu2 %vm424_vm0, %v1509_v54 }
 0x12d   : > { %1483 = vmatmul.msk.bf16.gmra.mxu3 %vm424_vm0, %v1509_v54 }
 0x12f   : > { %v804_v60 = vpop.f32.mrf.mxu2 }
 0x130   : > { %v933_v61 = vpop.f32.mrf.mxu3  ;;  %v548_v62 = vpop.f32.mrf.mxu0 }
 0x131   : > { %v1046_v63 = vpack.c.bf16 %v933_v61, %v804_v60  ;;  %v677_v0 = vpop.f32.mrf.mxu1 }
 0x132   : > { %v1047_v1 = vpack.c.bf16 %v677_v0, %v548_v62 }
 0x133   : > { %1142 = vst [vmem:[%s1719_s14 + $0x108] sm:$0xff] %v1046_v63 }
 0x134   : > { %1143 = vst [vmem:[%s1719_s14 + $0x110] sm:$0xff] %v1047_v1 }
 0x137   : > { %v806_v2 = vpop.f32.mrf.mxu2 }
 0x138   : > { %v935_v4 = vpop.f32.mrf.mxu3  ;;  %v551_v5 = vpop.f32.mrf.mxu0 }
 0x139   : > { %v1048_v6 = vpack.c.bf16 %v935_v4, %v806_v2  ;;  %v680_v7 = vpop.f32.mrf.mxu1  ;;  %v1515_v4 = vld [vmem:[%s1936_s1 + $0xb0] sm:$0xff] }
 0x13a   : > { %v1049_v8 = vpack.c.bf16 %v680_v7, %v551_v5 }
 0x13b   : > { %1144 = vst [vmem:[%s1719_s14 + $0x118] sm:$0xff] %v1048_v6  ;;  %1412 = vmatmul.msk.bf16.gmra.mxu0 %vm424_vm0, %v1510_v3  ;;  %1436 = vmatmul.msk.bf16.gmra.mxu1 %vm424_vm0, %v1510_v3 }
 0x13c   : > { %1145 = vst [vmem:[%s1719_s14 + $0x120] sm:$0xff] %v1049_v8  ;;  %1460 = vmatmul.msk.bf16.gmra.mxu2 %vm424_vm0, %v1510_v3 }
 0x13d   : > { %1484 = vmatmul.msk.bf16.gmra.mxu3 %vm424_vm0, %v1510_v3 }
 0x13f   : > { %v809_v9 = vpop.f32.mrf.mxu2 }
 0x140   : > { %v938_v10 = vpop.f32.mrf.mxu3  ;;  %v553_v11 = vpop.f32.mrf.mxu0 }
 0x141   : > { %v1050_v12 = vpack.c.bf16 %v938_v10, %v809_v9  ;;  %v682_v13 = vpop.f32.mrf.mxu1 }
 0x142   : > { %v1051_v14 = vpack.c.bf16 %v682_v13, %v553_v11 }
 0x143   : > { %1146 = vst [vmem:[%s1719_s14 + $0x128] sm:$0xff] %v1050_v12 }
 0x144   : > { %1147 = vst [vmem:[%s1719_s14 + $0x130] sm:$0xff] %v1051_v14 }
 0x147   : > { %v811_v15 = vpop.f32.mrf.mxu2 }
 0x148   : > { %v940_v17 = vpop.f32.mrf.mxu3  ;;  %v556_v18 = vpop.f32.mrf.mxu0 }
 0x149   : > { %v1052_v19 = vpack.c.bf16 %v940_v17, %v811_v15  ;;  %v685_v20 = vpop.f32.mrf.mxu1  ;;  %v1516_v17 = vld [vmem:[%s1936_s1 + $0xb8] sm:$0xff] }
 0x14a   : > { %v1053_v21 = vpack.c.bf16 %v685_v20, %v556_v18 }
 0x14b   : > { %1148 = vst [vmem:[%s1719_s14 + $0x138] sm:$0xff] %v1052_v19  ;;  %1413 = vmatmul.msk.bf16.gmra.mxu0 %vm424_vm0, %v1511_v16  ;;  %1437 = vmatmul.msk.bf16.gmra.mxu1 %vm424_vm0, %v1511_v16 }
 0x14c   : > { %1149 = vst [vmem:[%s1719_s14 + $0x140] sm:$0xff] %v1053_v21  ;;  %1461 = vmatmul.msk.bf16.gmra.mxu2 %vm424_vm0, %v1511_v16 }
 0x14d   : > { %1485 = vmatmul.msk.bf16.gmra.mxu3 %vm424_vm0, %v1511_v16 }
 0x14f   : > { %v814_v22 = vpop.f32.mrf.mxu2 }
 0x150   : > { %v943_v23 = vpop.f32.mrf.mxu3  ;;  %v558_v24 = vpop.f32.mrf.mxu0 }
 0x151   : > { %v1054_v25 = vpack.c.bf16 %v943_v23, %v814_v22  ;;  %v687_v26 = vpop.f32.mrf.mxu1 }
 0x152   : > { %v1055_v27 = vpack.c.bf16 %v687_v26, %v558_v24 }
 0x153   : > { %1150 = vst [vmem:[%s1719_s14 + $0x148] sm:$0xff] %v1054_v25 }
 0x154   : > { %1151 = vst [vmem:[%s1719_s14 + $0x150] sm:$0xff] %v1055_v27 }
 0x157   : > { %v816_v28 = vpop.f32.mrf.mxu2 }
 0x158   : > { %v945_v30 = vpop.f32.mrf.mxu3  ;;  %v561_v31 = vpop.f32.mrf.mxu0 }
 0x159   : > { %v1056_v32 = vpack.c.bf16 %v945_v30, %v816_v28  ;;  %v690_v33 = vpop.f32.mrf.mxu1 }
 0x15a   : > { %v1057_v34 = vpack.c.bf16 %v690_v33, %v561_v31 }
 0x15b   : > { %1152 = vst [vmem:[%s1719_s14 + $0x158] sm:$0xff] %v1056_v32  ;;  %1414 = vmatmul.msk.bf16.gmra.mxu0 %vm424_vm0, %v1512_v29  ;;  %1438 = vmatmul.msk.bf16.gmra.mxu1 %vm424_vm0, %v1512_v29 }
 0x15c   : > { %1153 = vst [vmem:[%s1719_s14 + $0x160] sm:$0xff] %v1057_v34  ;;  %1462 = vmatmul.msk.bf16.gmra.mxu2 %vm424_vm0, %v1512_v29 }
 0x15d   : > { %1486 = vmatmul.msk.bf16.gmra.mxu3 %vm424_vm0, %v1512_v29 }
 0x15f   : > { %v819_v35 = vpop.f32.mrf.mxu2 }
 0x160   : > { %v948_v36 = vpop.f32.mrf.mxu3  ;;  %v563_v37 = vpop.f32.mrf.mxu0 }
 0x161   : > { %v1058_v38 = vpack.c.bf16 %v948_v36, %v819_v35  ;;  %v692_v39 = vpop.f32.mrf.mxu1 }
 0x162   : > { %v1059_v40 = vpack.c.bf16 %v692_v39, %v563_v37 }
 0x163   : > { %1154 = vst [vmem:[%s1719_s14 + $0x168] sm:$0xff] %v1058_v38 }
 0x164   : > { %1155 = vst [vmem:[%s1719_s14 + $0x170] sm:$0xff] %v1059_v40 }
 0x167   : > { %v821_v41 = vpop.f32.mrf.mxu2 }
 0x168   : > { %v950_v43 = vpop.f32.mrf.mxu3  ;;  %v566_v44 = vpop.f32.mrf.mxu0 }
 0x169   : > { %v1060_v45 = vpack.c.bf16 %v950_v43, %v821_v41  ;;  %v695_v46 = vpop.f32.mrf.mxu1 }
 0x16a   : > { %v1061_v47 = vpack.c.bf16 %v695_v46, %v566_v44 }
 0x16b   : > { %1156 = vst [vmem:[%s1719_s14 + $0x178] sm:$0xff] %v1060_v45  ;;  %1415 = vmatmul.msk.bf16.gmra.mxu0 %vm424_vm0, %v1513_v42  ;;  %1439 = vmatmul.msk.bf16.gmra.mxu1 %vm424_vm0, %v1513_v42 }
 0x16c   : > { %1157 = vst [vmem:[%s1719_s14 + $0x180] sm:$0xff] %v1061_v47  ;;  %1463 = vmatmul.msk.bf16.gmra.mxu2 %vm424_vm0, %v1513_v42 }
 0x16d   : > { %1487 = vmatmul.msk.bf16.gmra.mxu3 %vm424_vm0, %v1513_v42 }
 0x16f   : > { %v824_v48 = vpop.f32.mrf.mxu2 }
 0x170   : > { %v953_v49 = vpop.f32.mrf.mxu3  ;;  %v568_v50 = vpop.f32.mrf.mxu0 }
 0x171   : > { %v1062_v51 = vpack.c.bf16 %v953_v49, %v824_v48  ;;  %v697_v52 = vpop.f32.mrf.mxu1 }
 0x172   : > { %v1063_v53 = vpack.c.bf16 %v697_v52, %v568_v50 }
 0x173   : > { %1158 = vst [vmem:[%s1719_s14 + $0x188] sm:$0xff] %v1062_v51 }
 0x174   : > { %1159 = vst [vmem:[%s1719_s14 + $0x190] sm:$0xff] %v1063_v53 }
 0x177   : > { %v826_v54 = vpop.f32.mrf.mxu2 }
 0x178   : > { %v955_v56 = vpop.f32.mrf.mxu3  ;;  %v571_v57 = vpop.f32.mrf.mxu0 }
 0x179   : > { %v1064_v58 = vpack.c.bf16 %v955_v56, %v826_v54  ;;  %v700_v59 = vpop.f32.mrf.mxu1 }
 0x17a   : > { %v1065_v60 = vpack.c.bf16 %v700_v59, %v571_v57 }
 0x17b   : > { %1160 = vst [vmem:[%s1719_s14 + $0x198] sm:$0xff] %v1064_v58  ;;  %1416 = vmatmul.msk.bf16.gmra.mxu0 %vm424_vm0, %v1514_v55  ;;  %1440 = vmatmul.msk.bf16.gmra.mxu1 %vm424_vm0, %v1514_v55 }
 0x17c   : > { %1161 = vst [vmem:[%s1719_s14 + $0x1a0] sm:$0xff] %v1065_v60  ;;  %1464 = vmatmul.msk.bf16.gmra.mxu2 %vm424_vm0, %v1514_v55 }
 0x17d   : > { %1488 = vmatmul.msk.bf16.gmra.mxu3 %vm424_vm0, %v1514_v55 }
 0x17f   : > { %v829_v61 = vpop.f32.mrf.mxu2 }
 0x180   : > { %v958_v62 = vpop.f32.mrf.mxu3  ;;  %v573_v63 = vpop.f32.mrf.mxu0 }
 0x181   : > { %v1066_v0 = vpack.c.bf16 %v958_v62, %v829_v61  ;;  %v702_v1 = vpop.f32.mrf.mxu1 }
 0x182   : > { %v1067_v2 = vpack.c.bf16 %v702_v1, %v573_v63 }
 0x183   : > { %1162 = vst [vmem:[%s1719_s14 + $0x1a8] sm:$0xff] %v1066_v0 }
 0x184   : > { %1163 = vst [vmem:[%s1719_s14 + $0x1b0] sm:$0xff] %v1067_v2 }
 0x187   : > { %v831_v3 = vpop.f32.mrf.mxu2 }
 0x188   : > { %v960_v5 = vpop.f32.mrf.mxu3  ;;  %v576_v6 = vpop.f32.mrf.mxu0 }
 0x189   : > { %v1068_v7 = vpack.c.bf16 %v960_v5, %v831_v3  ;;  %v705_v8 = vpop.f32.mrf.mxu1 }
 0x18a   : > { %v1069_v9 = vpack.c.bf16 %v705_v8, %v576_v6 }
 0x18b   : > { %1164 = vst [vmem:[%s1719_s14 + $0x1b8] sm:$0xff] %v1068_v7  ;;  %1417 = vmatmul.msk.bf16.gmra.mxu0 %vm424_vm0, %v1515_v4  ;;  %1441 = vmatmul.msk.bf16.gmra.mxu1 %vm424_vm0, %v1515_v4 }
 0x18c   : > { %1165 = vst [vmem:[%s1719_s14 + $0x1c0] sm:$0xff] %v1069_v9  ;;  %1465 = vmatmul.msk.bf16.gmra.mxu2 %vm424_vm0, %v1515_v4 }
 0x18d   : > { %1489 = vmatmul.msk.bf16.gmra.mxu3 %vm424_vm0, %v1515_v4 }
 0x18f   : > { %v834_v10 = vpop.f32.mrf.mxu2 }
 0x190   : > { %v963_v11 = vpop.f32.mrf.mxu3  ;;  %v578_v12 = vpop.f32.mrf.mxu0 }
 0x191   : > { %v1070_v13 = vpack.c.bf16 %v963_v11, %v834_v10  ;;  %v707_v14 = vpop.f32.mrf.mxu1 }
 0x192   : > { %v1071_v15 = vpack.c.bf16 %v707_v14, %v578_v12 }
 0x193   : > { %1166 = vst [vmem:[%s1719_s14 + $0x1c8] sm:$0xff] %v1070_v13 }
 0x194   : > { %1167 = vst [vmem:[%s1719_s14 + $0x1d0] sm:$0xff] %v1071_v15 }
 0x197   : > { %v836_v16 = vpop.f32.mrf.mxu2 }
 0x198   : > { %v965_v18 = vpop.f32.mrf.mxu3  ;;  %v581_v19 = vpop.f32.mrf.mxu0 }
 0x199   : > { %v1072_v20 = vpack.c.bf16 %v965_v18, %v836_v16  ;;  %v710_v21 = vpop.f32.mrf.mxu1 }
 0x19a   : > { %v1073_v22 = vpack.c.bf16 %v710_v21, %v581_v19 }
 0x19b   : > { %1168 = vst [vmem:[%s1719_s14 + $0x1d8] sm:$0xff] %v1072_v20  ;;  %1418 = vmatmul.msk.bf16.gmra.mxu0 %vm424_vm0, %v1516_v17  ;;  %1442 = vmatmul.msk.bf16.gmra.mxu1 %vm424_vm0, %v1516_v17 }
 0x19c   : > { %1169 = vst [vmem:[%s1719_s14 + $0x1e0] sm:$0xff] %v1073_v22  ;;  %1466 = vmatmul.msk.bf16.gmra.mxu2 %vm424_vm0, %v1516_v17 }
 0x19d   : > { %1490 = vmatmul.msk.bf16.gmra.mxu3 %vm424_vm0, %v1516_v17 }
 0x19f   : > { %v839_v23 = vpop.f32.mrf.mxu2 }
 0x1a0   : > { %v968_v24 = vpop.f32.mrf.mxu3  ;;  %v583_v25 = vpop.f32.mrf.mxu0 }
 0x1a1   : > { %v1074_v26 = vpack.c.bf16 %v968_v24, %v839_v23  ;;  %v712_v27 = vpop.f32.mrf.mxu1 }
 0x1a2   : > { %v1075_v28 = vpack.c.bf16 %v712_v27, %v583_v25 }
 0x1a3   : > { %1170 = vst [vmem:[%s1719_s14 + $0x1e8] sm:$0xff] %v1074_v26 }
 0x1a4   : > { %1171 = vst [vmem:[%s1719_s14 + $0x1f0] sm:$0xff] %v1075_v28 }
 0x1a7   : > { %v841_v29 = vpop.f32.mrf.mxu2 }
 0x1a8   : > { %v970_v30 = vpop.f32.mrf.mxu3  ;;  %v586_v31 = vpop.f32.mrf.mxu0 }
 0x1a9   : > { %v1076_v32 = vpack.c.bf16 %v970_v30, %v841_v29  ;;  %v715_v33 = vpop.f32.mrf.mxu1 }
 0x1aa   : > { %v1077_v34 = vpack.c.bf16 %v715_v33, %v586_v31 }
 0x1ab   : > { %1172 = vst [vmem:[%s1719_s14 + $0x1f8] sm:$0xff] %v1076_v32 }
 0x1ac   : > { %1173 = vst [vmem:[%s1719_s14 + $0x200] sm:$0xff] %v1077_v34 }
 0x1af   : > { %v844_v35 = vpop.f32.mrf.mxu2 }
 0x1b0   : > { %v973_v36 = vpop.f32.mrf.mxu3  ;;  %v588_v37 = vpop.f32.mrf.mxu0 }
 0x1b1   : > { %v1078_v38 = vpack.c.bf16 %v973_v36, %v844_v35  ;;  %v717_v39 = vpop.f32.mrf.mxu1 }
 0x1b2   : > { %v1079_v40 = vpack.c.bf16 %v717_v39, %v588_v37 }
 0x1b3   : > { %1174 = vst [vmem:[%s1719_s14 + $0x208] sm:$0xff] %v1078_v38 }
 0x1b4   : > { %1175 = vst [vmem:[%s1719_s14 + $0x210] sm:$0xff] %v1079_v40 }
 0x1b7   : > { %v846_v41 = vpop.f32.mrf.mxu2 }
 0x1b8   : > { %v975_v42 = vpop.f32.mrf.mxu3  ;;  %v591_v43 = vpop.f32.mrf.mxu0 }
 0x1b9   : > { %v1080_v44 = vpack.c.bf16 %v975_v42, %v846_v41  ;;  %v720_v45 = vpop.f32.mrf.mxu1 }
 0x1ba   : > { %v1081_v46 = vpack.c.bf16 %v720_v45, %v591_v43 }
 0x1bb   : > { %1176 = vst [vmem:[%s1719_s14 + $0x218] sm:$0xff] %v1080_v44 }
 0x1bc   : > { %1177 = vst [vmem:[%s1719_s14 + $0x220] sm:$0xff] %v1081_v46 }
 0x1bf   : > { %v849_v47 = vpop.f32.mrf.mxu2 }
 0x1c0   : > { %v978_v48 = vpop.f32.mrf.mxu3  ;;  %v593_v49 = vpop.f32.mrf.mxu0 }
 0x1c1   : > { %v1082_v50 = vpack.c.bf16 %v978_v48, %v849_v47  ;;  %v722_v51 = vpop.f32.mrf.mxu1 }
 0x1c2   : > { %v1083_v52 = vpack.c.bf16 %v722_v51, %v593_v49 }
 0x1c3   : > { %1178 = vst [vmem:[%s1719_s14 + $0x228] sm:$0xff] %v1082_v50 }
 0x1c4   : > { %1179 = vst [vmem:[%s1719_s14 + $0x230] sm:$0xff] %v1083_v52 }
 0x1c7   : > { %v851_v53 = vpop.f32.mrf.mxu2 }
 0x1c8   : > { %v980_v54 = vpop.f32.mrf.mxu3  ;;  %v596_v55 = vpop.f32.mrf.mxu0 }
 0x1c9   : > { %v1084_v56 = vpack.c.bf16 %v980_v54, %v851_v53  ;;  %v725_v57 = vpop.f32.mrf.mxu1 }
 0x1ca   : > { %v1085_v58 = vpack.c.bf16 %v725_v57, %v596_v55 }
 0x1cb   : > { %1180 = vst [vmem:[%s1719_s14 + $0x238] sm:$0xff] %v1084_v56 }
 0x1cc   : > { %1181 = vst [vmem:[%s1719_s14 + $0x240] sm:$0xff] %v1085_v58 }
 0x1cf   : > { %v854_v59 = vpop.f32.mrf.mxu2 }
 0x1d0   : > { %v983_v60 = vpop.f32.mrf.mxu3  ;;  %v598_v61 = vpop.f32.mrf.mxu0 }
 0x1d1   : > { %v1086_v62 = vpack.c.bf16 %v983_v60, %v854_v59  ;;  %v727_v63 = vpop.f32.mrf.mxu1 }
 0x1d2   : > { %v1087_v0 = vpack.c.bf16 %v727_v63, %v598_v61 }
 0x1d3   : > { %1182 = vst [vmem:[%s1719_s14 + $0x248] sm:$0xff] %v1086_v62 }
 0x1d4   : > { %1183 = vst [vmem:[%s1719_s14 + $0x250] sm:$0xff] %v1087_v0 }
 0x1d7   : > { %v856_v1 = vpop.f32.mrf.mxu2 }
 0x1d8   : > { %v985_v2 = vpop.f32.mrf.mxu3  ;;  %v601_v3 = vpop.f32.mrf.mxu0 }
 0x1d9   : > { %v1088_v4 = vpack.c.bf16 %v985_v2, %v856_v1  ;;  %v730_v5 = vpop.f32.mrf.mxu1 }
 0x1da   : > { %v1089_v6 = vpack.c.bf16 %v730_v5, %v601_v3 }
 0x1db   : > { %1184 = vst [vmem:[%s1719_s14 + $0x258] sm:$0xff] %v1088_v4 }
 0x1dc   : > { %1185 = vst [vmem:[%s1719_s14 + $0x260] sm:$0xff] %v1089_v6 }
 0x1df   : > { %v859_v7 = vpop.f32.mrf.mxu2 }
 0x1e0   : > { %v988_v8 = vpop.f32.mrf.mxu3  ;;  %v603_v9 = vpop.f32.mrf.mxu0 }
 0x1e1   : > { %v1090_v10 = vpack.c.bf16 %v988_v8, %v859_v7  ;;  %v732_v11 = vpop.f32.mrf.mxu1 }
 0x1e2   : > { %v1091_v12 = vpack.c.bf16 %v732_v11, %v603_v9 }
 0x1e3   : > { %1186 = vst [vmem:[%s1719_s14 + $0x268] sm:$0xff] %v1090_v10 }
 0x1e4   : > { %1187 = vst [vmem:[%s1719_s14 + $0x270] sm:$0xff] %v1091_v12 }
 0x1e7   : > { %v861_v13 = vpop.f32.mrf.mxu2 }
 0x1e8   : > { %v990_v14 = vpop.f32.mrf.mxu3  ;;  %v606_v15 = vpop.f32.mrf.mxu0 }
 0x1e9   : > { %v1092_v16 = vpack.c.bf16 %v990_v14, %v861_v13  ;;  %v735_v17 = vpop.f32.mrf.mxu1 }
 0x1ea   : > { %v1093_v18 = vpack.c.bf16 %v735_v17, %v606_v15 }
 0x1eb   : > { %1188 = vst [vmem:[%s1719_s14 + $0x278] sm:$0xff] %v1092_v16 }
 0x1ec   : > { %1189 = vst [vmem:[%s1719_s14 + $0x280] sm:$0xff] %v1093_v18 }
 0x1ef   : > { %v864_v19 = vpop.f32.mrf.mxu2 }
 0x1f0   : > { %v993_v20 = vpop.f32.mrf.mxu3  ;;  %v608_v21 = vpop.f32.mrf.mxu0 }
 0x1f1   : > { %v1094_v22 = vpack.c.bf16 %v993_v20, %v864_v19  ;;  %v737_v23 = vpop.f32.mrf.mxu1 }
 0x1f2   : > { %v1095_v24 = vpack.c.bf16 %v737_v23, %v608_v21 }
 0x1f3   : > { %1190 = vst [vmem:[%s1719_s14 + $0x288] sm:$0xff] %v1094_v22 }
 0x1f4   : > { %1191 = vst [vmem:[%s1719_s14 + $0x290] sm:$0xff] %v1095_v24 }
 0x1f7   : > { %v866_v25 = vpop.f32.mrf.mxu2 }
 0x1f8   : > { %v995_v26 = vpop.f32.mrf.mxu3  ;;  %v611_v27 = vpop.f32.mrf.mxu0 }
 0x1f9   : > { %v1096_v28 = vpack.c.bf16 %v995_v26, %v866_v25  ;;  %v740_v29 = vpop.f32.mrf.mxu1 }
 0x1fa   : > { %v1097_v30 = vpack.c.bf16 %v740_v29, %v611_v27 }
 0x1fb   : > { %1192 = vst [vmem:[%s1719_s14 + $0x298] sm:$0xff] %v1096_v28 }
 0x1fc   : > { %1193 = vst [vmem:[%s1719_s14 + $0x2a0] sm:$0xff] %v1097_v30 }
 0x1ff   : > { %v869_v31 = vpop.f32.mrf.mxu2 }
 0x200   : > { %v998_v32 = vpop.f32.mrf.mxu3  ;;  %v613_v33 = vpop.f32.mrf.mxu0 }
 0x201   : > { %v1098_v34 = vpack.c.bf16 %v998_v32, %v869_v31  ;;  %v742_v35 = vpop.f32.mrf.mxu1 }
 0x202   : > { %v1099_v36 = vpack.c.bf16 %v742_v35, %v613_v33 }
 0x203   : > { %1194 = vst [vmem:[%s1719_s14 + $0x2a8] sm:$0xff] %v1098_v34 }
 0x204   : > { %1195 = vst [vmem:[%s1719_s14 + $0x2b0] sm:$0xff] %v1099_v36 }
 0x207   : > { %v871_v37 = vpop.f32.mrf.mxu2 }
 0x208   : > { %v1000_v38 = vpop.f32.mrf.mxu3  ;;  %v616_v39 = vpop.f32.mrf.mxu0 }
 0x209   : > { %v1100_v40 = vpack.c.bf16 %v1000_v38, %v871_v37  ;;  %v745_v41 = vpop.f32.mrf.mxu1 }
 0x20a   : > { %v1101_v42 = vpack.c.bf16 %v745_v41, %v616_v39 }
 0x20b   : > { %1196 = vst [vmem:[%s1719_s14 + $0x2b8] sm:$0xff] %v1100_v40 }
 0x20c   : > { %1197 = vst [vmem:[%s1719_s14 + $0x2c0] sm:$0xff] %v1101_v42 }
 0x20f   : > { %v874_v43 = vpop.f32.mrf.mxu2 }
 0x210   : > { %v1003_v44 = vpop.f32.mrf.mxu3  ;;  %v618_v45 = vpop.f32.mrf.mxu0 }
 0x211   : > { %v1102_v46 = vpack.c.bf16 %v1003_v44, %v874_v43  ;;  %v747_v47 = vpop.f32.mrf.mxu1 }
 0x212   : > { %v1103_v48 = vpack.c.bf16 %v747_v47, %v618_v45 }
 0x213   : > { %1198 = vst [vmem:[%s1719_s14 + $0x2c8] sm:$0xff] %v1102_v46 }
 0x214   : > { %1199 = vst [vmem:[%s1719_s14 + $0x2d0] sm:$0xff] %v1103_v48 }
 0x217   : > { %v876_v49 = vpop.f32.mrf.mxu2 }
 0x218   : > { %v1005_v50 = vpop.f32.mrf.mxu3  ;;  %v621_v51 = vpop.f32.mrf.mxu0 }
 0x219   : > { %v1104_v52 = vpack.c.bf16 %v1005_v50, %v876_v49  ;;  %v750_v53 = vpop.f32.mrf.mxu1 }
 0x21a   : > { %v1105_v54 = vpack.c.bf16 %v750_v53, %v621_v51 }
 0x21b   : > { %1200 = vst [vmem:[%s1719_s14 + $0x2d8] sm:$0xff] %v1104_v52 }
 0x21c   : > { %1201 = vst [vmem:[%s1719_s14 + $0x2e0] sm:$0xff] %v1105_v54 }
 0x21f   : > { %v879_v55 = vpop.f32.mrf.mxu2 }
 0x220   : > { %v1008_v56 = vpop.f32.mrf.mxu3  ;;  %v623_v57 = vpop.f32.mrf.mxu0 }
 0x221   : > { %v1106_v58 = vpack.c.bf16 %v1008_v56, %v879_v55  ;;  %v752_v59 = vpop.f32.mrf.mxu1 }
 0x222   : > { %v1107_v60 = vpack.c.bf16 %v752_v59, %v623_v57 }
 0x223   : > { %1202 = vst [vmem:[%s1719_s14 + $0x2e8] sm:$0xff] %v1106_v58 }
 0x224   : > { %1203 = vst [vmem:[%s1719_s14 + $0x2f0] sm:$0xff] %v1107_v60 }
 0x227   : > { %v881_v61 = vpop.f32.mrf.mxu2 }
 0x228   : > { %v1010_v62 = vpop.f32.mrf.mxu3 }
 0x229   : > { %v1108_v63 = vpack.c.bf16 %v1010_v62, %v881_v61 }
 0x22b   : > { %1204 = vst [vmem:[%s1719_s14 + $0x2f8] sm:$0xff] %v1108_v63 }
 0x22c PF: > { %s12_s11 = sadd.s32 1, %s1565_s11   ;;  %s1938_s9 = smov %s1561_s10 }
 0x22d   : > { %p9_p5 = scmp.ge.s32.totalorder %s12_s11, 4   ;;  %s1939_s10 = smov %s1941_s12 }
 0x22f   :  { %11 = sbr.rel (!%p9_p5) target bundleno = 2 (0x2), region = 58 }

// kernel: transposed_conv_layer.3
= control target key start
LH: loop header
LB: loop body
LE: loop exit
PB: predicated region body
PF: predicated region fallthrough
CT: control target
= control target key end

     0   :  { %s3782_s21 = smov 0   ;;  %s8273_s0 = inlined_call_operand.vmem [shape: bf16[2,48,4096], index: 0, kind: input, shape index: {}]   ;;  %s8274_s1 = inlined_call_operand.vmem [shape: f32[2,48,4096], index: 1, kind: input, shape index: {}]   ;;  %s8275_s2 = inlined_call_operand.vmem [shape: bf16[48,48], index: 2, kind: input, shape index: {}]   ;;  %s8276_s3 = inlined_call_operand.vmem [shape: f32[48,1], index: 3, kind: input, shape index: {}]   ;;  %s8277_s4 = inlined_call_operand.vmem [shape: f32[48,1], index: 4, kind: input, shape index: {}]   ;;  %s8278_s5 = inlined_call_operand.vmem [shape: f32[48,1], index: 5, kind: input, shape index: {}]   ;;  %s8279_s6 = inlined_call_operand.vmem [shape: f32[2,48,4096], index: 6, kind: output, shape index: {}]  }
   0x1 LB: > { %s3598_s22 = sadd.s32 4294967295, %s3744_s21   ;;  %p3602_p0 = scmp.ge.s32.totalorder %s3744_s21, 1  ;;  %s3744_s21 = sphi %s3782_s21, %s16_s21  }
   0x2   : > { %p222_p1 = scmp.lt.s32.totalorder %s3744_s21, 3 }
   0x4   : > { %p223_p2 = pnand %p3602_p0, %p222_p1 }
   0x6   : > { %226 = sbr.rel (%p223_p2) target bundleno = 1431 (0x597), region = 44 }
   0xb   : > { %p257_p3 = scmp.lt.s32.totalorder %s3598_s22, 1  ;;  %v1648_v0 = vld [vmem:[%s8276_s3] sm:$0xff]  ;;  %v3746_v1 = vmov 0   ;;  %vm870_vm0 = vcmask 392192   ;;  %v1649_v61 = vld [vmem:[%s8276_s3 + $0x8] sm:$0xff]  ;;  %v1650_v62 = vld [vmem:[%s8276_s3 + $0x10] sm:$0xff] }
   0xc   : > { %3730 = vset.pattern.permute.xlu0 %v3746_v1  ;;  %3731 = vset.pattern.permute.xlu1 %v3746_v1  ;;  %v3830_v37 = vld [vmem:[%s8275_s2] sm:$0xff] }
   0xd   : > { %s9702_s22 = smov (!%p257_p3, %s3598_s22), 1  ;;  %1656 = vperm.xlu0 %3730, %v1648_v0   ;;  %3732 = vset.pattern.permute.xlu2 %v3746_v1 }
   0xe   : > { %s3720_s25 = smul.u32 1536, %s9702_s22  ;;  %1666 = vperm.xlu1 %3731, %v1650_v62  }
   0xf   : > { %s3719_s23 = smul.u32 768, %s9702_s22 }
  0x10   : > { %s3801_s28 = scalar_lea.vmem %s8274_s1, %s3720_s25  ;;  %s7321_s15 = scalar_lea.vmem %s8279_s6, %s3720_s25 }
  0x11   : > { %v401_v2 = vld [vmem:[%s3801_s28 + $0x400] sm:$0xff]  ;;  %v402_v4 = vld [vmem:[%s3801_s28 + $0x408] sm:$0xff]  ;;  %v403_v7 = vld [vmem:[%s3801_s28 + $0x410] sm:$0xff]  ;;  %s4377_s27 = scalar_lea.vmem %s8273_s0, %s3719_s23 }
  0x12   : > { %v433_v3 = vld [vmem:[%s3801_s28 + $0x500] sm:$0xff]  ;;  %v434_v6 = vld [vmem:[%s3801_s28 + $0x508] sm:$0xff]  ;;  %v435_v8 = vld [vmem:[%s3801_s28 + $0x510] sm:$0xff] }
  0x13   : > { %v529_v5 = vpack.c.bf16 %v433_v3, %v401_v2  ;;  %v530_v9 = vpack.c.bf16 %v434_v6, %v402_v4  ;;  %v531_v10 = vpack.c.bf16 %v435_v8, %v403_v7  ;;  %v404_v11 = vld [vmem:[%s3801_s28 + $0x418] sm:$0xff]  ;;  %v337_v13 = vld [vmem:[%s3801_s28 + $0x200] sm:$0xff]  ;;  %v338_v16 = vld [vmem:[%s3801_s28 + $0x208] sm:$0xff] }
  0x14   : > { %v436_v12 = vld [vmem:[%s3801_s28 + $0x518] sm:$0xff]  ;;  %v369_v15 = vld [vmem:[%s3801_s28 + $0x300] sm:$0xff]  ;;  %v370_v17 = vld [vmem:[%s3801_s28 + $0x308] sm:$0xff] }
  0x15   : > { %885 = vmatpush.bf16.msra.mxu0 %v529_v5  ;;  %v532_v14 = vpack.c.bf16 %v436_v12, %v404_v11  ;;  %909 = vmatpush.bf16.msra.mxu1 %v530_v9  ;;  %v497_v18 = vpack.c.bf16 %v369_v15, %v337_v13  ;;  %v498_v19 = vpack.c.bf16 %v370_v17, %v338_v16  ;;  %v339_v20 = vld [vmem:[%s3801_s28 + $0x210] sm:$0xff]  ;;  %v340_v22 = vld [vmem:[%s3801_s28 + $0x218] sm:$0xff]  ;;  %v273_v25 = vld [vmem:[%s3801_s28] sm:$0xff] }
  0x16   : > { %933 = vmatpush.bf16.msra.mxu2 %v531_v10  ;;  %v371_v21 = vld [vmem:[%s3801_s28 + $0x310] sm:$0xff]  ;;  %v372_v24 = vld [vmem:[%s3801_s28 + $0x318] sm:$0xff]  ;;  %v305_v26 = vld [vmem:[%s3801_s28 + $0x100] sm:$0xff]  ;;  %1661 = vperm.xlu0 %3730, %v1649_v61  }
  0x17   : > { %957 = vmatpush.bf16.msra.mxu3 %v532_v14  ;;  %v499_v23 = vpack.c.bf16 %v371_v21, %v339_v20  ;;  %v500_v27 = vpack.c.bf16 %v372_v24, %v340_v22  ;;  %v274_v28 = vld [vmem:[%s3801_s28 + $0x8] sm:$0xff]  ;;  %v275_v30 = vld [vmem:[%s3801_s28 + $0x10] sm:$0xff]  ;;  %v465_v31 = vpack.c.bf16 %v305_v26, %v273_v25  ;;  %v276_v33 = vld [vmem:[%s3801_s28 + $0x18] sm:$0xff] }
  0x18   : > { %v306_v29 = vld [vmem:[%s3801_s28 + $0x108] sm:$0xff]  ;;  %v307_v32 = vld [vmem:[%s3801_s28 + $0x110] sm:$0xff]  ;;  %v308_v34 = vld [vmem:[%s3801_s28 + $0x118] sm:$0xff] }
  0x19   : > { %886 = vmatpush.bf16.msra.mxu0 %v497_v18  ;;  %910 = vmatpush.bf16.msra.mxu1 %v498_v19  ;;  %v466_v35 = vpack.c.bf16 %v306_v29, %v274_v28  ;;  %v467_v36 = vpack.c.bf16 %v307_v32, %v275_v30  ;;  %v407_v38 = vld [vmem:[%s3801_s28 + $0x430] sm:$0xff]  ;;  %v405_v40 = vld [vmem:[%s3801_s28 + $0x420] sm:$0xff]  ;;  %v468_v41 = vpack.c.bf16 %v308_v34, %v276_v33  ;;  %v408_v44 = vld [vmem:[%s3801_s28 + $0x438] sm:$0xff] }
  0x1a   : > { %934 = vmatpush.bf16.msra.mxu2 %v499_v23  ;;  %v439_v39 = vld [vmem:[%s3801_s28 + $0x530] sm:$0xff]  ;;  %v437_v43 = vld [vmem:[%s3801_s28 + $0x520] sm:$0xff]  ;;  %v440_v45 = vld [vmem:[%s3801_s28 + $0x538] sm:$0xff] }
  0x1b   : > { %958 = vmatpush.bf16.msra.mxu3 %v500_v27  ;;  %v535_v42 = vpack.c.bf16 %v439_v39, %v407_v38  ;;  %v536_v46 = vpack.c.bf16 %v440_v45, %v408_v44  ;;  %v406_v47 = vld [vmem:[%s3801_s28 + $0x428] sm:$0xff]  ;;  %v343_v49 = vld [vmem:[%s3801_s28 + $0x230] sm:$0xff]  ;;  %v533_v51 = vpack.c.bf16 %v437_v43, %v405_v40  ;;  %v344_v52 = vld [vmem:[%s3801_s28 + $0x238] sm:$0xff] }
  0x1c   : > { %v438_v48 = vld [vmem:[%s3801_s28 + $0x528] sm:$0xff]  ;;  %v375_v50 = vld [vmem:[%s3801_s28 + $0x330] sm:$0xff]  ;;  %v376_v53 = vld [vmem:[%s3801_s28 + $0x338] sm:$0xff] }
  0x1d   : > { %887 = vmatpush.bf16.msra.mxu0 %v465_v31  ;;  %911 = vmatpush.bf16.msra.mxu1 %v466_v35  ;;  %v534_v54 = vpack.c.bf16 %v438_v48, %v406_v47  ;;  %v503_v55 = vpack.c.bf16 %v375_v50, %v343_v49  ;;  %v341_v56 = vld [vmem:[%s3801_s28 + $0x220] sm:$0xff]  ;;  %v504_v58 = vpack.c.bf16 %v376_v53, %v344_v52  ;;  %v342_v59 = vld [vmem:[%s3801_s28 + $0x228] sm:$0xff]  ;;  %v279_v0 = vld [vmem:[%s3801_s28 + $0x30] sm:$0xff] }
  0x1e   : > { %935 = vmatpush.bf16.msra.mxu2 %v467_v36  ;;  %v373_v57 = vld [vmem:[%s3801_s28 + $0x320] sm:$0xff]  ;;  %v374_v60 = vld [vmem:[%s3801_s28 + $0x328] sm:$0xff]  ;;  %v311_v1 = vld [vmem:[%s3801_s28 + $0x130] sm:$0xff] }
  0x1f   : > { %959 = vmatpush.bf16.msra.mxu3 %v468_v41  ;;  %v501_v63 = vpack.c.bf16 %v373_v57, %v341_v56  ;;  %v277_v2 = vld [vmem:[%s3801_s28 + $0x20] sm:$0xff]  ;;  %v502_v3 = vpack.c.bf16 %v374_v60, %v342_v59  ;;  %v471_v4 = vpack.c.bf16 %v311_v1, %v279_v0  ;;  %v280_v6 = vld [vmem:[%s3801_s28 + $0x38] sm:$0xff]  ;;  %v278_v9 = vld [vmem:[%s3801_s28 + $0x28] sm:$0xff] }
  0x20   : > { %3618 = vmatmul.msk.bf16.vlgmr.msra.gmra.mxu0 %vm870_vm0, %v3830_v37  ;;  %3621 = vmatmul.msk.bf16.vlgmr.msra.gmra.mxu1 %vm870_vm0, %v3830_v37  ;;  %v309_v5 = vld [vmem:[%s3801_s28 + $0x120] sm:$0xff]  ;;  %v312_v7 = vld [vmem:[%s3801_s28 + $0x138] sm:$0xff]  ;;  %v310_v10 = vld [vmem:[%s3801_s28 + $0x128] sm:$0xff] }
  0x21   : > { %3624 = vmatmul.msk.bf16.vlgmr.msra.gmra.mxu2 %vm870_vm0, %v3830_v37  ;;  %981 = vmatpush.bf16.msrb.mxu0 %v533_v51  ;;  %v472_v8 = vpack.c.bf16 %v312_v7, %v280_v6  ;;  %v469_v11 = vpack.c.bf16 %v309_v5, %v277_v2  ;;  %v470_v12 = vpack.c.bf16 %v310_v10, %v278_v9  ;;  %v1651_v13 = vld [vmem:[%s8276_s3 + $0x18] sm:$0xff]  ;;  %v3876_v14 = vld [vmem:[%s8275_s2 + $0x8] sm:$0xff]  ;;  %v411_v15 = vld [vmem:[%s3801_s28 + $0x450] sm:$0xff] }
  0x22   : > { %1029 = vmatpush.bf16.msrb.mxu2 %v535_v42  ;;  %3627 = vmatmul.msk.bf16.vlgmr.msra.gmra.mxu3 %vm870_vm0, %v3830_v37  ;;  %v443_v16 = vld [vmem:[%s3801_s28 + $0x550] sm:$0xff]  ;;  %v409_v17 = vld [vmem:[%s3801_s28 + $0x440] sm:$0xff]  ;;  %v412_v20 = vld [vmem:[%s3801_s28 + $0x458] sm:$0xff] }
  0x23   : > { %1053 = vmatpush.bf16.msrb.mxu3 %v536_v46  ;;  %1005 = vmatpush.bf16.msrb.mxu1 %v534_v54  ;;  %v539_v18 = vpack.c.bf16 %v443_v16, %v411_v15  ;;  %v441_v19 = vld [vmem:[%s3801_s28 + $0x540] sm:$0xff]  ;;  %v444_v21 = vld [vmem:[%s3801_s28 + $0x558] sm:$0xff]  ;;  %v410_v24 = vld [vmem:[%s3801_s28 + $0x448] sm:$0xff] }
  0x24   : > { %1671 = vperm.xlu1 %3731, %v1651_v13   ;;  %v537_v22 = vpack.c.bf16 %v441_v19, %v409_v17  ;;  %v540_v23 = vpack.c.bf16 %v444_v21, %v412_v20  ;;  %v442_v25 = vld [vmem:[%s3801_s28 + $0x548] sm:$0xff]  ;;  %v3897_v27 = vld [vmem:[%s8275_s2 + $0x10] sm:$0xff]  ;;  %v345_v30 = vld [vmem:[%s3801_s28 + $0x240] sm:$0xff] }
  0x25   : > { %982 = vmatpush.bf16.msrb.mxu0 %v501_v63  ;;  %v538_v26 = vpack.c.bf16 %v442_v25, %v410_v24  ;;  %v347_v28 = vld [vmem:[%s3801_s28 + $0x250] sm:$0xff]  ;;  %v377_v32 = vld [vmem:[%s3801_s28 + $0x340] sm:$0xff]  ;;  %v348_v33 = vld [vmem:[%s3801_s28 + $0x258] sm:$0xff] }
  0x26   : > { %1030 = vmatpush.bf16.msrb.mxu2 %v503_v55  ;;  %v379_v29 = vld [vmem:[%s3801_s28 + $0x350] sm:$0xff]  ;;  %v380_v34 = vld [vmem:[%s3801_s28 + $0x358] sm:$0xff]  ;;  %v505_v35 = vpack.c.bf16 %v377_v32, %v345_v30  ;;  %v346_v38 = vld [vmem:[%s3801_s28 + $0x248] sm:$0xff] }
  0x27   : > { %1054 = vmatpush.bf16.msrb.mxu3 %v504_v58  ;;  %1006 = vmatpush.bf16.msrb.mxu1 %v502_v3  ;;  %v507_v31 = vpack.c.bf16 %v379_v29, %v347_v28  ;;  %v508_v36 = vpack.c.bf16 %v380_v34, %v348_v33  ;;  %v378_v39 = vld [vmem:[%s3801_s28 + $0x348] sm:$0xff]  ;;  %v1652_v40 = vld [vmem:[%s8276_s3 + $0x20] sm:$0xff]  ;;  %v283_v43 = vld [vmem:[%s3801_s28 + $0x50] sm:$0xff] }
  0x28   : > { %v506_v41 = vpack.c.bf16 %v378_v39, %v346_v38  ;;  %1676 = vperm.xlu2 %3732, %v1652_v40   ;;  %v1653_v42 = vld [vmem:[%s8276_s3 + $0x28] sm:$0xff]  ;;  %v315_v44 = vld [vmem:[%s3801_s28 + $0x150] sm:$0xff]  ;;  %v281_v45 = vld [vmem:[%s3801_s28 + $0x40] sm:$0xff] }
  0x29   : > { %983 = vmatpush.bf16.msrb.mxu0 %v469_v11  ;;  %v475_v46 = vpack.c.bf16 %v315_v44, %v283_v43  ;;  %v313_v47 = vld [vmem:[%s3801_s28 + $0x140] sm:$0xff]  ;;  %v284_v48 = vld [vmem:[%s3801_s28 + $0x58] sm:$0xff]  ;;  %v282_v52 = vld [vmem:[%s3801_s28 + $0x48] sm:$0xff] }
  0x2a   : > { %1031 = vmatpush.bf16.msrb.mxu2 %v471_v4  ;;  %v316_v49 = vld [vmem:[%s3801_s28 + $0x158] sm:$0xff]  ;;  %v473_v50 = vpack.c.bf16 %v313_v47, %v281_v45  ;;  %v314_v53 = vld [vmem:[%s3801_s28 + $0x148] sm:$0xff]  ;;  %v415_v55 = vld [vmem:[%s3801_s28 + $0x470] sm:$0xff] }
  0x2b   : > { %1055 = vmatpush.bf16.msrb.mxu3 %v472_v8  ;;  %1007 = vmatpush.bf16.msrb.mxu1 %v470_v12  ;;  %v476_v51 = vpack.c.bf16 %v316_v49, %v284_v48  ;;  %v474_v54 = vpack.c.bf16 %v314_v53, %v282_v52  ;;  %v447_v56 = vld [vmem:[%s3801_s28 + $0x570] sm:$0xff]  ;;  %v413_v57 = vld [vmem:[%s3801_s28 + $0x460] sm:$0xff]  ;;  %v416_v60 = vld [vmem:[%s3801_s28 + $0x478] sm:$0xff] }
  0x2c   : > { %v543_v58 = vpack.c.bf16 %v447_v56, %v415_v55  ;;  %v445_v59 = vld [vmem:[%s3801_s28 + $0x560] sm:$0xff]  ;;  %v448_v61 = vld [vmem:[%s3801_s28 + $0x578] sm:$0xff]  ;;  %v414_v0 = vld [vmem:[%s3801_s28 + $0x468] sm:$0xff] }
  0x2d   : > { %1077 = vmatpush.bf16.msra.mxu0 %v537_v22  ;;  %v541_v62 = vpack.c.bf16 %v445_v59, %v413_v57  ;;  %v544_v63 = vpack.c.bf16 %v448_v61, %v416_v60  ;;  %v446_v1 = vld [vmem:[%s3801_s28 + $0x568] sm:$0xff]  ;;  %v351_v3 = vld [vmem:[%s3801_s28 + $0x270] sm:$0xff]  ;;  %v349_v5 = vld [vmem:[%s3801_s28 + $0x260] sm:$0xff] }
  0x2e   : > { %1125 = vmatpush.bf16.msra.mxu2 %v539_v18  ;;  %v542_v2 = vpack.c.bf16 %v446_v1, %v414_v0  ;;  %v383_v4 = vld [vmem:[%s3801_s28 + $0x370] sm:$0xff]  ;;  %v381_v7 = vld [vmem:[%s3801_s28 + $0x360] sm:$0xff]  ;;  %v352_v8 = vld [vmem:[%s3801_s28 + $0x278] sm:$0xff] }
  0x2f   : > { %1149 = vmatpush.bf16.msra.mxu3 %v540_v23  ;;  %1101 = vmatpush.bf16.msra.mxu1 %v538_v26  ;;  %v511_v6 = vpack.c.bf16 %v383_v4, %v351_v3  ;;  %v384_v9 = vld [vmem:[%s3801_s28 + $0x378] sm:$0xff]  ;;  %v509_v10 = vpack.c.bf16 %v381_v7, %v349_v5  ;;  %v350_v12 = vld [vmem:[%s3801_s28 + $0x268] sm:$0xff]  ;;  %v287_v16 = vld [vmem:[%s3801_s28 + $0x70] sm:$0xff] }
  0x30   : > { %3619 = vmatmul.msk.bf16.gmra.mxu0 %vm870_vm0, %v3876_v14  ;;  %3622 = vmatmul.msk.bf16.gmra.mxu1 %vm870_vm0, %v3876_v14  ;;  %v512_v11 = vpack.c.bf16 %v384_v9, %v352_v8  ;;  %v382_v13 = vld [vmem:[%s3801_s28 + $0x368] sm:$0xff]  ;;  %v319_v17 = vld [vmem:[%s3801_s28 + $0x170] sm:$0xff]  ;;  %v285_v18 = vld [vmem:[%s3801_s28 + $0x60] sm:$0xff] }
  0x31   : > { %3625 = vmatmul.msk.bf16.gmra.mxu2 %vm870_vm0, %v3876_v14  ;;  %1078 = vmatpush.bf16.msra.mxu0 %v505_v35  ;;  %v510_v15 = vpack.c.bf16 %v382_v13, %v350_v12  ;;  %v479_v19 = vpack.c.bf16 %v319_v17, %v287_v16  ;;  %v317_v20 = vld [vmem:[%s3801_s28 + $0x160] sm:$0xff]  ;;  %v288_v21 = vld [vmem:[%s3801_s28 + $0x78] sm:$0xff]  ;;  %v286_v25 = vld [vmem:[%s3801_s28 + $0x68] sm:$0xff] }
  0x32   : > { %3628 = vmatmul.msk.bf16.gmra.mxu3 %vm870_vm0, %v3876_v14  ;;  %1126 = vmatpush.bf16.msra.mxu2 %v507_v31  ;;  %v320_v22 = vld [vmem:[%s3801_s28 + $0x178] sm:$0xff]  ;;  %v477_v23 = vpack.c.bf16 %v317_v20, %v285_v18  ;;  %v318_v26 = vld [vmem:[%s3801_s28 + $0x168] sm:$0xff]  ;;  %v419_v29 = vld [vmem:[%s3801_s28 + $0x490] sm:$0xff] }
  0x33   : > { %1150 = vmatpush.bf16.msra.mxu3 %v508_v36  ;;  %1102 = vmatpush.bf16.msra.mxu1 %v506_v41  ;;  %v480_v24 = vpack.c.bf16 %v320_v22, %v288_v21  ;;  %v478_v28 = vpack.c.bf16 %v318_v26, %v286_v25  ;;  %v451_v30 = vld [vmem:[%s3801_s28 + $0x590] sm:$0xff]  ;;  %v417_v31 = vld [vmem:[%s3801_s28 + $0x480] sm:$0xff]  ;;  %v420_v34 = vld [vmem:[%s3801_s28 + $0x498] sm:$0xff] }
  0x34   : > { %1681 = vperm.xlu2 %3732, %v1653_v42   ;;  %v547_v32 = vpack.c.bf16 %v451_v30, %v419_v29  ;;  %v449_v33 = vld [vmem:[%s3801_s28 + $0x580] sm:$0xff]  ;;  %v452_v35 = vld [vmem:[%s3801_s28 + $0x598] sm:$0xff]  ;;  %v418_v39 = vld [vmem:[%s3801_s28 + $0x488] sm:$0xff] }
  0x35   : > { %1079 = vmatpush.bf16.msra.mxu0 %v473_v50  ;;  %v545_v36 = vpack.c.bf16 %v449_v33, %v417_v31  ;;  %v548_v38 = vpack.c.bf16 %v452_v35, %v420_v34  ;;  %v450_v40 = vld [vmem:[%s3801_s28 + $0x588] sm:$0xff]  ;;  %v355_v44 = vld [vmem:[%s3801_s28 + $0x290] sm:$0xff]  ;;  %v385_v49 = vld [vmem:[%s3801_s28 + $0x380] sm:$0xff] }
  0x36   : > { %1127 = vmatpush.bf16.msra.mxu2 %v475_v46  ;;  %v546_v41 = vpack.c.bf16 %v450_v40, %v418_v39  ;;  %v387_v45 = vld [vmem:[%s3801_s28 + $0x390] sm:$0xff]  ;;  %v353_v46 = vld [vmem:[%s3801_s28 + $0x280] sm:$0xff]  ;;  %v356_v50 = vld [vmem:[%s3801_s28 + $0x298] sm:$0xff] }
  0x37   : > { %1151 = vmatpush.bf16.msra.mxu3 %v476_v51  ;;  %1103 = vmatpush.bf16.msra.mxu1 %v474_v54  ;;  %v515_v48 = vpack.c.bf16 %v387_v45, %v355_v44  ;;  %v388_v51 = vld [vmem:[%s3801_s28 + $0x398] sm:$0xff]  ;;  %v513_v54 = vpack.c.bf16 %v385_v49, %v353_v46  ;;  %v354_v57 = vld [vmem:[%s3801_s28 + $0x288] sm:$0xff]  ;;  %v291_v1 = vld [vmem:[%s3801_s28 + $0x90] sm:$0xff] }
  0x38   : > { %v516_v55 = vpack.c.bf16 %v388_v51, %v356_v50  ;;  %v289_v3 = vld [vmem:[%s3801_s28 + $0x80] sm:$0xff]  ;;  %v292_v8 = vld [vmem:[%s3801_s28 + $0x98] sm:$0xff]  ;;  %v290_v13 = vld [vmem:[%s3801_s28 + $0x88] sm:$0xff] }
  0x39   : > { %v321_v7 = vld [vmem:[%s3801_s28 + $0x180] sm:$0xff]  ;;  %v324_v9 = vld [vmem:[%s3801_s28 + $0x198] sm:$0xff]  ;;  %v423_v22 = vld [vmem:[%s3801_s28 + $0x4b0] sm:$0xff] }
  0x3a   : > { %v484_v12 = vpack.c.bf16 %v324_v9, %v292_v8  ;;  %v453_v29 = vld [vmem:[%s3801_s28 + $0x5a0] sm:$0xff]  ;;  %v424_v30 = vld [vmem:[%s3801_s28 + $0x4b8] sm:$0xff]  ;;  %v422_v35 = vld [vmem:[%s3801_s28 + $0x4a8] sm:$0xff] }
  0x3b   : > { %v456_v31 = vld [vmem:[%s3801_s28 + $0x5b8] sm:$0xff]  ;;  %v359_v46 = vld [vmem:[%s3801_s28 + $0x2b0] sm:$0xff]  ;;  %v357_v49 = vld [vmem:[%s3801_s28 + $0x2a0] sm:$0xff] }
  0x3c   : > { %v552_v34 = vpack.c.bf16 %v456_v31, %v424_v30  ;;  %v296_v30 = vld [vmem:[%s3801_s28 + $0xb8] sm:$0xff] }
  0x3d   : > { %v328_v31 = vld [vmem:[%s3801_s28 + $0x1b8] sm:$0xff] }
  0x40   : > { %3620 = vmatmul.msk.bf16.gmra.mxu0 %vm870_vm0, %v3897_v27  ;;  %3623 = vmatmul.msk.bf16.gmra.mxu1 %vm870_vm0, %v3897_v27 }
  0x41   : > { %3626 = vmatmul.msk.bf16.gmra.mxu2 %vm870_vm0, %v3897_v27 }
  0x42   : > { %3629 = vmatmul.msk.bf16.gmra.mxu3 %vm870_vm0, %v3897_v27 }
  0x50   : > { %3630 = vmatmul.msk.bf16.vlgmr.msrb.gmra.mxu0 %vm870_vm0, %v3830_v37  ;;  %3633 = vmatmul.msk.bf16.vlgmr.msrb.gmra.mxu1 %vm870_vm0, %v3830_v37 }
  0x51   : > { %3636 = vmatmul.msk.bf16.vlgmr.msrb.gmra.mxu2 %vm870_vm0, %v3830_v37  ;;  %1173 = vmatpush.bf16.msrb.mxu0 %v541_v62 }
  0x52   : > { %3639 = vmatmul.msk.bf16.vlgmr.msrb.gmra.mxu3 %vm870_vm0, %v3830_v37  ;;  %1221 = vmatpush.bf16.msrb.mxu2 %v543_v58  ;;  %v386_v58 = vld [vmem:[%s3801_s28 + $0x388] sm:$0xff] }
  0x53   : > { %1245 = vmatpush.bf16.msrb.mxu3 %v544_v63  ;;  %1197 = vmatpush.bf16.msrb.mxu1 %v542_v2  ;;  %v514_v60 = vpack.c.bf16 %v386_v58, %v354_v57  ;;  %v323_v2 = vld [vmem:[%s3801_s28 + $0x190] sm:$0xff]  ;;  %v360_v57 = vld [vmem:[%s3801_s28 + $0x2b8] sm:$0xff] }
  0x54   : > { %v392_v58 = vld [vmem:[%s3801_s28 + $0x3b8] sm:$0xff] }
  0x55   : > { %1174 = vmatpush.bf16.msrb.mxu0 %v509_v10 }
  0x56   : > { %1222 = vmatpush.bf16.msrb.mxu2 %v511_v6  ;;  %v483_v6 = vpack.c.bf16 %v323_v2, %v291_v1  ;;  %v520_v2 = vpack.c.bf16 %v392_v58, %v360_v57  ;;  %v427_v58 = vld [vmem:[%s3801_s28 + $0x4d0] sm:$0xff] }
  0x57   : > { %1246 = vmatpush.bf16.msrb.mxu3 %v512_v11  ;;  %1198 = vmatpush.bf16.msrb.mxu1 %v510_v15  ;;  %v481_v11 = vpack.c.bf16 %v321_v7, %v289_v3  ;;  %v322_v15 = vld [vmem:[%s3801_s28 + $0x188] sm:$0xff] }
  0x58   : > { %v482_v17 = vpack.c.bf16 %v322_v15, %v290_v13  ;;  %v358_v3 = vld [vmem:[%s3801_s28 + $0x2a8] sm:$0xff]  ;;  %v295_v15 = vld [vmem:[%s3801_s28 + $0xb0] sm:$0xff] }
  0x59   : > { %1175 = vmatpush.bf16.msrb.mxu0 %v477_v23  ;;  %v455_v23 = vld [vmem:[%s3801_s28 + $0x5b0] sm:$0xff] }
  0x5a   : > { %1223 = vmatpush.bf16.msrb.mxu2 %v479_v19 }
  0x5b   : > { %1247 = vmatpush.bf16.msrb.mxu3 %v480_v24  ;;  %1199 = vmatpush.bf16.msrb.mxu1 %v478_v28  ;;  %v421_v24 = vld [vmem:[%s3801_s28 + $0x4a0] sm:$0xff]  ;;  %v551_v28 = vpack.c.bf16 %v455_v23, %v423_v22 }
  0x5c   : > { %v549_v33 = vpack.c.bf16 %v453_v29, %v421_v24  ;;  %v293_v22 = vld [vmem:[%s3801_s28 + $0xa0] sm:$0xff] }
  0x5d   : > { %v325_v29 = vld [vmem:[%s3801_s28 + $0x1a0] sm:$0xff] }
  0x60   : > { %3631 = vmatmul.msk.bf16.gmra.mxu0 %vm870_vm0, %v3876_v14  ;;  %3634 = vmatmul.msk.bf16.gmra.mxu1 %vm870_vm0, %v3876_v14 }
  0x61   : > { %3637 = vmatmul.msk.bf16.gmra.mxu2 %vm870_vm0, %v3876_v14 }
  0x62   : > { %3640 = vmatmul.msk.bf16.gmra.mxu3 %vm870_vm0, %v3876_v14 }
  0x70   : > { %3632 = vmatmul.msk.bf16.gmra.mxu0 %vm870_vm0, %v3897_v27  ;;  %3635 = vmatmul.msk.bf16.gmra.mxu1 %vm870_vm0, %v3897_v27 }
  0x71   : > { %3638 = vmatmul.msk.bf16.gmra.mxu2 %vm870_vm0, %v3897_v27 }
  0x72   : > { %3641 = vmatmul.msk.bf16.gmra.mxu3 %vm870_vm0, %v3897_v27 }
  0x80   : > { %3642 = vmatmul.msk.bf16.vlgmr.msra.gmra.mxu0 %vm870_vm0, %v3830_v37  ;;  %3645 = vmatmul.msk.bf16.vlgmr.msra.gmra.mxu1 %vm870_vm0, %v3830_v37 }
  0x81   : > { %3648 = vmatmul.msk.bf16.vlgmr.msra.gmra.mxu2 %vm870_vm0, %v3830_v37  ;;  %1269 = vmatpush.bf16.msra.mxu0 %v545_v36  ;;  %v454_v36 = vld [vmem:[%s3801_s28 + $0x5a8] sm:$0xff] }
  0x82   : > { %3651 = vmatmul.msk.bf16.vlgmr.msra.gmra.mxu3 %vm870_vm0, %v3830_v37  ;;  %1317 = vmatpush.bf16.msra.mxu2 %v547_v32  ;;  %v550_v39 = vpack.c.bf16 %v454_v36, %v422_v35  ;;  %v488_v35 = vpack.c.bf16 %v328_v31, %v296_v30  ;;  %v294_v36 = vld [vmem:[%s3801_s28 + $0xa8] sm:$0xff] }
  0x83   : > { %1341 = vmatpush.bf16.msra.mxu3 %v548_v38  ;;  %1293 = vmatpush.bf16.msra.mxu1 %v546_v41  ;;  %v426_v31 = vld [vmem:[%s3801_s28 + $0x4c8] sm:$0xff] }
  0x85   : > { %1270 = vmatpush.bf16.msra.mxu0 %v513_v54 }
  0x86   : > { %1318 = vmatpush.bf16.msra.mxu2 %v515_v48  ;;  %v391_v48 = vld [vmem:[%s3801_s28 + $0x3b0] sm:$0xff] }
  0x87   : > { %1342 = vmatpush.bf16.msra.mxu3 %v516_v55  ;;  %1294 = vmatpush.bf16.msra.mxu1 %v514_v60  ;;  %v519_v54 = vpack.c.bf16 %v391_v48, %v359_v46  ;;  %v389_v55 = vld [vmem:[%s3801_s28 + $0x3a0] sm:$0xff] }
  0x88   : > { %v517_v1 = vpack.c.bf16 %v389_v55, %v357_v49 }
  0x89   : > { %1271 = vmatpush.bf16.msra.mxu0 %v481_v11 }
  0x8a   : > { %1319 = vmatpush.bf16.msra.mxu2 %v483_v6  ;;  %v390_v6 = vld [vmem:[%s3801_s28 + $0x3a8] sm:$0xff] }
  0x8b   : > { %1343 = vmatpush.bf16.msra.mxu3 %v484_v12  ;;  %1295 = vmatpush.bf16.msra.mxu1 %v482_v17  ;;  %v518_v8 = vpack.c.bf16 %v390_v6, %v358_v3  ;;  %v327_v17 = vld [vmem:[%s3801_s28 + $0x1b0] sm:$0xff] }
  0x90   : > { %3643 = vmatmul.msk.bf16.gmra.mxu0 %vm870_vm0, %v3876_v14  ;;  %3646 = vmatmul.msk.bf16.gmra.mxu1 %vm870_vm0, %v3876_v14 }
  0x91   : > { %3649 = vmatmul.msk.bf16.gmra.mxu2 %vm870_vm0, %v3876_v14 }
  0x92   : > { %3652 = vmatmul.msk.bf16.gmra.mxu3 %vm870_vm0, %v3876_v14 }
  0x9d   : > { %v4001_v42 = vpop.f32.mrf.mxu0  ;;  %v4003_v43 = vpop.f32.mrf.mxu1 }
  0xa0   : > { %3644 = vmatmul.msk.bf16.gmra.mxu0 %vm870_vm0, %v3897_v27  ;;  %3647 = vmatmul.msk.bf16.gmra.mxu1 %vm870_vm0, %v3897_v27 }
  0xa1   : > { %3650 = vmatmul.msk.bf16.gmra.mxu2 %vm870_vm0, %v3897_v27 }
  0xa2   : > { %3653 = vmatmul.msk.bf16.gmra.mxu3 %vm870_vm0, %v3897_v27 }
  0xa4   : > { %v4016_v47 = vpop.f32.mrf.mxu2 }
  0xa5   : > { %v4021_v52 = vpop.f32.mrf.mxu3  ;;  %v4023_v53 = vpop.f32.mrf.mxu0 }
  0xa6   : > { %v4025_v56 = vpop.f32.mrf.mxu1 }
  0xac   : > { %v4029_v59 = vpop.f32.mrf.mxu2 }
  0xad   : > { %v4031_v61 = vpop.f32.mrf.mxu3  ;;  %v4033_v62 = vpop.f32.mrf.mxu0 }
  0xae   : > { %v4035_v63 = vpop.f32.mrf.mxu1 }
  0xb0   : > { %3654 = vmatmul.msk.bf16.vlgmr.msrb.gmra.mxu0 %vm870_vm0, %v3830_v37  ;;  %3657 = vmatmul.msk.bf16.vlgmr.msrb.gmra.mxu1 %vm870_vm0, %v3830_v37 }
  0xb1   : > { %3660 = vmatmul.msk.bf16.vlgmr.msrb.gmra.mxu2 %vm870_vm0, %v3830_v37  ;;  %1365 = vmatpush.bf16.msrb.mxu0 %v549_v33 }
  0xb2   : > { %3663 = vmatmul.msk.bf16.vlgmr.msrb.gmra.mxu3 %vm870_vm0, %v3830_v37  ;;  %1413 = vmatpush.bf16.msrb.mxu2 %v551_v28  ;;  %v487_v28 = vpack.c.bf16 %v327_v17, %v295_v15  ;;  %v457_v15 = vld [vmem:[%s3801_s28 + $0x5c0] sm:$0xff]  ;;  %v428_v17 = vld [vmem:[%s3801_s28 + $0x4d8] sm:$0xff] }
  0xb3   : > { %1437 = vmatpush.bf16.msrb.mxu3 %v552_v34  ;;  %1389 = vmatpush.bf16.msrb.mxu1 %v550_v39  ;;  %v485_v34 = vpack.c.bf16 %v325_v29, %v293_v22  ;;  %v326_v39 = vld [vmem:[%s3801_s28 + $0x1a8] sm:$0xff]  ;;  %v460_v22 = vld [vmem:[%s3801_s28 + $0x5d8] sm:$0xff] }
  0xb4   : > { %v4045_v0 = vpop.f32.mrf.mxu2  ;;  %v486_v48 = vpack.c.bf16 %v326_v39, %v294_v36  ;;  %v556_v30 = vpack.c.bf16 %v460_v22, %v428_v17 }
  0xb5   : > { %v4050_v4 = vpop.f32.mrf.mxu3  ;;  %v4052_v5 = vpop.f32.mrf.mxu0  ;;  %1366 = vmatpush.bf16.msrb.mxu0 %v517_v1  ;;  %v459_v1 = vld [vmem:[%s3801_s28 + $0x5d0] sm:$0xff] }
  0xb6   : > { %v4057_v10 = vpop.f32.mrf.mxu1  ;;  %1414 = vmatpush.bf16.msrb.mxu2 %v519_v54 }
  0xb7   : > { %1438 = vmatpush.bf16.msrb.mxu3 %v520_v2  ;;  %1390 = vmatpush.bf16.msrb.mxu1 %v518_v8  ;;  %v425_v2 = vld [vmem:[%s3801_s28 + $0x4c0] sm:$0xff]  ;;  %v555_v8 = vpack.c.bf16 %v459_v1, %v427_v58 }
  0xb8   : > { %v553_v29 = vpack.c.bf16 %v457_v15, %v425_v2  ;;  %v363_v2 = vld [vmem:[%s3801_s28 + $0x2d0] sm:$0xff]  ;;  %v361_v15 = vld [vmem:[%s3801_s28 + $0x2c0] sm:$0xff] }
  0xb9   : > { %1367 = vmatpush.bf16.msrb.mxu0 %v485_v34  ;;  %v458_v34 = vld [vmem:[%s3801_s28 + $0x5c8] sm:$0xff] }
  0xba   : > { %1415 = vmatpush.bf16.msrb.mxu2 %v487_v28  ;;  %v554_v36 = vpack.c.bf16 %v458_v34, %v426_v31  ;;  %v364_v31 = vld [vmem:[%s3801_s28 + $0x2d8] sm:$0xff] }
  0xbb   : > { %1439 = vmatpush.bf16.msrb.mxu3 %v488_v35  ;;  %1391 = vmatpush.bf16.msrb.mxu1 %v486_v48  ;;  %v396_v34 = vld [vmem:[%s3801_s28 + $0x3d8] sm:$0xff] }
  0xbc   : > { %v4061_v16 = vpop.f32.mrf.mxu2 }
  0xbd   : > { %v4063_v18 = vpop.f32.mrf.mxu3  ;;  %v4065_v19 = vpop.f32.mrf.mxu0 }
  0xbe   : > { %v4067_v20 = vpop.f32.mrf.mxu1 }
  0xc0   : > { %3655 = vmatmul.msk.bf16.gmra.mxu0 %vm870_vm0, %v3876_v14  ;;  %3658 = vmatmul.msk.bf16.gmra.mxu1 %vm870_vm0, %v3876_v14 }
  0xc1   : > { %3661 = vmatmul.msk.bf16.gmra.mxu2 %vm870_vm0, %v3876_v14 }
  0xc2   : > { %3664 = vmatmul.msk.bf16.gmra.mxu3 %vm870_vm0, %v3876_v14 }
  0xc4   : > { %v4077_v21 = vpop.f32.mrf.mxu2 }
  0xc5   : > { %v4082_v25 = vpop.f32.mrf.mxu3  ;;  %v4084_v26 = vpop.f32.mrf.mxu0 }
  0xc6   : > { %v4089_v32 = vpop.f32.mrf.mxu1 }
  0xcc   : > { %v4093_v38 = vpop.f32.mrf.mxu2 }
  0xcd   : > { %v4095_v40 = vpop.f32.mrf.mxu3  ;;  %v4097_v41 = vpop.f32.mrf.mxu0 }
  0xce   : > { %v4099_v44 = vpop.f32.mrf.mxu1 }
  0xd0   : > { %3656 = vmatmul.msk.bf16.gmra.mxu0 %vm870_vm0, %v3897_v27  ;;  %3659 = vmatmul.msk.bf16.gmra.mxu1 %vm870_vm0, %v3897_v27 }
  0xd1   : > { %3662 = vmatmul.msk.bf16.gmra.mxu2 %vm870_vm0, %v3897_v27 }
  0xd2   : > { %3665 = vmatmul.msk.bf16.gmra.mxu3 %vm870_vm0, %v3897_v27 }
  0xd4   : > { %v4109_v45 = vpop.f32.mrf.mxu2 }
  0xd5   : > { %v4114_v50 = vpop.f32.mrf.mxu3  ;;  %v4116_v51 = vpop.f32.mrf.mxu0 }
  0xd6   : > { %v4121_v60 = vpop.f32.mrf.mxu1 }
  0xdc   : > { %v4125_v7 = vpop.f32.mrf.mxu2 }
  0xdd   : > { %v4127_v9 = vpop.f32.mrf.mxu3  ;;  %v4129_v11 = vpop.f32.mrf.mxu0 }
  0xde   : > { %v4131_v12 = vpop.f32.mrf.mxu1 }
  0xe0   : > { %3666 = vmatmul.msk.bf16.vlgmr.msra.gmra.mxu0 %vm870_vm0, %v3830_v37  ;;  %3669 = vmatmul.msk.bf16.vlgmr.msra.gmra.mxu1 %vm870_vm0, %v3830_v37 }
  0xe1   : > { %3672 = vmatmul.msk.bf16.vlgmr.msra.gmra.mxu2 %vm870_vm0, %v3830_v37  ;;  %1461 = vmatpush.bf16.msra.mxu0 %v553_v29 }
  0xe2   : > { %3675 = vmatmul.msk.bf16.vlgmr.msra.gmra.mxu3 %vm870_vm0, %v3830_v37  ;;  %1509 = vmatpush.bf16.msra.mxu2 %v555_v8  ;;  %v395_v8 = vld [vmem:[%s3801_s28 + $0x3d0] sm:$0xff] }
  0xe3   : > { %1533 = vmatpush.bf16.msra.mxu3 %v556_v30  ;;  %1485 = vmatpush.bf16.msra.mxu1 %v554_v36  ;;  %v523_v29 = vpack.c.bf16 %v395_v8, %v363_v2  ;;  %v393_v30 = vld [vmem:[%s3801_s28 + $0x3c0] sm:$0xff] }
  0xe4   : > { %v4141_v13 = vpop.f32.mrf.mxu2 }
  0xe5   : > { %v4146_v23 = vpop.f32.mrf.mxu3  ;;  %v4148_v24 = vpop.f32.mrf.mxu0 }
  0xe6   : > { %v4153_v33 = vpop.f32.mrf.mxu1  ;;  %1510 = vmatpush.bf16.msra.mxu2 %v523_v29 }
  0xec   : > { %v4157_v46 = vpop.f32.mrf.mxu2 }
  0xed   : > { %v4159_v49 = vpop.f32.mrf.mxu3  ;;  %v4161_v54 = vpop.f32.mrf.mxu0 }
  0xee   : > { %8638 = vst [vmem:[#allocation2_spill] sm:$0xff] %v4159_v49  ;;  %v4163_v55 = vpop.f32.mrf.mxu1 }
  0xf0   : > { %3667 = vmatmul.msk.bf16.gmra.mxu0 %vm870_vm0, %v3876_v14  ;;  %3670 = vmatmul.msk.bf16.gmra.mxu1 %vm870_vm0, %v3876_v14 }
  0xf1   : > { %3673 = vmatmul.msk.bf16.gmra.mxu2 %vm870_vm0, %v3876_v14 }
  0xf2   : > { %3676 = vmatmul.msk.bf16.gmra.mxu3 %vm870_vm0, %v3876_v14 }
  0xf4   : > { %v4173_v57 = vpop.f32.mrf.mxu2 }
  0xf5   : > { %8639 = vst [vmem:[#allocation3_spill] sm:$0xff] %v4173_v57  ;;  %v4178_v3 = vpop.f32.mrf.mxu3  ;;  %v4180_v6 = vpop.f32.mrf.mxu0 }
  0xf6   : > { %8640 = vst [vmem:[#allocation4_spill] sm:$0xff] %v4178_v3  ;;  %v4185_v28 = vpop.f32.mrf.mxu1 }
  0xf7   : > { %8641 = vst [vmem:[#allocation5_spill] sm:$0xff] %v4185_v28 }
  0xfc   : > { %v4189_v35 = vpop.f32.mrf.mxu2 }
  0xfd   : > { %8642 = vst [vmem:[#allocation6_spill] sm:$0xff] %v4189_v35  ;;  %v4191_v39 = vpop.f32.mrf.mxu3  ;;  %v4193_v48 = vpop.f32.mrf.mxu0  ;;  %v394_v35 = vld [vmem:[%s3801_s28 + $0x3c8] sm:$0xff] }
  0xfe   : > { %8643 = vst [vmem:[#allocation7_spill] sm:$0xff] %v4191_v39  ;;  %v4195_v58 = vpop.f32.mrf.mxu1  ;;  %v521_v39 = vpack.c.bf16 %v393_v30, %v361_v15 }
  0xff   : > { %8644 = vst [vmem:[#allocation8_spill] sm:$0xff] %v4193_v48  ;;  %v4433_v48 = vld [vmem:[%s4377_s27 + $0x188] sm:$0xff] }
 0x100   : > { %8645 = vst [vmem:[#allocation9_spill] sm:$0xff] %v4195_v58  ;;  %3668 = vmatmul.msk.bf16.gmra.mxu0 %vm870_vm0, %v3897_v27  ;;  %3671 = vmatmul.msk.bf16.gmra.mxu1 %vm870_vm0, %v3897_v27  ;;  %v524_v58 = vpack.c.bf16 %v396_v34, %v364_v31  ;;  %v329_v31 = vld [vmem:[%s3801_s28 + $0x1c0] sm:$0xff]  ;;  %v300_v34 = vld [vmem:[%s3801_s28 + $0xd8] sm:$0xff] }
 0x101   : > { %3674 = vmatmul.msk.bf16.gmra.mxu2 %vm870_vm0, %v3897_v27  ;;  %1462 = vmatpush.bf16.msra.mxu0 %v521_v39  ;;  %v299_v39 = vld [vmem:[%s3801_s28 + $0xd0] sm:$0xff] }
 0x102   : > { %3677 = vmatmul.msk.bf16.gmra.mxu3 %vm870_vm0, %v3897_v27 }
 0x103   : > { %1534 = vmatpush.bf16.msra.mxu3 %v524_v58  ;;  %v331_v58 = vld [vmem:[%s3801_s28 + $0x1d0] sm:$0xff] }
 0x104   : > { %v4205_v1 = vpop.f32.mrf.mxu2  ;;  %v491_v30 = vpack.c.bf16 %v331_v58, %v299_v39 }
 0x105   : > { %8646 = vst [vmem:[#allocation10_spill] sm:$0xff] %v4205_v1  ;;  %v4210_v17 = vpop.f32.mrf.mxu3  ;;  %v4212_v22 = vpop.f32.mrf.mxu0  ;;  %v362_v1 = vld [vmem:[%s3801_s28 + $0x2c8] sm:$0xff] }
 0x106   : > { %8647 = vst [vmem:[#allocation11_spill] sm:$0xff] %v4210_v17  ;;  %v4217_v36 = vpop.f32.mrf.mxu1  ;;  %v522_v17 = vpack.c.bf16 %v394_v35, %v362_v1  ;;  %v297_v1 = vld [vmem:[%s3801_s28 + $0xc0] sm:$0xff]  ;;  %1511 = vmatpush.bf16.msra.mxu2 %v491_v30 }
 0x107   : > { %8648 = vst [vmem:[#allocation12_spill] sm:$0xff] %v4212_v22 }
 0x108   : > { %8649 = vst [vmem:[#allocation13_spill] sm:$0xff] %v4217_v36  ;;  %1486 = vmatpush.bf16.msra.mxu1 %v522_v17 }
 0x10c   : > { %v4221_v28 = vpop.f32.mrf.mxu2 }
 0x10d   : > { %8650 = vst [vmem:[#allocation14_spill] sm:$0xff] %v4221_v28  ;;  %v4223_v2 = vpop.f32.mrf.mxu3  ;;  %v4225_v8 = vpop.f32.mrf.mxu0  ;;  %v489_v28 = vpack.c.bf16 %v329_v31, %v297_v1  ;;  %v461_v31 = vld [vmem:[%s3801_s28 + $0x5e0] sm:$0xff] }
 0x10e   : > { %8651 = vst [vmem:[#allocation15_spill] sm:$0xff] %v4223_v2  ;;  %v4227_v15 = vpop.f32.mrf.mxu1  ;;  %v332_v2 = vld [vmem:[%s3801_s28 + $0x1d8] sm:$0xff] }
 0x10f   : > { %8652 = vst [vmem:[#allocation16_spill] sm:$0xff] %v4225_v8  ;;  %v492_v36 = vpack.c.bf16 %v332_v2, %v300_v34  ;;  %1463 = vmatpush.bf16.msra.mxu0 %v489_v28  ;;  %v330_v8 = vld [vmem:[%s3801_s28 + $0x1c8] sm:$0xff]  ;;  %v463_v2 = vld [vmem:[%s3801_s28 + $0x5f0] sm:$0xff]  ;;  %v432_v34 = vld [vmem:[%s3801_s28 + $0x4f8] sm:$0xff] }
 0x110   : > { %8653 = vst [vmem:[#allocation17_spill] sm:$0xff] %v4227_v15  ;;  %3678 = vmatmul.msk.bf16.vlgmr.msrb.gmra.mxu0 %vm870_vm0, %v3830_v37  ;;  %3681 = vmatmul.msk.bf16.vlgmr.msrb.gmra.mxu1 %vm870_vm0, %v3830_v37 }
 0x111   : > { %3684 = vmatmul.msk.bf16.vlgmr.msrb.gmra.mxu2 %vm870_vm0, %v3830_v37  ;;  %1535 = vmatpush.bf16.msra.mxu3 %v492_v36  ;;  %v431_v36 = vld [vmem:[%s3801_s28 + $0x4f0] sm:$0xff] }
 0x112   : > { %3687 = vmatmul.msk.bf16.vlgmr.msrb.gmra.mxu3 %vm870_vm0, %v3830_v37  ;;  %v559_v30 = vpack.c.bf16 %v463_v2, %v431_v36 }
 0x114   : > { %v4237_v35 = vpop.f32.mrf.mxu2  ;;  %1605 = vmatpush.bf16.msrb.mxu2 %v559_v30 }
 0x115   : > { %8654 = vst [vmem:[#allocation18_spill] sm:$0xff] %v4237_v35  ;;  %v4242_v17 = vpop.f32.mrf.mxu3  ;;  %v4244_v29 = vpop.f32.mrf.mxu0  ;;  %v298_v35 = vld [vmem:[%s3801_s28 + $0xc8] sm:$0xff] }
 0x116   : > { %8655 = vst [vmem:[#allocation19_spill] sm:$0xff] %v4242_v17  ;;  %v4249_v15 = vpop.f32.mrf.mxu1  ;;  %v490_v17 = vpack.c.bf16 %v330_v8, %v298_v35  ;;  %v429_v8 = vld [vmem:[%s3801_s28 + $0x4e0] sm:$0xff] }
 0x117   : > { %8656 = vst [vmem:[#allocation20_spill] sm:$0xff] %v4244_v29 }
 0x118   : > { %8657 = vst [vmem:[#allocation21_spill] sm:$0xff] %v4249_v15  ;;  %1487 = vmatpush.bf16.msra.mxu1 %v490_v17 }
 0x11c   : > { %v4253_v22 = vpop.f32.mrf.mxu2 }
 0x11d   : > { %8658 = vst [vmem:[#allocation22_spill] sm:$0xff] %v4253_v22  ;;  %v4255_v39 = vpop.f32.mrf.mxu3  ;;  %v4257_v58 = vpop.f32.mrf.mxu0  ;;  %v557_v22 = vpack.c.bf16 %v461_v31, %v429_v8  ;;  %v397_v31 = vld [vmem:[%s3801_s28 + $0x3e0] sm:$0xff] }
 0x11e   : > { %8659 = vst [vmem:[#allocation23_spill] sm:$0xff] %v4255_v39  ;;  %v4259_v1 = vpop.f32.mrf.mxu1  ;;  %v464_v39 = vld [vmem:[%s3801_s28 + $0x5f8] sm:$0xff] }
 0x11f   : > { %8660 = vst [vmem:[#allocation24_spill] sm:$0xff] %v4257_v58  ;;  %v560_v15 = vpack.c.bf16 %v464_v39, %v432_v34  ;;  %1557 = vmatpush.bf16.msrb.mxu0 %v557_v22  ;;  %v462_v58 = vld [vmem:[%s3801_s28 + $0x5e8] sm:$0xff]  ;;  %v399_v39 = vld [vmem:[%s3801_s28 + $0x3f0] sm:$0xff]  ;;  %v368_v34 = vld [vmem:[%s3801_s28 + $0x2f8] sm:$0xff] }
 0x120   : > { %8661 = vst [vmem:[#allocation25_spill] sm:$0xff] %v4259_v1  ;;  %3679 = vmatmul.msk.bf16.gmra.mxu0 %vm870_vm0, %v3876_v14  ;;  %3682 = vmatmul.msk.bf16.gmra.mxu1 %vm870_vm0, %v3876_v14 }
 0x121   : > { %3685 = vmatmul.msk.bf16.gmra.mxu2 %vm870_vm0, %v3876_v14  ;;  %1629 = vmatpush.bf16.msrb.mxu3 %v560_v15  ;;  %v367_v15 = vld [vmem:[%s3801_s28 + $0x2f0] sm:$0xff] }
 0x122   : > { %3688 = vmatmul.msk.bf16.gmra.mxu3 %vm870_vm0, %v3876_v14  ;;  %v527_v30 = vpack.c.bf16 %v399_v39, %v367_v15 }
 0x124   : > { %v4269_v28 = vpop.f32.mrf.mxu2  ;;  %1606 = vmatpush.bf16.msrb.mxu2 %v527_v30 }
 0x125   : > { %8662 = vst [vmem:[#allocation26_spill] sm:$0xff] %v4269_v28  ;;  %v4274_v35 = vpop.f32.mrf.mxu3  ;;  %v4276_v17 = vpop.f32.mrf.mxu0  ;;  %v430_v28 = vld [vmem:[%s3801_s28 + $0x4e8] sm:$0xff] }
 0x126   : > { %8663 = vst [vmem:[#allocation27_spill] sm:$0xff] %v4274_v35  ;;  %v4281_v1 = vpop.f32.mrf.mxu1  ;;  %v558_v35 = vpack.c.bf16 %v462_v58, %v430_v28  ;;  %v365_v58 = vld [vmem:[%s3801_s28 + $0x2e0] sm:$0xff] }
 0x127   : > { %8664 = vst [vmem:[#allocation28_spill] sm:$0xff] %v4276_v17 }
 0x128   : > { %8665 = vst [vmem:[#allocation29_spill] sm:$0xff] %v4281_v1  ;;  %1581 = vmatpush.bf16.msrb.mxu1 %v558_v35  ;;  %v398_v1 = vld [vmem:[%s3801_s28 + $0x3e8] sm:$0xff] }
 0x12c   : > { %v4285_v29 = vpop.f32.mrf.mxu2 }
 0x12d   : > { %8666 = vst [vmem:[#allocation30_spill] sm:$0xff] %v4285_v29  ;;  %v4287_v36 = vpop.f32.mrf.mxu3  ;;  %v4289_v2 = vpop.f32.mrf.mxu0 }
 0x12e   : > { %8667 = vst [vmem:[#allocation31_spill] sm:$0xff] %v4287_v36  ;;  %v4291_v8 = vpop.f32.mrf.mxu1  ;;  %v400_v36 = vld [vmem:[%s3801_s28 + $0x3f8] sm:$0xff] }
 0x12f   : > { %8668 = vst [vmem:[#allocation32_spill] sm:$0xff] %v4289_v2  ;;  %v525_v2 = vpack.c.bf16 %v397_v31, %v365_v58  ;;  %v528_v29 = vpack.c.bf16 %v400_v36, %v368_v34  ;;  %v335_v36 = vld [vmem:[%s3801_s28 + $0x1f0] sm:$0xff]  ;;  %v333_v31 = vld [vmem:[%s3801_s28 + $0x1e0] sm:$0xff]  ;;  %v304_v34 = vld [vmem:[%s3801_s28 + $0xf8] sm:$0xff] }
 0x130   : > { %8669 = vst [vmem:[#allocation33_spill] sm:$0xff] %v4291_v8  ;;  %3680 = vmatmul.msk.bf16.gmra.mxu0 %vm870_vm0, %v3897_v27  ;;  %3683 = vmatmul.msk.bf16.gmra.mxu1 %vm870_vm0, %v3897_v27 }
 0x131   : > { %3686 = vmatmul.msk.bf16.gmra.mxu2 %vm870_vm0, %v3897_v27  ;;  %1558 = vmatpush.bf16.msrb.mxu0 %v525_v2  ;;  %v301_v2 = vld [vmem:[%s3801_s28 + $0xe0] sm:$0xff] }
 0x132   : > { %3689 = vmatmul.msk.bf16.gmra.mxu3 %vm870_vm0, %v3897_v27 }
 0x133   : > { %1630 = vmatpush.bf16.msrb.mxu3 %v528_v29 }
 0x134   : > { %v4301_v22 = vpop.f32.mrf.mxu2 }
 0x135   : > { %8670 = vst [vmem:[#allocation34_spill] sm:$0xff] %v4301_v22  ;;  %v4306_v28 = vpop.f32.mrf.mxu3  ;;  %v4308_v35 = vpop.f32.mrf.mxu0  ;;  %v366_v22 = vld [vmem:[%s3801_s28 + $0x2e8] sm:$0xff] }
 0x136   : > { %8671 = vst [vmem:[#allocation35_spill] sm:$0xff] %v4306_v28  ;;  %v4313_v8 = vpop.f32.mrf.mxu1  ;;  %v526_v28 = vpack.c.bf16 %v398_v1, %v366_v22  ;;  %v303_v1 = vld [vmem:[%s3801_s28 + $0xf0] sm:$0xff] }
 0x137   : > { %8672 = vst [vmem:[#allocation36_spill] sm:$0xff] %v4308_v35  ;;  %v495_v30 = vpack.c.bf16 %v335_v36, %v303_v1 }
 0x138   : > { %8673 = vst [vmem:[#allocation37_spill] sm:$0xff] %v4313_v8  ;;  %1582 = vmatpush.bf16.msrb.mxu1 %v526_v28 }
 0x139   : > { %1607 = vmatpush.bf16.msrb.mxu2 %v495_v30 }
 0x13c   : > { %v4317_v17 = vpop.f32.mrf.mxu2 }
 0x13d   : > { %8674 = vst [vmem:[#allocation38_spill] sm:$0xff] %v4317_v17  ;;  %v4319_v15 = vpop.f32.mrf.mxu3  ;;  %v4321_v39 = vpop.f32.mrf.mxu0  ;;  %v493_v17 = vpack.c.bf16 %v333_v31, %v301_v2 }
 0x13e   : > { %8675 = vst [vmem:[#allocation39_spill] sm:$0xff] %v4319_v15  ;;  %v4323_v58 = vpop.f32.mrf.mxu1  ;;  %v336_v15 = vld [vmem:[%s3801_s28 + $0x1f8] sm:$0xff]  ;;  %v4388_v31 = vpop.permute.xlu0 %1656 }
 0x13f   : > { %8676 = vst [vmem:[#allocation40_spill] sm:$0xff] %v4321_v39  ;;  %v496_v8 = vpack.c.bf16 %v336_v15, %v304_v34  ;;  %1559 = vmatpush.bf16.msrb.mxu0 %v493_v17  ;;  %v568_v34 = vld [vmem:[%s4377_s27 + $0x8] sm:$0xff] }
 0x140   : > { %8677 = vst [vmem:[#allocation41_spill] sm:$0xff] %v4323_v58  ;;  %3690 = vmatmul.msk.bf16.vlgmr.msra.gmra.mxu0 %vm870_vm0, %v3830_v37  ;;  %3693 = vmatmul.msk.bf16.vlgmr.msra.gmra.mxu1 %vm870_vm0, %v3830_v37 }
 0x141   : > { %3696 = vmatmul.msk.bf16.vlgmr.msra.gmra.mxu2 %vm870_vm0, %v3830_v37  ;;  %1631 = vmatpush.bf16.msrb.mxu3 %v496_v8 }
 0x142   : > { %3699 = vmatmul.msk.bf16.vlgmr.msra.gmra.mxu3 %vm870_vm0, %v3830_v37  ;;  %v302_v37 = vld [vmem:[%s3801_s28 + $0xe8] sm:$0xff] }
 0x144   : > { %v4333_v29 = vpop.f32.mrf.mxu2 }
 0x145   : > { %8678 = vst [vmem:[#allocation42_spill] sm:$0xff] %v4333_v29  ;;  %v4338_v22 = vpop.f32.mrf.mxu3  ;;  %v4340_v28 = vpop.f32.mrf.mxu0  ;;  %v334_v29 = vld [vmem:[%s3801_s28 + $0x1e8] sm:$0xff] }
 0x146   : > { %8679 = vst [vmem:[#allocation43_spill] sm:$0xff] %v4338_v22  ;;  %v4345_v58 = vpop.f32.mrf.mxu1  ;;  %v494_v35 = vpack.c.bf16 %v334_v29, %v302_v37 }
 0x147   : > { %8680 = vst [vmem:[#allocation44_spill] sm:$0xff] %v4340_v28 }
 0x148   : > { %8681 = vst [vmem:[#allocation45_spill] sm:$0xff] %v4345_v58  ;;  %1583 = vmatpush.bf16.msrb.mxu1 %v494_v35 }
 0x14c   : > { %v4349_v39 = vpop.f32.mrf.mxu2 }
 0x14d   : > { %8682 = vst [vmem:[#allocation46_spill] sm:$0xff] %v4349_v39  ;;  %v4351_v22 = vpop.f32.mrf.mxu3  ;;  %v4353_v28 = vpop.f32.mrf.mxu0 }
 0x14e   : > { %8683 = vst [vmem:[#allocation47_spill] sm:$0xff] %v4351_v22  ;;  %v4355_v1 = vpop.f32.mrf.mxu1 }
 0x14f   : > { %8684 = vst [vmem:[#allocation48_spill] sm:$0xff] %v4353_v28  ;;  %v666_v28 = vunpack.c.h.bf16 %v568_v34 }
 0x150   : > { %8685 = vst [vmem:[#allocation49_spill] sm:$0xff] %v4355_v1  ;;  %3691 = vmatmul.msk.bf16.gmra.mxu0 %vm870_vm0, %v3876_v14  ;;  %3694 = vmatmul.msk.bf16.gmra.mxu1 %vm870_vm0, %v3876_v14 }
 0x151   : > { %3697 = vmatmul.msk.bf16.gmra.mxu2 %vm870_vm0, %v3876_v14 }
 0x152   : > { %3700 = vmatmul.msk.bf16.gmra.mxu3 %vm870_vm0, %v3876_v14  ;;  %v567_v14 = vld [vmem:[%s4377_s27] sm:$0xff] }
 0x153   : > { %v663_v37 = vunpack.c.l.bf16 %v567_v14 }
 0x154   : > { %v4365_v17 = vpop.f32.mrf.mxu2 }
 0x155   : > { %8686 = vst [vmem:[#allocation50_spill] sm:$0xff] %v4365_v17  ;;  %v4367_v8 = vpop.f32.mrf.mxu3  ;;  %v4369_v15 = vpop.f32.mrf.mxu0 }
 0x156   : > { %8687 = vst [vmem:[#allocation51_spill] sm:$0xff] %v4367_v8  ;;  %v4372_v35 = vpop.f32.mrf.mxu1 }
 0x157   : > { %8688 = vst [vmem:[#allocation52_spill] sm:$0xff] %v4369_v15  ;;  %v583_v15 = vld [vmem:[%s4377_s27 + $0x80] sm:$0xff] }
 0x158   : > { %8689 = vst [vmem:[#allocation53_spill] sm:$0xff] %v4372_v35  ;;  %v664_v35 = vunpack.c.h.bf16 %v567_v14  ;;  %v695_v8 = vunpack.c.l.bf16 %v583_v15  ;;  %v696_v22 = vunpack.c.h.bf16 %v583_v15 }
 0x15a   : > { %v914_v14 = vadd.f32 %v4003_v43, %v664_v35 }
 0x15c   : > { %v4379_v29 = vpop.f32.mrf.mxu2 }
 0x15d   : > { %8690 = vst [vmem:[#allocation54_spill] sm:$0xff] %v4379_v29  ;;  %v4382_v36 = vpop.f32.mrf.mxu3  ;;  %v4384_v2 = vpop.f32.mrf.mxu0  ;;  %v584_v29 = vld [vmem:[%s4377_s27 + $0x88] sm:$0xff] }
 0x15e   : > { %8691 = vst [vmem:[#allocation55_spill] sm:$0xff] %v4382_v36  ;;  %v4386_v30 = vpop.f32.mrf.mxu1  ;;  %v665_v36 = vunpack.c.l.bf16 %v568_v34  ;;  %v697_v3 = vunpack.c.l.bf16 %v584_v29  ;;  %v4425_v34 = vpop.permute.xlu0 %1661 }
 0x15f   : > { %8692 = vst [vmem:[#allocation56_spill] sm:$0xff] %v4384_v2  ;;  %v599_v2 = vld [vmem:[%s4377_s27 + $0x100] sm:$0xff] }
 0x160   : > { %8693 = vst [vmem:[#allocation57_spill] sm:$0xff] %v4386_v30  ;;  %3692 = vmatmul.msk.bf16.gmra.mxu0 %vm870_vm0, %v3897_v27  ;;  %3695 = vmatmul.msk.bf16.gmra.mxu1 %vm870_vm0, %v3897_v27  ;;  %v890_v30 = vadd.f32 %v4001_v42, %v663_v37  ;;  %v938_v58 = vadd.f32 %v4016_v47, %v665_v36  ;;  %v600_v42 = vld [vmem:[%s4377_s27 + $0x108] sm:$0xff]  ;;  %v727_v15 = vunpack.c.l.bf16 %v599_v2  ;;  %v728_v35 = vunpack.c.h.bf16 %v599_v2  ;;  %v615_v36 = vld [vmem:[%s4377_s27 + $0x180] sm:$0xff] }
 0x161   : > { %3698 = vmatmul.msk.bf16.gmra.mxu2 %vm870_vm0, %v3897_v27  ;;  %v916_v47 = vadd.f32 %v4025_v56, %v696_v22  ;;  %v940_v2 = vadd.f32 %v4029_v59, %v697_v3  ;;  %v759_v22 = vunpack.c.l.bf16 %v615_v36  ;;  %v730_v59 = vunpack.c.h.bf16 %v600_v42 }
 0x162   : > { %3701 = vmatmul.msk.bf16.gmra.mxu3 %vm870_vm0, %v3897_v27  ;;  %v4411_v27 = vpop.permute.xlu1 %1666  ;;  %v4417_v37 = vadd.f32 %v4388_v31, %v890_v30  ;;  %v4428_v49 = vadd.f32 %v4388_v31, %v938_v58  ;;  %v698_v30 = vunpack.c.h.bf16 %v584_v29  ;;  %v919_v56 = vadd.f32 %v4035_v63, %v728_v35 }
 0x163   : > { %v762_v63 = vunpack.c.h.bf16 %v4433_v48 }
 0x164   : > { %v4404_v17 = vpop.f32.mrf.mxu2  ;;  %8698 = vst [vmem:[#allocation62_spill] sm:$0xff] %v4417_v37 }
 0x165   : > { %8694 = vst [vmem:[#allocation58_spill] sm:$0xff] %v4404_v17  ;;  %v4406_v1 = vpop.f32.mrf.mxu3  ;;  %v4408_v39 = vpop.f32.mrf.mxu0  ;;  %v892_v17 = vadd.f32 %v4023_v53, %v695_v8  ;;  %v895_v53 = vadd.f32 %v4033_v62, %v727_v15  ;;  %v760_v8 = vunpack.c.h.bf16 %v615_v36  ;;  %v761_v62 = vunpack.c.l.bf16 %v4433_v48  ;;  %v4452_v15 = vld [vmem:[%s4377_s27 + $0x208] sm:$0xff]  ;;  %v647_v36 = vld [vmem:[%s4377_s27 + $0x280] sm:$0xff] }
 0x166   : > { %8695 = vst [vmem:[#allocation59_spill] sm:$0xff] %v4406_v1  ;;  %v4414_v43 = vpop.f32.mrf.mxu1  ;;  %v4420_v1 = vadd.f32 %v4388_v31, %v914_v14  ;;  %v631_v14 = vld [vmem:[%s4377_s27 + $0x200] sm:$0xff] }
 0x167   : > { %8696 = vst [vmem:[#allocation60_spill] sm:$0xff] %v4408_v39  ;;  %v729_v39 = vunpack.c.l.bf16 %v600_v42  ;;  %v4441_v58 = vadd.f32 %v4425_v34, %v892_v17  ;;  %v791_v29 = vunpack.c.l.bf16 %v631_v14 }
 0x168   : > { %8697 = vst [vmem:[#allocation61_spill] sm:$0xff] %v4414_v43  ;;  %v962_v43 = vadd.f32 %v4021_v52, %v666_v28  ;;  %v1876_v57 = vadd.f32 %v4420_v1, %v4417_v37  ;;  %v4444_v52 = vadd.f32 %v4425_v34, %v916_v47  ;;  %v4472_v37 = vadd.f32 %v4411_v27, %v919_v56 }
 0x169   : > { %8699 = vst [vmem:[#allocation63_spill] sm:$0xff] %v4420_v1  ;;  %v943_v28 = vadd.f32 %v4045_v0, %v729_v39  ;;  %v4463_v0 = vadd.f32 %v4425_v34, %v940_v2  ;;  %v792_v39 = vunpack.c.h.bf16 %v631_v14  ;;  %v4469_v1 = vadd.f32 %v4411_v27, %v895_v53 }
 0x16a   : > { %8700 = vst [vmem:[#allocation64_spill] sm:$0xff] %v4428_v49  ;;  %v1877_v47 = vadd.f32 %v1876_v57, %v4428_v49  ;;  %v4460_v42 = vadd.f32 %v4388_v31, %v962_v43  ;;  %v921_v57 = vadd.f32 %v4057_v10, %v760_v8  ;;  %v4476_v43 = vpop.permute.xlu2 %1676  ;;  %v4479_v49 = vld [vmem:[%s4377_s27 + $0x288] sm:$0xff]  ;;  %v1909_v2 = vadd.f32 %v4444_v52, %v4441_v58 }
 0x16b   : > { %8701 = vst [vmem:[#allocation65_spill] sm:$0xff] %v4441_v58  ;;  %v964_v14 = vadd.f32 %v4031_v61, %v698_v30  ;;  %v793_v53 = vunpack.c.l.bf16 %v4452_v15  ;;  %v794_v56 = vunpack.c.h.bf16 %v4452_v15  ;;  %v4494_v10 = vadd.f32 %v4411_v27, %v943_v28 }
 0x16c   : > { %8702 = vst [vmem:[#allocation66_spill] sm:$0xff] %v4444_v52  ;;  %v4446_v3 = vpop.f32.mrf.mxu2  ;;  %v945_v61 = vadd.f32 %v4061_v16, %v761_v62  ;;  %v823_v30 = vunpack.c.l.bf16 %v647_v36  ;;  %v4501_v8 = vadd.f32 %v1877_v47, %v4460_v42  ;;  %v1910_v15 = vadd.f32 %v1909_v2, %v4463_v0  ;;  %v4515_v62 = vld [vmem:[%s4377_s27 + $0x18] sm:$0xff] }
 0x16d   : > { %8703 = vst [vmem:[#allocation67_spill] sm:$0xff] %v4446_v3  ;;  %v4454_v35 = vpop.f32.mrf.mxu3  ;;  %v4456_v17 = vpop.f32.mrf.mxu0  ;;  %v569_v3 = vld [vmem:[%s4377_s27 + $0x10] sm:$0xff]  ;;  %v824_v52 = vunpack.c.h.bf16 %v647_v36  ;;  %v825_v58 = vunpack.c.l.bf16 %v4479_v49  ;;  %v4518_v47 = vadd.f32 %v4425_v34, %v964_v14  ;;  %v900_v36 = vadd.f32 %v4065_v19, %v791_v29 }
 0x16e   : > { %8704 = vst [vmem:[#allocation68_spill] sm:$0xff] %v4454_v35  ;;  %v4466_v48 = vpop.f32.mrf.mxu1  ;;  %v897_v35 = vadd.f32 %v4052_v5, %v759_v22  ;;  %v3735_v5 = vld [vmem:[%s8275_s2] sm:$0xff]  ;;  %v967_v22 = vadd.f32 %v4050_v4, %v730_v59  ;;  %v1942_v4 = vadd.f32 %v4472_v37, %v4469_v1  ;;  %v667_v28 = vunpack.c.l.bf16 %v569_v3 }
 0x16f   : > { %8705 = vst [vmem:[#allocation69_spill] sm:$0xff] %v4460_v42  ;;  %v924_v2 = vadd.f32 %v4067_v20, %v792_v39  ;;  %v668_v14 = vunpack.c.h.bf16 %v569_v3  ;;  %v4540_v20 = vadd.f32 %v1910_v15, %v4518_v47  ;;  %v669_v29 = vunpack.c.l.bf16 %v4515_v62 }
 0x170   : > { %8706 = vst [vmem:[#allocation70_spill] sm:$0xff] %v4463_v0  ;;  %3702 = vmatmul.msk.bf16.vlgmr.msrb.gmra.mxu0 %vm870_vm0, %v3735_v5  ;;  %3705 = vmatmul.msk.bf16.vlgmr.msrb.gmra.mxu1 %vm870_vm0, %v3735_v5  ;;  %v670_v39 = vunpack.c.h.bf16 %v4515_v62  ;;  %v902_v62 = vadd.f32 %v4084_v26, %v823_v30  ;;  %v950_v26 = vadd.f32 %v4093_v38, %v825_v58 }
 0x171   : > { %8707 = vst [vmem:[#allocation71_spill] sm:$0xff] %v4466_v48  ;;  %v4484_v48 = vpop.permute.xlu1 %1671  ;;  %3708 = vmatmul.msk.bf16.vlgmr.msrb.gmra.mxu2 %vm870_vm0, %v3735_v5 }
 0x172   : > { %8708 = vst [vmem:[#allocation72_spill] sm:$0xff] %v4469_v1  ;;  %3711 = vmatmul.msk.bf16.vlgmr.msrb.gmra.mxu3 %vm870_vm0, %v3735_v5  ;;  %v4509_v16 = vadd.f32 %v4484_v48, %v897_v35  ;;  %v4512_v59 = vadd.f32 %v4484_v48, %v921_v57  ;;  %v826_v5 = vunpack.c.h.bf16 %v4479_v49  ;;  %v1943_v57 = vadd.f32 %v1942_v4, %v4494_v10 }
 0x173   : > { %8709 = vst [vmem:[#allocation73_spill] sm:$0xff] %v4472_v37  ;;  %v4524_v37 = vld [vmem:[%s4377_s27 + $0x90] sm:$0xff]  ;;  %v4530_v1 = vadd.f32 %v4411_v27, %v967_v22  ;;  %v4533_v0 = vadd.f32 %v4484_v48, %v945_v61  ;;  %v948_v49 = vadd.f32 %v4077_v21, %v793_v53  ;;  %v4546_v22 = vld [vmem:[%s4377_s27 + $0x98] sm:$0xff]  ;;  %v969_v61 = vadd.f32 %v4063_v18, %v762_v63  ;;  %v4567_v63 = vpop.permute.xlu2 %1681 }
 0x174   : > { %8710 = vst [vmem:[#allocation74_spill] sm:$0xff] %v4494_v10  ;;  %v4526_v35 = vpop.f32.mrf.mxu2  ;;  %v1975_v3 = vadd.f32 %v4512_v59, %v4509_v16  ;;  %v986_v10 = vadd.f32 %v4097_v41, %v667_v28  ;;  %v699_v15 = vunpack.c.l.bf16 %v4524_v37  ;;  %v4556_v21 = vadd.f32 %v4476_v43, %v900_v36  ;;  %v601_v36 = vld [vmem:[%s4377_s27 + $0x110] sm:$0xff] }
 0x175   : > { %8711 = vst [vmem:[#allocation75_spill] sm:$0xff] %v4509_v16  ;;  %v4535_v42 = vpop.f32.mrf.mxu3  ;;  %v4537_v19 = vpop.f32.mrf.mxu0  ;;  %v4559_v53 = vadd.f32 %v4476_v43, %v924_v2  ;;  %v700_v41 = vunpack.c.h.bf16 %v4524_v37  ;;  %v701_v28 = vunpack.c.l.bf16 %v4546_v22  ;;  %v972_v2 = vadd.f32 %v4082_v25, %v794_v56 }
 0x176   : > { %8712 = vst [vmem:[#allocation76_spill] sm:$0xff] %v4512_v59  ;;  %v4548_v4 = vpop.f32.mrf.mxu1  ;;  %v1976_v18 = vadd.f32 %v1975_v3, %v4533_v0  ;;  %v4573_v59 = vadd.f32 %v4476_v43, %v948_v49  ;;  %v4582_v30 = vadd.f32 %v4484_v48, %v969_v61  ;;  %v4585_v37 = vadd.f32 %v4388_v31, %v986_v10 }
 0x177   : > { %8713 = vst [vmem:[#allocation77_spill] sm:$0xff] %v4518_v47  ;;  %v926_v47 = vadd.f32 %v4089_v32, %v824_v52  ;;  %v4579_v52 = vld [vmem:[%s4377_s27 + $0x118] sm:$0xff]  ;;  %v988_v49 = vadd.f32 %v4116_v51, %v699_v15  ;;  %v2008_v25 = vadd.f32 %v4559_v53, %v4556_v21  ;;  %v4592_v38 = vadd.f32 %v4567_v63, %v902_v62 }
 0x178   : > { %8714 = vst [vmem:[#allocation78_spill] sm:$0xff] %v4530_v1  ;;  %v731_v56 = vunpack.c.l.bf16 %v601_v36  ;;  %v4600_v61 = vadd.f32 %v1976_v18, %v4582_v30  ;;  %v732_v10 = vunpack.c.h.bf16 %v601_v36  ;;  %v733_v51 = vunpack.c.l.bf16 %v4579_v52 }
 0x179   : > { %8715 = vst [vmem:[#allocation79_spill] sm:$0xff] %v4533_v0  ;;  %v4595_v58 = vadd.f32 %v4567_v63, %v926_v47  ;;  %v2009_v47 = vadd.f32 %v2008_v25, %v4573_v59  ;;  %v4613_v32 = vadd.f32 %v4476_v43, %v972_v2  ;;  %v4616_v18 = vadd.f32 %v4567_v63, %v950_v26  ;;  %v4631_v2 = vld [vmem:[%s4377_s27 + $0x198] sm:$0xff] }
 0x17a   : > { %8716 = vst [vmem:[#allocation80_spill] sm:$0xff] %v4535_v42  ;;  %v4564_v42 = vadd.f32 %v1943_v57, %v4530_v1  ;;  %v1010_v57 = vadd.f32 %v4099_v44, %v668_v14  ;;  %v1034_v44 = vadd.f32 %v4109_v45, %v669_v29  ;;  %v4605_v14 = vld [vmem:[%s4377_s27 + $0x190] sm:$0xff]  ;;  %v974_v36 = vadd.f32 %v4095_v40, %v826_v5 }
 0x17b   : > { %8717 = vst [vmem:[#allocation81_spill] sm:$0xff] %v4556_v21  ;;  %v4628_v25 = vadd.f32 %v4425_v34, %v988_v49  ;;  %v2041_v26 = vadd.f32 %v4595_v58, %v4592_v38  ;;  %v1058_v45 = vadd.f32 %v4114_v50, %v670_v39  ;;  %v763_v40 = vunpack.c.l.bf16 %v4605_v14  ;;  %v633_v5 = vld [vmem:[%s4377_s27 + $0x210] sm:$0xff] }
 0x17c   : > { %8718 = vst [vmem:[#allocation82_spill] sm:$0xff] %v4559_v53  ;;  %v4597_v3 = vpop.f32.mrf.mxu2  ;;  %v1879_v53 = vadd.f32 %v4501_v8, %v4585_v37  ;;  %v4625_v21 = vadd.f32 %v4388_v31, %v1010_v57  ;;  %v3736_v8 = vld [vmem:[%s8275_s2 + $0x8] sm:$0xff]  ;;  %v4644_v57 = vadd.f32 %v4388_v31, %v1034_v44  ;;  %v1012_v49 = vadd.f32 %v4121_v60, %v700_v41 }
 0x17d   : > { %8719 = vst [vmem:[#allocation83_spill] sm:$0xff] %v4567_v63  ;;  %v4607_v15 = vpop.f32.mrf.mxu3  ;;  %v4609_v62 = vpop.f32.mrf.mxu0  ;;  %v764_v50 = vunpack.c.h.bf16 %v4605_v14  ;;  %v2042_v39 = vadd.f32 %v2041_v26, %v4616_v18  ;;  %v4659_v60 = vadd.f32 %v4567_v63, %v974_v36  ;;  %v1912_v41 = vadd.f32 %v4540_v20, %v4628_v25  ;;  %v4665_v14 = vld [vmem:[%s4377_s27 + $0x218] sm:$0xff]  ;;  %v4673_v36 = vld [vmem:[%s4377_s27 + $0x290] sm:$0xff] }
 0x17e   : > { %8720 = vst [vmem:[#allocation84_spill] sm:$0xff] %v4573_v59  ;;  %v4619_v29 = vpop.f32.mrf.mxu1  ;;  %v991_v59 = vadd.f32 %v4129_v11, %v731_v56  ;;  %v4652_v11 = vadd.f32 %v2009_v47, %v4613_v32  ;;  %v765_v56 = vunpack.c.l.bf16 %v4631_v2  ;;  %v1015_v26 = vadd.f32 %v4131_v12, %v732_v10 }
 0x17f   : > { %8721 = vst [vmem:[#allocation85_spill] sm:$0xff] %v4582_v30  ;;  %v796_v44 = vunpack.c.h.bf16 %v633_v5  ;;  %v4679_v20 = vadd.f32 %v4388_v31, %v1058_v45  ;;  %v1039_v45 = vadd.f32 %v4141_v13, %v733_v51 }
 0x180   : > { %8722 = vst [vmem:[#allocation86_spill] sm:$0xff] %v4585_v37  ;;  %3703 = vmatmul.msk.bf16.gmra.mxu0 %vm870_vm0, %v3736_v8  ;;  %3706 = vmatmul.msk.bf16.gmra.mxu1 %vm870_vm0, %v3736_v8  ;;  %v4668_v47 = vadd.f32 %v4411_v27, %v991_v59  ;;  %v4712_v13 = vadd.f32 %v4411_v27, %v1015_v26  ;;  %v8742_v26 = vunpack.c.h.bf16 %v4579_v52 }
 0x181   : > { %8723 = vst [vmem:[#allocation87_spill] sm:$0xff] %v4592_v38  ;;  %3709 = vmatmul.msk.bf16.gmra.mxu2 %vm870_vm0, %v3736_v8  ;;  %v4682_v38 = vadd.f32 %v4425_v34, %v1012_v49  ;;  %v4700_v49 = vld [vmem:[%s4377_s27 + $0x298] sm:$0xff] }
 0x182   : > { %8724 = vst [vmem:[#allocation88_spill] sm:$0xff] %v4595_v58  ;;  %v1036_v58 = vadd.f32 %v4125_v7, %v701_v28  ;;  %3712 = vmatmul.msk.bf16.gmra.mxu3 %vm870_vm0, %v3736_v8  ;;  %v1880_v7 = vadd.f32 %v1879_v53, %v4625_v21  ;;  %v795_v28 = vunpack.c.l.bf16 %v633_v5  ;;  %v993_v8 = vadd.f32 %v4148_v24, %v763_v40 }
 0x183   : > { %8725 = vst [vmem:[#allocation89_spill] sm:$0xff] %v4613_v32  ;;  %v4692_v24 = vadd.f32 %v2042_v39, %v4659_v60  ;;  %v8736_v40 = vunpack.c.h.bf16 %v4546_v22  ;;  %v571_v32 = vld [vmem:[%s4377_s27 + $0x20] sm:$0xff]  ;;  %v1913_v30 = vadd.f32 %v1912_v41, %v4682_v38  ;;  %v798_v39 = vunpack.c.h.bf16 %v4665_v14 }
 0x184   : > { %8726 = vst [vmem:[#allocation90_spill] sm:$0xff] %v4616_v18  ;;  %v4675_v18 = vpop.f32.mrf.mxu2  ;;  %v1881_v53 = vadd.f32 %v1880_v7, %v4644_v57  ;;  %v4685_v59 = vadd.f32 %v4425_v34, %v1036_v58  ;;  %v797_v7 = vunpack.c.l.bf16 %v4665_v14  ;;  %v996_v0 = vadd.f32 %v4161_v54, %v795_v28 }
 0x185   : > { %8727 = vst [vmem:[#allocation91_spill] sm:$0xff] %v4625_v21  ;;  %v4687_v12 = vpop.f32.mrf.mxu3  ;;  %v4689_v10 = vpop.f32.mrf.mxu0  ;;  %v1060_v5 = vadd.f32 %v4127_v9, %v8736_v40  ;;  %v827_v22 = vunpack.c.l.bf16 %v4673_v36  ;;  %v1945_v9 = vadd.f32 %v4564_v42, %v4668_v47  ;;  %v4715_v51 = vadd.f32 %v4484_v48, %v993_v8 }
 0x186   : > { %8728 = vst [vmem:[#allocation92_spill] sm:$0xff] %v4628_v25  ;;  %v4703_v58 = vpop.f32.mrf.mxu1  ;;  %v828_v40 = vunpack.c.h.bf16 %v4673_v36  ;;  %v4719_v41 = vadd.f32 %v1881_v53, %v4679_v20  ;;  %v1914_v54 = vadd.f32 %v1913_v30, %v4685_v59  ;;  %v829_v28 = vunpack.c.l.bf16 %v4700_v49  ;;  %v4734_v53 = vld [vmem:[%s4377_s27 + $0x28] sm:$0xff] }
 0x187   : > { %8729 = vst [vmem:[#allocation93_spill] sm:$0xff] %v4644_v57  ;;  %v671_v14 = vunpack.c.l.bf16 %v571_v32  ;;  %v4727_v42 = vadd.f32 %v4411_v27, %v1039_v45  ;;  %v1063_v8 = vadd.f32 %v4146_v23, %v8742_v26  ;;  %v1017_v36 = vadd.f32 %v4153_v33, %v764_v50  ;;  %v4858_v25 = vld [vmem:[%s4377_s27 + $0x1a8] sm:$0xff] }
 0x188   : > { %8730 = vst [vmem:[#allocation94_spill] sm:$0xff] %v4659_v60  ;;  %v4724_v60 = vadd.f32 %v4425_v34, %v1060_v5  ;;  %v1041_v30 = vadd.f32 %v4157_v46, %v765_v56  ;;  %v4738_v16 = vadd.f32 %v4476_v43, %v996_v0  ;;  %v1020_v5 = vadd.f32 %v4163_v55, %v796_v44  ;;  %v8745_v46 = vld [vmem:[#allocation3_spill] sm:$0xff]  ;;  %v4755_v56 = vld [vmem:[%s4377_s27 + $0xa0] sm:$0xff] }
 0x189   : > { %8731 = vst [vmem:[#allocation95_spill] sm:$0xff] %v4668_v47  ;;  %v998_v47 = vadd.f32 %v4180_v6, %v827_v22  ;;  %v1946_v45 = vadd.f32 %v1945_v9, %v4712_v13  ;;  %v1978_v52 = vadd.f32 %v4600_v61, %v4715_v51  ;;  %v830_v23 = vunpack.c.h.bf16 %v4700_v49 }
 0x18a   : > { %8732 = vst [vmem:[#allocation96_spill] sm:$0xff] %v4679_v20  ;;  %v672_v26 = vunpack.c.h.bf16 %v571_v32  ;;  %v4749_v50 = vadd.f32 %v1914_v54, %v4724_v60  ;;  %v1044_v0 = vadd.f32 %v8745_v46, %v797_v7  ;;  %v673_v55 = vunpack.c.l.bf16 %v4734_v53  ;;  %v8749_v7 = vld [vmem:[#allocation8_spill] sm:$0xff]  ;;  %v8775_v20 = vld [vmem:[#allocation14_spill] sm:$0xff] }
 0x18b   : > { %8733 = vst [vmem:[#allocation97_spill] sm:$0xff] %v4682_v38  ;;  %v674_v6 = vunpack.c.h.bf16 %v4734_v53  ;;  %v1947_v32 = vadd.f32 %v1946_v45, %v4727_v42  ;;  %v4763_v49 = vadd.f32 %v4411_v27, %v1063_v8  ;;  %v4766_v22 = vadd.f32 %v4484_v48, %v1017_v36  ;;  %v4783_v8 = vld [vmem:[%s4377_s27 + $0xa8] sm:$0xff] }
 0x18c   : > { %8734 = vst [vmem:[#allocation98_spill] sm:$0xff] %v4685_v59  ;;  %v4746_v33 = vpop.f32.mrf.mxu2  ;;  %v1082_v9 = vadd.f32 %v8749_v7, %v671_v14  ;;  %v4772_v53 = vadd.f32 %v4484_v48, %v1041_v30  ;;  %v2011_v46 = vadd.f32 %v4652_v11, %v4738_v16  ;;  %v4780_v45 = vadd.f32 %v4567_v63, %v998_v47  ;;  %v8754_v7 = vld [vmem:[#allocation2_spill] sm:$0xff]  ;;  %v3737_v11 = vld [vmem:[%s8275_s2 + $0x10] sm:$0xff] }
 0x18d   : > { %8735 = vst [vmem:[#allocation99_spill] sm:$0xff] %v4689_v10  ;;  %v4757_v44 = vpop.f32.mrf.mxu3  ;;  %v4759_v61 = vpop.f32.mrf.mxu0  ;;  %v1979_v36 = vadd.f32 %v1978_v52, %v4766_v22  ;;  %v8753_v14 = vunpack.c.h.bf16 %v4631_v2  ;;  %v703_v1 = vunpack.c.l.bf16 %v4755_v56  ;;  %v4797_v47 = vadd.f32 %v4476_v43, %v1044_v0 }
 0x18e   : > { %8737 = vst [vmem:[#allocation100_spill] sm:$0xff] %v4703_v58  ;;  %v4769_v54 = vpop.f32.mrf.mxu1  ;;  %v770_v21 = vunpack.c.h.bf16 %v4858_v25 }
 0x18f   : > { %8738 = vst [vmem:[#allocation101_spill] sm:$0xff] %v4712_v13  ;;  %v8755_v13 = vld [vmem:[#allocation4_spill] sm:$0xff] }
 0x190   : > { %8739 = vst [vmem:[#allocation102_spill] sm:$0xff] %v4715_v51  ;;  %v4777_v51 = vadd.f32 %v4476_v43, %v1020_v5  ;;  %v1068_v30 = vadd.f32 %v8755_v13, %v798_v39  ;;  %3704 = vmatmul.msk.bf16.gmra.mxu0 %vm870_vm0, %v3737_v11  ;;  %v8757_v5 = vld [vmem:[#allocation5_spill] sm:$0xff]  ;;  %3707 = vmatmul.msk.bf16.gmra.mxu1 %vm870_vm0, %v3737_v11 }
 0x191   : > { %8740 = vst [vmem:[#allocation103_spill] sm:$0xff] %v4724_v60  ;;  %v603_v60 = vld [vmem:[%s4377_s27 + $0x120] sm:$0xff]  ;;  %v1022_v52 = vadd.f32 %v8757_v5, %v828_v40  ;;  %3710 = vmatmul.msk.bf16.gmra.mxu2 %vm870_vm0, %v3737_v11  ;;  %v4805_v39 = vadd.f32 %v1947_v32, %v4763_v49  ;;  %v4808_v13 = vadd.f32 %v4388_v31, %v1082_v9 }
 0x192   : > { %8741 = vst [vmem:[#allocation104_spill] sm:$0xff] %v4727_v42  ;;  %v1065_v42 = vadd.f32 %v8754_v7, %v8753_v14  ;;  %v704_v14 = vunpack.c.h.bf16 %v4755_v56  ;;  %v8760_v7 = vld [vmem:[#allocation9_spill] sm:$0xff]  ;;  %3713 = vmatmul.msk.bf16.gmra.mxu3 %vm870_vm0, %v3737_v11  ;;  %v2012_v40 = vadd.f32 %v2011_v46, %v4777_v51  ;;  %v735_v56 = vunpack.c.l.bf16 %v603_v60 }
 0x193   : > { %8743 = vst [vmem:[#allocation105_spill] sm:$0xff] %v4738_v16  ;;  %v8758_v16 = vld [vmem:[#allocation6_spill] sm:$0xff]  ;;  %v1106_v0 = vadd.f32 %v8760_v7, %v672_v26  ;;  %v4821_v9 = vadd.f32 %v4476_v43, %v1068_v30  ;;  %v706_v7 = vunpack.c.h.bf16 %v4783_v8 }
 0x194   : > { %8744 = vst [vmem:[#allocation106_spill] sm:$0xff] %v4746_v33  ;;  %v1046_v2 = vadd.f32 %v8758_v16, %v829_v28  ;;  %v1980_v16 = vadd.f32 %v1979_v36, %v4772_v53  ;;  %v2044_v28 = vadd.f32 %v4692_v24, %v4780_v45  ;;  %v4818_v32 = vadd.f32 %v4484_v48, %v1065_v42  ;;  %v8763_v26 = vld [vmem:[#allocation10_spill] sm:$0xff]  ;;  %v4828_v11 = vpop.f32.mrf.mxu2  ;;  %v8766_v36 = vld [vmem:[#allocation12_spill] sm:$0xff] }
 0x195   : > { %8746 = vst [vmem:[#allocation3_spill] sm:$0xff] %v4757_v44  ;;  %v1130_v5 = vadd.f32 %v8763_v26, %v673_v55  ;;  %v2013_v46 = vadd.f32 %v2012_v40, %v4797_v47  ;;  %v4832_v24 = vadd.f32 %v4567_v63, %v1022_v52  ;;  %v1084_v30 = vadd.f32 %v8766_v36, %v703_v1  ;;  %v4839_v55 = vpop.f32.mrf.mxu3  ;;  %v8767_v26 = vld [vmem:[#allocation7_spill] sm:$0xff]  ;;  %v8769_v36 = vld [vmem:[#allocation16_spill] sm:$0xff]  ;;  %v8791_v44 = vld [vmem:[#allocation22_spill] sm:$0xff] }
 0x196   : > { %8747 = vst [vmem:[#allocation107_spill] sm:$0xff] %v4763_v49  ;;  %v4826_v49 = vld [vmem:[%s4377_s27 + $0x128] sm:$0xff]  ;;  %v4835_v42 = vadd.f32 %v4567_v63, %v1046_v2  ;;  %v1883_v40 = vadd.f32 %v4719_v41, %v4808_v13  ;;  %v736_v52 = vunpack.c.h.bf16 %v603_v60  ;;  %v4852_v2 = vadd.f32 %v1980_v16, %v4818_v32  ;;  %v8794_v33 = vld [vmem:[#allocation28_spill] sm:$0xff] }
 0x197   : > { %8748 = vst [vmem:[#allocation108_spill] sm:$0xff] %v4766_v22  ;;  %v705_v22 = vunpack.c.l.bf16 %v4783_v8  ;;  %v4841_v8 = vpop.f32.mrf.mxu0  ;;  %v2045_v1 = vadd.f32 %v2044_v28, %v4832_v24  ;;  %v1087_v59 = vadd.f32 %v8769_v36, %v735_v56  ;;  %v737_v38 = vunpack.c.l.bf16 %v4826_v49 }
 0x198   : > { %8750 = vst [vmem:[#allocation8_spill] sm:$0xff] %v4772_v53  ;;  %v4849_v53 = vpop.f32.mrf.mxu1  ;;  %v4862_v41 = vadd.f32 %v4388_v31, %v1130_v5  ;;  %v4871_v56 = vadd.f32 %v4425_v34, %v1084_v30  ;;  %v636_v30 = vld [vmem:[%s4377_s27 + $0x228] sm:$0xff] }
 0x199   : > { %8751 = vst [vmem:[#allocation109_spill] sm:$0xff] %v4777_v51  ;;  %v1070_v51 = vadd.f32 %v8767_v26, %v830_v23  ;;  %v635_v23 = vld [vmem:[%s4377_s27 + $0x220] sm:$0xff]  ;;  %v738_v26 = vunpack.c.h.bf16 %v4826_v49  ;;  %v2046_v28 = vadd.f32 %v2045_v1, %v4835_v42  ;;  %v1132_v57 = vadd.f32 %v8775_v20, %v705_v22  ;;  %v8777_v1 = vld [vmem:[#allocation17_spill] sm:$0xff] }
 0x19a   : > { %8752 = vst [vmem:[#allocation110_spill] sm:$0xff] %v4780_v45  ;;  %v619_v45 = vld [vmem:[%s4377_s27 + $0x1a0] sm:$0xff] }
 0x19b   : > { %8756 = vst [vmem:[#allocation2_spill] sm:$0xff] %v4797_v47  ;;  %v4847_v47 = vadd.f32 %v4388_v31, %v1106_v0  ;;  %v8771_v0 = vld [vmem:[#allocation11_spill] sm:$0xff]  ;;  %v767_v16 = vunpack.c.l.bf16 %v619_v45  ;;  %v768_v36 = vunpack.c.h.bf16 %v619_v45  ;;  %v8780_v22 = vld [vmem:[#allocation18_spill] sm:$0xff] }
 0x19c   : > { %8759 = vst [vmem:[#allocation4_spill] sm:$0xff] %v4808_v13  ;;  %v1154_v60 = vadd.f32 %v8771_v0, %v674_v6  ;;  %v769_v6 = vunpack.c.l.bf16 %v4858_v25  ;;  %v799_v0 = vunpack.c.l.bf16 %v635_v23  ;;  %v8774_v13 = vld [vmem:[#allocation13_spill] sm:$0xff]  ;;  %v802_v25 = vunpack.c.h.bf16 %v636_v30 }
 0x19d   : > { %8761 = vst [vmem:[#allocation5_spill] sm:$0xff] %v4818_v32  ;;  %v4867_v32 = vadd.f32 %v2013_v46, %v4821_v9  ;;  %v1884_v5 = vadd.f32 %v1883_v40, %v4847_v47  ;;  %v1108_v49 = vadd.f32 %v8774_v13, %v704_v14  ;;  %v4881_v46 = vadd.f32 %v4411_v27, %v1087_v59  ;;  %v8779_v40 = vld [vmem:[#allocation20_spill] sm:$0xff]  ;;  %v4894_v14 = vpop.f32.mrf.mxu2 }
 0x19e   : > { %8762 = vst [vmem:[#allocation6_spill] sm:$0xff] %v4821_v9  ;;  %v4886_v9 = vld [vmem:[%s4377_s27 + $0x2a0] sm:$0xff]  ;;  %v4890_v45 = vadd.f32 %v4388_v31, %v1154_v60  ;;  %v1916_v59 = vadd.f32 %v4749_v50, %v4871_v56  ;;  %v1135_v13 = vadd.f32 %v8780_v22, %v737_v38  ;;  %v4914_v38 = vadd.f32 %v4425_v34, %v1132_v57 }
 0x19f   : > { %8764 = vst [vmem:[#allocation9_spill] sm:$0xff] %v4832_v24  ;;  %v4874_v24 = vadd.f32 %v4567_v63, %v1070_v51  ;;  %v1885_v51 = vadd.f32 %v1884_v5, %v4862_v41  ;;  %v4902_v5 = vpop.f32.mrf.mxu3  ;;  %v4904_v60 = vpop.f32.mrf.mxu0  ;;  %v1949_v50 = vadd.f32 %v4805_v39, %v4881_v46  ;;  %v8789_v39 = vld [vmem:[#allocation19_spill] sm:$0xff] }
 0x1a0   : > { %8765 = vst [vmem:[#allocation10_spill] sm:$0xff] %v4835_v42  ;;  %v1111_v42 = vadd.f32 %v8777_v1, %v736_v52  ;;  %v800_v52 = vunpack.c.h.bf16 %v635_v23  ;;  %v8782_v1 = vld [vmem:[#allocation24_spill] sm:$0xff]  ;;  %v4934_v37 = vadd.f32 %v4411_v27, %v1135_v13 }
 0x1a1   : > { %8768 = vst [vmem:[#allocation12_spill] sm:$0xff] %v4847_v47  ;;  %v1089_v47 = vadd.f32 %v8779_v40, %v767_v16  ;;  %v4897_v20 = vadd.f32 %v2046_v28, %v4874_v24  ;;  %v1092_v16 = vadd.f32 %v8782_v1, %v799_v0  ;;  %v801_v40 = vunpack.c.l.bf16 %v636_v30  ;;  %v4908_v28 = vpop.f32.mrf.mxu1  ;;  %v8786_v30 = vld [vmem:[#allocation15_spill] sm:$0xff] }
 0x1a2   : > { %8770 = vst [vmem:[#allocation7_spill] sm:$0xff] %v4862_v41  ;;  %v831_v41 = vunpack.c.l.bf16 %v4886_v9  ;;  %v4919_v23 = vadd.f32 %v4411_v27, %v1111_v42  ;;  %v4922_v0 = vadd.f32 %v1885_v51, %v4890_v45  ;;  %v1156_v22 = vadd.f32 %v8786_v30, %v706_v7  ;;  %v8793_v30 = vld [vmem:[#allocation25_spill] sm:$0xff] }
 0x1a3   : > { %8772 = vst [vmem:[#allocation16_spill] sm:$0xff] %v4871_v56  ;;  %v4926_v1 = vadd.f32 %v4484_v48, %v1089_v47  ;;  %v4930_v56 = vld [vmem:[%s4377_s27 + $0x2a8] sm:$0xff]  ;;  %v1159_v42 = vadd.f32 %v8789_v39, %v738_v26  ;;  %v1137_v7 = vadd.f32 %v8791_v44, %v769_v6  ;;  %v4941_v47 = vadd.f32 %v4476_v43, %v1092_v16  ;;  %v8796_v6 = vld [vmem:[#allocation26_spill] sm:$0xff]  ;;  %v4956_v16 = vld [vmem:[%s4377_s27 + $0xb0] sm:$0xff] }
 0x1a4   : > { %8773 = vst [vmem:[#allocation11_spill] sm:$0xff] %v4874_v24  ;;  %v4911_v24 = vadd.f32 %v4425_v34, %v1108_v49  ;;  %v832_v49 = vunpack.c.h.bf16 %v4886_v9  ;;  %v1116_v9 = vadd.f32 %v8793_v30, %v800_v52  ;;  %v1094_v58 = vadd.f32 %v8794_v33, %v831_v41 }
 0x1a5   : > { %8776 = vst [vmem:[#allocation13_spill] sm:$0xff] %v4881_v46  ;;  %v8790_v46 = vld [vmem:[#allocation21_spill] sm:$0xff]  ;;  %v1950_v13 = vadd.f32 %v1949_v50, %v4919_v23  ;;  %v834_v26 = vunpack.c.h.bf16 %v4930_v56  ;;  %v1982_v44 = vadd.f32 %v4852_v2, %v4926_v1  ;;  %v4958_v33 = vpop.f32.mrf.mxu2  ;;  %v4962_v50 = vadd.f32 %v4411_v27, %v1159_v42 }
 0x1a6   : > { %8778 = vst [vmem:[#allocation14_spill] sm:$0xff] %v4890_v45  ;;  %v1917_v57 = vadd.f32 %v1916_v59, %v4911_v24  ;;  %v1113_v51 = vadd.f32 %v8790_v46, %v768_v36  ;;  %v573_v45 = vld [vmem:[%s4377_s27 + $0x30] sm:$0xff]  ;;  %v4950_v36 = vadd.f32 %v4425_v34, %v1156_v22  ;;  %v1140_v46 = vadd.f32 %v8796_v6, %v801_v40  ;;  %v8805_v6 = vld [vmem:[#allocation23_spill] sm:$0xff] }
 0x1a7   : > { %8781 = vst [vmem:[#allocation17_spill] sm:$0xff] %v4902_v5  ;;  %v675_v52 = vunpack.c.l.bf16 %v573_v45  ;;  %v1951_v41 = vadd.f32 %v1950_v13, %v4934_v37  ;;  %v676_v22 = vunpack.c.h.bf16 %v573_v45  ;;  %v4969_v2 = vpop.f32.mrf.mxu0  ;;  %v4972_v40 = vadd.f32 %v4484_v48, %v1137_v7  ;;  %v8806_v7 = vld [vmem:[#allocation27_spill] sm:$0xff]  ;;  %v5000_v5 = vld [vmem:[%s4377_s27 + $0xb8] sm:$0xff] }
 0x1a8   : > { %8783 = vst [vmem:[#allocation20_spill] sm:$0xff] %v4911_v24  ;;  %v1918_v59 = vadd.f32 %v1917_v57, %v4914_v38  ;;  %v833_v24 = vunpack.c.l.bf16 %v4930_v56  ;;  %v4965_v56 = vadd.f32 %v4484_v48, %v1113_v51  ;;  %v4967_v57 = vpop.f32.mrf.mxu3  ;;  %v2015_v39 = vadd.f32 %v4867_v32, %v4941_v47  ;;  %v4983_v51 = vld [vmem:[%s4377_s27 + $0x38] sm:$0xff] }
 0x1a9   : > { %8784 = vst [vmem:[#allocation18_spill] sm:$0xff] %v4914_v38  ;;  %v4977_v30 = vadd.f32 %v4476_v43, %v1116_v9  ;;  %v4980_v42 = vadd.f32 %v4567_v63, %v1094_v58  ;;  %v4985_v45 = vpop.f32.mrf.mxu1  ;;  %v4995_v9 = vadd.f32 %v4476_v43, %v1140_v46  ;;  %v8808_v58 = vld [vmem:[#allocation29_spill] sm:$0xff]  ;;  %v8809_v38 = vld [vmem:[#allocation30_spill] sm:$0xff]  ;;  %v5008_v46 = vadd.f32 %v1951_v41, %v4962_v50 }
 0x1aa   : > { %8785 = vst [vmem:[#allocation24_spill] sm:$0xff] %v4919_v23  ;;  %v4988_v13 = vadd.f32 %v1918_v59, %v4950_v36  ;;  %v707_v23 = vunpack.c.l.bf16 %v4956_v16  ;;  %v1983_v32 = vadd.f32 %v1982_v44, %v4965_v56  ;;  %v1142_v10 = vadd.f32 %v8809_v38, %v833_v24  ;;  %v605_v59 = vld [vmem:[%s4377_s27 + $0x130] sm:$0xff] }
 0x1ab   : > { %8787 = vst [vmem:[#allocation15_spill] sm:$0xff] %v4926_v1  ;;  %v1161_v1 = vadd.f32 %v8805_v6, %v770_v21  ;;  %v677_v21 = vunpack.c.l.bf16 %v4983_v51  ;;  %v708_v44 = vunpack.c.h.bf16 %v4956_v16  ;;  %v2016_v6 = vadd.f32 %v2015_v39, %v4977_v30  ;;  %v5022_v16 = vld [vmem:[%s4377_s27 + $0x138] sm:$0xff] }
 0x1ac   : > { %8788 = vst [vmem:[#allocation111_spill] sm:$0xff] %v4934_v37  ;;  %v1164_v37 = vadd.f32 %v8806_v7, %v802_v25  ;;  %v678_v25 = vunpack.c.h.bf16 %v4983_v51  ;;  %v2048_v24 = vadd.f32 %v4897_v20, %v4980_v42  ;;  %v739_v51 = vunpack.c.l.bf16 %v605_v59 }
 0x1ad   : > { %8792 = vst [vmem:[#allocation19_spill] sm:$0xff] %v4941_v47  ;;  %v1118_v47 = vadd.f32 %v8808_v58, %v832_v49  ;;  %v1984_v49 = vadd.f32 %v1983_v32, %v4972_v40  ;;  %v5015_v38 = vadd.f32 %v4484_v48, %v1161_v1  ;;  %v2017_v41 = vadd.f32 %v2016_v6, %v4995_v9  ;;  %v8815_v1 = vld [vmem:[#allocation36_spill] sm:$0xff] }
 0x1ae   : > { %8795 = vst [vmem:[#allocation21_spill] sm:$0xff] %v4950_v36  ;;  %v8810_v36 = vld [vmem:[#allocation32_spill] sm:$0xff]  ;;  %v5029_v20 = vadd.f32 %v4567_v63, %v1142_v10  ;;  %v1180_v39 = vadd.f32 %v8815_v1, %v707_v23  ;;  %v710_v6 = vunpack.c.h.bf16 %v5000_v5  ;;  %v8821_v1 = vld [vmem:[#allocation31_spill] sm:$0xff] }
 0x1af   : > { %8797 = vst [vmem:[#allocation22_spill] sm:$0xff] %v4958_v33  ;;  %v5026_v7 = vadd.f32 %v4567_v63, %v1118_v47  ;;  %v5033_v32 = vld [vmem:[%s4377_s27 + $0x1b0] sm:$0xff]  ;;  %v5047_v10 = vadd.f32 %v1984_v49, %v5015_v38 }
 0x1b0   : > { %8798 = vst [vmem:[#allocation25_spill] sm:$0xff] %v4962_v50  ;;  %v5042_v47 = vpop.f32.mrf.mxu3  ;;  %v741_v50 = vunpack.c.l.bf16 %v5022_v16  ;;  %v772_v49 = vunpack.c.h.bf16 %v5033_v32  ;;  %v5091_v33 = vld [vmem:[%s4377_s27 + $0x2b0] sm:$0xff] }
 0x1b1   : > { %8799 = vst [vmem:[#allocation28_spill] sm:$0xff] %v4965_v56  ;;  %v2049_v23 = vadd.f32 %v2048_v24, %v5026_v7  ;;  %v1166_v56 = vadd.f32 %v8821_v1, %v834_v26  ;;  %v5067_v1 = vadd.f32 %v4425_v34, %v1180_v39 }
 0x1b2   : > { %8800 = vst [vmem:[#allocation26_spill] sm:$0xff] %v4967_v57  ;;  %v1178_v57 = vadd.f32 %v8810_v36, %v675_v52  ;;  %v5018_v36 = vadd.f32 %v4476_v43, %v1164_v37  ;;  %v709_v52 = vunpack.c.l.bf16 %v5000_v5  ;;  %v5035_v37 = vpop.f32.mrf.mxu2  ;;  %v8823_v5 = vld [vmem:[#allocation34_spill] sm:$0xff] }
 0x1b3   : > { %8801 = vst [vmem:[#allocation112_spill] sm:$0xff] %v4972_v40  ;;  %v5044_v40 = vpop.f32.mrf.mxu0  ;;  %v2050_v26 = vadd.f32 %v2049_v23, %v5029_v20 }
 0x1b4   : > { %8802 = vst [vmem:[#allocation113_spill] sm:$0xff] %v4977_v30  ;;  %v5038_v58 = vadd.f32 %v4388_v31, %v1178_v57  ;;  %v5053_v57 = vld [vmem:[%s4377_s27 + $0x1b8] sm:$0xff]  ;;  %v5063_v24 = vadd.f32 %v2017_v41, %v5018_v36  ;;  %v5077_v41 = vadd.f32 %v4567_v63, %v1166_v56 }
 0x1b5   : > { %8803 = vst [vmem:[#allocation114_spill] sm:$0xff] %v4980_v42  ;;  %v8818_v42 = vld [vmem:[#allocation33_spill] sm:$0xff] }
 0x1b6   : > { %8804 = vst [vmem:[#allocation115_spill] sm:$0xff] %v4985_v45  ;;  %v1202_v30 = vadd.f32 %v8818_v42, %v676_v22  ;;  %v5056_v22 = vpop.f32.mrf.mxu1  ;;  %v1226_v42 = vadd.f32 %v8823_v5, %v677_v21  ;;  %v1887_v21 = vadd.f32 %v4922_v0, %v5038_v58  ;;  %v773_v5 = vunpack.c.l.bf16 %v5053_v57 }
 0x1b7   : > { %8807 = vst [vmem:[#allocation23_spill] sm:$0xff] %v4995_v9  ;;  %v740_v9 = vunpack.c.h.bf16 %v605_v59  ;;  %v742_v59 = vunpack.c.h.bf16 %v5022_v16  ;;  %v5094_v56 = vadd.f32 %v2050_v26, %v5077_v41  ;;  %v575_v26 = vld [vmem:[%s4377_s27 + $0x40] sm:$0xff] }
 0x1b8   : > { %8811 = vst [vmem:[#allocation27_spill] sm:$0xff] %v5015_v38  ;;  %v5073_v16 = vadd.f32 %v4388_v31, %v1202_v30  ;;  %v5086_v0 = vadd.f32 %v4388_v31, %v1226_v42  ;;  %v8831_v30 = vld [vmem:[#allocation35_spill] sm:$0xff]  ;;  %v5109_v39 = vpop.f32.mrf.mxu3 }
 0x1b9   : > { %8812 = vst [vmem:[#allocation29_spill] sm:$0xff] %v5018_v36  ;;  %v8828_v36 = vld [vmem:[#allocation37_spill] sm:$0xff] }
 0x1ba   : > { %8813 = vst [vmem:[#allocation30_spill] sm:$0xff] %v5026_v7  ;;  %v8825_v7 = vld [vmem:[#allocation40_spill] sm:$0xff]  ;;  %v1204_v23 = vadd.f32 %v8828_v36, %v708_v44  ;;  %v1920_v44 = vadd.f32 %v4988_v13, %v5067_v1  ;;  %v5102_v42 = vpop.f32.mrf.mxu2 }
 0x1bb   : > { %8814 = vst [vmem:[#allocation32_spill] sm:$0xff] %v5029_v20  ;;  %v1183_v38 = vadd.f32 %v8825_v7, %v739_v51  ;;  %v8829_v20 = vld [vmem:[#allocation38_spill] sm:$0xff]  ;;  %v5083_v51 = vld [vmem:[%s4377_s27 + $0x238] sm:$0xff]  ;;  %v1250_v7 = vadd.f32 %v8831_v30, %v678_v25  ;;  %v1888_v25 = vadd.f32 %v1887_v21, %v5073_v16  ;;  %v8838_v30 = vld [vmem:[#allocation48_spill] sm:$0xff] }
 0x1bc   : > { %8816 = vst [vmem:[#allocation36_spill] sm:$0xff] %v5035_v37  ;;  %v637_v37 = vld [vmem:[%s4377_s27 + $0x230] sm:$0xff]  ;;  %v5114_v13 = vadd.f32 %v4425_v34, %v1204_v23 }
 0x1bd   : > { %8817 = vst [vmem:[#allocation116_spill] sm:$0xff] %v5038_v58  ;;  %v8832_v58 = vld [vmem:[#allocation44_spill] sm:$0xff]  ;;  %v804_v45 = vunpack.c.h.bf16 %v637_v37  ;;  %v5099_v36 = vadd.f32 %v4411_v27, %v1183_v38  ;;  %v8843_v38 = vld [vmem:[#allocation42_spill] sm:$0xff] }
 0x1be   : > { %8819 = vst [vmem:[#allocation33_spill] sm:$0xff] %v5042_v47  ;;  %v771_v47 = vunpack.c.l.bf16 %v5033_v32  ;;  %v803_v32 = vunpack.c.l.bf16 %v637_v37  ;;  %v805_v37 = vunpack.c.l.bf16 %v5083_v51  ;;  %v1231_v21 = vadd.f32 %v8843_v38, %v741_v50 }
 0x1bf   : > { %8820 = vst [vmem:[#allocation117_spill] sm:$0xff] %v5044_v40  ;;  %v679_v38 = vunpack.c.l.bf16 %v575_v26 }
 0x1c0   : > { %8822 = vst [vmem:[#allocation31_spill] sm:$0xff] %v5056_v22  ;;  %v1228_v22 = vadd.f32 %v8829_v20, %v709_v52  ;;  %v1185_v40 = vadd.f32 %v8832_v58, %v771_v47  ;;  %v8836_v52 = vld [vmem:[#allocation41_spill] sm:$0xff]  ;;  %v1188_v58 = vadd.f32 %v8838_v30, %v803_v32  ;;  %v806_v47 = vunpack.c.h.bf16 %v5083_v51 }
 0x1c1   : > { %8824 = vst [vmem:[#allocation34_spill] sm:$0xff] %v5067_v1  ;;  %v1207_v20 = vadd.f32 %v8836_v52, %v740_v9  ;;  %v5121_v52 = vpop.f32.mrf.mxu1  ;;  %v1889_v51 = vadd.f32 %v1888_v25, %v5086_v0  ;;  %v5125_v30 = vadd.f32 %v4388_v31, %v1250_v7  ;;  %v8846_v1 = vld [vmem:[#allocation39_spill] sm:$0xff]  ;;  %v8849_v32 = vld [vmem:[#allocation45_spill] sm:$0xff] }
 0x1c2   : > { %8826 = vst [vmem:[#allocation40_spill] sm:$0xff] %v5073_v16  ;;  %v5117_v9 = vadd.f32 %v4425_v34, %v1228_v22  ;;  %v1252_v16 = vadd.f32 %v8846_v1, %v710_v6  ;;  %v5129_v23 = vadd.f32 %v4484_v48, %v1185_v40  ;;  %v1921_v22 = vadd.f32 %v1920_v44, %v5114_v13  ;;  %v8852_v6 = vld [vmem:[#allocation49_spill] sm:$0xff]  ;;  %v5144_v1 = vld [vmem:[%s4377_s27 + $0xc0] sm:$0xff] }
 0x1c3   : > { %8827 = vst [vmem:[#allocation118_spill] sm:$0xff] %v5077_v41  ;;  %v5111_v41 = vpop.f32.mrf.mxu0  ;;  %v5135_v50 = vadd.f32 %v4411_v27, %v1207_v20  ;;  %v1209_v25 = vadd.f32 %v8849_v32, %v772_v49  ;;  %v1212_v40 = vadd.f32 %v8852_v6, %v804_v45  ;;  %v1890_v49 = vadd.f32 %v1889_v51, %v5125_v30  ;;  %v8856_v45 = vld [vmem:[#allocation50_spill] sm:$0xff]  ;;  %v576_v32 = vld [vmem:[%s4377_s27 + $0x48] sm:$0xff] }
 0x1c4   : > { %8830 = vst [vmem:[#allocation37_spill] sm:$0xff] %v5086_v0  ;;  %v8850_v0 = vld [vmem:[#allocation46_spill] sm:$0xff]  ;;  %v1922_v44 = vadd.f32 %v1921_v22, %v5117_v9 }
 0x1c5   : > { %8833 = vst [vmem:[#allocation38_spill] sm:$0xff] %v5091_v33  ;;  %v1233_v7 = vadd.f32 %v8850_v0, %v773_v5  ;;  %v5154_v5 = vadd.f32 %v4425_v34, %v1252_v16  ;;  %v1986_v0 = vadd.f32 %v5047_v10, %v5129_v23  ;;  %v5166_v51 = vadd.f32 %v4484_v48, %v1209_v25 }
 0x1c6   : > { %8834 = vst [vmem:[#allocation35_spill] sm:$0xff] %v5094_v56  ;;  %v639_v56 = vld [vmem:[%s4377_s27 + $0x240] sm:$0xff] }
 0x1c7   : > { %8835 = vst [vmem:[#allocation44_spill] sm:$0xff] %v5099_v36  ;;  %v5169_v16 = vadd.f32 %v4484_v48, %v1233_v7  ;;  %v681_v7 = vunpack.c.l.bf16 %v576_v32 }
 0x1c8   : > { %8837 = vst [vmem:[#allocation41_spill] sm:$0xff] %v5102_v42  ;;  %v640_v42 = vld [vmem:[%s4377_s27 + $0x248] sm:$0xff] }
 0x1c9   : > { %8839 = vst [vmem:[#allocation48_spill] sm:$0xff] %v5109_v39 }
 0x1ca   : > { %8840 = vst [vmem:[#allocation119_spill] sm:$0xff] %v5111_v41  ;;  %v1953_v41 = vadd.f32 %v5008_v46, %v5099_v36  ;;  %v5148_v46 = vadd.f32 %v4411_v27, %v1231_v21  ;;  %v8854_v36 = vld [vmem:[#allocation43_spill] sm:$0xff]  ;;  %v8857_v21 = vld [vmem:[#allocation56_spill] sm:$0xff] }
 0x1cb   : > { %8841 = vst [vmem:[#allocation120_spill] sm:$0xff] %v5114_v13  ;;  %v1255_v20 = vadd.f32 %v8854_v36, %v742_v59  ;;  %v1274_v6 = vadd.f32 %v8857_v21, %v679_v38  ;;  %v711_v59 = vunpack.c.l.bf16 %v5144_v1  ;;  %v5163_v36 = vpop.f32.mrf.mxu2  ;;  %v1923_v38 = vadd.f32 %v1922_v44, %v5154_v5  ;;  %v607_v21 = vld [vmem:[%s4377_s27 + $0x140] sm:$0xff]  ;;  %v5186_v13 = vpop.f32.mrf.mxu1  ;;  %v8867_v44 = vld [vmem:[#allocation51_spill] sm:$0xff] }
 0x1cc   : > { %8842 = vst [vmem:[#allocation121_spill] sm:$0xff] %v5117_v9  ;;  %v1954_v22 = vadd.f32 %v1953_v41, %v5135_v50  ;;  %v680_v9 = vunpack.c.h.bf16 %v575_v26  ;;  %v5174_v41 = vadd.f32 %v4476_v43, %v1212_v40  ;;  %v5178_v26 = vpop.f32.mrf.mxu0  ;;  %v8864_v40 = vunpack.c.h.bf16 %v5053_v57 }
 0x1cd   : > { %8844 = vst [vmem:[#allocation42_spill] sm:$0xff] %v5121_v52  ;;  %v5140_v52 = vadd.f32 %v4476_v43, %v1188_v58  ;;  %v1236_v58 = vadd.f32 %v8856_v45, %v805_v37  ;;  %v5176_v37 = vpop.f32.mrf.mxu3  ;;  %v5183_v45 = vadd.f32 %v4411_v27, %v1255_v20  ;;  %v623_v20 = vld [vmem:[%s4377_s27 + $0x1c0] sm:$0xff] }
 0x1ce   : > { %8845 = vst [vmem:[#allocation122_spill] sm:$0xff] %v5125_v30  ;;  %v1955_v25 = vadd.f32 %v1954_v22, %v5148_v46  ;;  %v1260_v22 = vadd.f32 %v8867_v44, %v806_v47  ;;  %v8869_v30 = vld [vmem:[#allocation57_spill] sm:$0xff]  ;;  %v8871_v44 = vld [vmem:[#allocation58_spill] sm:$0xff]  ;;  %v776_v39 = vunpack.c.h.bf16 %v623_v20 }
 0x1cf   : > { %8847 = vst [vmem:[#allocation39_spill] sm:$0xff] %v5129_v23  ;;  %v2019_v10 = vadd.f32 %v5063_v24, %v5140_v52  ;;  %v1987_v24 = vadd.f32 %v1986_v0, %v5166_v51  ;;  %v712_v0 = vunpack.c.h.bf16 %v5144_v1  ;;  %v1322_v63 = vadd.f32 %v8871_v44, %v681_v7 }
 0x1d0   : > { %8848 = vst [vmem:[#allocation123_spill] sm:$0xff] %v5135_v50  ;;  %v5193_v50 = vadd.f32 %v4476_v43, %v1236_v58  ;;  %v1956_v47 = vadd.f32 %v1955_v25, %v5183_v45  ;;  %v744_v7 = vunpack.c.h.bf16 %v607_v21 }
 0x1d1   : > { %8851 = vst [vmem:[#allocation45_spill] sm:$0xff] %v5140_v52  ;;  %v8865_v52 = vld [vmem:[#allocation47_spill] sm:$0xff]  ;;  %v1988_v57 = vadd.f32 %v1987_v24, %v5169_v16  ;;  %v807_v24 = vunpack.c.l.bf16 %v639_v56 }
 0x1d2   : > { %8853 = vst [vmem:[#allocation46_spill] sm:$0xff] %v5148_v46  ;;  %v1257_v23 = vadd.f32 %v8865_v52, %v8864_v40  ;;  %v592_v46 = vld [vmem:[%s4377_s27 + $0xc8] sm:$0xff]  ;;  %v2020_v52 = vadd.f32 %v2019_v10, %v5174_v41  ;;  %v8870_v40 = vld [vmem:[#allocation60_spill] sm:$0xff] }
 0x1d3   : > { %8855 = vst [vmem:[#allocation49_spill] sm:$0xff] %v5154_v5  ;;  %v5199_v5 = vadd.f32 %v4388_v31, %v1274_v6  ;;  %v1276_v58 = vadd.f32 %v8870_v40, %v711_v59  ;;  %v713_v33 = vunpack.c.l.bf16 %v592_v46  ;;  %v5210_v6 = vld [vmem:[%s4377_s27 + $0x148] sm:$0xff]  ;;  %v714_v59 = vunpack.c.h.bf16 %v592_v46  ;;  %v5223_v40 = vpop.f32.mrf.mxu2 }
 0x1d4   : > { %8858 = vst [vmem:[#allocation43_spill] sm:$0xff] %v5163_v36  ;;  %v682_v36 = vunpack.c.h.bf16 %v576_v32  ;;  %v2021_v1 = vadd.f32 %v2020_v52, %v5193_v50  ;;  %v5217_v32 = vadd.f32 %v4476_v43, %v1260_v22  ;;  %v745_v22 = vunpack.c.l.bf16 %v5210_v6  ;;  %v5232_v46 = vld [vmem:[%s4377_s27 + $0x1c8] sm:$0xff] }
 0x1d5   : > { %8859 = vst [vmem:[#allocation50_spill] sm:$0xff] %v5166_v51  ;;  %v743_v51 = vunpack.c.l.bf16 %v607_v21  ;;  %v1891_v10 = vadd.f32 %v1890_v49, %v5199_v5  ;;  %v5234_v49 = vpop.f32.mrf.mxu3  ;;  %v5239_v21 = vadd.f32 %v4388_v31, %v1322_v63 }
 0x1d6   : > { %8860 = vst [vmem:[#allocation56_spill] sm:$0xff] %v5169_v16 }
 0x1d7   : > { %8861 = vst [vmem:[#allocation124_spill] sm:$0xff] %v5174_v41  ;;  %v1279_v52 = vadd.f32 %v4456_v17, %v743_v51  ;;  %v2022_v17 = vadd.f32 %v2021_v1, %v5217_v32  ;;  %v8877_v51 = vld [vmem:[#allocation61_spill] sm:$0xff] }
 0x1d8   : > { %8862 = vst [vmem:[#allocation125_spill] sm:$0xff] %v5176_v37  ;;  %v1298_v37 = vadd.f32 %v8869_v30, %v680_v9  ;;  %v775_v9 = vunpack.c.l.bf16 %v623_v20  ;;  %v5213_v30 = vadd.f32 %v4484_v48, %v1257_v23  ;;  %v5227_v23 = vadd.f32 %v4425_v34, %v1276_v58 }
 0x1d9   : > { %8863 = vst [vmem:[#allocation126_spill] sm:$0xff] %v5183_v45  ;;  %v1300_v16 = vadd.f32 %v8877_v51, %v712_v0  ;;  %v8878_v45 = vld [vmem:[#allocation67_spill] sm:$0xff]  ;;  %v778_v0 = vunpack.c.h.bf16 %v5232_v46 }
 0x1da   : > { %8866 = vst [vmem:[#allocation47_spill] sm:$0xff] %v5193_v50  ;;  %v5221_v25 = vadd.f32 %v4388_v31, %v1298_v37  ;;  %v1989_v44 = vadd.f32 %v1988_v57, %v5213_v30  ;;  %v5236_v37 = vpop.f32.mrf.mxu0  ;;  %v8876_v50 = vld [vmem:[#allocation59_spill] sm:$0xff]  ;;  %v746_v57 = vunpack.c.h.bf16 %v5210_v6  ;;  %v1281_v58 = vadd.f32 %v4537_v19, %v775_v9 }
 0x1db   : > { %8868 = vst [vmem:[#allocation51_spill] sm:$0xff] %v5199_v5  ;;  %v1346_v41 = vadd.f32 %v8876_v50, %v682_v36  ;;  %v1324_v5 = vadd.f32 %v8878_v45, %v713_v33  ;;  %v1284_v50 = vadd.f32 %v4609_v62, %v807_v24  ;;  %v808_v36 = vunpack.c.h.bf16 %v639_v56  ;;  %v8880_v9 = vld [vmem:[#allocation71_spill] sm:$0xff]  ;;  %v577_v62 = vld [vmem:[%s4377_s27 + $0x50] sm:$0xff] }
 0x1dc   : > { %8872 = vst [vmem:[#allocation57_spill] sm:$0xff] %v5213_v30  ;;  %v5244_v30 = vpop.f32.mrf.mxu1  ;;  %v1892_v63 = vadd.f32 %v1891_v10, %v5221_v25  ;;  %v1924_v19 = vadd.f32 %v1923_v38, %v5227_v23  ;;  %v5255_v6 = vadd.f32 %v4411_v27, %v1279_v52  ;;  %v1303_v1 = vadd.f32 %v8880_v9, %v744_v7  ;;  %v8884_v24 = vld [vmem:[#allocation68_spill] sm:$0xff] }
 0x1dd   : > { %8873 = vst [vmem:[#allocation60_spill] sm:$0xff] %v5217_v32  ;;  %v5261_v45 = vadd.f32 %v4388_v31, %v1346_v41  ;;  %v5264_v20 = vadd.f32 %v4484_v48, %v1281_v58  ;;  %v809_v10 = vunpack.c.l.bf16 %v640_v42  ;;  %v5268_v56 = vadd.f32 %v4425_v34, %v1300_v16 }
 0x1de   : > { %8874 = vst [vmem:[#allocation58_spill] sm:$0xff] %v5227_v23  ;;  %v1893_v33 = vadd.f32 %v1892_v63, %v5239_v21  ;;  %v5271_v38 = vadd.f32 %v4425_v34, %v1324_v5  ;;  %v1348_v7 = vadd.f32 %v8884_v24, %v714_v59  ;;  %v1327_v52 = vadd.f32 %v4526_v35, %v745_v22  ;;  %v5281_v63 = vpop.f32.mrf.mxu2  ;;  %v5288_v22 = vpop.f32.mrf.mxu3  ;;  %v578_v24 = vld [vmem:[%s4377_s27 + $0x58] sm:$0xff] }
 0x1df   : > { %8875 = vst [vmem:[#allocation127_spill] sm:$0xff] %v5234_v49  ;;  %v777_v49 = vunpack.c.l.bf16 %v5232_v46  ;;  %v1305_v46 = vadd.f32 %v4548_v4, %v776_v39  ;;  %v5278_v58 = vadd.f32 %v4476_v43, %v1284_v50  ;;  %v1308_v51 = vadd.f32 %v4619_v29, %v808_v36  ;;  %v5296_v50 = vld [vmem:[%s4377_s27 + $0xd0] sm:$0xff] }
 0x1e0   : > { %8879 = vst [vmem:[#allocation59_spill] sm:$0xff] %v5255_v6  ;;  %v1925_v16 = vadd.f32 %v1924_v19, %v5268_v56  ;;  %v1957_v5 = vadd.f32 %v1956_v47, %v5255_v6  ;;  %v5286_v59 = vadd.f32 %v4411_v27, %v1303_v1  ;;  %v683_v35 = vunpack.c.l.bf16 %v577_v62  ;;  %v8889_v1 = vld [vmem:[#allocation80_spill] sm:$0xff] }
 0x1e1   : > { %8881 = vst [vmem:[#allocation61_spill] sm:$0xff] %v5264_v20  ;;  %v1329_v41 = vadd.f32 %v4597_v3, %v777_v49  ;;  %v1894_v3 = vadd.f32 %v1893_v33, %v5261_v45  ;;  %v1990_v39 = vadd.f32 %v1989_v44, %v5264_v20  ;;  %v1332_v29 = vadd.f32 %v4675_v18, %v809_v10  ;;  %v579_v20 = vld [vmem:[%s4377_s27 + $0x60] sm:$0xff] }
 0x1e2   : > { %8882 = vst [vmem:[#allocation67_spill] sm:$0xff] %v5268_v56  ;;  %v5290_v4 = vpop.f32.mrf.mxu0  ;;  %v810_v49 = vunpack.c.h.bf16 %v640_v42  ;;  %v1926_v36 = vadd.f32 %v1925_v16, %v5271_v38  ;;  %v5302_v19 = vadd.f32 %v4425_v34, %v1348_v7  ;;  %v5305_v9 = vadd.f32 %v4411_v27, %v1327_v52  ;;  %v8907_v56 = vld [vmem:[#allocation117_spill] sm:$0xff] }
 0x1e3   : > { %8883 = vst [vmem:[#allocation71_spill] sm:$0xff] %v5271_v38  ;;  %v1351_v33 = vadd.f32 %v8889_v1, %v746_v57  ;;  %v5309_v44 = vadd.f32 %v4484_v48, %v1305_v46  ;;  %v5312_v18 = vadd.f32 %v4484_v48, %v1329_v41  ;;  %v2023_v42 = vadd.f32 %v2022_v17, %v5278_v58  ;;  %v609_v46 = vld [vmem:[%s4377_s27 + $0x150] sm:$0xff] }
 0x1e4   : > { %8885 = vst [vmem:[#allocation68_spill] sm:$0xff] %v5278_v58  ;;  %v5298_v47 = vpop.f32.mrf.mxu1  ;;  %v5316_v10 = vadd.f32 %v4476_v43, %v1308_v51  ;;  %v1958_v7 = vadd.f32 %v1957_v5, %v5286_v59  ;;  %v1370_v52 = vadd.f32 %v4759_v61, %v683_v35  ;;  %v684_v16 = vunpack.c.h.bf16 %v577_v62  ;;  %v5335_v35 = vld [vmem:[%s4377_s27 + $0x1d0] sm:$0xff] }
 0x1e5   : > { %8886 = vst [vmem:[#allocation128_spill] sm:$0xff] %v5286_v59  ;;  %v715_v57 = vunpack.c.l.bf16 %v5296_v50  ;;  %v1991_v1 = vadd.f32 %v1990_v39, %v5309_v44  ;;  %v1353_v41 = vadd.f32 %v4607_v15, %v778_v0  ;;  %v5326_v17 = vadd.f32 %v4476_v43, %v1332_v29  ;;  %v5340_v29 = vld [vmem:[%s4377_s27 + $0xd8] sm:$0xff] }
 0x1e6   : > { %8887 = vst [vmem:[#allocation129_spill] sm:$0xff] %v5302_v19  ;;  %v1356_v51 = vadd.f32 %v4687_v12, %v810_v49  ;;  %v1927_v58 = vadd.f32 %v1926_v36, %v5302_v19  ;;  %v1959_v5 = vadd.f32 %v1958_v7, %v5305_v9  ;;  %v5332_v61 = vadd.f32 %v4411_v27, %v1351_v33  ;;  %v5342_v12 = vpop.f32.mrf.mxu2  ;;  %v8906_v19 = vld [vmem:[#allocation36_spill] sm:$0xff] }
 0x1e7   : > { %8888 = vst [vmem:[#allocation130_spill] sm:$0xff] %v5305_v9  ;;  %v685_v62 = vunpack.c.l.bf16 %v578_v24  ;;  %v1992_v39 = vadd.f32 %v1991_v1, %v5312_v18  ;;  %v2024_v15 = vadd.f32 %v2023_v42, %v5316_v10  ;;  %v686_v0 = vunpack.c.h.bf16 %v578_v24  ;;  %v5353_v1 = vpop.f32.mrf.mxu3 }
 0x1e8   : > { %8890 = vst [vmem:[#allocation80_spill] sm:$0xff] %v5309_v44  ;;  %v747_v32 = vunpack.c.l.bf16 %v609_v46  ;;  %v5345_v49 = vadd.f32 %v4388_v31, %v1370_v52  ;;  %v1394_v36 = vadd.f32 %v4769_v54, %v684_v16  ;;  %v1372_v33 = vadd.f32 %v4841_v8, %v715_v57  ;;  %v5351_v44 = vld [vmem:[%s4377_s27 + $0x158] sm:$0xff] }
 0x1e9   : > { %8891 = vst [vmem:[#allocation131_spill] sm:$0xff] %v5312_v18  ;;  %v716_v7 = vunpack.c.h.bf16 %v5296_v50  ;;  %v5358_v24 = vadd.f32 %v4484_v48, %v1353_v41  ;;  %v5362_v52 = vadd.f32 %v4476_v43, %v1356_v51  ;;  %v779_v54 = vunpack.c.l.bf16 %v5335_v35 }
 0x1ea   : > { %8892 = vst [vmem:[#allocation132_spill] sm:$0xff] %v5316_v10  ;;  %v5355_v42 = vpop.f32.mrf.mxu0  ;;  %v2025_v10 = vadd.f32 %v2024_v15, %v5326_v17  ;;  %v1960_v50 = vadd.f32 %v1959_v5, %v5332_v61  ;;  %v1418_v16 = vadd.f32 %v4828_v11, %v685_v62  ;;  %v717_v57 = vunpack.c.l.bf16 %v5340_v29 }
 0x1eb   : > { %8893 = vst [vmem:[#allocation133_spill] sm:$0xff] %v5326_v17  ;;  %v718_v41 = vunpack.c.h.bf16 %v5340_v29  ;;  %v1993_v18 = vadd.f32 %v1992_v39, %v5358_v24  ;;  %v1375_v15 = vadd.f32 %v4904_v60, %v747_v32  ;;  %v748_v51 = vunpack.c.h.bf16 %v609_v46  ;;  %v5384_v29 = vld [vmem:[%s4377_s27 + $0x1d8] sm:$0xff] }
 0x1ec   : > { %8894 = vst [vmem:[#allocation134_spill] sm:$0xff] %v5332_v61  ;;  %v5365_v8 = vpop.f32.mrf.mxu1  ;;  %v749_v17 = vunpack.c.l.bf16 %v5351_v44  ;;  %v1895_v9 = vadd.f32 %v1894_v3, %v5345_v49  ;;  %v5377_v5 = vadd.f32 %v4388_v31, %v1394_v36  ;;  %v5380_v11 = vadd.f32 %v4425_v34, %v1372_v33  ;;  %v641_v3 = vld [vmem:[%s4377_s27 + $0x250] sm:$0xff] }
 0x1ed   : > { %8895 = vst [vmem:[#allocation135_spill] sm:$0xff] %v5358_v24  ;;  %v750_v62 = vunpack.c.h.bf16 %v5351_v44  ;;  %v5387_v39 = vadd.f32 %v2025_v10, %v5362_v52  ;;  %v1442_v60 = vadd.f32 %v4839_v55, %v686_v0  ;;  %v1377_v32 = vadd.f32 %v4969_v2, %v779_v54  ;;  %v5399_v44 = vld [vmem:[%s4377_s27 + $0x258] sm:$0xff] }
 0x1ee   : > { %8896 = vst [vmem:[#allocation136_spill] sm:$0xff] %v5362_v52  ;;  %v780_v46 = vunpack.c.h.bf16 %v5335_v35  ;;  %v5394_v36 = vadd.f32 %v4388_v31, %v1418_v16  ;;  %v1396_v33 = vadd.f32 %v4849_v53, %v716_v7  ;;  %v1420_v24 = vadd.f32 %v4894_v14, %v717_v57  ;;  %v5407_v0 = vpop.f32.mrf.mxu2 }
 0x1ef   : > { %8897 = vst [vmem:[#allocation137_spill] sm:$0xff] %v5380_v11  ;;  %v687_v61 = vunpack.c.l.bf16 %v579_v20  ;;  %v5402_v10 = vadd.f32 %v4411_v27, %v1375_v15  ;;  %v1399_v55 = vadd.f32 %v4908_v28, %v748_v51  ;;  %v781_v2 = vunpack.c.l.bf16 %v5384_v29  ;;  %v5411_v16 = vpop.f32.mrf.mxu3  ;;  %v8900_v28 = vld [vmem:[#allocation22_spill] sm:$0xff] }
 0x1f0   : > { %8898 = vst [vmem:[#allocation138_spill] sm:$0xff] %v5394_v36  ;;  %v782_v35 = vunpack.c.h.bf16 %v5384_v29  ;;  %v1896_v54 = vadd.f32 %v1895_v9, %v5377_v5  ;;  %v1928_v53 = vadd.f32 %v1927_v58, %v5380_v11  ;;  %v811_v14 = vunpack.c.l.bf16 %v641_v3  ;;  %v580_v9 = vld [vmem:[%s4377_s27 + $0x68] sm:$0xff]  ;;  %v595_v11 = vld [vmem:[%s4377_s27 + $0xe0] sm:$0xff] }
 0x1f1   : > { %8899 = vst [vmem:[#allocation139_spill] sm:$0xff] %v5402_v10  ;;  %v812_v7 = vunpack.c.h.bf16 %v641_v3  ;;  %v5416_v15 = vadd.f32 %v4388_v31, %v1442_v60  ;;  %v1423_v51 = vadd.f32 %v8900_v28, %v749_v17  ;;  %v5420_v29 = vadd.f32 %v4484_v48, %v1377_v32  ;;  %v8905_v28 = vld [vmem:[#allocation115_spill] sm:$0xff] }
 0x1f2   : > { %v5413_v57 = vpop.f32.mrf.mxu0  ;;  %v1897_v58 = vadd.f32 %v1896_v54, %v5394_v36  ;;  %v5428_v3 = vadd.f32 %v4425_v34, %v1396_v33  ;;  %v5431_v6 = vadd.f32 %v4425_v34, %v1420_v24  ;;  %v1466_v60 = vadd.f32 %v5178_v26, %v687_v61  ;;  %v8909_v26 = vld [vmem:[#allocation26_spill] sm:$0xff] }
 0x1f3   : > { %8901 = vst [vmem:[#allocation22_spill] sm:$0xff] %v5420_v29  ;;  %v1961_v17 = vadd.f32 %v1960_v50, %v5402_v10  ;;  %v5437_v32 = vadd.f32 %v4411_v27, %v1399_v55  ;;  %v1401_v52 = vadd.f32 %v8905_v28, %v780_v46  ;;  %v1425_v38 = vadd.f32 %v8906_v19, %v781_v2  ;;  %v8910_v28 = vld [vmem:[#allocation17_spill] sm:$0xff]  ;;  %v581_v10 = vld [vmem:[%s4377_s27 + $0x70] sm:$0xff] }
 0x1f4   : > { %v5424_v59 = vpop.f32.mrf.mxu1  ;;  %8902 = vst [vmem:[#allocation140_spill] sm:$0xff] %v5428_v3  ;;  %v1929_v54 = vadd.f32 %v1928_v53, %v5428_v3  ;;  %v1380_v33 = vadd.f32 %v8907_v56, %v811_v14  ;;  %v688_v23 = vunpack.c.h.bf16 %v579_v20  ;;  %v689_v36 = vunpack.c.l.bf16 %v580_v9 }
 0x1f5   : > { %8903 = vst [vmem:[#allocation141_spill] sm:$0xff] %v5431_v6  ;;  %v5444_v24 = vadd.f32 %v4411_v27, %v1423_v51  ;;  %v1447_v61 = vadd.f32 %v8909_v26, %v750_v62  ;;  %v1994_v50 = vadd.f32 %v1993_v18, %v5420_v29  ;;  %v719_v55 = vunpack.c.l.bf16 %v595_v11  ;;  %v5471_v26 = vld [vmem:[%s4377_s27 + $0xe8] sm:$0xff] }
 0x1f6   : > { %8904 = vst [vmem:[#allocation142_spill] sm:$0xff] %v5437_v32  ;;  %v1898_v46 = vadd.f32 %v1897_v58, %v5416_v15  ;;  %v1444_v19 = vadd.f32 %v8910_v28, %v718_v41  ;;  %v814_v2 = vunpack.c.h.bf16 %v5399_v44  ;;  %v5452_v56 = vadd.f32 %v4388_v31, %v1466_v60  ;;  %v5462_v14 = vpop.f32.mrf.mxu2  ;;  %v8914_v41 = vld [vmem:[#allocation31_spill] sm:$0xff] }
 0x1f7   : > { %8908 = vst [vmem:[#allocation115_spill] sm:$0xff] %v5444_v24  ;;  %v1930_v20 = vadd.f32 %v1929_v54, %v5431_v6  ;;  %v1962_v53 = vadd.f32 %v1961_v17, %v5437_v32  ;;  %v5457_v62 = vadd.f32 %v4484_v48, %v1401_v52  ;;  %v5460_v18 = vadd.f32 %v4484_v48, %v1425_v38  ;;  %v611_v17 = vld [vmem:[%s4377_s27 + $0x160] sm:$0xff]  ;;  %v5474_v52 = vpop.f32.mrf.mxu3 }
 0x1f8   : > { %v5465_v51 = vadd.f32 %v4476_v43, %v1380_v33  ;;  %v1404_v58 = vadd.f32 %v8914_v41, %v812_v7  ;;  %v1490_v60 = vadd.f32 %v5186_v13, %v688_v23  ;;  %v1514_v54 = vadd.f32 %v5223_v40, %v689_v36  ;;  %v8916_v13 = vld [vmem:[#allocation33_spill] sm:$0xff] }
 0x1f9   : > { %8911 = vst [vmem:[#allocation36_spill] sm:$0xff] %v5457_v62  ;;  %v1963_v38 = vadd.f32 %v1962_v53, %v5444_v24  ;;  %v5480_v29 = vadd.f32 %v4411_v27, %v1447_v61  ;;  %v1995_v33 = vadd.f32 %v1994_v50, %v5457_v62  ;;  %v1468_v7 = vadd.f32 %v5236_v37, %v719_v55  ;;  %v5521_v62 = vld [vmem:[%s4377_s27 + $0x1e0] sm:$0xff]  ;;  %v8924_v24 = vld [vmem:[#allocation48_spill] sm:$0xff] }
 0x1fa   : > { %8912 = vst [vmem:[#allocation117_spill] sm:$0xff] %v5460_v18  ;;  %v5476_v28 = vpop.f32.mrf.mxu0  ;;  %v1449_v40 = vadd.f32 %v8916_v13, %v782_v35  ;;  %v1899_v23 = vadd.f32 %v1898_v46, %v5452_v56  ;;  %v690_v36 = vunpack.c.h.bf16 %v580_v9  ;;  %v720_v32 = vunpack.c.h.bf16 %v595_v11  ;;  %v8921_v13 = vld [vmem:[#allocation127_spill] sm:$0xff] }
 0x1fb   : > { %8913 = vst [vmem:[#allocation26_spill] sm:$0xff] %v5465_v51  ;;  %v5490_v6 = vadd.f32 %v4425_v34, %v1444_v19  ;;  %v1996_v61 = vadd.f32 %v1995_v33, %v5460_v18  ;;  %v721_v53 = vunpack.c.l.bf16 %v5471_v26  ;;  %v751_v50 = vunpack.c.l.bf16 %v611_v17  ;;  %v612_v18 = vld [vmem:[%s4377_s27 + $0x168] sm:$0xff] }
 0x1fc   : > { %8915 = vst [vmem:[#allocation17_spill] sm:$0xff] %v5480_v29  ;;  %v5484_v41 = vpop.f32.mrf.mxu1  ;;  %v2027_v37 = vadd.f32 %v5387_v39, %v5465_v51  ;;  %v5497_v55 = vadd.f32 %v4476_v43, %v1404_v58  ;;  %v5500_v35 = vadd.f32 %v4388_v31, %v1490_v60  ;;  %v5503_v11 = vadd.f32 %v4388_v31, %v1514_v54 }
 0x1fd   : > { %8917 = vst [vmem:[#allocation31_spill] sm:$0xff] %v5490_v6  ;;  %v1931_v9 = vadd.f32 %v1930_v20, %v5490_v6  ;;  %v1964_v46 = vadd.f32 %v1963_v38, %v5480_v29  ;;  %v5508_v19 = vadd.f32 %v4425_v34, %v1468_v7  ;;  %v691_v33 = vunpack.c.l.bf16 %v581_v10 }
 0x1fe   : > { %8918 = vst [vmem:[#allocation33_spill] sm:$0xff] %v5497_v55  ;;  %v5511_v39 = vadd.f32 %v4484_v48, %v1449_v40  ;;  %v1900_v58 = vadd.f32 %v1899_v23, %v5500_v35  ;;  %v1538_v51 = vadd.f32 %v8921_v13, %v690_v36  ;;  %v1492_v60 = vadd.f32 %v5244_v30, %v720_v32  ;;  %v5523_v29 = vpop.f32.mrf.mxu2 }
 0x1ff   : > { %8919 = vst [vmem:[#allocation143_spill] sm:$0xff] %v5508_v19  ;;  %v1516_v54 = vadd.f32 %v5281_v63, %v721_v53  ;;  %v722_v20 = vunpack.c.h.bf16 %v5471_v26  ;;  %v1471_v38 = vadd.f32 %v5290_v4, %v751_v50  ;;  %v752_v7 = vunpack.c.h.bf16 %v611_v17  ;;  %v5532_v63 = vpop.f32.mrf.mxu3  ;;  %v8923_v17 = vld [vmem:[#allocation41_spill] sm:$0xff] }
 0x200   : > { %8920 = vst [vmem:[#allocation144_spill] sm:$0xff] %v5511_v39  ;;  %v5526_v40 = vadd.f32 %v1996_v61, %v5511_v39  ;;  %v5529_v23 = vadd.f32 %v2027_v37, %v5497_v55  ;;  %v1901_v30 = vadd.f32 %v1900_v58, %v5503_v11  ;;  %v692_v26 = vunpack.c.h.bf16 %v581_v10  ;;  %v582_v39 = vld [vmem:[%s4377_s27 + $0x78] sm:$0xff]  ;;  %v597_v55 = vld [vmem:[%s4377_s27 + $0xf0] sm:$0xff] }
 0x201   : > { %v8922_v4 = vunpack.c.l.bf16 %v5399_v44  ;;  %v1932_v53 = vadd.f32 %v1931_v9, %v5508_v19  ;;  %v753_v50 = vunpack.c.l.bf16 %v612_v18  ;;  %v1452_v6 = vadd.f32 %v8924_v24, %v814_v2 }
 0x202   : > { %v1561_v32 = vpop.f32.mrf.mxu0  ;;  %v5541_v37 = vadd.f32 %v4388_v31, %v1538_v51  ;;  %v5544_v58 = vadd.f32 %v4425_v34, %v1492_v60  ;;  %v783_v10 = vunpack.c.l.bf16 %v5521_v62  ;;  %v5549_v44 = vadd.f32 %v4425_v34, %v1516_v54 }
 0x203   : > { %v1428_v36 = vadd.f32 %v8923_v17, %v8922_v4  ;;  %v1562_v13 = vadd.f32 %v1561_v32, %v691_v33  ;;  %v5552_v9 = vadd.f32 %v4411_v27, %v1471_v38  ;;  %v1495_v33 = vadd.f32 %v5298_v47, %v752_v7  ;;  %v5567_v7 = vld [vmem:[%s4377_s27 + $0x1e8] sm:$0xff] }
 0x204   : > { %v1585_v61 = vpop.f32.mrf.mxu1  ;;  %v1902_v2 = vadd.f32 %v1901_v30, %v5541_v37  ;;  %v754_v51 = vunpack.c.h.bf16 %v612_v18  ;;  %v693_v32 = vunpack.c.l.bf16 %v582_v39  ;;  %v1933_v4 = vadd.f32 %v1932_v53, %v5544_v58 }
 0x205   : > { %8925 = vst [vmem:[#allocation127_spill] sm:$0xff] %v5552_v9  ;;  %v5556_v24 = vadd.f32 %v4388_v31, %v1562_v13  ;;  %v1586_v60 = vadd.f32 %v1585_v61, %v692_v26  ;;  %v1540_v17 = vadd.f32 %v5288_v22, %v722_v20  ;;  %v694_v19 = vunpack.c.h.bf16 %v582_v39 }
 0x206   : > { %v723_v54 = vunpack.c.l.bf16 %v597_v55  ;;  %v5562_v3 = vadd.f32 %v4476_v43, %v1428_v36  ;;  %v1519_v38 = vadd.f32 %v5342_v12, %v753_v50  ;;  %v784_v47 = vunpack.c.h.bf16 %v5521_v62  ;;  %v1609_v20 = vpop.f32.mrf.mxu2 }
 0x207   : > { %v1903_v30 = vadd.f32 %v1902_v2, %v5556_v24  ;;  %v1934_v18 = vadd.f32 %v1933_v4, %v5549_v44  ;;  %v1965_v26 = vadd.f32 %v1964_v46, %v5552_v9  ;;  %v5573_v22 = vadd.f32 %v4411_v27, %v1495_v33  ;;  %v1633_v53 = vpop.f32.mrf.mxu3  ;;  %v598_v2 = vld [vmem:[%s4377_s27 + $0xf8] sm:$0xff]  ;;  %v643_v4 = vld [vmem:[%s4377_s27 + $0x260] sm:$0xff] }
 0x208   : > { %8926 = vst [vmem:[#allocation41_spill] sm:$0xff] %v5562_v3  ;;  %v1473_v39 = vadd.f32 %v5355_v42, %v783_v10  ;;  %v5577_v12 = vadd.f32 %v4476_v43, %v1452_v6  ;;  %v5580_v62 = vadd.f32 %v4388_v31, %v1586_v60  ;;  %v1610_v36 = vadd.f32 %v1609_v20, %v693_v32 }
 0x209   : > { %v724_v13 = vunpack.c.h.bf16 %v597_v55  ;;  %v5583_v46 = vadd.f32 %v4425_v34, %v1540_v17  ;;  %v785_v61 = vunpack.c.l.bf16 %v5567_v7  ;;  %v1634_v33 = vadd.f32 %v1633_v53, %v694_v19  ;;  %v613_v55 = vld [vmem:[%s4377_s27 + $0x170] sm:$0xff] }
 0x20a   : > { %8927 = vst [vmem:[#allocation48_spill] sm:$0xff] %v5577_v12  ;;  %v1563_v50 = vpop.f32.mrf.mxu0  ;;  %v5588_v6 = vadd.f32 %v4411_v27, %v1519_v38  ;;  %v1543_v60 = vadd.f32 %v5353_v1, %v754_v51  ;;  %v1904_v32 = vadd.f32 %v1903_v30, %v5580_v62  ;;  %v5594_v20 = vadd.f32 %v4388_v31, %v1610_v36 }
 0x20b   : > { %v1564_v42 = vadd.f32 %v1563_v50, %v723_v54  ;;  %v1935_v17 = vadd.f32 %v1934_v18, %v5583_v46  ;;  %v1966_v9 = vadd.f32 %v1965_v26, %v5573_v22  ;;  %v5600_v19 = vadd.f32 %v4484_v48, %v1473_v39 }
 0x20c   : > { %v1587_v10 = vpop.f32.mrf.mxu1  ;;  %v5606_v38 = vadd.f32 %v4388_v31, %v1634_v33  ;;  %v725_v51 = vunpack.c.l.bf16 %v598_v2  ;;  %v1905_v30 = vadd.f32 %v1904_v32, %v5594_v20  ;;  %v1497_v36 = vadd.f32 %v5365_v8, %v784_v47 }
 0x20d   : > { %8928 = vst [vmem:[#allocation145_spill] sm:$0xff] %v5600_v19  ;;  %v5603_v54 = vadd.f32 %v4425_v34, %v1564_v42  ;;  %v1588_v1 = vadd.f32 %v1587_v10, %v724_v13  ;;  %v815_v53 = vunpack.c.l.bf16 %v643_v4  ;;  %v726_v18 = vunpack.c.h.bf16 %v598_v2  ;;  %v5623_v10 = vld [vmem:[%s4377_s27 + $0x268] sm:$0xff] }
 0x20e   : > { %v755_v50 = vunpack.c.l.bf16 %v613_v55  ;;  %v1967_v26 = vadd.f32 %v1966_v9, %v5588_v6  ;;  %v5612_v39 = vadd.f32 %v4411_v27, %v1543_v60  ;;  %v1906_v31 = vadd.f32 %v1905_v30, %v5606_v38  ;;  %v1611_v9 = vpop.f32.mrf.mxu2 }
 0x20f   : > { %v1936_v42 = vadd.f32 %v1935_v17, %v5603_v54  ;;  %v2029_v13 = vadd.f32 %v5529_v23, %v5562_v3  ;;  %v1998_v33 = vadd.f32 %v5526_v40, %v5600_v19  ;;  %v1521_v8 = vadd.f32 %v5407_v0, %v785_v61  ;;  %v1635_v17 = vpop.f32.mrf.mxu3  ;;  %v614_v19 = vld [vmem:[%s4377_s27 + $0x178] sm:$0xff] }
 0x210   : > { %8929 = vst [vmem:[#allocation146_spill] sm:$0xff] %v5612_v39  ;;  %v786_v47 = vunpack.c.h.bf16 %v5567_v7  ;;  %v816_v2 = vunpack.c.h.bf16 %v643_v4  ;;  %v5626_v60 = vadd.f32 %v4425_v34, %v1588_v1  ;;  %v1612_v32 = vadd.f32 %v1611_v9, %v725_v51  ;;  %1907 = vadd.xlane.f32.xlu0 %v1906_v31  ;;  %v629_v31 = vld [vmem:[%s4377_s27 + $0x1f0] sm:$0xff] }
 0x211   : > { %v756_v30 = vunpack.c.h.bf16 %v613_v55  ;;  %v5629_v40 = vadd.f32 %v4484_v48, %v1497_v36  ;;  %v1476_v0 = vadd.f32 %v5413_v57, %v815_v53  ;;  %v1636_v7 = vadd.f32 %v1635_v17, %v726_v18  ;;  %v5641_v55 = vld [vmem:[%s4377_s27 + $0x2b8] sm:$0xff] }
 0x212   : > { %v1566_v23 = vpop.f32.mrf.mxu0  ;;  %v1968_v4 = vadd.f32 %v1967_v26, %v5612_v39  ;;  %v817_v1 = vunpack.c.l.bf16 %v5623_v10  ;;  %v1937_v51 = vadd.f32 %v1936_v42, %v5626_v60  ;;  %v5637_v9 = vadd.f32 %v4425_v34, %v1612_v32 }
 0x213   : > { %8930 = vst [vmem:[#allocation147_spill] sm:$0xff] %v5629_v40  ;;  %v1567_v61 = vadd.f32 %v1566_v23, %v755_v50  ;;  %v1999_v36 = vadd.f32 %v1998_v33, %v5629_v40  ;;  %v5645_v57 = vadd.f32 %v4484_v48, %v1521_v8  ;;  %v1545_v53 = vadd.f32 %v5411_v16, %v786_v47  ;;  %v8933_v40 = vld [vmem:[#allocation38_spill] sm:$0xff]  ;;  %v8935_v16 = vld [vmem:[#allocation52_spill] sm:$0xff] }
 0x214   : > { %v1590_v3 = vpop.f32.mrf.mxu1  ;;  %v5652_v50 = vadd.f32 %v4425_v34, %v1636_v7  ;;  %v757_v42 = vunpack.c.l.bf16 %v614_v19  ;;  %v1938_v32 = vadd.f32 %v1937_v51, %v5637_v9  ;;  %v5656_v17 = vadd.f32 %v4476_v43, %v1476_v0 }
 0x215   : > { %8931 = vst [vmem:[#allocation148_spill] sm:$0xff] %v5645_v57  ;;  %v5649_v18 = vadd.f32 %v4411_v27, %v1567_v61  ;;  %v1591_v26 = vadd.f32 %v1590_v3, %v756_v30  ;;  %v1500_v33 = vadd.f32 %v5424_v59, %v816_v2  ;;  %v758_v23 = vunpack.c.h.bf16 %v614_v19 }
 0x216   : > { %8932 = vst [vmem:[#allocation149_spill] sm:$0xff] %v5656_v17  ;;  %v787_v8 = vunpack.c.l.bf16 %v629_v31  ;;  %v8934_v39 = vunpack.c.l.bf16 %v8933_v40  ;;  %v837_v61 = vunpack.c.l.bf16 %v5641_v55  ;;  %v1939_v3 = vadd.f32 %v1938_v32, %v5652_v50  ;;  %v1614_v19 = vpop.f32.mrf.mxu2 }
 0x217   : > { %v1969_v34 = vadd.f32 %v1968_v4, %v5649_v18  ;;  %v2030_v30 = vadd.f32 %v2029_v13, %v5577_v12  ;;  %v2000_v7 = vadd.f32 %v1999_v36, %v5645_v57  ;;  %v1524_v0 = vadd.f32 %v5462_v14, %v817_v1  ;;  %v1638_v51 = vpop.f32.mrf.mxu3  ;;  %v8938_v12 = vld [vmem:[#allocation83_spill] sm:$0xff] }
 0x218   : > { %v1190_v47 = vadd.f32 %v8935_v16, %v8934_v39  ;;  %v818_v59 = vunpack.c.h.bf16 %v5623_v10  ;;  %v5670_v2 = vadd.f32 %v4484_v48, %v1545_v53  ;;  %v5673_v39 = vadd.f32 %v4411_v27, %v1591_v26  ;;  %1940 = vadd.xlane.f32.xlu1 %v1939_v3  ;;  %v630_v53 = vld [vmem:[%s4377_s27 + $0x1f8] sm:$0xff] }
 0x219   : > { %v1615_v4 = vadd.f32 %v1614_v19, %v757_v42  ;;  %v788_v13 = vunpack.c.h.bf16 %v629_v31  ;;  %v2031_v36 = vadd.f32 %v2030_v30, %v5656_v17  ;;  %v5677_v14 = vadd.f32 %v4476_v43, %v1500_v33  ;;  %v8941_v42 = vld [vmem:[#allocation53_spill] sm:$0xff]  ;;  %v645_v30 = vld [vmem:[%s4377_s27 + $0x270] sm:$0xff] }
 0x21a   : > { %8936 = vst [vmem:[#allocation38_spill] sm:$0xff] %v5670_v2  ;;  %v1568_v32 = vpop.f32.mrf.mxu0  ;;  %v1639_v10 = vadd.f32 %v1638_v51, %v758_v23  ;;  %v5681_v57 = vadd.f32 %v8938_v12, %v1190_v47  ;;  %v8940_v26 = vunpack.c.h.bf16 %v8933_v40  ;;  %v1970_v3 = vadd.f32 %v1969_v34, %v5673_v39  ;;  %v655_v51 = vld [vmem:[%s4377_s27 + $0x2c0] sm:$0xff] }
 0x21b   : > { %8937 = vst [vmem:[#allocation52_spill] sm:$0xff] %v5677_v14  ;;  %v1569_v1 = vadd.f32 %v1568_v32, %v787_v8  ;;  %v5688_v31 = vadd.f32 %v4411_v27, %v1615_v4  ;;  %v2001_v33 = vadd.f32 %v2000_v7, %v5670_v2  ;;  %v5693_v23 = vadd.f32 %v4476_v43, %v1524_v0  ;;  %v8945_v2 = vld [vmem:[#allocation35_spill] sm:$0xff] }
 0x21c   : > { %v1592_v16 = vpop.f32.mrf.mxu1  ;;  %8939 = vst [vmem:[#allocation83_spill] sm:$0xff] %v5681_v57  ;;  %v1214_v19 = vadd.f32 %v8941_v42, %v8940_v26  ;;  %v1548_v8 = vadd.f32 %v5474_v52, %v818_v59  ;;  %v5701_v40 = vadd.f32 %v4411_v27, %v1639_v10  ;;  %v789_v34 = vunpack.c.l.bf16 %v630_v53  ;;  %v8944_v26 = vld [vmem:[#allocation54_spill] sm:$0xff] }
 0x21d   : > { %8942 = vst [vmem:[#allocation53_spill] sm:$0xff] %v5693_v23  ;;  %v5697_v47 = vadd.f32 %v4484_v48, %v1569_v1  ;;  %v1593_v32 = vadd.f32 %v1592_v16, %v788_v13  ;;  %v1971_v4 = vadd.f32 %v1970_v3, %v5688_v31  ;;  %v1238_v42 = vadd.f32 %v8944_v26, %v837_v61 }
 0x21e   : > { %v2032_v7 = vadd.f32 %v2031_v36, %v5677_v14  ;;  %v790_v17 = vunpack.c.h.bf16 %v630_v53  ;;  %v819_v0 = vunpack.c.l.bf16 %v645_v30  ;;  %v2052_v52 = vadd.f32 %v8945_v2, %v5681_v57  ;;  %v1616_v36 = vpop.f32.mrf.mxu2  ;;  %v656_v14 = vld [vmem:[%s4377_s27 + $0x2c8] sm:$0xff] }
 0x21f   : > { %8943 = vst [vmem:[#allocation150_spill] sm:$0xff] %v5697_v47  ;;  %v2002_v59 = vadd.f32 %v2001_v33, %v5697_v47  ;;  %v1972_v1 = vadd.f32 %v1971_v4, %v5701_v40  ;;  %v838_v27 = vunpack.c.h.bf16 %v5641_v55  ;;  %v839_v13 = vunpack.c.l.bf16 %v655_v51  ;;  %v1640_v3 = vpop.f32.mrf.mxu3 }
 0x220   : > { %v2033_v10 = vadd.f32 %v2032_v7, %v5693_v23  ;;  %v5713_v61 = vadd.f32 %v4476_v43, %v1548_v8  ;;  %v5716_v16 = vadd.f32 %v8938_v12, %v1214_v19  ;;  %v5719_v2 = vadd.f32 %v4484_v48, %v1593_v32  ;;  %v646_v8 = vld [vmem:[%s4377_s27 + $0x278] sm:$0xff] }
 0x221   : > { %v1617_v53 = vadd.f32 %v1616_v36, %v789_v34  ;;  %1973 = vadd.xlane.f32.xlu2 %v1972_v1  ;;  %v820_v55 = vunpack.c.h.bf16 %v645_v30  ;;  %v5722_v4 = vadd.f32 %v8938_v12, %v1238_v42  ;;  %v1641_v26 = vadd.f32 %v1640_v3, %v790_v17  ;;  %v8947_v34 = vld [vmem:[#allocation55_spill] sm:$0xff] }
 0x222   : > { %v1571_v33 = vpop.f32.mrf.mxu0  ;;  %v2053_v23 = vadd.f32 %v2052_v52, %v5716_v16  ;;  %v2003_v19 = vadd.f32 %v2002_v59, %v5719_v2  ;;  %v1262_v36 = vadd.f32 %v8947_v34, %v838_v27  ;;  %v8948_v1 = vld [vmem:[#allocation99_spill] sm:$0xff]  ;;  %v2034_v30 = vadd.f32 %v2033_v10, %v5713_v61 }
 0x223   : > { %8946 = vst [vmem:[#allocation54_spill] sm:$0xff] %v5722_v4  ;;  %v1572_v7 = vadd.f32 %v1571_v33, %v819_v0  ;;  %v5729_v32 = vadd.f32 %v4484_v48, %v1617_v53  ;;  %v1286_v47 = vadd.f32 %v8948_v1, %v839_v13  ;;  %v5738_v42 = vadd.f32 %v4484_v48, %v1641_v26  ;;  %v8952_v1 = vld [vmem:[#allocation106_spill] sm:$0xff] }
 0x224   : > { %v1595_v57 = vpop.f32.mrf.mxu1  ;;  %v821_v52 = vunpack.c.l.bf16 %v646_v8  ;;  %v2054_v53 = vadd.f32 %v2053_v23, %v5722_v4  ;;  %v840_v3 = vunpack.c.h.bf16 %v655_v51  ;;  %v841_v33 = vunpack.c.l.bf16 %v656_v14 }
 0x225   : > { %v5735_v17 = vadd.f32 %v4476_v43, %v1572_v7  ;;  %8949 = vst [vmem:[#allocation35_spill] sm:$0xff] %v5738_v42  ;;  %v1596_v0 = vadd.f32 %v1595_v57, %v820_v55  ;;  %v2004_v59 = vadd.f32 %v2003_v19, %v5729_v32  ;;  %v822_v27 = vunpack.c.h.bf16 %v646_v8  ;;  %v657_v57 = vld [vmem:[%s4377_s27 + $0x2d0] sm:$0xff] }
 0x226   : > { %v5745_v10 = vadd.f32 %v8938_v12, %v1262_v36  ;;  %v5748_v7 = vadd.f32 %v8938_v12, %v1286_v47  ;;  %v1619_v48 = vpop.f32.mrf.mxu2  ;;  %v8951_v8 = vld [vmem:[#allocation100_spill] sm:$0xff]  ;;  %v843_v4 = vunpack.c.l.bf16 %v657_v57 }
 0x227   : > { %v2035_v13 = vadd.f32 %v2034_v30, %v5735_v17  ;;  %v2005_v34 = vadd.f32 %v2004_v59, %v5738_v42  ;;  %v5752_v55 = vadd.f32 %v4476_v43, %v1596_v0  ;;  %v1620_v26 = vadd.f32 %v1619_v48, %v821_v52  ;;  %v1643_v23 = vpop.f32.mrf.mxu3 }
 0x228   : > { %8950 = vst [vmem:[#allocation55_spill] sm:$0xff] %v5748_v7  ;;  %v2055_v51 = vadd.f32 %v2054_v53, %v5745_v10  ;;  %v1310_v19 = vadd.f32 %v8951_v8, %v840_v3  ;;  %v1334_v30 = vadd.f32 %v8952_v1, %v841_v33  ;;  %v1644_v36 = vadd.f32 %v1643_v23, %v822_v27  ;;  %v658_v33 = vld [vmem:[%s4377_s27 + $0x2d8] sm:$0xff] }
 0x229   : > { %2006 = vadd.xlane.f32.xlu2 %v2005_v34  ;;  %v2036_v59 = vadd.f32 %v2035_v13, %v5752_v55  ;;  %v5759_v47 = vadd.f32 %v4476_v43, %v1620_v26  ;;  %v842_v0 = vunpack.c.h.bf16 %v656_v14  ;;  %v2885_v14 = vld [vmem:[%s8277_s4 + $0x10] sm:$0xff]  ;;  %v8957_v26 = vld [vmem:[#allocation119_spill] sm:$0xff]  ;;  %v844_v8 = vunpack.c.h.bf16 %v657_v57 }
 0x22a   : > { %v2056_v42 = vadd.f32 %v2055_v51, %v5748_v7  ;;  %v5763_v52 = vadd.f32 %v4476_v43, %v1644_v36  ;;  %v5767_v53 = vadd.f32 %v8938_v12, %v1310_v19  ;;  %v5770_v3 = vadd.f32 %v8938_v12, %v1334_v30  ;;  %v8956_v43 = vld [vmem:[#allocation3_spill] sm:$0xff]  ;;  %v659_v36 = vld [vmem:[%s4377_s27 + $0x2e0] sm:$0xff]  ;;  %v9034_v7 = vld [vmem:[#allocation92_spill] sm:$0xff] }
 0x22b   : > { %v2037_v34 = vadd.f32 %v2036_v59, %v5759_v47  ;;  %v1358_v48 = vadd.f32 %v8956_v43, %v842_v0  ;;  %v1382_v23 = vadd.f32 %v8957_v26, %v843_v4  ;;  %v845_v19 = vunpack.c.l.bf16 %v658_v33  ;;  %v8960_v59 = vld [vmem:[#allocation42_spill] sm:$0xff] }
 0x22c   : > { %8953 = vst [vmem:[#allocation99_spill] sm:$0xff] %v5763_v52  ;;  %v2057_v13 = vadd.f32 %v2056_v42, %v5767_v53  ;;  %v1406_v0 = vadd.f32 %v8960_v59, %v844_v8  ;;  %v847_v57 = vunpack.c.l.bf16 %v659_v36  ;;  %v848_v59 = vunpack.c.h.bf16 %v659_v36 }
 0x22d   : > { %8954 = vst [vmem:[#allocation100_spill] sm:$0xff] %v5767_v53  ;;  %v2038_v27 = vadd.f32 %v2037_v34, %v5763_v52  ;;  %v5782_v1 = vadd.f32 %v8938_v12, %v1358_v48  ;;  %v5785_v30 = vadd.f32 %v8938_v12, %v1382_v23  ;;  %v8961_v34 = vld [vmem:[#allocation43_spill] sm:$0xff]  ;;  %v8964_v23 = vld [vmem:[#allocation125_spill] sm:$0xff]  ;;  %v9030_v53 = vld [vmem:[#allocation70_spill] sm:$0xff] }
 0x22e   : > { %8955 = vst [vmem:[#allocation106_spill] sm:$0xff] %v5770_v3  ;;  %v2058_v51 = vadd.f32 %v2057_v13, %v5770_v3  ;;  %v1430_v4 = vadd.f32 %v8961_v34, %v845_v19  ;;  %v846_v13 = vunpack.c.h.bf16 %v658_v33  ;;  %v660_v48 = vld [vmem:[%s4377_s27 + $0x2e8] sm:$0xff]  ;;  %v1478_v8 = vadd.f32 %v5476_v28, %v847_v57  ;;  %v2883_v33 = vld [vmem:[%s8277_s4] sm:$0xff]  ;;  %v9032_v52 = vld [vmem:[#allocation77_spill] sm:$0xff] }
 0x22f   : > { %2039 = vadd.xlane.f32.xlu0 %v2038_v27  ;;  %8958 = vst [vmem:[#allocation3_spill] sm:$0xff] %v5782_v1  ;;  %v849_v34 = vunpack.c.l.bf16 %v660_v48  ;;  %v1502_v28 = vadd.f32 %v5484_v41, %v848_v59  ;;  %v662_v41 = vld [vmem:[%s4377_s27 + $0x2f8] sm:$0xff]  ;;  %v9028_v3 = vld [vmem:[#allocation66_spill] sm:$0xff] }
 0x230   : > { %8959 = vst [vmem:[#allocation119_spill] sm:$0xff] %v5785_v30  ;;  %v2059_v42 = vadd.f32 %v2058_v51, %v5782_v1  ;;  %v5796_v43 = vadd.f32 %v8938_v12, %v1430_v4  ;;  %v1454_v51 = vadd.f32 %v8964_v23, %v846_v13  ;;  %v661_v4 = vld [vmem:[%s4377_s27 + $0x2f0] sm:$0xff]  ;;  %v2884_v13 = vld [vmem:[%s8277_s4 + $0x8] sm:$0xff]  ;;  %v9026_v1 = vld [vmem:[#allocation65_spill] sm:$0xff] }
 0x231   : > { %2901 = vperm.xlu1 %3731, %v2885_v14   ;;  %v5793_v14 = vadd.f32 %v8938_v12, %v1406_v0  ;;  %v5810_v0 = vadd.f32 %v8938_v12, %v1478_v8  ;;  %v1526_v36 = vadd.f32 %v5523_v29, %v849_v34  ;;  %v851_v23 = vunpack.c.l.bf16 %v661_v4  ;;  %v2887_v29 = vld [vmem:[%s8277_s4 + $0x20] sm:$0xff] }
 0x232   : > { %v2060_v27 = vadd.f32 %v2059_v42, %v5785_v30  ;;  %8963 = vst [vmem:[#allocation43_spill] sm:$0xff] %v5796_v43  ;;  %v5807_v42 = vadd.f32 %v8938_v12, %v1454_v51  ;;  %v1573_v51 = vpop.f32.mrf.mxu0  ;;  %v5821_v8 = vadd.f32 %v8938_v12, %v1502_v28  ;;  %v2886_v28 = vld [vmem:[%s8277_s4 + $0x18] sm:$0xff]  ;;  %v9015_v30 = vld [vmem:[#allocation138_spill] sm:$0xff] }
 0x233   : > { %8962 = vst [vmem:[#allocation42_spill] sm:$0xff] %v5793_v14  ;;  %v1574_v34 = vadd.f32 %v1573_v51, %v851_v23  ;;  %v854_v23 = vunpack.c.h.bf16 %v662_v41  ;;  %v1645_v51 = vpop.f32.mrf.mxu3 }
 0x234   : > { %v2061_v26 = vadd.f32 %v2060_v27, %v5793_v14  ;;  %8965 = vst [vmem:[#allocation125_spill] sm:$0xff] %v5807_v42  ;;  %v9008_v14 = vld [vmem:[#allocation51_spill] sm:$0xff] }
 0x235   : > { %8966 = vst [vmem:[#allocation151_spill] sm:$0xff] %v5810_v0 }
 0x236   : > { %v2062_v19 = vadd.f32 %v2061_v26, %v5796_v43  ;;  %v850_v26 = vunpack.c.h.bf16 %v660_v48  ;;  %8967 = vst [vmem:[#allocation152_spill] sm:$0xff] %v5821_v8  ;;  %v5840_v43 = vadd.f32 %v8938_v12, %v1574_v34 }
 0x238   : > { %v2063_v27 = vadd.f32 %v2062_v19, %v5807_v42  ;;  %v1550_v59 = vadd.f32 %v5532_v63, %v850_v26  ;;  %8970 = vst [vmem:[#allocation155_spill] sm:$0xff] %v5840_v43 }
 0x23a   : > { %v2064_v57 = vadd.f32 %v2063_v27, %v5810_v0  ;;  %v852_v27 = vunpack.c.h.bf16 %v661_v4  ;;  %v1621_v0 = vpop.f32.mrf.mxu2  ;;  %v5837_v42 = vadd.f32 %v8938_v12, %v1550_v59 }
 0x23c   : > { %v2065_v19 = vadd.f32 %v2064_v57, %v5821_v8  ;;  %8969 = vst [vmem:[#allocation154_spill] sm:$0xff] %v5837_v42  ;;  %v9006_v8 = vld [vmem:[#allocation122_spill] sm:$0xff] }
 0x241   : > { %2891 = vperm.xlu2 %3732, %v2883_v33   ;;  %v5824_v33 = vadd.f32 %v8938_v12, %v1526_v36  ;;  %v1597_v36 = vpop.f32.mrf.mxu1 }
 0x242   : > { %v1598_v57 = vadd.f32 %v1597_v36, %v852_v27 }
 0x243   : > { %2896 = vperm.xlu0 %3730, %v2884_v13   ;;  %8968 = vst [vmem:[#allocation153_spill] sm:$0xff] %v5824_v33  ;;  %v2066_v48 = vadd.f32 %v2065_v19, %v5824_v33  ;;  %v853_v13 = vunpack.c.l.bf16 %v662_v41  ;;  %v1646_v33 = vadd.f32 %v1645_v51, %v854_v23  ;;  %v2888_v41 = vld [vmem:[%s8277_s4 + $0x28] sm:$0xff] }
 0x245   : > { %v2067_v63 = vadd.f32 %v2066_v48, %v5837_v42  ;;  %v1622_v26 = vadd.f32 %v1621_v0, %v853_v13 }
 0x247   : > { %v2068_v4 = vadd.f32 %v2067_v63, %v5840_v43  ;;  %v5848_v19 = vadd.f32 %v8938_v12, %v1622_v26  ;;  %v8976_v43 = vld [vmem:[#allocation62_spill] sm:$0xff] }
 0x249   : > { %2911 = vperm.xlu2 %3732, %v2887_v29   ;;  %v5845_v29 = vadd.f32 %v8938_v12, %v1598_v57  ;;  %8972 = vst [vmem:[#allocation157_spill] sm:$0xff] %v5848_v19 }
 0x24b   : > { %2906 = vperm.xlu0 %3730, %v2886_v28   ;;  %8971 = vst [vmem:[#allocation156_spill] sm:$0xff] %v5845_v29  ;;  %v2069_v59 = vadd.f32 %v2068_v4, %v5845_v29  ;;  %v5853_v28 = vadd.f32 %v8938_v12, %v1646_v33 }
 0x24d   : > { %v2070_v34 = vadd.f32 %v2069_v59, %v5848_v19  ;;  %8973 = vst [vmem:[#allocation158_spill] sm:$0xff] %v5853_v28 }
 0x24f   : > { %v2071_v0 = vadd.f32 %v2070_v34, %v5853_v28 }
 0x25b   : > { %2072 = vadd.xlane.f32.xlu1 %v2071_v0 }
 0x274   : > { %2916 = vperm.xlu1 %3731, %v2888_v41  }
 0x283   : > { %v1908_v13 = vpop.xlane.xlu0 %1907 }
 0x28b   : > { %v1941_v48 = vpop.xlane.xlu1 %1940 }
 0x28c   : > { %v2074_v63 = vadd.f32 %v1941_v48, %v1908_v13  ;;  %v8978_v48 = vld [vmem:[#allocation63_spill] sm:$0xff]  ;;  %v8980_v13 = vld [vmem:[#allocation64_spill] sm:$0xff] }
 0x294   : > { %v1974_v27 = vpop.xlane.xlu2 %1973 }
 0x295   : > { %v2075_v26 = vadd.f32 %v2074_v63, %v1974_v27 }
 0x29c   : > { %v2007_v57 = vpop.xlane.xlu2 %2006 }
 0x29d   : > { %v2076_v23 = vadd.f32 %v2075_v26, %v2007_v57  ;;  %v8982_v57 = vld [vmem:[#allocation69_spill] sm:$0xff] }
 0x2a2   : > { %v2040_v4 = vpop.xlane.xlu0 %2039 }
 0x2a3   : > { %v5859_v36 = vpop.permute.xlu1 %2901  ;;  %v2077_v33 = vadd.f32 %v2076_v23, %v2040_v4  ;;  %v8988_v4 = vld [vmem:[#allocation93_spill] sm:$0xff] }
 0x2a4   : > { %8974 = vst [vmem:[#allocation159_spill] sm:$0xff] %v5859_v36  ;;  %v9004_v36 = vld [vmem:[#allocation37_spill] sm:$0xff] }
 0x2ce   : > { %v2073_v12 = vpop.xlane.xlu1 %2072 }
 0x2cf   : > { %v2078_v51 = vadd.f32 %v2077_v33, %v2073_v12  ;;  %v8990_v12 = vld [vmem:[#allocation96_spill] sm:$0xff] }
 0x2d1   : > { %v2079_v59 = vrot.slane %v2078_v51, 4 }
 0x2d3   : > { %v2080_v34 = vadd.f32 %v2079_v59, %v2078_v51  ;;  %v8992_v51 = vld [vmem:[#allocation4_spill] sm:$0xff] }
 0x2d5   : > { %v2081_v0 = vrot.slane %v2080_v34, 2 }
 0x2d7   : > { %v2082_v28 = vadd.f32 %v2081_v0, %v2080_v34  ;;  %v8994_v34 = vld [vmem:[#allocation12_spill] sm:$0xff] }
 0x2d9   : > { %v2083_v19 = vrot.slane %v2082_v28, 1 }
 0x2db   : > { %v2084_v29 = vadd.f32 %v2083_v19, %v2082_v28  ;;  %v8984_v19 = vld [vmem:[#allocation86_spill] sm:$0xff]  ;;  %v8986_v28 = vld [vmem:[#allocation91_spill] sm:$0xff] }
 0x2dd   : > { %v5861_v41 = vmul.f32 5.086263e-06, %v2084_v29 }
 0x2df   : > { %8975 = vst [vmem:[#allocation160_spill] sm:$0xff] %v5861_v41  ;;  %v5865_v42 = vsub.f32 %v8976_v43, %v5861_v41  ;;  %v5869_v27 = vsub.f32 %v8978_v48, %v5861_v41  ;;  %v5873_v63 = vsub.f32 %v8980_v13, %v5861_v41  ;;  %v5877_v26 = vsub.f32 %v8982_v57, %v5861_v41  ;;  %v8996_v48 = vld [vmem:[#allocation7_spill] sm:$0xff]  ;;  %v8998_v57 = vld [vmem:[#allocation14_spill] sm:$0xff] }
 0x2e0   : > { %v5881_v29 = vsub.f32 %v8984_v19, %v5861_v41  ;;  %v5885_v43 = vsub.f32 %v8986_v28, %v5861_v41  ;;  %v5889_v23 = vsub.f32 %v8988_v4, %v5861_v41  ;;  %v5893_v33 = vsub.f32 %v8990_v12, %v5861_v41  ;;  %v9000_v28 = vld [vmem:[#allocation116_spill] sm:$0xff] }
 0x2e1   : > { %8977 = vst [vmem:[#allocation62_spill] sm:$0xff] %v5865_v42  ;;  %v5897_v59 = vsub.f32 %v8992_v51, %v5861_v41  ;;  %v5901_v0 = vsub.f32 %v8994_v34, %v5861_v41  ;;  %v5905_v13 = vsub.f32 %v8996_v48, %v5861_v41  ;;  %v5909_v19 = vsub.f32 %v8998_v57, %v5861_v41  ;;  %v9002_v12 = vld [vmem:[#allocation40_spill] sm:$0xff] }
 0x2e2   : > { %8979 = vst [vmem:[#allocation63_spill] sm:$0xff] %v5869_v27  ;;  %v5913_v4 = vsub.f32 %v9000_v28, %v5861_v41  ;;  %v5917_v51 = vsub.f32 %v9002_v12, %v5861_v41  ;;  %v5921_v34 = vsub.f32 %v9004_v36, %v5861_v41  ;;  %v5925_v48 = vsub.f32 %v9006_v8, %v5861_v41 }
 0x2e3   : > { %8981 = vst [vmem:[#allocation64_spill] sm:$0xff] %v5873_v63  ;;  %v5929_v57 = vsub.f32 %v9008_v14, %v5861_v41  ;;  %v5933_v28 = vsub.f32 %v5221_v25, %v5861_v41  ;;  %v5937_v12 = vsub.f32 %v5239_v21, %v5861_v41  ;;  %v5941_v36 = vsub.f32 %v5261_v45, %v5861_v41 }
 0x2e4   : > { %8983 = vst [vmem:[#allocation69_spill] sm:$0xff] %v5877_v26  ;;  %v5945_v8 = vsub.f32 %v5345_v49, %v5861_v41  ;;  %v5949_v14 = vsub.f32 %v5377_v5, %v5861_v41  ;;  %v5953_v25 = vsub.f32 %v9015_v30, %v5861_v41  ;;  %v5957_v21 = vsub.f32 %v5416_v15, %v5861_v41 }
 0x2e5   : > { %8985 = vst [vmem:[#allocation86_spill] sm:$0xff] %v5881_v29  ;;  %v5961_v45 = vsub.f32 %v5452_v56, %v5861_v41  ;;  %v5965_v49 = vsub.f32 %v5500_v35, %v5861_v41  ;;  %v5969_v5 = vsub.f32 %v5503_v11, %v5861_v41  ;;  %v5973_v30 = vsub.f32 %v5541_v37, %v5861_v41 }
 0x2e6   : > { %8987 = vst [vmem:[#allocation91_spill] sm:$0xff] %v5885_v43  ;;  %v5977_v15 = vsub.f32 %v5556_v24, %v5861_v41  ;;  %v5981_v56 = vsub.f32 %v5580_v62, %v5861_v41  ;;  %v5985_v35 = vsub.f32 %v5594_v20, %v5861_v41  ;;  %v5989_v11 = vsub.f32 %v5606_v38, %v5861_v41 }
 0x2e7   : > { %8989 = vst [vmem:[#allocation93_spill] sm:$0xff] %v5889_v23  ;;  %v5993_v37 = vsub.f32 %v9026_v1, %v5861_v41  ;;  %v5997_v24 = vsub.f32 %v9028_v3, %v5861_v41  ;;  %v6001_v62 = vsub.f32 %v9030_v53, %v5861_v41  ;;  %v6005_v20 = vsub.f32 %v9032_v52, %v5861_v41 }
 0x2e8   : > { %8991 = vst [vmem:[#allocation96_spill] sm:$0xff] %v5893_v33  ;;  %v6009_v38 = vsub.f32 %v9034_v7, %v5861_v41 }
 0x2e9   : > { %8993 = vst [vmem:[#allocation4_spill] sm:$0xff] %v5897_v59 }
 0x2ea   : > { %8995 = vst [vmem:[#allocation12_spill] sm:$0xff] %v5901_v0 }
 0x2eb   : > { %8997 = vst [vmem:[#allocation7_spill] sm:$0xff] %v5905_v13 }
 0x2ec   : > { %8999 = vst [vmem:[#allocation14_spill] sm:$0xff] %v5909_v19 }
 0x2ed   : > { %9001 = vst [vmem:[#allocation116_spill] sm:$0xff] %v5913_v4 }
 0x2ee   : > { %9003 = vst [vmem:[#allocation40_spill] sm:$0xff] %v5917_v51 }
 0x2ef   : > { %9005 = vst [vmem:[#allocation37_spill] sm:$0xff] %v5921_v34 }
 0x2f0   : > { %9007 = vst [vmem:[#allocation122_spill] sm:$0xff] %v5925_v48 }
 0x2f1   : > { %9009 = vst [vmem:[#allocation51_spill] sm:$0xff] %v5929_v57 }
 0x2f2   : > { %9010 = vst [vmem:[#allocation161_spill] sm:$0xff] %v5933_v28 }
 0x2f3   : > { %9011 = vst [vmem:[#allocation162_spill] sm:$0xff] %v5937_v12 }
 0x2f4   : > { %9012 = vst [vmem:[#allocation163_spill] sm:$0xff] %v5941_v36 }
 0x2f5   : > { %9013 = vst [vmem:[#allocation164_spill] sm:$0xff] %v5945_v8 }
 0x2f6   : > { %9014 = vst [vmem:[#allocation165_spill] sm:$0xff] %v5949_v14 }
 0x2f7   : > { %9016 = vst [vmem:[#allocation138_spill] sm:$0xff] %v5953_v25 }
 0x2f8   : > { %9017 = vst [vmem:[#allocation166_spill] sm:$0xff] %v5957_v21 }
 0x2f9   : > { %9018 = vst [vmem:[#allocation167_spill] sm:$0xff] %v5961_v45 }
 0x2fa   : > { %9019 = vst [vmem:[#allocation168_spill] sm:$0xff] %v5965_v49 }
 0x2fb   : > { %9020 = vst [vmem:[#allocation169_spill] sm:$0xff] %v5969_v5 }
 0x2fc   : > { %9021 = vst [vmem:[#allocation170_spill] sm:$0xff] %v5973_v30 }
 0x2fd   : > { %9022 = vst [vmem:[#allocation171_spill] sm:$0xff] %v5977_v15 }
 0x2fe   : > { %9023 = vst [vmem:[#allocation172_spill] sm:$0xff] %v5981_v56 }
 0x2ff   : > { %9024 = vst [vmem:[#allocation173_spill] sm:$0xff] %v5985_v35  ;;  %v9038_v35 = vld [vmem:[#allocation98_spill] sm:$0xff] }
 0x300   : > { %9025 = vst [vmem:[#allocation174_spill] sm:$0xff] %v5989_v11  ;;  %v9036_v11 = vld [vmem:[#allocation97_spill] sm:$0xff]  ;;  %v6017_v3 = vsub.f32 %v9038_v35, %v5861_v41 }
 0x301   : > { %9027 = vst [vmem:[#allocation65_spill] sm:$0xff] %v5993_v37  ;;  %v6013_v1 = vsub.f32 %v9036_v11, %v5861_v41 }
 0x302   : > { %9029 = vst [vmem:[#allocation66_spill] sm:$0xff] %v5997_v24  ;;  %v9040_v24 = vld [vmem:[#allocation103_spill] sm:$0xff] }
 0x303   : > { %9031 = vst [vmem:[#allocation70_spill] sm:$0xff] %v6001_v62  ;;  %v6021_v53 = vsub.f32 %v9040_v24, %v5861_v41  ;;  %v9042_v62 = vld [vmem:[#allocation16_spill] sm:$0xff] }
 0x304   : > { %9033 = vst [vmem:[#allocation77_spill] sm:$0xff] %v6005_v20  ;;  %v6025_v52 = vsub.f32 %v9042_v62, %v5861_v41  ;;  %v9044_v20 = vld [vmem:[#allocation20_spill] sm:$0xff] }
 0x305   : > { %9035 = vst [vmem:[#allocation92_spill] sm:$0xff] %v6009_v38  ;;  %v6029_v7 = vsub.f32 %v9044_v20, %v5861_v41  ;;  %v9046_v38 = vld [vmem:[#allocation18_spill] sm:$0xff] }
 0x306   : > { %9037 = vst [vmem:[#allocation97_spill] sm:$0xff] %v6013_v1  ;;  %v6033_v11 = vsub.f32 %v9046_v38, %v5861_v41  ;;  %v9048_v1 = vld [vmem:[#allocation21_spill] sm:$0xff] }
 0x307   : > { %9039 = vst [vmem:[#allocation98_spill] sm:$0xff] %v6017_v3  ;;  %v6037_v35 = vsub.f32 %v9048_v1, %v5861_v41  ;;  %v9050_v3 = vld [vmem:[#allocation34_spill] sm:$0xff] }
 0x308   : > { %9041 = vst [vmem:[#allocation103_spill] sm:$0xff] %v6021_v53  ;;  %v6041_v24 = vsub.f32 %v9050_v3, %v5861_v41  ;;  %v9052_v53 = vld [vmem:[#allocation120_spill] sm:$0xff] }
 0x309   : > { %9043 = vst [vmem:[#allocation16_spill] sm:$0xff] %v6025_v52  ;;  %v6045_v62 = vsub.f32 %v9052_v53, %v5861_v41  ;;  %v9054_v52 = vld [vmem:[#allocation121_spill] sm:$0xff] }
 0x30a   : > { %9045 = vst [vmem:[#allocation20_spill] sm:$0xff] %v6029_v7  ;;  %v6049_v20 = vsub.f32 %v9054_v52, %v5861_v41  ;;  %v9056_v7 = vld [vmem:[#allocation49_spill] sm:$0xff] }
 0x30b   : > { %9047 = vst [vmem:[#allocation18_spill] sm:$0xff] %v6033_v11  ;;  %v6053_v38 = vsub.f32 %v9056_v7, %v5861_v41  ;;  %v9058_v11 = vld [vmem:[#allocation58_spill] sm:$0xff] }
 0x30c   : > { %9049 = vst [vmem:[#allocation21_spill] sm:$0xff] %v6037_v35  ;;  %v6057_v1 = vsub.f32 %v9058_v11, %v5861_v41  ;;  %v9060_v35 = vld [vmem:[#allocation67_spill] sm:$0xff] }
 0x30d   : > { %9051 = vst [vmem:[#allocation34_spill] sm:$0xff] %v6041_v24  ;;  %v6061_v3 = vsub.f32 %v9060_v35, %v5861_v41  ;;  %v9062_v24 = vld [vmem:[#allocation71_spill] sm:$0xff] }
 0x30e   : > { %9053 = vst [vmem:[#allocation120_spill] sm:$0xff] %v6045_v62  ;;  %v6065_v53 = vsub.f32 %v9062_v24, %v5861_v41  ;;  %v9064_v62 = vld [vmem:[#allocation129_spill] sm:$0xff] }
 0x30f   : > { %9055 = vst [vmem:[#allocation121_spill] sm:$0xff] %v6049_v20  ;;  %v6069_v52 = vsub.f32 %v9064_v62, %v5861_v41  ;;  %v9066_v20 = vld [vmem:[#allocation137_spill] sm:$0xff] }
 0x310   : > { %9057 = vst [vmem:[#allocation49_spill] sm:$0xff] %v6053_v38  ;;  %v6073_v7 = vsub.f32 %v9066_v20, %v5861_v41  ;;  %v9068_v38 = vld [vmem:[#allocation140_spill] sm:$0xff]  ;;  %v6093_v20 = vsub.f32 %v5544_v58, %v5861_v41  ;;  %v6113_v58 = vsub.f32 %v5637_v9, %v5861_v41 }
 0x311   : > { %9059 = vst [vmem:[#allocation58_spill] sm:$0xff] %v6057_v1  ;;  %v6077_v11 = vsub.f32 %v9068_v38, %v5861_v41  ;;  %v9070_v1 = vld [vmem:[#allocation141_spill] sm:$0xff]  ;;  %v6097_v38 = vsub.f32 %v5549_v44, %v5861_v41  ;;  %v6117_v44 = vsub.f32 %v5652_v50, %v5861_v41 }
 0x312   : > { %9061 = vst [vmem:[#allocation67_spill] sm:$0xff] %v6061_v3  ;;  %v6081_v35 = vsub.f32 %v9070_v1, %v5861_v41  ;;  %v9072_v3 = vld [vmem:[#allocation31_spill] sm:$0xff]  ;;  %v6101_v1 = vsub.f32 %v5583_v46, %v5861_v41 }
 0x313   : > { %9063 = vst [vmem:[#allocation71_spill] sm:$0xff] %v6065_v53  ;;  %v6085_v24 = vsub.f32 %v9072_v3, %v5861_v41  ;;  %v9074_v53 = vld [vmem:[#allocation143_spill] sm:$0xff]  ;;  %v6105_v3 = vsub.f32 %v5603_v54, %v5861_v41 }
 0x314   : > { %9065 = vst [vmem:[#allocation129_spill] sm:$0xff] %v6069_v52  ;;  %v6089_v62 = vsub.f32 %v9074_v53, %v5861_v41  ;;  %v6109_v53 = vsub.f32 %v5626_v60, %v5861_v41 }
 0x315   : > { %9067 = vst [vmem:[#allocation137_spill] sm:$0xff] %v6073_v7 }
 0x316   : > { %9069 = vst [vmem:[#allocation140_spill] sm:$0xff] %v6077_v11 }
 0x317   : > { %9071 = vst [vmem:[#allocation141_spill] sm:$0xff] %v6081_v35 }
 0x318   : > { %9073 = vst [vmem:[#allocation31_spill] sm:$0xff] %v6085_v24 }
 0x319   : > { %9075 = vst [vmem:[#allocation143_spill] sm:$0xff] %v6089_v62 }
 0x31a   : > { %9076 = vst [vmem:[#allocation175_spill] sm:$0xff] %v6093_v20 }
 0x31b   : > { %9077 = vst [vmem:[#allocation176_spill] sm:$0xff] %v6097_v38  ;;  %v9083_v38 = vld [vmem:[#allocation72_spill] sm:$0xff] }
 0x31c   : > { %9078 = vst [vmem:[#allocation177_spill] sm:$0xff] %v6101_v1  ;;  %v6121_v46 = vsub.f32 %v9083_v38, %v5861_v41  ;;  %v9085_v1 = vld [vmem:[#allocation73_spill] sm:$0xff] }
 0x31d   : > { %9079 = vst [vmem:[#allocation178_spill] sm:$0xff] %v6105_v3  ;;  %v6125_v54 = vsub.f32 %v9085_v1, %v5861_v41  ;;  %v9087_v3 = vld [vmem:[#allocation74_spill] sm:$0xff] }
 0x31e   : > { %9080 = vst [vmem:[#allocation179_spill] sm:$0xff] %v6109_v53  ;;  %v6129_v60 = vsub.f32 %v9087_v3, %v5861_v41  ;;  %v9089_v53 = vld [vmem:[#allocation78_spill] sm:$0xff] }
 0x31f   : > { %9081 = vst [vmem:[#allocation180_spill] sm:$0xff] %v6113_v58  ;;  %v6133_v9 = vsub.f32 %v9089_v53, %v5861_v41  ;;  %v9091_v58 = vld [vmem:[#allocation95_spill] sm:$0xff] }
 0x320   : > { %9082 = vst [vmem:[#allocation181_spill] sm:$0xff] %v6117_v44  ;;  %v6137_v50 = vsub.f32 %v9091_v58, %v5861_v41  ;;  %v9093_v44 = vld [vmem:[#allocation101_spill] sm:$0xff] }
 0x321   : > { %9084 = vst [vmem:[#allocation72_spill] sm:$0xff] %v6121_v46  ;;  %v6141_v38 = vsub.f32 %v9093_v44, %v5861_v41  ;;  %v9095_v46 = vld [vmem:[#allocation104_spill] sm:$0xff] }
 0x322   : > { %9086 = vst [vmem:[#allocation73_spill] sm:$0xff] %v6125_v54  ;;  %v6145_v1 = vsub.f32 %v9095_v46, %v5861_v41  ;;  %v9097_v54 = vld [vmem:[#allocation107_spill] sm:$0xff] }
 0x323   : > { %9088 = vst [vmem:[#allocation74_spill] sm:$0xff] %v6129_v60  ;;  %v6149_v3 = vsub.f32 %v9097_v54, %v5861_v41  ;;  %v9099_v60 = vld [vmem:[#allocation13_spill] sm:$0xff] }
 0x324   : > { %9090 = vst [vmem:[#allocation78_spill] sm:$0xff] %v6133_v9  ;;  %v6153_v53 = vsub.f32 %v9099_v60, %v5861_v41  ;;  %v9101_v9 = vld [vmem:[#allocation24_spill] sm:$0xff] }
 0x325   : > { %9092 = vst [vmem:[#allocation95_spill] sm:$0xff] %v6137_v50  ;;  %v6157_v58 = vsub.f32 %v9101_v9, %v5861_v41  ;;  %v9103_v50 = vld [vmem:[#allocation111_spill] sm:$0xff] }
 0x326   : > { %9094 = vst [vmem:[#allocation101_spill] sm:$0xff] %v6141_v38  ;;  %v6161_v44 = vsub.f32 %v9103_v50, %v5861_v41  ;;  %v9105_v38 = vld [vmem:[#allocation25_spill] sm:$0xff] }
 0x327   : > { %9096 = vst [vmem:[#allocation104_spill] sm:$0xff] %v6145_v1  ;;  %v6165_v46 = vsub.f32 %v9105_v38, %v5861_v41  ;;  %v9107_v1 = vld [vmem:[#allocation44_spill] sm:$0xff] }
 0x328   : > { %9098 = vst [vmem:[#allocation107_spill] sm:$0xff] %v6149_v3  ;;  %v6169_v54 = vsub.f32 %v9107_v1, %v5861_v41  ;;  %v9109_v3 = vld [vmem:[#allocation123_spill] sm:$0xff] }
 0x329   : > { %9100 = vst [vmem:[#allocation13_spill] sm:$0xff] %v6153_v53  ;;  %v6173_v60 = vsub.f32 %v9109_v3, %v5861_v41  ;;  %v9111_v53 = vld [vmem:[#allocation46_spill] sm:$0xff] }
 0x32a   : > { %9102 = vst [vmem:[#allocation24_spill] sm:$0xff] %v6157_v58  ;;  %v6177_v9 = vsub.f32 %v9111_v53, %v5861_v41  ;;  %v9113_v58 = vld [vmem:[#allocation126_spill] sm:$0xff] }
 0x32b   : > { %9104 = vst [vmem:[#allocation111_spill] sm:$0xff] %v6161_v44  ;;  %v6181_v50 = vsub.f32 %v9113_v58, %v5861_v41  ;;  %v9115_v44 = vld [vmem:[#allocation59_spill] sm:$0xff] }
 0x32c   : > { %9106 = vst [vmem:[#allocation25_spill] sm:$0xff] %v6165_v46  ;;  %v6185_v38 = vsub.f32 %v9115_v44, %v5861_v41  ;;  %v9117_v46 = vld [vmem:[#allocation128_spill] sm:$0xff] }
 0x32d   : > { %9108 = vst [vmem:[#allocation44_spill] sm:$0xff] %v6169_v54  ;;  %v6189_v1 = vsub.f32 %v9117_v46, %v5861_v41  ;;  %v9119_v54 = vld [vmem:[#allocation130_spill] sm:$0xff] }
 0x32e   : > { %9110 = vst [vmem:[#allocation123_spill] sm:$0xff] %v6173_v60  ;;  %v6193_v3 = vsub.f32 %v9119_v54, %v5861_v41  ;;  %v9121_v60 = vld [vmem:[#allocation134_spill] sm:$0xff] }
 0x32f   : > { %9112 = vst [vmem:[#allocation46_spill] sm:$0xff] %v6177_v9  ;;  %v6197_v53 = vsub.f32 %v9121_v60, %v5861_v41  ;;  %v9123_v9 = vld [vmem:[#allocation139_spill] sm:$0xff] }
 0x330   : > { %9114 = vst [vmem:[#allocation126_spill] sm:$0xff] %v6181_v50  ;;  %v6201_v58 = vsub.f32 %v9123_v9, %v5861_v41  ;;  %v9125_v50 = vld [vmem:[#allocation142_spill] sm:$0xff]  ;;  %v6221_v9 = vsub.f32 %v5573_v22, %v5861_v41  ;;  %v6241_v22 = vsub.f32 %v5688_v31, %v5861_v41 }
 0x331   : > { %9116 = vst [vmem:[#allocation59_spill] sm:$0xff] %v6185_v38  ;;  %v6205_v44 = vsub.f32 %v9125_v50, %v5861_v41  ;;  %v9127_v38 = vld [vmem:[#allocation115_spill] sm:$0xff]  ;;  %v6225_v50 = vsub.f32 %v5588_v6, %v5861_v41  ;;  %v6245_v6 = vsub.f32 %v5701_v40, %v5861_v41 }
 0x332   : > { %9118 = vst [vmem:[#allocation128_spill] sm:$0xff] %v6189_v1  ;;  %v6209_v46 = vsub.f32 %v9127_v38, %v5861_v41  ;;  %v9129_v1 = vld [vmem:[#allocation17_spill] sm:$0xff] }
 0x333   : > { %9120 = vst [vmem:[#allocation130_spill] sm:$0xff] %v6193_v3  ;;  %v6213_v54 = vsub.f32 %v9129_v1, %v5861_v41  ;;  %v9131_v3 = vld [vmem:[#allocation127_spill] sm:$0xff]  ;;  %v6233_v1 = vsub.f32 %v5649_v18, %v5861_v41 }
 0x334   : > { %9122 = vst [vmem:[#allocation134_spill] sm:$0xff] %v6197_v53  ;;  %v6217_v60 = vsub.f32 %v9131_v3, %v5861_v41  ;;  %v6237_v3 = vsub.f32 %v5673_v39, %v5861_v41 }
 0x335   : > { %9124 = vst [vmem:[#allocation139_spill] sm:$0xff] %v6201_v58 }
 0x336   : > { %9126 = vst [vmem:[#allocation142_spill] sm:$0xff] %v6205_v44  ;;  %v9135_v44 = vld [vmem:[#allocation146_spill] sm:$0xff] }
 0x337   : > { %9128 = vst [vmem:[#allocation115_spill] sm:$0xff] %v6209_v46  ;;  %v6229_v38 = vsub.f32 %v9135_v44, %v5861_v41 }
 0x338   : > { %9130 = vst [vmem:[#allocation17_spill] sm:$0xff] %v6213_v54 }
 0x339   : > { %9132 = vst [vmem:[#allocation127_spill] sm:$0xff] %v6217_v60  ;;  %v9155_v60 = vld [vmem:[#allocation5_spill] sm:$0xff] }
 0x33a   : > { %9133 = vst [vmem:[#allocation182_spill] sm:$0xff] %v6221_v9  ;;  %v9153_v9 = vld [vmem:[#allocation8_spill] sm:$0xff] }
 0x33b   : > { %9134 = vst [vmem:[#allocation183_spill] sm:$0xff] %v6225_v50  ;;  %v9141_v50 = vld [vmem:[#allocation75_spill] sm:$0xff] }
 0x33c   : > { %9136 = vst [vmem:[#allocation146_spill] sm:$0xff] %v6229_v38  ;;  %v6249_v44 = vsub.f32 %v9141_v50, %v5861_v41  ;;  %v9143_v38 = vld [vmem:[#allocation76_spill] sm:$0xff] }
 0x33d   : > { %9137 = vst [vmem:[#allocation184_spill] sm:$0xff] %v6233_v1  ;;  %v6253_v18 = vsub.f32 %v9143_v38, %v5861_v41  ;;  %v9145_v1 = vld [vmem:[#allocation79_spill] sm:$0xff]  ;;  %v6273_v38 = vsub.f32 %v9153_v9, %v5861_v41 }
 0x33e   : > { %9138 = vst [vmem:[#allocation185_spill] sm:$0xff] %v6237_v3  ;;  %v6257_v39 = vsub.f32 %v9145_v1, %v5861_v41  ;;  %v9147_v3 = vld [vmem:[#allocation85_spill] sm:$0xff]  ;;  %v6277_v1 = vsub.f32 %v9155_v60, %v5861_v41 }
 0x33f   : > { %9139 = vst [vmem:[#allocation186_spill] sm:$0xff] %v6241_v22  ;;  %v6261_v31 = vsub.f32 %v9147_v3, %v5861_v41  ;;  %v9149_v22 = vld [vmem:[#allocation102_spill] sm:$0xff] }
 0x340   : > { %9140 = vst [vmem:[#allocation187_spill] sm:$0xff] %v6245_v6  ;;  %v6265_v40 = vsub.f32 %v9149_v22, %v5861_v41  ;;  %v9151_v6 = vld [vmem:[#allocation108_spill] sm:$0xff] }
 0x341   : > { %9142 = vst [vmem:[#allocation75_spill] sm:$0xff] %v6249_v44  ;;  %v6269_v50 = vsub.f32 %v9151_v6, %v5861_v41 }
 0x342   : > { %9144 = vst [vmem:[#allocation76_spill] sm:$0xff] %v6253_v18 }
 0x343   : > { %9146 = vst [vmem:[#allocation79_spill] sm:$0xff] %v6257_v39  ;;  %v9157_v39 = vld [vmem:[#allocation15_spill] sm:$0xff] }
 0x344   : > { %9148 = vst [vmem:[#allocation85_spill] sm:$0xff] %v6261_v31  ;;  %v6281_v3 = vsub.f32 %v9157_v39, %v5861_v41  ;;  %v9159_v31 = vld [vmem:[#allocation28_spill] sm:$0xff] }
 0x345   : > { %9150 = vst [vmem:[#allocation102_spill] sm:$0xff] %v6265_v40  ;;  %v6285_v22 = vsub.f32 %v9159_v31, %v5861_v41  ;;  %v9161_v40 = vld [vmem:[#allocation112_spill] sm:$0xff] }
 0x346   : > { %9152 = vst [vmem:[#allocation108_spill] sm:$0xff] %v6269_v50  ;;  %v6289_v6 = vsub.f32 %v9161_v40, %v5861_v41  ;;  %v9163_v50 = vld [vmem:[#allocation27_spill] sm:$0xff] }
 0x347   : > { %9154 = vst [vmem:[#allocation8_spill] sm:$0xff] %v6273_v38  ;;  %v6293_v9 = vsub.f32 %v9163_v50, %v5861_v41  ;;  %v9165_v38 = vld [vmem:[#allocation39_spill] sm:$0xff] }
 0x348   : > { %9156 = vst [vmem:[#allocation5_spill] sm:$0xff] %v6277_v1  ;;  %v6297_v60 = vsub.f32 %v9165_v38, %v5861_v41  ;;  %v9167_v1 = vld [vmem:[#allocation50_spill] sm:$0xff] }
 0x349   : > { %9158 = vst [vmem:[#allocation15_spill] sm:$0xff] %v6281_v3  ;;  %v6301_v39 = vsub.f32 %v9167_v1, %v5861_v41  ;;  %v9169_v3 = vld [vmem:[#allocation56_spill] sm:$0xff] }
 0x34a   : > { %9160 = vst [vmem:[#allocation28_spill] sm:$0xff] %v6285_v22  ;;  %v6305_v31 = vsub.f32 %v9169_v3, %v5861_v41  ;;  %v9171_v22 = vld [vmem:[#allocation57_spill] sm:$0xff] }
 0x34b   : > { %9162 = vst [vmem:[#allocation112_spill] sm:$0xff] %v6289_v6  ;;  %v6309_v40 = vsub.f32 %v9171_v22, %v5861_v41  ;;  %v9173_v6 = vld [vmem:[#allocation61_spill] sm:$0xff] }
 0x34c   : > { %9164 = vst [vmem:[#allocation27_spill] sm:$0xff] %v6293_v9  ;;  %v6313_v50 = vsub.f32 %v9173_v6, %v5861_v41  ;;  %v9175_v9 = vld [vmem:[#allocation80_spill] sm:$0xff] }
 0x34d   : > { %9166 = vst [vmem:[#allocation39_spill] sm:$0xff] %v6297_v60  ;;  %v6317_v38 = vsub.f32 %v9175_v9, %v5861_v41  ;;  %v9177_v60 = vld [vmem:[#allocation131_spill] sm:$0xff] }
 0x34e   : > { %9168 = vst [vmem:[#allocation50_spill] sm:$0xff] %v6301_v39  ;;  %v6321_v1 = vsub.f32 %v9177_v60, %v5861_v41  ;;  %v9179_v39 = vld [vmem:[#allocation135_spill] sm:$0xff] }
 0x34f   : > { %9170 = vst [vmem:[#allocation56_spill] sm:$0xff] %v6305_v31  ;;  %v6325_v3 = vsub.f32 %v9179_v39, %v5861_v41  ;;  %v9181_v31 = vld [vmem:[#allocation22_spill] sm:$0xff] }
 0x350   : > { %9172 = vst [vmem:[#allocation57_spill] sm:$0xff] %v6309_v40  ;;  %v6329_v22 = vsub.f32 %v9181_v31, %v5861_v41  ;;  %v9183_v40 = vld [vmem:[#allocation36_spill] sm:$0xff] }
 0x351   : > { %9174 = vst [vmem:[#allocation61_spill] sm:$0xff] %v6313_v50  ;;  %v6333_v6 = vsub.f32 %v9183_v40, %v5861_v41  ;;  %v9185_v50 = vld [vmem:[#allocation117_spill] sm:$0xff] }
 0x352   : > { %9176 = vst [vmem:[#allocation80_spill] sm:$0xff] %v6317_v38  ;;  %v6337_v9 = vsub.f32 %v9185_v50, %v5861_v41  ;;  %v9187_v38 = vld [vmem:[#allocation144_spill] sm:$0xff] }
 0x353   : > { %9178 = vst [vmem:[#allocation131_spill] sm:$0xff] %v6321_v1  ;;  %v6341_v60 = vsub.f32 %v9187_v38, %v5861_v41  ;;  %v9189_v1 = vld [vmem:[#allocation145_spill] sm:$0xff] }
 0x354   : > { %9180 = vst [vmem:[#allocation135_spill] sm:$0xff] %v6325_v3  ;;  %v6345_v39 = vsub.f32 %v9189_v1, %v5861_v41  ;;  %v9191_v3 = vld [vmem:[#allocation147_spill] sm:$0xff]  ;;  %v6365_v1 = vsub.f32 %v5719_v2, %v5861_v41 }
 0x355   : > { %9182 = vst [vmem:[#allocation22_spill] sm:$0xff] %v6329_v22  ;;  %v6349_v31 = vsub.f32 %v9191_v3, %v5861_v41  ;;  %v9193_v22 = vld [vmem:[#allocation148_spill] sm:$0xff]  ;;  %v6369_v3 = vsub.f32 %v5729_v32, %v5861_v41 }
 0x356   : > { %9184 = vst [vmem:[#allocation36_spill] sm:$0xff] %v6333_v6  ;;  %v6353_v40 = vsub.f32 %v9193_v22, %v5861_v41  ;;  %v9195_v6 = vld [vmem:[#allocation38_spill] sm:$0xff] }
 0x357   : > { %9186 = vst [vmem:[#allocation117_spill] sm:$0xff] %v6337_v9  ;;  %v6357_v50 = vsub.f32 %v9195_v6, %v5861_v41  ;;  %v9197_v9 = vld [vmem:[#allocation150_spill] sm:$0xff] }
 0x358   : > { %9188 = vst [vmem:[#allocation144_spill] sm:$0xff] %v6341_v60  ;;  %v6361_v38 = vsub.f32 %v9197_v9, %v5861_v41  ;;  %v9215_v60 = vld [vmem:[#allocation6_spill] sm:$0xff] }
 0x359   : > { %9190 = vst [vmem:[#allocation145_spill] sm:$0xff] %v6345_v39  ;;  %v9213_v39 = vld [vmem:[#allocation2_spill] sm:$0xff] }
 0x35a   : > { %9192 = vst [vmem:[#allocation147_spill] sm:$0xff] %v6349_v31  ;;  %v9201_v31 = vld [vmem:[#allocation81_spill] sm:$0xff] }
 0x35b   : > { %9194 = vst [vmem:[#allocation148_spill] sm:$0xff] %v6353_v40  ;;  %v6373_v22 = vsub.f32 %v9201_v31, %v5861_v41  ;;  %v9203_v40 = vld [vmem:[#allocation82_spill] sm:$0xff] }
 0x35c   : > { %9196 = vst [vmem:[#allocation38_spill] sm:$0xff] %v6357_v50  ;;  %v6377_v6 = vsub.f32 %v9203_v40, %v5861_v41  ;;  %v9205_v50 = vld [vmem:[#allocation84_spill] sm:$0xff]  ;;  %v6397_v40 = vsub.f32 %v9213_v39, %v5861_v41 }
 0x35d   : > { %9198 = vst [vmem:[#allocation150_spill] sm:$0xff] %v6361_v38  ;;  %v6381_v9 = vsub.f32 %v9205_v50, %v5861_v41  ;;  %v9207_v38 = vld [vmem:[#allocation89_spill] sm:$0xff]  ;;  %v6401_v50 = vsub.f32 %v9215_v60, %v5861_v41 }
 0x35e   : > { %9199 = vst [vmem:[#allocation188_spill] sm:$0xff] %v6365_v1  ;;  %v6385_v2 = vsub.f32 %v9207_v38, %v5861_v41  ;;  %v9209_v1 = vld [vmem:[#allocation105_spill] sm:$0xff] }
 0x35f   : > { %9200 = vst [vmem:[#allocation189_spill] sm:$0xff] %v6369_v3  ;;  %v6389_v32 = vsub.f32 %v9209_v1, %v5861_v41  ;;  %v9211_v3 = vld [vmem:[#allocation109_spill] sm:$0xff] }
 0x360   : > { %9202 = vst [vmem:[#allocation81_spill] sm:$0xff] %v6373_v22  ;;  %v6393_v31 = vsub.f32 %v9211_v3, %v5861_v41 }
 0x361   : > { %9204 = vst [vmem:[#allocation82_spill] sm:$0xff] %v6377_v6 }
 0x362   : > { %9206 = vst [vmem:[#allocation84_spill] sm:$0xff] %v6381_v9  ;;  %v9217_v9 = vld [vmem:[#allocation19_spill] sm:$0xff] }
 0x363   : > { %9208 = vst [vmem:[#allocation89_spill] sm:$0xff] %v6385_v2  ;;  %v6405_v38 = vsub.f32 %v9217_v9, %v5861_v41  ;;  %v9219_v2 = vld [vmem:[#allocation113_spill] sm:$0xff] }
 0x364   : > { %9210 = vst [vmem:[#allocation105_spill] sm:$0xff] %v6389_v32  ;;  %v6409_v1 = vsub.f32 %v9219_v2, %v5861_v41  ;;  %v9221_v32 = vld [vmem:[#allocation23_spill] sm:$0xff] }
 0x365   : > { %9212 = vst [vmem:[#allocation109_spill] sm:$0xff] %v6393_v31  ;;  %v6413_v3 = vsub.f32 %v9221_v32, %v5861_v41  ;;  %v9223_v31 = vld [vmem:[#allocation29_spill] sm:$0xff] }
 0x366   : > { %9214 = vst [vmem:[#allocation2_spill] sm:$0xff] %v6397_v40  ;;  %v6417_v39 = vsub.f32 %v9223_v31, %v5861_v41  ;;  %v9225_v40 = vld [vmem:[#allocation45_spill] sm:$0xff] }
 0x367   : > { %9216 = vst [vmem:[#allocation6_spill] sm:$0xff] %v6401_v50  ;;  %v6421_v60 = vsub.f32 %v9225_v40, %v5861_v41  ;;  %v9227_v50 = vld [vmem:[#allocation124_spill] sm:$0xff] }
 0x368   : > { %9218 = vst [vmem:[#allocation19_spill] sm:$0xff] %v6405_v38  ;;  %v6425_v9 = vsub.f32 %v9227_v50, %v5861_v41  ;;  %v9229_v38 = vld [vmem:[#allocation47_spill] sm:$0xff] }
 0x369   : > { %9220 = vst [vmem:[#allocation113_spill] sm:$0xff] %v6409_v1  ;;  %v6429_v2 = vsub.f32 %v9229_v38, %v5861_v41  ;;  %v9231_v1 = vld [vmem:[#allocation60_spill] sm:$0xff] }
 0x36a   : > { %9222 = vst [vmem:[#allocation23_spill] sm:$0xff] %v6413_v3  ;;  %v6433_v32 = vsub.f32 %v9231_v1, %v5861_v41  ;;  %v9233_v3 = vld [vmem:[#allocation68_spill] sm:$0xff] }
 0x36b   : > { %9224 = vst [vmem:[#allocation29_spill] sm:$0xff] %v6417_v39  ;;  %v6437_v31 = vsub.f32 %v9233_v3, %v5861_v41  ;;  %v9235_v39 = vld [vmem:[#allocation132_spill] sm:$0xff] }
 0x36c   : > { %9226 = vst [vmem:[#allocation45_spill] sm:$0xff] %v6421_v60  ;;  %v6441_v40 = vsub.f32 %v9235_v39, %v5861_v41  ;;  %v9237_v60 = vld [vmem:[#allocation133_spill] sm:$0xff] }
 0x36d   : > { %9228 = vst [vmem:[#allocation124_spill] sm:$0xff] %v6425_v9  ;;  %v6445_v50 = vsub.f32 %v9237_v60, %v5861_v41  ;;  %v9239_v9 = vld [vmem:[#allocation136_spill] sm:$0xff] }
 0x36e   : > { %9230 = vst [vmem:[#allocation47_spill] sm:$0xff] %v6429_v2  ;;  %v6449_v38 = vsub.f32 %v9239_v9, %v5861_v41  ;;  %v9241_v2 = vld [vmem:[#allocation26_spill] sm:$0xff] }
 0x36f   : > { %9232 = vst [vmem:[#allocation60_spill] sm:$0xff] %v6433_v32  ;;  %v6453_v1 = vsub.f32 %v9241_v2, %v5861_v41  ;;  %v9243_v32 = vld [vmem:[#allocation33_spill] sm:$0xff] }
 0x370   : > { %9234 = vst [vmem:[#allocation68_spill] sm:$0xff] %v6437_v31  ;;  %v6457_v3 = vsub.f32 %v9243_v32, %v5861_v41  ;;  %v9245_v31 = vld [vmem:[#allocation41_spill] sm:$0xff] }
 0x371   : > { %9236 = vst [vmem:[#allocation132_spill] sm:$0xff] %v6441_v40  ;;  %v6461_v39 = vsub.f32 %v9245_v31, %v5861_v41  ;;  %v9247_v40 = vld [vmem:[#allocation48_spill] sm:$0xff]  ;;  %v6481_v31 = vsub.f32 %v5713_v61, %v5861_v41 }
 0x372   : > { %9238 = vst [vmem:[#allocation133_spill] sm:$0xff] %v6445_v50  ;;  %v6465_v60 = vsub.f32 %v9247_v40, %v5861_v41  ;;  %v9249_v50 = vld [vmem:[#allocation149_spill] sm:$0xff]  ;;  %v6485_v40 = vsub.f32 %v5735_v17, %v5861_v41 }
 0x373   : > { %9240 = vst [vmem:[#allocation136_spill] sm:$0xff] %v6449_v38  ;;  %v6469_v9 = vsub.f32 %v9249_v50, %v5861_v41  ;;  %v9251_v38 = vld [vmem:[#allocation52_spill] sm:$0xff]  ;;  %v6489_v50 = vsub.f32 %v5752_v55, %v5861_v41 }
 0x374   : > { %9242 = vst [vmem:[#allocation26_spill] sm:$0xff] %v6453_v1  ;;  %v6473_v2 = vsub.f32 %v9251_v38, %v5861_v41  ;;  %v9253_v1 = vld [vmem:[#allocation53_spill] sm:$0xff]  ;;  %v6493_v38 = vsub.f32 %v5759_v47, %v5861_v41 }
 0x375   : > { %9244 = vst [vmem:[#allocation33_spill] sm:$0xff] %v6457_v3  ;;  %v6477_v32 = vsub.f32 %v9253_v1, %v5861_v41  ;;  %v9277_v3 = vld [vmem:[#allocation30_spill] sm:$0xff] }
 0x376   : > { %9246 = vst [vmem:[#allocation41_spill] sm:$0xff] %v6461_v39  ;;  %v9275_v39 = vld [vmem:[#allocation114_spill] sm:$0xff] }
 0x377   : > { %9248 = vst [vmem:[#allocation48_spill] sm:$0xff] %v6465_v60  ;;  %v9273_v60 = vld [vmem:[#allocation11_spill] sm:$0xff] }
 0x378   : > { %9250 = vst [vmem:[#allocation149_spill] sm:$0xff] %v6469_v9  ;;  %v9271_v9 = vld [vmem:[#allocation10_spill] sm:$0xff] }
 0x379   : > { %9252 = vst [vmem:[#allocation52_spill] sm:$0xff] %v6473_v2  ;;  %v9259_v2 = vld [vmem:[#allocation87_spill] sm:$0xff] }
 0x37a   : > { %9254 = vst [vmem:[#allocation53_spill] sm:$0xff] %v6477_v32  ;;  %v6497_v1 = vsub.f32 %v9259_v2, %v5861_v41  ;;  %v9261_v32 = vld [vmem:[#allocation88_spill] sm:$0xff] }
 0x37b   : > { %9255 = vst [vmem:[#allocation190_spill] sm:$0xff] %v6481_v31  ;;  %v6501_v61 = vsub.f32 %v9261_v32, %v5861_v41  ;;  %v9263_v31 = vld [vmem:[#allocation90_spill] sm:$0xff]  ;;  %v6521_v32 = vsub.f32 %v9271_v9, %v5861_v41 }
 0x37c   : > { %9256 = vst [vmem:[#allocation191_spill] sm:$0xff] %v6485_v40  ;;  %v6505_v17 = vsub.f32 %v9263_v31, %v5861_v41  ;;  %v9265_v40 = vld [vmem:[#allocation94_spill] sm:$0xff]  ;;  %v6525_v31 = vsub.f32 %v9273_v60, %v5861_v41 }
 0x37d   : > { %9257 = vst [vmem:[#allocation192_spill] sm:$0xff] %v6489_v50  ;;  %v6509_v55 = vsub.f32 %v9265_v40, %v5861_v41  ;;  %v9267_v50 = vld [vmem:[#allocation110_spill] sm:$0xff]  ;;  %v6529_v40 = vsub.f32 %v9275_v39, %v5861_v41  ;;  %v6549_v39 = vsub.f32 %v5716_v16, %v5861_v41  ;;  %v6569_v16 = vmul.f32 %v5873_v63, %v5873_v63 }
 0x37e   : > { %9258 = vst [vmem:[#allocation193_spill] sm:$0xff] %v6493_v38  ;;  %v6513_v47 = vsub.f32 %v9267_v50, %v5861_v41  ;;  %v9269_v38 = vld [vmem:[#allocation9_spill] sm:$0xff]  ;;  %v6533_v50 = vsub.f32 %v9277_v3, %v5861_v41  ;;  %v6589_v63 = vmul.f32 %v5893_v33, %v5893_v33  ;;  %v6609_v33 = vmul.f32 %v5913_v4, %v5913_v4 }
 0x37f   : > { %9260 = vst [vmem:[#allocation87_spill] sm:$0xff] %v6497_v1  ;;  %v6517_v2 = vsub.f32 %v9269_v38, %v5861_v41  ;;  %v6629_v4 = vmul.f32 %v5933_v28, %v5933_v28  ;;  %v6649_v28 = vmul.f32 %v5953_v25, %v5953_v25  ;;  %v6669_v25 = vmul.f32 %v5973_v30, %v5973_v30 }
 0x380   : > { %9262 = vst [vmem:[#allocation88_spill] sm:$0xff] %v6501_v61 }
 0x381   : > { %9264 = vst [vmem:[#allocation90_spill] sm:$0xff] %v6505_v17 }
 0x382   : > { %9266 = vst [vmem:[#allocation94_spill] sm:$0xff] %v6509_v55 }
 0x383   : > { %9268 = vst [vmem:[#allocation110_spill] sm:$0xff] %v6513_v47  ;;  %v9279_v47 = vld [vmem:[#allocation32_spill] sm:$0xff] }
 0x384   : > { %9270 = vst [vmem:[#allocation9_spill] sm:$0xff] %v6517_v2  ;;  %v6537_v38 = vsub.f32 %v9279_v47, %v5861_v41  ;;  %v9281_v2 = vld [vmem:[#allocation118_spill] sm:$0xff]  ;;  %v6557_v47 = vsub.f32 %v5745_v10, %v5861_v41  ;;  %v6577_v10 = vmul.f32 %v5881_v29, %v5881_v29  ;;  %v6597_v29 = vmul.f32 %v5901_v0, %v5901_v0 }
 0x385   : > { %9272 = vst [vmem:[#allocation10_spill] sm:$0xff] %v6521_v32  ;;  %v6541_v9 = vsub.f32 %v9281_v2, %v5861_v41  ;;  %v9283_v32 = vld [vmem:[#allocation83_spill] sm:$0xff]  ;;  %v6561_v2 = vmul.f32 %v5865_v42, %v5865_v42  ;;  %v6581_v42 = vmul.f32 %v5885_v43, %v5885_v43  ;;  %v6601_v43 = vmul.f32 %v5905_v13, %v5905_v13 }
 0x386   : > { %9274 = vst [vmem:[#allocation11_spill] sm:$0xff] %v6525_v31  ;;  %v6545_v60 = vsub.f32 %v9283_v32, %v5861_v41  ;;  %v6565_v32 = vmul.f32 %v5869_v27, %v5869_v27  ;;  %v6585_v27 = vmul.f32 %v5889_v23, %v5889_v23  ;;  %v6605_v23 = vmul.f32 %v5909_v19, %v5909_v19  ;;  %v9359_v31 = vld [vmem:[#allocation126_spill] sm:$0xff] }
 0x387   : > { %9276 = vst [vmem:[#allocation114_spill] sm:$0xff] %v6529_v40  ;;  %v9286_v40 = vld [vmem:[#allocation54_spill] sm:$0xff]  ;;  %v6617_v0 = vmul.f32 %v5921_v34, %v5921_v34  ;;  %v6621_v13 = vmul.f32 %v5925_v48, %v5925_v48  ;;  %v6625_v19 = vmul.f32 %v5929_v57, %v5929_v57  ;;  %v6637_v34 = vmul.f32 %v5941_v36, %v5941_v36 }
 0x388   : > { %9278 = vst [vmem:[#allocation30_spill] sm:$0xff] %v6533_v50  ;;  %v6553_v3 = vsub.f32 %v9286_v40, %v5861_v41  ;;  %v6573_v40 = vmul.f32 %v5877_v26, %v5877_v26  ;;  %v6593_v26 = vmul.f32 %v5897_v59, %v5897_v59  ;;  %v6613_v59 = vmul.f32 %v5917_v51, %v5917_v51  ;;  %v9306_v41 = vld [vmem:[#allocation70_spill] sm:$0xff]  ;;  %v9326_v50 = vld [vmem:[#allocation71_spill] sm:$0xff] }
 0x389   : > { %9280 = vst [vmem:[#allocation32_spill] sm:$0xff] %v6537_v38  ;;  %v6633_v51 = vmul.f32 %v5937_v12, %v5937_v12  ;;  %v6641_v48 = vmul.f32 %v5945_v8, %v5945_v8  ;;  %v6645_v57 = vmul.f32 %v5949_v14, %v5949_v14  ;;  %v6653_v12 = vmul.f32 %v5957_v21, %v5957_v21  ;;  %v9320_v38 = vld [vmem:[#allocation49_spill] sm:$0xff] }
 0x38a   : > { %9282 = vst [vmem:[#allocation118_spill] sm:$0xff] %v6541_v9  ;;  %v6657_v36 = vmul.f32 %v5961_v45, %v5961_v45  ;;  %v6661_v8 = vmul.f32 %v5965_v49, %v5965_v49  ;;  %v6665_v14 = vmul.f32 %v5969_v5, %v5969_v5  ;;  %v6673_v21 = vmul.f32 %v5977_v15, %v5977_v15  ;;  %v9316_v9 = vld [vmem:[#allocation34_spill] sm:$0xff] }
 0x38b   : > { %9284 = vst [vmem:[#allocation83_spill] sm:$0xff] %v6545_v60  ;;  %v6677_v45 = vmul.f32 %v5981_v56, %v5981_v56  ;;  %v6681_v49 = vmul.f32 %v5993_v37, %v5993_v37  ;;  %v6689_v30 = vmul.f32 %v9306_v41, %v9306_v41  ;;  %v9313_v60 = vld [vmem:[#allocation20_spill] sm:$0xff] }
 0x38c   : > { %9285 = vst [vmem:[#allocation194_spill] sm:$0xff] %v6549_v39  ;;  %v9310_v39 = vld [vmem:[#allocation98_spill] sm:$0xff] }
 0x38d   : > { %9287 = vst [vmem:[#allocation54_spill] sm:$0xff] %v6553_v3  ;;  %v9307_v3 = vld [vmem:[#allocation77_spill] sm:$0xff] }
 0x38e   : > { %9288 = vst [vmem:[#allocation195_spill] sm:$0xff] %v6557_v47  ;;  %v9305_v47 = vld [vmem:[#allocation66_spill] sm:$0xff]  ;;  %v6693_v15 = vmul.f32 %v9307_v3, %v9307_v3 }
 0x38f   : > { %9289 = vst [vmem:[#allocation196_spill] sm:$0xff] %v6617_v0  ;;  %v6685_v5 = vmul.f32 %v9305_v47, %v9305_v47  ;;  %v6705_v47 = vmul.f32 %v9310_v39, %v9310_v39  ;;  %v9365_v0 = vld [vmem:[#allocation130_spill] sm:$0xff] }
 0x390   : > { %9290 = vst [vmem:[#allocation197_spill] sm:$0xff] %v6621_v13  ;;  %v9361_v13 = vld [vmem:[#allocation59_spill] sm:$0xff] }
 0x391   : > { %9291 = vst [vmem:[#allocation198_spill] sm:$0xff] %v6625_v19  ;;  %v9356_v19 = vld [vmem:[#allocation123_spill] sm:$0xff] }
 0x392   : > { %9292 = vst [vmem:[#allocation199_spill] sm:$0xff] %v6629_v4 }
 0x393   : > { %9293 = vst [vmem:[#allocation200_spill] sm:$0xff] %v6633_v51 }
 0x394   : > { %9294 = vst [vmem:[#allocation201_spill] sm:$0xff] %v6637_v34  ;;  %v9346_v34 = vld [vmem:[#allocation78_spill] sm:$0xff] }
 0x395   : > { %9295 = vst [vmem:[#allocation202_spill] sm:$0xff] %v6641_v48  ;;  %v9324_v48 = vld [vmem:[#allocation67_spill] sm:$0xff] }
 0x396   : > { %9296 = vst [vmem:[#allocation203_spill] sm:$0xff] %v6645_v57  ;;  %v9322_v57 = vld [vmem:[#allocation58_spill] sm:$0xff] }
 0x397   : > { %9297 = vst [vmem:[#allocation204_spill] sm:$0xff] %v6649_v28  ;;  %v9318_v28 = vld [vmem:[#allocation121_spill] sm:$0xff] }
 0x398   : > { %9298 = vst [vmem:[#allocation205_spill] sm:$0xff] %v6653_v12  ;;  %v9317_v12 = vld [vmem:[#allocation120_spill] sm:$0xff] }
 0x399   : > { %9299 = vst [vmem:[#allocation206_spill] sm:$0xff] %v6657_v36  ;;  %v9315_v36 = vld [vmem:[#allocation21_spill] sm:$0xff] }
 0x39a   : > { %9300 = vst [vmem:[#allocation207_spill] sm:$0xff] %v6661_v8  ;;  %v9314_v8 = vld [vmem:[#allocation18_spill] sm:$0xff]  ;;  %v6725_v39 = vmul.f32 %v9315_v36, %v9315_v36  ;;  %v6745_v36 = vmul.f32 %v9322_v57, %v9322_v57  ;;  %v6765_v57 = vmul.f32 %v6077_v11, %v6077_v11 }
 0x39b   : > { %9301 = vst [vmem:[#allocation208_spill] sm:$0xff] %v6665_v14  ;;  %v9312_v14 = vld [vmem:[#allocation16_spill] sm:$0xff] }
 0x39c   : > { %9302 = vst [vmem:[#allocation209_spill] sm:$0xff] %v6669_v25  ;;  %v9311_v25 = vld [vmem:[#allocation103_spill] sm:$0xff]  ;;  %v6713_v3 = vmul.f32 %v9312_v14, %v9312_v14  ;;  %v6733_v14 = vmul.f32 %v9317_v12, %v9317_v12  ;;  %v6753_v12 = vmul.f32 %v9326_v50, %v9326_v50  ;;  %v6773_v50 = vmul.f32 %v6085_v24, %v6085_v24 }
 0x39d   : > { %9303 = vst [vmem:[#allocation210_spill] sm:$0xff] %v6673_v21  ;;  %v9308_v21 = vld [vmem:[#allocation92_spill] sm:$0xff]  ;;  %v6709_v41 = vmul.f32 %v9311_v25, %v9311_v25  ;;  %v6729_v25 = vmul.f32 %v9316_v9, %v9316_v9  ;;  %v6749_v9 = vmul.f32 %v9324_v48, %v9324_v48  ;;  %v6769_v48 = vmul.f32 %v6081_v35, %v6081_v35 }
 0x39e   : > { %9304 = vst [vmem:[#allocation211_spill] sm:$0xff] %v6677_v45  ;;  %v6697_v56 = vmul.f32 %v9308_v21, %v9308_v21  ;;  %v9309_v45 = vld [vmem:[#allocation97_spill] sm:$0xff]  ;;  %v6717_v21 = vmul.f32 %v9313_v60, %v9313_v60  ;;  %v6737_v60 = vmul.f32 %v9318_v28, %v9318_v28  ;;  %v6757_v28 = vmul.f32 %v6069_v52, %v6069_v52 }
 0x39f   : > { %v6701_v37 = vmul.f32 %v9309_v45, %v9309_v45  ;;  %v6721_v45 = vmul.f32 %v9314_v8, %v9314_v8  ;;  %v6741_v8 = vmul.f32 %v9320_v38, %v9320_v38  ;;  %9323 = vst [vmem:[#allocation214_spill] sm:$0xff] %v6745_v36  ;;  %v6761_v38 = vmul.f32 %v6073_v7, %v6073_v7  ;;  %v9355_v36 = vld [vmem:[#allocation44_spill] sm:$0xff] }
 0x3a0   : > { %9319 = vst [vmem:[#allocation212_spill] sm:$0xff] %v6737_v60  ;;  %v6777_v52 = vmul.f32 %v6089_v62, %v6089_v62  ;;  %v6781_v7 = vmul.f32 %v6093_v20, %v6093_v20  ;;  %v9363_v60 = vld [vmem:[#allocation128_spill] sm:$0xff] }
 0x3a1   : > { %9321 = vst [vmem:[#allocation213_spill] sm:$0xff] %v6741_v8  ;;  %v9357_v8 = vld [vmem:[#allocation46_spill] sm:$0xff] }
 0x3a2   : > { %9325 = vst [vmem:[#allocation215_spill] sm:$0xff] %v6749_v9  ;;  %v9352_v9 = vld [vmem:[#allocation24_spill] sm:$0xff] }
 0x3a3   : > { %9327 = vst [vmem:[#allocation216_spill] sm:$0xff] %v6753_v12 }
 0x3a4   : > { %9328 = vst [vmem:[#allocation217_spill] sm:$0xff] %v6757_v28 }
 0x3a5   : > { %9329 = vst [vmem:[#allocation218_spill] sm:$0xff] %v6761_v38  ;;  %v9335_v38 = vld [vmem:[#allocation176_spill] sm:$0xff] }
 0x3a6   : > { %9330 = vst [vmem:[#allocation219_spill] sm:$0xff] %v6765_v57  ;;  %v6785_v11 = vmul.f32 %v9335_v38, %v9335_v38  ;;  %v9337_v57 = vld [vmem:[#allocation177_spill] sm:$0xff]  ;;  %v9345_v38 = vld [vmem:[#allocation74_spill] sm:$0xff] }
 0x3a7   : > { %9331 = vst [vmem:[#allocation220_spill] sm:$0xff] %v6769_v48  ;;  %v6789_v35 = vmul.f32 %v9337_v57, %v9337_v57  ;;  %v9339_v48 = vld [vmem:[#allocation178_spill] sm:$0xff]  ;;  %v2345_v57 = vmul.f32 %v9346_v34, %v9346_v34  ;;  %v6825_v34 = vmul.f32 %v9352_v9, %v9352_v9  ;;  %v6845_v9 = vmul.f32 %v9357_v8, %v9357_v8 }
 0x3a8   : > { %9332 = vst [vmem:[#allocation221_spill] sm:$0xff] %v6773_v50  ;;  %v6793_v24 = vmul.f32 %v9339_v48, %v9339_v48  ;;  %v9341_v50 = vld [vmem:[#allocation179_spill] sm:$0xff]  ;;  %v2374_v8 = vmul.f32 %v6249_v44, %v6249_v44 }
 0x3a9   : > { %9333 = vst [vmem:[#allocation222_spill] sm:$0xff] %v6777_v52  ;;  %v6797_v62 = vmul.f32 %v9341_v50, %v9341_v50  ;;  %v9343_v52 = vld [vmem:[#allocation72_spill] sm:$0xff] }
 0x3aa   : > { %9334 = vst [vmem:[#allocation223_spill] sm:$0xff] %v6781_v7  ;;  %v2342_v20 = vmul.f32 %v9343_v52, %v9343_v52  ;;  %v9344_v7 = vld [vmem:[#allocation73_spill] sm:$0xff]  ;;  %v9349_v50 = vld [vmem:[#allocation104_spill] sm:$0xff]  ;;  %v9350_v52 = vld [vmem:[#allocation107_spill] sm:$0xff] }
 0x3ab   : > { %9336 = vst [vmem:[#allocation224_spill] sm:$0xff] %v6785_v11  ;;  %v2343_v28 = vmul.f32 %v9344_v7, %v9344_v7  ;;  %v2344_v11 = vmul.f32 %v9345_v38, %v9345_v38  ;;  %v6817_v51 = vmul.f32 %v9350_v52, %v9350_v52  ;;  %v9351_v7 = vld [vmem:[#allocation13_spill] sm:$0xff]  ;;  %v6837_v52 = vmul.f32 %v9355_v36, %v9355_v36 }
 0x3ac   : > { %9338 = vst [vmem:[#allocation225_spill] sm:$0xff] %v6789_v35  ;;  %v9347_v35 = vld [vmem:[#allocation95_spill] sm:$0xff]  ;;  %v6821_v38 = vmul.f32 %v9351_v7, %v9351_v7  ;;  %v6841_v7 = vmul.f32 %v9356_v19, %v9356_v19  ;;  %v6857_v36 = vmul.f32 %v9363_v60, %v9363_v60  ;;  %v6861_v19 = vmul.f32 %v9365_v0, %v9365_v0 }
 0x3ad   : > { %9340 = vst [vmem:[#allocation226_spill] sm:$0xff] %v6793_v24  ;;  %v2346_v48 = vmul.f32 %v9347_v35, %v9347_v35  ;;  %v9348_v24 = vld [vmem:[#allocation101_spill] sm:$0xff]  ;;  %v9353_v35 = vld [vmem:[#allocation111_spill] sm:$0xff]  ;;  %v6873_v60 = vmul.f32 %v6197_v53, %v6197_v53  ;;  %v6877_v0 = vmul.f32 %v6201_v58, %v6201_v58 }
 0x3ae   : > { %9342 = vst [vmem:[#allocation227_spill] sm:$0xff] %v6797_v62  ;;  %v2347_v12 = vmul.f32 %v9348_v24, %v9348_v24  ;;  %v6813_v62 = vmul.f32 %v9349_v50, %v9349_v50  ;;  %v6829_v4 = vmul.f32 %v9353_v35, %v9353_v35  ;;  %v9354_v24 = vld [vmem:[#allocation25_spill] sm:$0xff]  ;;  %v6849_v35 = vmul.f32 %v9359_v31, %v9359_v31 }
 0x3af   : > { %v6833_v50 = vmul.f32 %v9354_v24, %v9354_v24  ;;  %9358 = vst [vmem:[#allocation228_spill] sm:$0xff] %v6845_v9  ;;  %v6853_v24 = vmul.f32 %v9361_v13, %v9361_v13  ;;  %v2375_v9 = vmul.f32 %v6253_v18, %v6253_v18  ;;  %v2406_v31 = vmul.f32 %v6373_v22, %v6373_v22 }
 0x3b0   : > { %9360 = vst [vmem:[#allocation229_spill] sm:$0xff] %v6849_v35  ;;  %v2407_v13 = vmul.f32 %v6377_v6, %v6377_v6  ;;  %v6885_v18 = vmul.f32 %v6209_v46, %v6209_v46  ;;  %v6889_v22 = vmul.f32 %v6213_v54, %v6213_v54  ;;  %v9373_v6 = vld [vmem:[#allocation127_spill] sm:$0xff]  ;;  %v2536_v54 = vadd.f32 %v2343_v28, %v2342_v20 }
 0x3b1   : > { %9362 = vst [vmem:[#allocation230_spill] sm:$0xff] %v6853_v24  ;;  %v6893_v53 = vmul.f32 %v9373_v6, %v9373_v6  ;;  %v9381_v6 = vld [vmem:[#allocation84_spill] sm:$0xff]  ;;  %v2439_v20 = vmul.f32 %v6501_v61, %v6501_v61 }
 0x3b2   : > { %9364 = vst [vmem:[#allocation231_spill] sm:$0xff] %v6857_v36  ;;  %v2602_v24 = vadd.f32 %v2407_v13, %v2406_v31  ;;  %v2537_v35 = vadd.f32 %v2536_v54, %v2344_v11  ;;  %v9384_v13 = vld [vmem:[#allocation102_spill] sm:$0xff]  ;;  %v9385_v11 = vld [vmem:[#allocation105_spill] sm:$0xff] }
 0x3b3   : > { %9366 = vst [vmem:[#allocation232_spill] sm:$0xff] %v6861_v19  ;;  %v9369_v19 = vld [vmem:[#allocation142_spill] sm:$0xff]  ;;  %v2410_v54 = vmul.f32 %v9385_v11, %v9385_v11 }
 0x3b4   : > { %9367 = vst [vmem:[#allocation233_spill] sm:$0xff] %v6873_v60  ;;  %v6881_v44 = vmul.f32 %v9369_v19, %v9369_v19  ;;  %v9375_v60 = vld [vmem:[#allocation182_spill] sm:$0xff] }
 0x3b5   : > { %9368 = vst [vmem:[#allocation234_spill] sm:$0xff] %v6877_v0  ;;  %v6897_v58 = vmul.f32 %v9375_v60, %v9375_v60  ;;  %v9377_v0 = vld [vmem:[#allocation183_spill] sm:$0xff]  ;;  %v2503_v60 = vadd.f32 %v6685_v5, %v6681_v49  ;;  %v2378_v49 = vmul.f32 %v9384_v13, %v9384_v13  ;;  %v2538_v5 = vadd.f32 %v2537_v35, %v2345_v57 }
 0x3b6   : > { %9370 = vst [vmem:[#allocation235_spill] sm:$0xff] %v6881_v44  ;;  %v6901_v19 = vmul.f32 %v9377_v0, %v9377_v0  ;;  %v9379_v44 = vld [vmem:[#allocation79_spill] sm:$0xff]  ;;  %v9382_v0 = vld [vmem:[#allocation89_spill] sm:$0xff] }
 0x3b7   : > { %9371 = vst [vmem:[#allocation236_spill] sm:$0xff] %v6885_v18  ;;  %v2376_v46 = vmul.f32 %v9379_v44, %v9379_v44  ;;  %v9380_v18 = vld [vmem:[#allocation85_spill] sm:$0xff]  ;;  %v2438_v44 = vmul.f32 %v6497_v1, %v6497_v1 }
 0x3b8   : > { %9372 = vst [vmem:[#allocation237_spill] sm:$0xff] %v6889_v22  ;;  %v2377_v36 = vmul.f32 %v9380_v18, %v9380_v18  ;;  %v2470_v22 = vadd.f32 %v6565_v32, %v6561_v2  ;;  %v2504_v2 = vadd.f32 %v2503_v60, %v6689_v30  ;;  %v9383_v18 = vld [vmem:[#allocation146_spill] sm:$0xff]  ;;  %v9386_v30 = vld [vmem:[#allocation108_spill] sm:$0xff] }
 0x3b9   : > { %9374 = vst [vmem:[#allocation238_spill] sm:$0xff] %v6893_v53  ;;  %v2408_v53 = vmul.f32 %v9381_v6, %v9381_v6  ;;  %v2635_v61 = vadd.f32 %v2439_v20, %v2438_v44  ;;  %v9390_v20 = vld [vmem:[#allocation5_spill] sm:$0xff] }
 0x3ba   : > { %9376 = vst [vmem:[#allocation239_spill] sm:$0xff] %v6897_v58  ;;  %v2569_v58 = vadd.f32 %v2375_v9, %v2374_v8  ;;  %v2471_v28 = vadd.f32 %v2470_v22, %v6569_v16  ;;  %v6923_v8 = vmul.f32 %v9383_v18, %v9383_v18  ;;  %v2505_v22 = vadd.f32 %v2504_v2, %v6693_v15  ;;  %v9389_v15 = vld [vmem:[#allocation2_spill] sm:$0xff] }
 0x3bb   : > { %9378 = vst [vmem:[#allocation240_spill] sm:$0xff] %v6901_v19  ;;  %v2409_v19 = vmul.f32 %v9382_v0, %v9382_v0  ;;  %v2603_v6 = vadd.f32 %v2602_v24, %v2408_v53  ;;  %v2379_v24 = vmul.f32 %v9386_v30, %v9386_v30  ;;  %v9387_v53 = vld [vmem:[#allocation109_spill] sm:$0xff]  ;;  %v2440_v2 = vmul.f32 %v6505_v17, %v6505_v17  ;;  %v9440_v17 = vld [vmem:[#allocation30_spill] sm:$0xff] }
 0x3bc   : > { %v2570_v32 = vadd.f32 %v2569_v58, %v2376_v46  ;;  %v2472_v31 = vadd.f32 %v2471_v28, %v6573_v40  ;;  %v2411_v58 = vmul.f32 %v9387_v53, %v9387_v53  ;;  %v2539_v46 = vadd.f32 %v2538_v5, %v2346_v48  ;;  %v9388_v28 = vld [vmem:[#allocation8_spill] sm:$0xff] }
 0x3bd   : > { %v2604_v16 = vadd.f32 %v2603_v6, %v2409_v19  ;;  %v2506_v57 = vadd.f32 %v2505_v22, %v6697_v56  ;;  %v2380_v1 = vmul.f32 %v9388_v28, %v9388_v28  ;;  %v2412_v19 = vmul.f32 %v9389_v15, %v9389_v15 }
 0x3be   : > { %v2571_v9 = vadd.f32 %v2570_v32, %v2377_v36  ;;  %v2473_v60 = vadd.f32 %v2472_v31, %v6577_v10  ;;  %v2540_v36 = vadd.f32 %v2539_v46, %v2347_v12  ;;  %v2381_v56 = vmul.f32 %v9390_v20, %v9390_v20  ;;  %v9391_v32 = vld [vmem:[#allocation6_spill] sm:$0xff] }
 0x3bf   : > { %v2605_v35 = vadd.f32 %v2604_v16, %v2410_v54  ;;  %v2507_v48 = vadd.f32 %v2506_v57, %v6701_v37  ;;  %v9393_v16 = vld [vmem:[#allocation19_spill] sm:$0xff]  ;;  %v9395_v57 = vld [vmem:[#allocation113_spill] sm:$0xff] }
 0x3c0   : > { %v2572_v40 = vadd.f32 %v2571_v9, %v2378_v49  ;;  %v2474_v6 = vadd.f32 %v2473_v60, %v6581_v42  ;;  %v2413_v49 = vmul.f32 %v9391_v32, %v9391_v32  ;;  %v2541_v5 = vadd.f32 %v2540_v36, %v6813_v62  ;;  %v9392_v9 = vld [vmem:[#allocation15_spill] sm:$0xff] }
 0x3c1   : > { %v2606_v10 = vadd.f32 %v2605_v35, %v2411_v58  ;;  %v2508_v12 = vadd.f32 %v2507_v48, %v6705_v47  ;;  %v2636_v42 = vadd.f32 %v2635_v61, %v2440_v2  ;;  %v2382_v37 = vmul.f32 %v9392_v9, %v9392_v9  ;;  %v9394_v61 = vld [vmem:[#allocation28_spill] sm:$0xff]  ;;  %v9397_v48 = vld [vmem:[#allocation23_spill] sm:$0xff] }
 0x3c2   : > { %v2573_v44 = vadd.f32 %v2572_v40, %v2379_v24  ;;  %v2475_v31 = vadd.f32 %v2474_v6, %v6585_v27  ;;  %v2414_v24 = vmul.f32 %v9393_v16, %v9393_v16  ;;  %v2542_v58 = vadd.f32 %v2541_v5, %v6817_v51  ;;  %v9396_v2 = vld [vmem:[#allocation112_spill] sm:$0xff]  ;;  %v9496_v16 = vld [vmem:[#allocation187_spill] sm:$0xff] }
 0x3c3   : > { %v2607_v54 = vadd.f32 %v2606_v10, %v2412_v19  ;;  %v2441_v62 = vmul.f32 %v6509_v55, %v6509_v55  ;;  %v2509_v27 = vadd.f32 %v2508_v12, %v6709_v41  ;;  %v2415_v35 = vmul.f32 %v9395_v57, %v9395_v57 }
 0x3c4   : > { %v2574_v22 = vadd.f32 %v2573_v44, %v2380_v1  ;;  %v2476_v46 = vadd.f32 %v2475_v31, %v6589_v63  ;;  %v2383_v1 = vmul.f32 %v9394_v61, %v9394_v61  ;;  %v2543_v40 = vadd.f32 %v2542_v58, %v6821_v38  ;;  %v9399_v31 = vld [vmem:[#allocation27_spill] sm:$0xff] }
 0x3c5   : > { %v2608_v60 = vadd.f32 %v2607_v54, %v2413_v49  ;;  %v2510_v51 = vadd.f32 %v2509_v27, %v6713_v3  ;;  %v2637_v63 = vadd.f32 %v2636_v42, %v2441_v62  ;;  %v2384_v41 = vmul.f32 %v9396_v2, %v9396_v2  ;;  %v9398_v49 = vld [vmem:[#allocation110_spill] sm:$0xff]  ;;  %v9400_v42 = vld [vmem:[#allocation29_spill] sm:$0xff] }
 0x3c6   : > { %v2575_v47 = vadd.f32 %v2574_v22, %v2381_v56  ;;  %v2477_v19 = vadd.f32 %v2476_v46, %v6593_v26  ;;  %v2416_v10 = vmul.f32 %v9397_v48, %v9397_v48  ;;  %v2544_v44 = vadd.f32 %v2543_v40, %v6825_v34  ;;  %v9401_v46 = vld [vmem:[#allocation39_spill] sm:$0xff]  ;;  %v9402_v62 = vld [vmem:[#allocation45_spill] sm:$0xff]  ;;  %v9404_v40 = vld [vmem:[#allocation50_spill] sm:$0xff] }
 0x3c7   : > { %v2609_v36 = vadd.f32 %v2608_v60, %v2414_v24  ;;  %v2442_v38 = vmul.f32 %v9398_v49, %v9398_v49  ;;  %v2511_v26 = vadd.f32 %v2510_v51, %v6717_v21  ;;  %v2385_v12 = vmul.f32 %v9399_v31, %v9399_v31  ;;  %v9405_v51 = vld [vmem:[#allocation124_spill] sm:$0xff]  ;;  %v9493_v48 = vld [vmem:[#allocation54_spill] sm:$0xff] }
 0x3c8   : > { %v2576_v6 = vadd.f32 %v2575_v47, %v2382_v37  ;;  %v2478_v56 = vadd.f32 %v2477_v19, %v6597_v29  ;;  %v2417_v54 = vmul.f32 %v9400_v42, %v9400_v42  ;;  %v2545_v22 = vadd.f32 %v2544_v44, %v6829_v4  ;;  %v9406_v44 = vld [vmem:[#allocation56_spill] sm:$0xff] }
 0x3c9   : > { %v2610_v5 = vadd.f32 %v2609_v36, %v2415_v35  ;;  %v2512_v34 = vadd.f32 %v2511_v26, %v6721_v45  ;;  %v2638_v24 = vadd.f32 %v2637_v63, %v2442_v38  ;;  %v2386_v21 = vmul.f32 %v9401_v46, %v9401_v46 }
 0x3ca   : > { %v2577_v3 = vadd.f32 %v2576_v6, %v2383_v1  ;;  %v2479_v37 = vadd.f32 %v2478_v56, %v6601_v43  ;;  %v2418_v27 = vmul.f32 %v9402_v62, %v9402_v62  ;;  %v2546_v60 = vadd.f32 %v2545_v22, %v6833_v50  ;;  %v9403_v1 = vld [vmem:[#allocation9_spill] sm:$0xff]  ;;  %v9407_v56 = vld [vmem:[#allocation47_spill] sm:$0xff] }
 0x3cb   : > { %v2611_v29 = vadd.f32 %v2610_v5, %v2416_v10  ;;  %v2443_v4 = vmul.f32 %v9403_v1, %v9403_v1  ;;  %v2513_v43 = vadd.f32 %v2512_v34, %v6725_v39  ;;  %v2387_v19 = vmul.f32 %v9404_v40, %v9404_v40  ;;  %v9488_v62 = vld [vmem:[#allocation191_spill] sm:$0xff] }
 0x3cc   : > { %v2578_v58 = vadd.f32 %v2577_v3, %v2384_v41  ;;  %v2480_v47 = vadd.f32 %v2479_v37, %v6605_v23  ;;  %v2419_v63 = vmul.f32 %v9405_v51, %v9405_v51  ;;  %v2547_v36 = vadd.f32 %v2546_v60, %v6837_v52  ;;  %v9408_v3 = vld [vmem:[#allocation10_spill] sm:$0xff]  ;;  %v9410_v37 = vld [vmem:[#allocation60_spill] sm:$0xff] }
 0x3cd   : > { %v2612_v35 = vadd.f32 %v2611_v29, %v2417_v54  ;;  %v2514_v50 = vadd.f32 %v2513_v43, %v6729_v25  ;;  %v2639_v10 = vadd.f32 %v2638_v24, %v2443_v4  ;;  %v2388_v39 = vmul.f32 %v9406_v44, %v9406_v44  ;;  %v9409_v54 = vld [vmem:[#allocation57_spill] sm:$0xff]  ;;  %v9411_v29 = vld [vmem:[#allocation228_spill] sm:$0xff] }
 0x3ce   : > { %v2579_v45 = vadd.f32 %v2578_v58, %v2385_v12  ;;  %v2481_v6 = vadd.f32 %v2480_v47, %v6609_v33  ;;  %v2420_v38 = vmul.f32 %v9407_v56, %v9407_v56  ;;  %v2548_v26 = vadd.f32 %v2547_v36, %v6841_v7  ;;  %v9412_v58 = vld [vmem:[#allocation196_spill] sm:$0xff]  ;;  %v9414_v4 = vld [vmem:[#allocation61_spill] sm:$0xff] }
 0x3cf   : > { %v2613_v23 = vadd.f32 %v2612_v35, %v2418_v27  ;;  %v2444_v52 = vmul.f32 %v9408_v3, %v9408_v3  ;;  %v2515_v33 = vadd.f32 %v2514_v50, %v6733_v14  ;;  %v2389_v22 = vmul.f32 %v9409_v54, %v9409_v54  ;;  %v9413_v7 = vld [vmem:[#allocation212_spill] sm:$0xff]  ;;  %v9429_v3 = vld [vmem:[#allocation114_spill] sm:$0xff] }
 0x3d0   : > { %v2580_v41 = vadd.f32 %v2579_v45, %v2386_v21  ;;  %v2482_v5 = vadd.f32 %v2481_v6, %v6613_v59  ;;  %v2421_v34 = vmul.f32 %v9410_v37, %v9410_v37  ;;  %v2549_v24 = vadd.f32 %v2548_v26, %v9411_v29  ;;  %v9415_v43 = vld [vmem:[#allocation68_spill] sm:$0xff]  ;;  %v9416_v45 = vld [vmem:[#allocation229_spill] sm:$0xff]  ;;  %v9418_v6 = vld [vmem:[#allocation11_spill] sm:$0xff] }
 0x3d1   : > { %v2614_v12 = vadd.f32 %v2613_v23, %v2419_v63  ;;  %v2516_v27 = vadd.f32 %v2515_v33, %v9413_v7  ;;  %v2640_v47 = vadd.f32 %v2639_v10, %v2444_v52  ;;  %v2390_v14 = vmul.f32 %v9414_v4, %v9414_v4  ;;  %v9417_v63 = vld [vmem:[#allocation197_spill] sm:$0xff]  ;;  %v9422_v33 = vld [vmem:[#allocation230_spill] sm:$0xff] }
 0x3d2   : > { %v2581_v25 = vadd.f32 %v2580_v41, %v2387_v19  ;;  %v2483_v21 = vadd.f32 %v2482_v5, %v9412_v58  ;;  %v2422_v35 = vmul.f32 %v9415_v43, %v9415_v43  ;;  %v2550_v19 = vadd.f32 %v2549_v24, %v9416_v45  ;;  %v9419_v23 = vld [vmem:[#allocation213_spill] sm:$0xff]  ;;  %v9424_v24 = vld [vmem:[#allocation214_spill] sm:$0xff] }
 0x3d3   : > { %v2615_v59 = vadd.f32 %v2614_v12, %v2420_v38  ;;  %v2445_v50 = vmul.f32 %v9418_v6, %v9418_v6  ;;  %v2517_v41 = vadd.f32 %v2516_v27, %v9419_v23  ;;  %v9420_v38 = vld [vmem:[#allocation80_spill] sm:$0xff]  ;;  %v9428_v23 = vld [vmem:[#allocation199_spill] sm:$0xff] }
 0x3d4   : > { %v2582_v60 = vadd.f32 %v2581_v25, %v2388_v39  ;;  %v2484_v36 = vadd.f32 %v2483_v21, %v9417_v63  ;;  %v2391_v10 = vmul.f32 %v9420_v38, %v9420_v38  ;;  %v9421_v39 = vld [vmem:[#allocation132_spill] sm:$0xff]  ;;  %v2551_v12 = vadd.f32 %v2550_v19, %v9422_v33  ;;  %v9423_v25 = vld [vmem:[#allocation198_spill] sm:$0xff]  ;;  %v9425_v63 = vld [vmem:[#allocation131_spill] sm:$0xff] }
 0x3d5   : > { %v2616_v26 = vadd.f32 %v2615_v59, %v2421_v34  ;;  %v2423_v52 = vmul.f32 %v9421_v39, %v9421_v39  ;;  %v2518_v58 = vadd.f32 %v2517_v41, %v9424_v24  ;;  %v2641_v45 = vadd.f32 %v2640_v47, %v2445_v50  ;;  %v9426_v34 = vld [vmem:[#allocation133_spill] sm:$0xff]  ;;  %v9427_v59 = vld [vmem:[#allocation231_spill] sm:$0xff]  ;;  %v9434_v24 = vld [vmem:[#allocation200_spill] sm:$0xff] }
 0x3d6   : > { %v2583_v5 = vadd.f32 %v2582_v60, %v2389_v22  ;;  %v2485_v29 = vadd.f32 %v2484_v36, %v9423_v25  ;;  %v2392_v27 = vmul.f32 %v9425_v63, %v9425_v63  ;;  %v2424_v22 = vmul.f32 %v9426_v34, %v9426_v34  ;;  %v9430_v33 = vld [vmem:[#allocation215_spill] sm:$0xff] }
 0x3d7   : > { %v2617_v21 = vadd.f32 %v2616_v26, %v2422_v35  ;;  %v2552_v60 = vadd.f32 %v2551_v12, %v9427_v59  ;;  %v2446_v19 = vmul.f32 %v9429_v3, %v9429_v3  ;;  %v2519_v36 = vadd.f32 %v2518_v58, %v9430_v33  ;;  %v9431_v35 = vld [vmem:[#allocation135_spill] sm:$0xff]  ;;  %v9433_v26 = vld [vmem:[#allocation232_spill] sm:$0xff]  ;;  %v9436_v3 = vld [vmem:[#allocation22_spill] sm:$0xff] }
 0x3d8   : > { %v2584_v7 = vadd.f32 %v2583_v5, %v2390_v14  ;;  %v2486_v6 = vadd.f32 %v2485_v29, %v9428_v23  ;;  %v2393_v47 = vmul.f32 %v9431_v35, %v9431_v35  ;;  %v9432_v14 = vld [vmem:[#allocation136_spill] sm:$0xff]  ;;  %v2394_v58 = vmul.f32 %v9436_v3, %v9436_v3  ;;  %v9439_v33 = vld [vmem:[#allocation201_spill] sm:$0xff] }
 0x3d9   : > { %v2618_v25 = vadd.f32 %v2617_v21, %v2423_v52  ;;  %v2425_v50 = vmul.f32 %v9432_v14, %v9432_v14  ;;  %v2553_v5 = vadd.f32 %v2552_v60, %v9433_v26  ;;  %v9435_v12 = vld [vmem:[#allocation216_spill] sm:$0xff]  ;;  %v2642_v49 = vadd.f32 %v2641_v45, %v2446_v19  ;;  %v9437_v52 = vld [vmem:[#allocation26_spill] sm:$0xff]  ;;  %v9438_v21 = vld [vmem:[#allocation233_spill] sm:$0xff] }
 0x3da   : > { %v2585_v41 = vadd.f32 %v2584_v7, %v2391_v10  ;;  %v2487_v1 = vadd.f32 %v2486_v6, %v9434_v24  ;;  %v2520_v59 = vadd.f32 %v2519_v36, %v9435_v12  ;;  %v2426_v10 = vmul.f32 %v9437_v52, %v9437_v52  ;;  %v9441_v26 = vld [vmem:[#allocation217_spill] sm:$0xff]  ;;  %v9445_v12 = vld [vmem:[#allocation202_spill] sm:$0xff] }
 0x3db   : > { %v2619_v29 = vadd.f32 %v2618_v25, %v2424_v22  ;;  %v2554_v7 = vadd.f32 %v2553_v5, %v9438_v21  ;;  %v2447_v60 = vmul.f32 %v9440_v17, %v9440_v17  ;;  %v9442_v22 = vld [vmem:[#allocation36_spill] sm:$0xff]  ;;  %v9444_v25 = vld [vmem:[#allocation234_spill] sm:$0xff]  ;;  %v9447_v17 = vld [vmem:[#allocation117_spill] sm:$0xff] }
 0x3dc   : > { %v2586_v23 = vadd.f32 %v2585_v41, %v2392_v27  ;;  %v2488_v55 = vadd.f32 %v2487_v1, %v9439_v33  ;;  %v2521_v6 = vadd.f32 %v2520_v59, %v9441_v26  ;;  %v2395_v45 = vmul.f32 %v9442_v22, %v9442_v22  ;;  %v9443_v27 = vld [vmem:[#allocation33_spill] sm:$0xff]  ;;  %v9446_v5 = vld [vmem:[#allocation218_spill] sm:$0xff]  ;;  %v9450_v26 = vld [vmem:[#allocation203_spill] sm:$0xff] }
 0x3dd   : > { %v2620_v24 = vadd.f32 %v2619_v29, %v2425_v50  ;;  %v2427_v19 = vmul.f32 %v9443_v27, %v9443_v27  ;;  %v2555_v41 = vadd.f32 %v2554_v7, %v9444_v25  ;;  %v2643_v14 = vadd.f32 %v2642_v49, %v2447_v60  ;;  %v9448_v50 = vld [vmem:[#allocation41_spill] sm:$0xff]  ;;  %v9449_v29 = vld [vmem:[#allocation235_spill] sm:$0xff]  ;;  %v9451_v27 = vld [vmem:[#allocation32_spill] sm:$0xff] }
 0x3de   : > { %v2587_v36 = vadd.f32 %v2586_v23, %v2393_v47  ;;  %v2489_v52 = vadd.f32 %v2488_v55, %v9445_v12  ;;  %v2522_v21 = vadd.f32 %v2521_v6, %v9446_v5  ;;  %v2396_v59 = vmul.f32 %v9447_v17, %v9447_v17  ;;  %v9452_v25 = vld [vmem:[#allocation219_spill] sm:$0xff]  ;;  %v9456_v5 = vld [vmem:[#allocation204_spill] sm:$0xff] }
 0x3df   : > { %v2621_v1 = vadd.f32 %v2620_v24, %v2426_v10  ;;  %v2428_v47 = vmul.f32 %v9448_v50, %v9448_v50  ;;  %v2556_v23 = vadd.f32 %v2555_v41, %v9449_v29  ;;  %v2448_v7 = vmul.f32 %v9451_v27, %v9451_v27  ;;  %v9453_v10 = vld [vmem:[#allocation144_spill] sm:$0xff]  ;;  %v9458_v27 = vld [vmem:[#allocation145_spill] sm:$0xff] }
 0x3e0   : > { %v2588_v33 = vadd.f32 %v2587_v36, %v2394_v58  ;;  %v2490_v34 = vadd.f32 %v2489_v52, %v9450_v26  ;;  %v2523_v55 = vadd.f32 %v2522_v21, %v9452_v25  ;;  %v2397_v49 = vmul.f32 %v9453_v10, %v9453_v10  ;;  %v9454_v58 = vld [vmem:[#allocation48_spill] sm:$0xff]  ;;  %v9461_v25 = vld [vmem:[#allocation205_spill] sm:$0xff] }
 0x3e1   : > { %v2622_v12 = vadd.f32 %v2621_v1, %v2427_v19  ;;  %v2429_v60 = vmul.f32 %v9454_v58, %v9454_v58  ;;  %v9455_v24 = vld [vmem:[#allocation236_spill] sm:$0xff]  ;;  %v2644_v39 = vadd.f32 %v2643_v14, %v2448_v7  ;;  %v2398_v21 = vmul.f32 %v9458_v27, %v9458_v27  ;;  %v9459_v19 = vld [vmem:[#allocation149_spill] sm:$0xff]  ;;  %v9462_v58 = vld [vmem:[#allocation118_spill] sm:$0xff] }
 0x3e2   : > { %v2589_v6 = vadd.f32 %v2588_v33, %v2395_v45  ;;  %v2557_v36 = vadd.f32 %v2556_v23, %v9455_v24  ;;  %v2491_v50 = vadd.f32 %v2490_v34, %v9456_v5  ;;  %v9457_v41 = vld [vmem:[#allocation220_spill] sm:$0xff]  ;;  %v2430_v45 = vmul.f32 %v9459_v19, %v9459_v19  ;;  %v9460_v1 = vld [vmem:[#allocation237_spill] sm:$0xff] }
 0x3e3   : > { %v2524_v29 = vadd.f32 %v2523_v55, %v9457_v41  ;;  %v2623_v52 = vadd.f32 %v2622_v12, %v2428_v47  ;;  %v2449_v23 = vmul.f32 %v9462_v58, %v9462_v58  ;;  %v9463_v24 = vld [vmem:[#allocation221_spill] sm:$0xff]  ;;  %v9464_v47 = vld [vmem:[#allocation147_spill] sm:$0xff]  ;;  %v9466_v12 = vld [vmem:[#allocation238_spill] sm:$0xff] }
 0x3e4   : > { %v2590_v26 = vadd.f32 %v2589_v6, %v2396_v59  ;;  %v2558_v33 = vadd.f32 %v2557_v36, %v9460_v1  ;;  %v2492_v43 = vadd.f32 %v2491_v50, %v9461_v25  ;;  %v2399_v14 = vmul.f32 %v9464_v47, %v9464_v47  ;;  %v9465_v59 = vld [vmem:[#allocation52_spill] sm:$0xff]  ;;  %v9467_v41 = vld [vmem:[#allocation206_spill] sm:$0xff] }
 0x3e5   : > { %v2525_v34 = vadd.f32 %v2524_v29, %v9463_v24  ;;  %v2624_v5 = vadd.f32 %v2623_v52, %v2429_v60  ;;  %v2431_v7 = vmul.f32 %v9465_v59, %v9465_v59  ;;  %v9468_v36 = vld [vmem:[#allocation222_spill] sm:$0xff]  ;;  %v2645_v37 = vadd.f32 %v2644_v39, %v2449_v23  ;;  %v9469_v58 = vld [vmem:[#allocation148_spill] sm:$0xff]  ;;  %v9470_v60 = vld [vmem:[#allocation53_spill] sm:$0xff] }
 0x3e6   : > { %v2591_v55 = vadd.f32 %v2590_v26, %v2397_v49  ;;  %v2559_v6 = vadd.f32 %v2558_v33, %v9466_v12  ;;  %v2493_v19 = vadd.f32 %v2492_v43, %v9467_v41  ;;  %v2400_v29 = vmul.f32 %v9469_v58, %v9469_v58  ;;  %v9471_v52 = vld [vmem:[#allocation239_spill] sm:$0xff] }
 0x3e7   : > { %v2526_v1 = vadd.f32 %v2525_v34, %v9468_v36  ;;  %v2625_v50 = vadd.f32 %v2624_v5, %v2430_v45  ;;  %v2432_v49 = vmul.f32 %v9470_v60, %v9470_v60  ;;  %v9472_v24 = vld [vmem:[#allocation207_spill] sm:$0xff]  ;;  %v9475_v45 = vld [vmem:[#allocation38_spill] sm:$0xff]  ;;  %v9477_v5 = vld [vmem:[#allocation240_spill] sm:$0xff] }
 0x3e8   : > { %v2592_v25 = vadd.f32 %v2591_v55, %v2398_v21  ;;  %v2560_v26 = vadd.f32 %v2559_v6, %v9471_v52  ;;  %v2494_v56 = vadd.f32 %v2493_v19, %v9472_v24  ;;  %v9473_v59 = vld [vmem:[#allocation83_spill] sm:$0xff]  ;;  %v2401_v39 = vmul.f32 %v9475_v45, %v9475_v45  ;;  %v9476_v21 = vld [vmem:[#allocation190_spill] sm:$0xff]  ;;  %v9478_v36 = vld [vmem:[#allocation208_spill] sm:$0xff] }
 0x3e9   : > { %v2450_v33 = vmul.f32 %v9473_v59, %v9473_v59  ;;  %v9474_v12 = vld [vmem:[#allocation223_spill] sm:$0xff]  ;;  %v2626_v41 = vadd.f32 %v2625_v50, %v2431_v7  ;;  %v2433_v23 = vmul.f32 %v9476_v21, %v9476_v21  ;;  %v9479_v6 = vld [vmem:[#allocation224_spill] sm:$0xff]  ;;  %v9481_v7 = vld [vmem:[#allocation185_spill] sm:$0xff] }
 0x3ea   : > { %v2527_v43 = vadd.f32 %v2526_v1, %v9474_v12  ;;  %v2593_v34 = vadd.f32 %v2592_v25, %v2399_v14  ;;  %v2561_v55 = vadd.f32 %v2560_v26, %v9477_v5  ;;  %v2495_v60 = vadd.f32 %v2494_v56, %v9478_v36  ;;  %v9480_v59 = vld [vmem:[#allocation184_spill] sm:$0xff]  ;;  %v9482_v25 = vld [vmem:[#allocation209_spill] sm:$0xff]  ;;  %v9483_v21 = vld [vmem:[#allocation194_spill] sm:$0xff] }
 0x3eb   : > { %v2627_v19 = vadd.f32 %v2626_v41, %v2432_v49  ;;  %v2646_v51 = vadd.f32 %v2645_v37, %v2450_v33  ;;  %v2370_v1 = vmul.f32 %v9480_v59, %v9480_v59  ;;  %v2371_v14 = vmul.f32 %v9481_v7, %v9481_v7  ;;  %v9484_v5 = vld [vmem:[#allocation225_spill] sm:$0xff]  ;;  %v9485_v49 = vld [vmem:[#allocation150_spill] sm:$0xff] }
 0x3ec   : > { %v2528_v52 = vadd.f32 %v2527_v43, %v9479_v6  ;;  %v2594_v24 = vadd.f32 %v2593_v34, %v2400_v29  ;;  %v2562_v50 = vadd.f32 %v2561_v55, %v6923_v8  ;;  %v2496_v12 = vadd.f32 %v2495_v60, %v9482_v25  ;;  %v9486_v29 = vld [vmem:[#allocation188_spill] sm:$0xff]  ;;  %v9487_v34 = vld [vmem:[#allocation210_spill] sm:$0xff] }
 0x3ed   : > { %v2451_v26 = vmul.f32 %v9483_v21, %v9483_v21  ;;  %v2628_v36 = vadd.f32 %v2627_v19, %v2433_v23  ;;  %v2402_v37 = vmul.f32 %v9485_v49, %v9485_v49  ;;  %v2403_v33 = vmul.f32 %v9486_v29, %v9486_v29  ;;  %v9489_v60 = vld [vmem:[#allocation186_spill] sm:$0xff] }
 0x3ee   : > { %v2529_v56 = vadd.f32 %v2528_v52, %v9484_v5  ;;  %v2595_v43 = vadd.f32 %v2594_v24, %v2401_v39  ;;  %v2563_v41 = vadd.f32 %v2562_v50, %v2370_v1  ;;  %v2497_v6 = vadd.f32 %v2496_v12, %v9487_v34  ;;  %v9490_v25 = vld [vmem:[#allocation226_spill] sm:$0xff]  ;;  %v9491_v39 = vld [vmem:[#allocation173_spill] sm:$0xff]  ;;  %v9492_v24 = vld [vmem:[#allocation211_spill] sm:$0xff] }
 0x3ef   : > { %v2434_v8 = vmul.f32 %v9488_v62, %v9488_v62  ;;  %v2372_v55 = vmul.f32 %v9489_v60, %v9489_v60  ;;  %v2647_v52 = vadd.f32 %v2646_v51, %v2451_v26  ;;  %v2308_v19 = vmul.f32 %v9491_v39, %v9491_v39  ;;  %v9494_v50 = vld [vmem:[#allocation180_spill] sm:$0xff]  ;;  %v9495_v34 = vld [vmem:[#allocation227_spill] sm:$0xff] }
 0x3f0   : > { %v2530_v21 = vadd.f32 %v2529_v56, %v9490_v25  ;;  %v2564_v23 = vadd.f32 %v2563_v41, %v2371_v14  ;;  %v2498_v5 = vadd.f32 %v2497_v6, %v9492_v24  ;;  %v2596_v42 = vadd.f32 %v2595_v43, %v2402_v37  ;;  %v9497_v14 = vld [vmem:[#allocation174_spill] sm:$0xff]  ;;  %v9498_v25 = vld [vmem:[#allocation192_spill] sm:$0xff]  ;;  %v9499_v37 = vld [vmem:[#allocation181_spill] sm:$0xff] }
 0x3f1   : > { %v2452_v1 = vmul.f32 %v9493_v48, %v9493_v48  ;;  %v2340_v12 = vmul.f32 %v9494_v50, %v9494_v50  ;;  %v2629_v57 = vadd.f32 %v2628_v36, %v2434_v8  ;;  %v2373_v56 = vmul.f32 %v9496_v16, %v9496_v16  ;;  %v9500_v36 = vld [vmem:[#allocation160_spill] sm:$0xff]  ;;  %v9501_v8 = vld [vmem:[#allocation55_spill] sm:$0xff] }
 0x3f2   : > { %v2531_v62 = vadd.f32 %v2530_v21, %v9495_v34  ;;  %v2565_v51 = vadd.f32 %v2564_v23, %v2372_v55  ;;  %v2309_v26 = vmul.f32 %v9497_v14, %v9497_v14  ;;  %v2499_v41 = vadd.f32 %v2498_v5, %v2308_v19  ;;  %v9503_v55 = vld [vmem:[#allocation195_spill] sm:$0xff] }
 0x3f3   : > { %v2435_v43 = vmul.f32 %v9498_v25, %v9498_v25  ;;  %v2341_v6 = vmul.f32 %v9499_v37, %v9499_v37  ;;  %v2648_v48 = vadd.f32 %v2647_v52, %v2452_v1  ;;  %v2597_v21 = vadd.f32 %v2596_v42, %v2403_v33  ;;  %v9504_v5 = vld [vmem:[#allocation35_spill] sm:$0xff]  ;;  %v9509_v1 = vld [vmem:[#allocation193_spill] sm:$0xff] }
 0x3f4   : > { %v2532_v24 = vadd.f32 %v2531_v62, %v2340_v12  ;;  %v2566_v32 = vadd.f32 %v2565_v51, %v2373_v56  ;;  %v2500_v15 = vadd.f32 %v2499_v41, %v2309_v26  ;;  %v7149_v34 = vsub.f32 %v9501_v8, %v9500_v36  ;;  %v9506_v62 = vld [vmem:[#allocation189_spill] sm:$0xff]  ;;  %v9507_v42 = vld [vmem:[#allocation99_spill] sm:$0xff] }
 0x3f5   : > { %v2453_v23 = vmul.f32 %v9503_v55, %v9503_v55  ;;  %v2630_v19 = vadd.f32 %v2629_v57, %v2435_v43  ;;  %v7155_v25 = vsub.f32 %v9504_v5, %v9500_v36  ;;  %v2404_v52 = vmul.f32 %v9506_v62, %v9506_v62  ;;  %v9510_v57 = vld [vmem:[#allocation100_spill] sm:$0xff] }
 0x3f6   : > { %9502 = vst [vmem:[#allocation146_spill] sm:$0xff] %v7149_v34  ;;  %v2533_v53 = vadd.f32 %v2532_v24, %v2341_v6  ;;  %2567 = vadd.xlane.f32.xlu1 %v2566_v32  ;;  %2501 = vadd.xlane.f32.xlu2 %v2500_v15  ;;  %v7161_v33 = vsub.f32 %v9507_v42, %v9500_v36  ;;  %v9512_v24 = vld [vmem:[#allocation106_spill] sm:$0xff] }
 0x3f7   : > { %9505 = vst [vmem:[#allocation102_spill] sm:$0xff] %v7155_v25  ;;  %v2436_v12 = vmul.f32 %v9509_v1, %v9509_v1  ;;  %v2649_v56 = vadd.f32 %v2648_v48, %v2453_v23  ;;  %v2598_v51 = vadd.f32 %v2597_v21, %v2404_v52  ;;  %v7167_v26 = vsub.f32 %v9510_v57, %v9500_v36 }
 0x3f8   : > { %9508 = vst [vmem:[#allocation108_spill] sm:$0xff] %v7161_v33  ;;  %2534 = vadd.xlane.f32.xlu0 %v2533_v53  ;;  %v2454_v15 = vmul.f32 %v7149_v34, %v7149_v34  ;;  %v2405_v41 = vmul.f32 %v7155_v25, %v7155_v25  ;;  %v2437_v43 = vmul.f32 %v7161_v33, %v7161_v33 }
 0x3f9   : > { %9511 = vst [vmem:[#allocation8_spill] sm:$0xff] %v7167_v26  ;;  %v2631_v32 = vadd.f32 %v2630_v19, %v2436_v12  ;;  %v7177_v48 = vsub.f32 %v9512_v24, %v9500_v36  ;;  %v2455_v21 = vmul.f32 %v7167_v26, %v7167_v26  ;;  %v9514_v19 = vld [vmem:[#allocation3_spill] sm:$0xff] }
 0x3fa   : > { %v2650_v53 = vadd.f32 %v2649_v56, %v2454_v15  ;;  %v2599_v6 = vadd.f32 %v2598_v51, %v2405_v41  ;;  %v7183_v5 = vsub.f32 %v9514_v19, %v9500_v36  ;;  %v9516_v12 = vld [vmem:[#allocation119_spill] sm:$0xff]  ;;  %v9518_v15 = vld [vmem:[#allocation42_spill] sm:$0xff]  ;;  %v9522_v19 = vld [vmem:[#allocation125_spill] sm:$0xff] }
 0x3fb   : > { %9513 = vst [vmem:[#allocation5_spill] sm:$0xff] %v7177_v48  ;;  %v2632_v8 = vadd.f32 %v2631_v32, %v2437_v43  ;;  %v2456_v52 = vmul.f32 %v7177_v48, %v7177_v48  ;;  %v7189_v56 = vsub.f32 %v9516_v12, %v9500_v36  ;;  %v7195_v32 = vsub.f32 %v9518_v15, %v9500_v36  ;;  %v3112_v12 = vld [vmem:[%s8278_s5 + $0x8] sm:$0xff] }
 0x3fc   : > { %v2651_v23 = vadd.f32 %v2650_v53, %v2455_v21  ;;  %9515 = vst [vmem:[#allocation15_spill] sm:$0xff] %v7183_v5  ;;  %v2457_v51 = vmul.f32 %v7183_v5, %v7183_v5  ;;  %v3113_v53 = vld [vmem:[%s8278_s5 + $0x10] sm:$0xff] }
 0x3fd   : > { %9517 = vst [vmem:[#allocation28_spill] sm:$0xff] %v7189_v56  ;;  %v2458_v41 = vmul.f32 %v7189_v56, %v7189_v56  ;;  %v2459_v21 = vmul.f32 %v7195_v32, %v7195_v32 }
 0x3fe   : > { %2600 = vadd.xlane.f32.xlu2 %v2599_v6  ;;  %v2652_v42 = vadd.f32 %v2651_v23, %v2456_v52  ;;  %9519 = vst [vmem:[#allocation112_spill] sm:$0xff] %v7195_v32  ;;  %v9520_v6 = vld [vmem:[#allocation43_spill] sm:$0xff]  ;;  %v3111_v23 = vld [vmem:[%s8278_s5] sm:$0xff]  ;;  %v7213_v52 = vsub.f32 %v9522_v19, %v9500_v36 }
 0x3ff   : > { %v7204_v24 = vsub.f32 %v9520_v6, %v9500_v36  ;;  %v9526_v6 = vld [vmem:[#allocation152_spill] sm:$0xff] }
 0x400   : > { %2633 = vadd.xlane.f32.xlu0 %v2632_v8  ;;  %v2653_v57 = vadd.f32 %v2652_v42, %v2457_v51  ;;  %9523 = vst [vmem:[#allocation39_spill] sm:$0xff] %v7213_v52 }
 0x401   : > { %9521 = vst [vmem:[#allocation27_spill] sm:$0xff] %v7204_v24  ;;  %v2460_v42 = vmul.f32 %v7204_v24, %v7204_v24 }
 0x402   : > { %v2654_v43 = vadd.f32 %v2653_v57, %v2458_v41  ;;  %v9524_v57 = vld [vmem:[#allocation151_spill] sm:$0xff]  ;;  %v2461_v41 = vmul.f32 %v7213_v52, %v7213_v52 }
 0x403   : > { %v7222_v15 = vsub.f32 %v9524_v57, %v9500_v36  ;;  %v9532_v52 = vld [vmem:[#allocation155_spill] sm:$0xff] }
 0x404   : > { %v2655_v8 = vadd.f32 %v2654_v43, %v2459_v21  ;;  %v7231_v21 = vsub.f32 %v9526_v6, %v9500_v36 }
 0x405   : > { %9525 = vst [vmem:[#allocation50_spill] sm:$0xff] %v7222_v15 }
 0x406   : > { %v2656_v51 = vadd.f32 %v2655_v8, %v2460_v42  ;;  %9527 = vst [vmem:[#allocation56_spill] sm:$0xff] %v7231_v21  ;;  %v2462_v8 = vmul.f32 %v7222_v15, %v7222_v15  ;;  %v9528_v42 = vld [vmem:[#allocation153_spill] sm:$0xff] }
 0x408   : > { %v2657_v43 = vadd.f32 %v2656_v51, %v2461_v41  ;;  %v2463_v51 = vmul.f32 %v7231_v21, %v7231_v21  ;;  %v9530_v41 = vld [vmem:[#allocation154_spill] sm:$0xff]  ;;  %v9534_v21 = vld [vmem:[#allocation156_spill] sm:$0xff] }
 0x409   : > { %v7246_v6 = vsub.f32 %v9530_v41, %v9500_v36  ;;  %v9536_v41 = vld [vmem:[#allocation157_spill] sm:$0xff] }
 0x40a   : > { %v2658_v19 = vadd.f32 %v2657_v43, %v2462_v8  ;;  %v7252_v43 = vsub.f32 %v9532_v52, %v9500_v36 }
 0x40b   : > { %9531 = vst [vmem:[#allocation228_spill] sm:$0xff] %v7246_v6  ;;  %v2465_v8 = vmul.f32 %v7246_v6, %v7246_v6 }
 0x40c   : > { %v2659_v57 = vadd.f32 %v2658_v19, %v2463_v51  ;;  %9533 = vst [vmem:[#allocation196_spill] sm:$0xff] %v7252_v43  ;;  %v2466_v19 = vmul.f32 %v7252_v43, %v7252_v43 }
 0x40f   : > { %3129 = vperm.xlu1 %3731, %v3113_v53   ;;  %v3114_v53 = vld [vmem:[%s8278_s5 + $0x18] sm:$0xff] }
 0x414   : > { %3119 = vperm.xlu0 %3730, %v3111_v23   ;;  %v3115_v23 = vld [vmem:[%s8278_s5 + $0x20] sm:$0xff] }
 0x416   : > { %3124 = vperm.xlu2 %3732, %v3112_v12   ;;  %v7240_v12 = vsub.f32 %v9528_v42, %v9500_v36 }
 0x418   : > { %9529 = vst [vmem:[#allocation57_spill] sm:$0xff] %v7240_v12 }
 0x41c   : > { %3134 = vperm.xlu0 %3730, %v3114_v53   ;;  %v2464_v53 = vmul.f32 %v7240_v12, %v7240_v12  ;;  %v7264_v12 = vsub.f32 %v9536_v41, %v9500_v36  ;;  %v7279_v41 = vpop.permute.xlu2 %2891 }
 0x41e   : > { %3139 = vperm.xlu2 %3732, %v3115_v23   ;;  %v2660_v15 = vadd.f32 %v2659_v57, %v2464_v53  ;;  %v7258_v23 = vsub.f32 %v9534_v21, %v9500_v36  ;;  %9537 = vst [vmem:[#allocation61_spill] sm:$0xff] %v7264_v12  ;;  %v9538_v53 = vld [vmem:[#allocation158_spill] sm:$0xff] }
 0x41f   : > { %v7270_v6 = vsub.f32 %v9538_v53, %v9500_v36 }
 0x420   : > { %v2661_v42 = vadd.f32 %v2660_v15, %v2465_v8  ;;  %9535 = vst [vmem:[#allocation212_spill] sm:$0xff] %v7258_v23  ;;  %v2467_v52 = vmul.f32 %v7258_v23, %v7258_v23  ;;  %v2468_v15 = vmul.f32 %v7264_v12, %v7264_v12 }
 0x421   : > { %9539 = vst [vmem:[#allocation229_spill] sm:$0xff] %v7270_v6  ;;  %v2469_v8 = vmul.f32 %v7270_v6, %v7270_v6 }
 0x422   : > { %v2662_v51 = vadd.f32 %v2661_v42, %v2466_v19  ;;  %v3116_v19 = vld [vmem:[%s8278_s5 + $0x28] sm:$0xff] }
 0x424   : > { %v2663_v57 = vadd.f32 %v2662_v51, %v2467_v52  ;;  %v7281_v51 = vpop.permute.xlu0 %2896  ;;  %v7283_v36 = vpop.permute.xlu2 %2911 }
 0x425   : > { %9540 = vst [vmem:[#allocation197_spill] sm:$0xff] %v7283_v36  ;;  %v7285_v52 = vpop.permute.xlu1 %2916 }
 0x426   : > { %v2664_v21 = vadd.f32 %v2663_v57, %v2468_v15  ;;  %9541 = vst [vmem:[#allocation213_spill] sm:$0xff] %v7285_v52 }
 0x428   : > { %v2665_v42 = vadd.f32 %v2664_v21, %v2469_v8 }
 0x42c   : > { %v7287_v53 = vpop.permute.xlu0 %2906 }
 0x439   : > { %2666 = vadd.xlane.f32.xlu1 %v2665_v42 }
 0x452   : > { %3144 = vperm.xlu1 %3731, %v3116_v19  }
 0x469   : > { %v2568_v57 = vpop.xlane.xlu1 %2567  ;;  %v2502_v15 = vpop.xlane.xlu2 %2501 }
 0x46b   : > { %v2535_v6 = vpop.xlane.xlu0 %2534 }
 0x46c   : > { %v2668_v21 = vadd.f32 %v2535_v6, %v2502_v15 }
 0x46e   : > { %v2669_v12 = vadd.f32 %v2668_v21, %v2568_v57 }
 0x471   : > { %v2601_v42 = vpop.xlane.xlu2 %2600 }
 0x472   : > { %v2670_v23 = vadd.f32 %v2669_v12, %v2601_v42 }
 0x473   : > { %v2634_v19 = vpop.xlane.xlu0 %2633 }
 0x474   : > { %v2671_v24 = vadd.f32 %v2670_v23, %v2634_v19  ;;  %v9549_v19 = vld [vmem:[#allocation96_spill] sm:$0xff] }
 0x481   : > { %v7289_v8 = vpop.permute.xlu1 %3129 }
 0x4ac   : > { %v2667_v43 = vpop.xlane.xlu1 %2666 }
 0x4ad   : > { %v2672_v32 = vadd.f32 %v2671_v24, %v2667_v43  ;;  %v9546_v43 = vld [vmem:[#allocation86_spill] sm:$0xff] }
 0x4af   : > { %v2673_v56 = vrot.slane %v2672_v32, 4 }
 0x4b1   : > { %v2674_v5 = vadd.f32 %v2673_v56, %v2672_v32  ;;  %v9542_v56 = vld [vmem:[#allocation62_spill] sm:$0xff]  ;;  %v9545_v32 = vld [vmem:[#allocation69_spill] sm:$0xff] }
 0x4b3   : > { %v2675_v48 = vrot.slane %v2674_v5, 2 }
 0x4b5   : > { %v2676_v26 = vadd.f32 %v2675_v48, %v2674_v5  ;;  %v9543_v5 = vld [vmem:[#allocation63_spill] sm:$0xff] }
 0x4b7   : > { %v2677_v34 = vrot.slane %v2676_v26, 1 }
 0x4b9   : > { %v2678_v55 = vadd.f32 %v2677_v34, %v2676_v26 }
 0x4bb   : > { %v2679_v52 = vmul.f32 5.086263e-06, %v2678_v55  ;;  %v9544_v55 = vld [vmem:[#allocation64_spill] sm:$0xff] }
 0x4bd   : > { %v2680_v33 = vadd.f32 1e-05, %v2679_v52 }
 0x4bf   : > { %3733 = vrsqrt.f32 %v2680_v33  ;;  %vm2687_vm2 = vweird.f32 %v2680_v33 }
 0x4c5   : > { %v3734_v1 = vpop.eup %3733 }
 0x4c6   : > { %v2682_v6 = vmul.f32 %v3734_v1, %v2680_v33  ;;  %vm2688_vm1 = vweird.f32 %v3734_v1  ;;  %v9547_v33 = vld [vmem:[#allocation91_spill] sm:$0xff] }
 0x4c7   : > { %vm2689_vm3 = vmor %vm2687_vm2, %vm2688_vm1 }
 0x4c8   : > { %v2683_v15 = vmul.f32 %v3734_v1, %v2682_v6 }
 0x4ca   : > { %v2684_v36 = vmul.f32 0.5, %v2683_v15 }
 0x4cc   : > { %v2685_v11 = vsub.f32 1.5, %v2684_v36 }
 0x4ce   : > { %v2686_v57 = vmul.f32 %v3734_v1, %v2685_v11 }
 0x4d0   : > { %v7291_v24 = vsel %vm2689_vm3, %v3734_v1, %v2686_v57  ;;  %v9548_v1 = vld [vmem:[#allocation93_spill] sm:$0xff]  ;;  %v9550_v57 = vld [vmem:[#allocation4_spill] sm:$0xff] }
 0x4d1   : > { %v2691_v48 = vmul.f32 %v7291_v24, %v9542_v56  ;;  %v2692_v34 = vmul.f32 %v7291_v24, %v9543_v5  ;;  %v2693_v26 = vmul.f32 %v7291_v24, %v9544_v55  ;;  %v2694_v12 = vmul.f32 %v7291_v24, %v9545_v32 }
 0x4d2   : > { %v2695_v11 = vmul.f32 %v7291_v24, %v9546_v43  ;;  %v2696_v23 = vmul.f32 %v7291_v24, %v9547_v33  ;;  %v2697_v36 = vmul.f32 %v7291_v24, %v9548_v1  ;;  %v2698_v6 = vmul.f32 %v7291_v24, %v9549_v19  ;;  %v9553_v19 = vld [vmem:[#allocation14_spill] sm:$0xff] }
 0x4d3   : > { %v2919_v52 = vmul.f32 %v7279_v41, %v2691_v48  ;;  %v2920_v21 = vmul.f32 %v7279_v41, %v2692_v34  ;;  %v2921_v42 = vmul.f32 %v7279_v41, %v2693_v26  ;;  %v2922_v15 = vmul.f32 %v7279_v41, %v2694_v12  ;;  %v7323_v48 = vpop.permute.xlu0 %3119  ;;  %v9551_v34 = vld [vmem:[#allocation12_spill] sm:$0xff]  ;;  %v9552_v26 = vld [vmem:[#allocation7_spill] sm:$0xff] }
 0x4d4   : > { %v2699_v56 = vmul.f32 %v7291_v24, %v9550_v57  ;;  %v2923_v5 = vmul.f32 %v7279_v41, %v2695_v11  ;;  %v2700_v55 = vmul.f32 %v7291_v24, %v9551_v34  ;;  %v2701_v32 = vmul.f32 %v7291_v24, %v9552_v26  ;;  %v9554_v26 = vld [vmem:[#allocation116_spill] sm:$0xff] }
 0x4d5   : > { %v2924_v12 = vmul.f32 %v7279_v41, %v2696_v23  ;;  %v2925_v43 = vmul.f32 %v7279_v41, %v2697_v36  ;;  %v3147_v11 = vadd.f32 %v7323_v48, %v2919_v52  ;;  %v3148_v33 = vadd.f32 %v7323_v48, %v2920_v21  ;;  %v9555_v21 = vld [vmem:[#allocation40_spill] sm:$0xff] }
 0x4d6   : > { %v3149_v1 = vadd.f32 %v7323_v48, %v2921_v42  ;;  %v2702_v57 = vmul.f32 %v7291_v24, %v9553_v19  ;;  %v2926_v34 = vmul.f32 %v7279_v41, %v2698_v6  ;;  %v3150_v0 = vadd.f32 %v7323_v48, %v2922_v15  ;;  %v9556_v6 = vld [vmem:[#allocation37_spill] sm:$0xff] }
 0x4d7   : > { %v2703_v23 = vmul.f32 %v7291_v24, %v9554_v26  ;;  %v2927_v36 = vmul.f32 %v7279_v41, %v2699_v56  ;;  %v3151_v52 = vadd.f32 %v7323_v48, %v2923_v5  ;;  %3339 = vst [vmem:[%s7321_s15] sm:$0xff] %v3147_v11  ;;  %v2704_v42 = vmul.f32 %v7291_v24, %v9555_v21  ;;  %v9557_v5 = vld [vmem:[#allocation122_spill] sm:$0xff] }
 0x4d8   : > { %v2928_v25 = vmul.f32 %v7279_v41, %v2700_v55  ;;  %v3152_v19 = vadd.f32 %v7323_v48, %v2924_v12  ;;  %3340 = vst [vmem:[%s7321_s15 + $0x8] sm:$0xff] %v3148_v33  ;;  %v2705_v15 = vmul.f32 %v7291_v24, %v9556_v6  ;;  %v2929_v26 = vmul.f32 %v7279_v41, %v2701_v32  ;;  %v9558_v12 = vld [vmem:[#allocation51_spill] sm:$0xff] }
 0x4d9   : > { %v3153_v56 = vadd.f32 %v7323_v48, %v2925_v43  ;;  %3341 = vst [vmem:[%s7321_s15 + $0x10] sm:$0xff] %v3149_v1  ;;  %v2706_v11 = vmul.f32 %v7291_v24, %v9557_v5  ;;  %v2930_v21 = vmul.f32 %v7279_v41, %v2702_v57  ;;  %v3154_v55 = vadd.f32 %v7323_v48, %v2926_v34  ;;  %v9559_v43 = vld [vmem:[#allocation161_spill] sm:$0xff]  ;;  %v9560_v34 = vld [vmem:[#allocation162_spill] sm:$0xff] }
 0x4da   : > { %3342 = vst [vmem:[%s7321_s15 + $0x18] sm:$0xff] %v3150_v0  ;;  %v2707_v33 = vmul.f32 %v7291_v24, %v9558_v12  ;;  %v2931_v6 = vmul.f32 %v7279_v41, %v2703_v23  ;;  %v3155_v32 = vadd.f32 %v7323_v48, %v2927_v36  ;;  %v2708_v1 = vmul.f32 %v7291_v24, %v9559_v43  ;;  %v9561_v36 = vld [vmem:[#allocation163_spill] sm:$0xff] }
 0x4db   : > { %3343 = vst [vmem:[%s7321_s15 + $0x20] sm:$0xff] %v3151_v52  ;;  %v2932_v5 = vmul.f32 %v7279_v41, %v2704_v42  ;;  %v3156_v57 = vadd.f32 %v7323_v48, %v2928_v25  ;;  %v2709_v0 = vmul.f32 %v7291_v24, %v9560_v34  ;;  %v2933_v12 = vmul.f32 %v7279_v41, %v2705_v15  ;;  %v9562_v25 = vld [vmem:[#allocation164_spill] sm:$0xff] }
 0x4dc   : > { %3344 = vst [vmem:[%s7321_s15 + $0x28] sm:$0xff] %v3152_v19  ;;  %v3157_v23 = vadd.f32 %v7323_v48, %v2929_v26  ;;  %v2710_v52 = vmul.f32 %v7291_v24, %v9561_v36  ;;  %v2934_v43 = vmul.f32 %v7279_v41, %v2706_v11  ;;  %v3158_v42 = vadd.f32 %v7323_v48, %v2930_v21  ;;  %v9563_v26 = vld [vmem:[#allocation165_spill] sm:$0xff]  ;;  %v9564_v21 = vld [vmem:[#allocation138_spill] sm:$0xff] }
 0x4dd   : > { %3345 = vst [vmem:[%s7321_s15 + $0x30] sm:$0xff] %v3153_v56  ;;  %v2711_v19 = vmul.f32 %v7291_v24, %v9562_v25  ;;  %v2935_v34 = vmul.f32 %v7279_v41, %v2707_v33  ;;  %v3159_v15 = vadd.f32 %v7323_v48, %v2931_v6  ;;  %v2712_v56 = vmul.f32 %v7291_v24, %v9563_v26  ;;  %v9565_v6 = vld [vmem:[#allocation166_spill] sm:$0xff] }
 0x4de   : > { %3346 = vst [vmem:[%s7321_s15 + $0x38] sm:$0xff] %v3154_v55  ;;  %v2936_v36 = vmul.f32 %v7279_v41, %v2708_v1  ;;  %v3160_v11 = vadd.f32 %v7323_v48, %v2932_v5  ;;  %v2713_v55 = vmul.f32 %v7291_v24, %v9564_v21  ;;  %v2937_v25 = vmul.f32 %v7279_v41, %v2709_v0  ;;  %v9566_v5 = vld [vmem:[#allocation167_spill] sm:$0xff] }
 0x4df   : > { %3347 = vst [vmem:[%s7321_s15 + $0x40] sm:$0xff] %v3155_v32  ;;  %v3161_v33 = vadd.f32 %v7323_v48, %v2933_v12  ;;  %v2714_v32 = vmul.f32 %v7291_v24, %v9565_v6  ;;  %v2938_v26 = vmul.f32 %v7279_v41, %v2710_v52  ;;  %v3162_v1 = vadd.f32 %v7323_v48, %v2934_v43  ;;  %v9567_v12 = vld [vmem:[#allocation168_spill] sm:$0xff]  ;;  %v9568_v43 = vld [vmem:[#allocation169_spill] sm:$0xff] }
 0x4e0   : > { %3348 = vst [vmem:[%s7321_s15 + $0x48] sm:$0xff] %v3156_v57  ;;  %v2715_v57 = vmul.f32 %v7291_v24, %v9566_v5  ;;  %v2939_v21 = vmul.f32 %v7279_v41, %v2711_v19  ;;  %v3163_v0 = vadd.f32 %v7323_v48, %v2935_v34  ;;  %v2940_v6 = vmul.f32 %v7279_v41, %v2712_v56  ;;  %v9569_v34 = vld [vmem:[#allocation170_spill] sm:$0xff] }
 0x4e1   : > { %3349 = vst [vmem:[%s7321_s15 + $0x50] sm:$0xff] %v3157_v23  ;;  %v2716_v23 = vmul.f32 %v7291_v24, %v9567_v12  ;;  %v3164_v52 = vadd.f32 %v7323_v48, %v2936_v36  ;;  %v2941_v5 = vmul.f32 %v7279_v41, %v2713_v55  ;;  %v3165_v19 = vadd.f32 %v7323_v48, %v2937_v25  ;;  %v9570_v36 = vld [vmem:[#allocation171_spill] sm:$0xff]  ;;  %v9571_v25 = vld [vmem:[#allocation172_spill] sm:$0xff] }
 0x4e2   : > { %3350 = vst [vmem:[%s7321_s15 + $0x58] sm:$0xff] %v3158_v42  ;;  %v2717_v42 = vmul.f32 %v7291_v24, %v9568_v43  ;;  %v2942_v12 = vmul.f32 %v7279_v41, %v2714_v32  ;;  %v3166_v56 = vadd.f32 %v7323_v48, %v2938_v26  ;;  %v2943_v43 = vmul.f32 %v7279_v41, %v2715_v57 }
 0x4e3   : > { %3351 = vst [vmem:[%s7321_s15 + $0x60] sm:$0xff] %v3159_v15  ;;  %v2718_v15 = vmul.f32 %v7291_v24, %v9569_v34  ;;  %v3167_v55 = vadd.f32 %v7323_v48, %v2939_v21  ;;  %v2944_v34 = vmul.f32 %v7279_v41, %v2716_v23  ;;  %v3168_v32 = vadd.f32 %v7323_v48, %v2940_v6  ;;  %v9572_v6 = vld [vmem:[#allocation65_spill] sm:$0xff] }
 0x4e4   : > { %3352 = vst [vmem:[%s7321_s15 + $0x68] sm:$0xff] %v3160_v11  ;;  %v2719_v11 = vmul.f32 %v7291_v24, %v9570_v36  ;;  %v2721_v26 = vmul.f32 %v7291_v24, %v9491_v39  ;;  %v3169_v57 = vadd.f32 %v7323_v48, %v2941_v5  ;;  %v2722_v21 = vmul.f32 %v7291_v24, %v9497_v14  ;;  %v9573_v5 = vld [vmem:[#allocation66_spill] sm:$0xff] }
 0x4e5   : > { %3353 = vst [vmem:[%s7321_s15 + $0x70] sm:$0xff] %v3161_v33  ;;  %v2720_v33 = vmul.f32 %v7291_v24, %v9571_v25  ;;  %v3170_v23 = vadd.f32 %v7323_v48, %v2942_v12  ;;  %v9574_v12 = vld [vmem:[#allocation70_spill] sm:$0xff] }
 0x4e6   : > { %3354 = vst [vmem:[%s7321_s15 + $0x78] sm:$0xff] %v3162_v1  ;;  %v2945_v1 = vmul.f32 %v7279_v41, %v2717_v42  ;;  %v2947_v39 = vmul.f32 %v7279_v41, %v2719_v11  ;;  %v3171_v42 = vadd.f32 %v7323_v48, %v2943_v43  ;;  %v2949_v36 = vmul.f32 %v7279_v41, %v2721_v26  ;;  %v9575_v43 = vld [vmem:[#allocation77_spill] sm:$0xff] }
 0x4e7   : > { %3355 = vst [vmem:[%s7321_s15 + $0x80] sm:$0xff] %v3163_v0  ;;  %v2946_v0 = vmul.f32 %v7279_v41, %v2718_v15  ;;  %v2948_v14 = vmul.f32 %v7279_v41, %v2720_v33  ;;  %v3172_v15 = vadd.f32 %v7323_v48, %v2944_v34  ;;  %v2950_v25 = vmul.f32 %v7279_v41, %v2722_v21  ;;  %v9576_v34 = vld [vmem:[#allocation92_spill] sm:$0xff]  ;;  %v9578_v21 = vld [vmem:[#allocation98_spill] sm:$0xff] }
 0x4e8   : > { %3356 = vst [vmem:[%s7321_s15 + $0x88] sm:$0xff] %v3164_v52  ;;  %v2723_v52 = vmul.f32 %v7291_v24, %v9572_v6  ;;  %v3173_v11 = vadd.f32 %v7323_v48, %v2945_v1  ;;  %v3175_v26 = vadd.f32 %v7323_v48, %v2947_v39  ;;  %v9577_v1 = vld [vmem:[#allocation97_spill] sm:$0xff]  ;;  %v7473_v39 = vpop.permute.xlu2 %3124 }
 0x4e9   : > { %3357 = vst [vmem:[%s7321_s15 + $0x90] sm:$0xff] %v3165_v19  ;;  %v2724_v19 = vmul.f32 %v7291_v24, %v9573_v5  ;;  %v3174_v33 = vadd.f32 %v7323_v48, %v2946_v0  ;;  %v3176_v41 = vadd.f32 %v7323_v48, %v2948_v14  ;;  %v2729_v0 = vmul.f32 %v7291_v24, %v9578_v21 }
 0x4ea   : > { %3358 = vst [vmem:[%s7321_s15 + $0x98] sm:$0xff] %v3166_v56  ;;  %v2725_v56 = vmul.f32 %v7291_v24, %v9574_v12  ;;  %v2951_v6 = vmul.f32 %v7281_v51, %v2723_v52  ;;  %v3177_v52 = vadd.f32 %v7323_v48, %v2949_v36  ;;  %v3178_v14 = vadd.f32 %v7323_v48, %v2950_v25  ;;  %v9582_v48 = vld [vmem:[#allocation18_spill] sm:$0xff] }
 0x4eb   : > { %3359 = vst [vmem:[%s7321_s15 + $0xa0] sm:$0xff] %v3167_v55  ;;  %v2726_v55 = vmul.f32 %v7291_v24, %v9575_v43  ;;  %v2952_v5 = vmul.f32 %v7281_v51, %v2724_v19  ;;  %v2733_v25 = vmul.f32 %v7291_v24, %v9582_v48 }
 0x4ec   : > { %3360 = vst [vmem:[%s7321_s15 + $0xa8] sm:$0xff] %v3168_v32  ;;  %v2727_v32 = vmul.f32 %v7291_v24, %v9576_v34  ;;  %v3179_v36 = vadd.f32 %v7473_v39, %v2951_v6  ;;  %v9583_v6 = vld [vmem:[#allocation21_spill] sm:$0xff] }
 0x4ed   : > { %3361 = vst [vmem:[%s7321_s15 + $0xb0] sm:$0xff] %v3169_v57  ;;  %v2728_v57 = vmul.f32 %v7291_v24, %v9577_v1  ;;  %v2954_v19 = vmul.f32 %v7281_v51, %v2726_v55  ;;  %v3180_v55 = vadd.f32 %v7473_v39, %v2952_v5  ;;  %v9584_v5 = vld [vmem:[#allocation34_spill] sm:$0xff] }
 0x4ee   : > { %3362 = vst [vmem:[%s7321_s15 + $0xb8] sm:$0xff] %v3170_v23  ;;  %v2953_v23 = vmul.f32 %v7281_v51, %v2725_v56  ;;  %v2955_v56 = vmul.f32 %v7281_v51, %v2727_v32 }
 0x4ef   : > { %3363 = vst [vmem:[%s7321_s15 + $0xc0] sm:$0xff] %v3171_v42  ;;  %v9579_v42 = vld [vmem:[#allocation103_spill] sm:$0xff]  ;;  %v2956_v1 = vmul.f32 %v7281_v51, %v2728_v57  ;;  %v3182_v57 = vadd.f32 %v7473_v39, %v2954_v19  ;;  %v9586_v19 = vld [vmem:[#allocation121_spill] sm:$0xff] }
 0x4f0   : > { %3364 = vst [vmem:[%s7321_s15 + $0xc8] sm:$0xff] %v3172_v15  ;;  %v2730_v12 = vmul.f32 %v7291_v24, %v9579_v42  ;;  %v9580_v15 = vld [vmem:[#allocation16_spill] sm:$0xff]  ;;  %v3181_v32 = vadd.f32 %v7473_v39, %v2953_v23 }
 0x4f1   : > { %3365 = vst [vmem:[%s7321_s15 + $0xd0] sm:$0xff] %v3173_v11  ;;  %v2731_v43 = vmul.f32 %v7291_v24, %v9580_v15  ;;  %v9581_v11 = vld [vmem:[#allocation20_spill] sm:$0xff] }
 0x4f2   : > { %3366 = vst [vmem:[%s7321_s15 + $0xd8] sm:$0xff] %v3174_v33  ;;  %v2732_v34 = vmul.f32 %v7291_v24, %v9581_v11  ;;  %v2957_v33 = vmul.f32 %v7281_v51, %v2729_v0  ;;  %v2958_v21 = vmul.f32 %v7281_v51, %v2730_v12  ;;  %v3183_v0 = vadd.f32 %v7473_v39, %v2955_v56  ;;  %v9585_v23 = vld [vmem:[#allocation120_spill] sm:$0xff]  ;;  %v9587_v56 = vld [vmem:[#allocation49_spill] sm:$0xff] }
 0x4f3   : > { %3367 = vst [vmem:[%s7321_s15 + $0xe0] sm:$0xff] %v3175_v26  ;;  %v2734_v26 = vmul.f32 %v7291_v24, %v9583_v6  ;;  %v2959_v42 = vmul.f32 %v7281_v51, %v2731_v43  ;;  %v3184_v12 = vadd.f32 %v7473_v39, %v2956_v1  ;;  %v2961_v11 = vmul.f32 %v7281_v51, %v2733_v25  ;;  %v9588_v1 = vld [vmem:[#allocation58_spill] sm:$0xff] }
 0x4f4   : > { %3368 = vst [vmem:[%s7321_s15 + $0xe8] sm:$0xff] %v3176_v41  ;;  %v2735_v41 = vmul.f32 %v7291_v24, %v9584_v5  ;;  %v2960_v15 = vmul.f32 %v7281_v51, %v2732_v34  ;;  %v3185_v43 = vadd.f32 %v7473_v39, %v2957_v33  ;;  %v3186_v34 = vadd.f32 %v7473_v39, %v2958_v21  ;;  %v9589_v33 = vld [vmem:[#allocation67_spill] sm:$0xff] }
 0x4f5   : > { %3369 = vst [vmem:[%s7321_s15 + $0xf0] sm:$0xff] %v3177_v52  ;;  %v2736_v52 = vmul.f32 %v7291_v24, %v9585_v23  ;;  %v2962_v48 = vmul.f32 %v7281_v51, %v2734_v26  ;;  %v3187_v25 = vadd.f32 %v7473_v39, %v2959_v42  ;;  %v9590_v21 = vld [vmem:[#allocation71_spill] sm:$0xff]  ;;  %v9591_v42 = vld [vmem:[#allocation129_spill] sm:$0xff] }
 0x4f6   : > { %3370 = vst [vmem:[%s7321_s15 + $0xf8] sm:$0xff] %v3178_v14  ;;  %v2737_v14 = vmul.f32 %v7291_v24, %v9586_v19  ;;  %v2963_v6 = vmul.f32 %v7281_v51, %v2735_v41  ;;  %v3188_v26 = vadd.f32 %v7473_v39, %v2960_v15  ;;  %v3189_v41 = vadd.f32 %v7473_v39, %v2961_v11  ;;  %v9592_v15 = vld [vmem:[#allocation137_spill] sm:$0xff]  ;;  %v9593_v11 = vld [vmem:[#allocation140_spill] sm:$0xff] }
 0x4f7   : > { %3371 = vst [vmem:[%s7321_s15 + $0x100] sm:$0xff] %v3179_v36  ;;  %v2738_v36 = vmul.f32 %v7291_v24, %v9587_v56  ;;  %v2964_v5 = vmul.f32 %v7281_v51, %v2736_v52  ;;  %v3190_v52 = vadd.f32 %v7473_v39, %v2962_v48  ;;  %v9594_v48 = vld [vmem:[#allocation141_spill] sm:$0xff] }
 0x4f8   : > { %3372 = vst [vmem:[%s7321_s15 + $0x108] sm:$0xff] %v3180_v55  ;;  %v2739_v55 = vmul.f32 %v7291_v24, %v9588_v1  ;;  %v2965_v23 = vmul.f32 %v7281_v51, %v2737_v14  ;;  %v3191_v14 = vadd.f32 %v7473_v39, %v2963_v6  ;;  %v9595_v6 = vld [vmem:[#allocation31_spill] sm:$0xff] }
 0x4f9   : > { %3373 = vst [vmem:[%s7321_s15 + $0x110] sm:$0xff] %v3181_v32  ;;  %v2740_v32 = vmul.f32 %v7291_v24, %v9589_v33  ;;  %v2966_v19 = vmul.f32 %v7281_v51, %v2738_v36  ;;  %v3192_v36 = vadd.f32 %v7473_v39, %v2964_v5  ;;  %v9596_v5 = vld [vmem:[#allocation143_spill] sm:$0xff] }
 0x4fa   : > { %3374 = vst [vmem:[%s7321_s15 + $0x118] sm:$0xff] %v3182_v57  ;;  %v2741_v57 = vmul.f32 %v7291_v24, %v9590_v21  ;;  %v2967_v56 = vmul.f32 %v7281_v51, %v2739_v55  ;;  %v3193_v55 = vadd.f32 %v7473_v39, %v2965_v23  ;;  %v9597_v23 = vld [vmem:[#allocation175_spill] sm:$0xff] }
 0x4fb   : > { %3375 = vst [vmem:[%s7321_s15 + $0x120] sm:$0xff] %v3183_v0  ;;  %v2742_v0 = vmul.f32 %v7291_v24, %v9591_v42  ;;  %v2968_v1 = vmul.f32 %v7281_v51, %v2740_v32  ;;  %v3194_v32 = vadd.f32 %v7473_v39, %v2966_v19  ;;  %v9598_v19 = vld [vmem:[#allocation176_spill] sm:$0xff] }
 0x4fc   : > { %3376 = vst [vmem:[%s7321_s15 + $0x128] sm:$0xff] %v3184_v12  ;;  %v2743_v12 = vmul.f32 %v7291_v24, %v9592_v15  ;;  %v2969_v33 = vmul.f32 %v7281_v51, %v2741_v57  ;;  %v3195_v57 = vadd.f32 %v7473_v39, %v2967_v56  ;;  %v9599_v56 = vld [vmem:[#allocation177_spill] sm:$0xff] }
 0x4fd   : > { %3377 = vst [vmem:[%s7321_s15 + $0x130] sm:$0xff] %v3185_v43  ;;  %v2744_v43 = vmul.f32 %v7291_v24, %v9593_v11  ;;  %v2970_v21 = vmul.f32 %v7281_v51, %v2742_v0  ;;  %v3196_v0 = vadd.f32 %v7473_v39, %v2968_v1  ;;  %v9600_v1 = vld [vmem:[#allocation178_spill] sm:$0xff] }
 0x4fe   : > { %3378 = vst [vmem:[%s7321_s15 + $0x138] sm:$0xff] %v3186_v34  ;;  %v2745_v34 = vmul.f32 %v7291_v24, %v9594_v48  ;;  %v2971_v42 = vmul.f32 %v7281_v51, %v2743_v12  ;;  %v3197_v12 = vadd.f32 %v7473_v39, %v2969_v33  ;;  %v9601_v33 = vld [vmem:[#allocation179_spill] sm:$0xff] }
 0x4ff   : > { %3379 = vst [vmem:[%s7321_s15 + $0x140] sm:$0xff] %v3187_v25  ;;  %v2746_v25 = vmul.f32 %v7291_v24, %v9595_v6  ;;  %v2972_v15 = vmul.f32 %v7281_v51, %v2744_v43  ;;  %v3198_v43 = vadd.f32 %v7473_v39, %v2970_v21  ;;  %v2753_v21 = vmul.f32 %v7291_v24, %v9494_v50 }
 0x500   : > { %3380 = vst [vmem:[%s7321_s15 + $0x148] sm:$0xff] %v3188_v26  ;;  %v2747_v26 = vmul.f32 %v7291_v24, %v9596_v5  ;;  %v2973_v11 = vmul.f32 %v7281_v51, %v2745_v34  ;;  %v3199_v34 = vadd.f32 %v7473_v39, %v2971_v42  ;;  %v2754_v42 = vmul.f32 %v7291_v24, %v9499_v37 }
 0x501   : > { %3381 = vst [vmem:[%s7321_s15 + $0x150] sm:$0xff] %v3189_v41  ;;  %v2748_v41 = vmul.f32 %v7291_v24, %v9597_v23  ;;  %v2974_v48 = vmul.f32 %v7281_v51, %v2746_v25  ;;  %v3200_v25 = vadd.f32 %v7473_v39, %v2972_v15 }
 0x502   : > { %3382 = vst [vmem:[%s7321_s15 + $0x158] sm:$0xff] %v3190_v52  ;;  %v2749_v52 = vmul.f32 %v7291_v24, %v9598_v19  ;;  %v2975_v6 = vmul.f32 %v7281_v51, %v2747_v26  ;;  %v3201_v26 = vadd.f32 %v7473_v39, %v2973_v11  ;;  %v9603_v19 = vld [vmem:[#allocation73_spill] sm:$0xff] }
 0x503   : > { %3383 = vst [vmem:[%s7321_s15 + $0x160] sm:$0xff] %v3191_v14  ;;  %v2750_v14 = vmul.f32 %v7291_v24, %v9599_v56  ;;  %v2976_v5 = vmul.f32 %v7281_v51, %v2748_v41  ;;  %v3202_v23 = vadd.f32 %v7473_v39, %v2974_v48  ;;  %v9602_v41 = vld [vmem:[#allocation72_spill] sm:$0xff] }
 0x504   : > { %3384 = vst [vmem:[%s7321_s15 + $0x168] sm:$0xff] %v3192_v36  ;;  %v2751_v36 = vmul.f32 %v7291_v24, %v9600_v1  ;;  %v2755_v15 = vmul.f32 %v7291_v24, %v9602_v41 }
 0x505   : > { %3385 = vst [vmem:[%s7321_s15 + $0x170] sm:$0xff] %v3193_v55  ;;  %v2752_v55 = vmul.f32 %v7291_v24, %v9601_v33  ;;  %v3204_v11 = vadd.f32 %v7473_v39, %v2976_v5 }
 0x506   : > { %3386 = vst [vmem:[%s7321_s15 + $0x178] sm:$0xff] %v3194_v32  ;;  %v2977_v32 = vmul.f32 %v7281_v51, %v2749_v52  ;;  %v2979_v50 = vmul.f32 %v7281_v51, %v2751_v36  ;;  %v2756_v52 = vmul.f32 %v7291_v24, %v9603_v19  ;;  %v2982_v36 = vmul.f32 %v7281_v51, %v2754_v42  ;;  %v9609_v42 = vld [vmem:[#allocation104_spill] sm:$0xff] }
 0x507   : > { %3387 = vst [vmem:[%s7321_s15 + $0x180] sm:$0xff] %v3195_v57  ;;  %v2978_v57 = vmul.f32 %v7281_v51, %v2750_v14  ;;  %v2980_v37 = vmul.f32 %v7281_v51, %v2752_v55  ;;  %v2981_v14 = vmul.f32 %v7281_v51, %v2753_v21  ;;  %v9607_v55 = vld [vmem:[#allocation159_spill] sm:$0xff]  ;;  %v9608_v21 = vld [vmem:[#allocation101_spill] sm:$0xff] }
 0x508   : > { %3388 = vst [vmem:[%s7321_s15 + $0x188] sm:$0xff] %v3196_v0  ;;  %v3203_v0 = vadd.f32 %v7473_v39, %v2975_v6  ;;  %v3205_v48 = vadd.f32 %v7473_v39, %v2977_v32  ;;  %v2983_v5 = vmul.f32 %v9607_v55, %v2755_v15  ;;  %v2760_v32 = vmul.f32 %v7291_v24, %v9608_v21  ;;  %v9610_v15 = vld [vmem:[#allocation107_spill] sm:$0xff]  ;;  %v9615_v21 = vld [vmem:[#allocation44_spill] sm:$0xff] }
 0x509   : > { %3389 = vst [vmem:[%s7321_s15 + $0x190] sm:$0xff] %v3197_v12  ;;  %v9604_v12 = vld [vmem:[#allocation74_spill] sm:$0xff]  ;;  %v3206_v6 = vadd.f32 %v7473_v39, %v2978_v57  ;;  %v3208_v51 = vadd.f32 %v7473_v39, %v2980_v37  ;;  %v2761_v57 = vmul.f32 %v7291_v24, %v9609_v42  ;;  %v3209_v41 = vadd.f32 %v7473_v39, %v2981_v14  ;;  %v9616_v42 = vld [vmem:[#allocation123_spill] sm:$0xff] }
 0x50a   : > { %3390 = vst [vmem:[%s7321_s15 + $0x198] sm:$0xff] %v3198_v43  ;;  %v2757_v56 = vmul.f32 %v7291_v24, %v9604_v12  ;;  %v9605_v43 = vld [vmem:[#allocation78_spill] sm:$0xff]  ;;  %v3210_v19 = vadd.f32 %v7473_v39, %v2982_v36  ;;  %v3211_v12 = vadd.f32 %v7289_v8, %v2983_v5 }
 0x50b   : > { %3391 = vst [vmem:[%s7321_s15 + $0x1a0] sm:$0xff] %v3199_v34  ;;  %v2758_v1 = vmul.f32 %v7291_v24, %v9605_v43  ;;  %v9606_v34 = vld [vmem:[#allocation95_spill] sm:$0xff]  ;;  %v2989_v36 = vmul.f32 %v9607_v55, %v2761_v57  ;;  %v2768_v57 = vmul.f32 %v7291_v24, %v9616_v42 }
 0x50c   : > { %3392 = vst [vmem:[%s7321_s15 + $0x1a8] sm:$0xff] %v3200_v25  ;;  %v2759_v33 = vmul.f32 %v7291_v24, %v9606_v34  ;;  %v3207_v25 = vadd.f32 %v7473_v39, %v2979_v50  ;;  %v2762_v50 = vmul.f32 %v7291_v24, %v9610_v15  ;;  %v9613_v39 = vld [vmem:[#allocation111_spill] sm:$0xff]  ;;  %v9614_v34 = vld [vmem:[#allocation25_spill] sm:$0xff]  ;;  %v9617_v15 = vld [vmem:[#allocation46_spill] sm:$0xff] }
 0x50d   : > { %3393 = vst [vmem:[%s7321_s15 + $0x1b0] sm:$0xff] %v3201_v26  ;;  %v2984_v26 = vmul.f32 %v9607_v55, %v2756_v52  ;;  %v9611_v52 = vld [vmem:[#allocation13_spill] sm:$0xff]  ;;  %v9623_v42 = vld [vmem:[#allocation139_spill] sm:$0xff] }
 0x50e   : > { %3394 = vst [vmem:[%s7321_s15 + $0x1b8] sm:$0xff] %v3202_v23  ;;  %v2985_v23 = vmul.f32 %v9607_v55, %v2757_v56  ;;  %v2763_v37 = vmul.f32 %v7291_v24, %v9611_v52  ;;  %v9612_v56 = vld [vmem:[#allocation24_spill] sm:$0xff]  ;;  %v2990_v5 = vmul.f32 %v9607_v55, %v2762_v50  ;;  %v2769_v50 = vmul.f32 %v7291_v24, %v9617_v15  ;;  %v9618_v52 = vld [vmem:[#allocation126_spill] sm:$0xff] }
 0x50f   : > { %3395 = vst [vmem:[%s7321_s15 + $0x1c0] sm:$0xff] %v3203_v0  ;;  %v2986_v0 = vmul.f32 %v9607_v55, %v2758_v1  ;;  %v2764_v14 = vmul.f32 %v7291_v24, %v9612_v56  ;;  %v3212_v43 = vadd.f32 %v7289_v8, %v2984_v26  ;;  %v2765_v1 = vmul.f32 %v7291_v24, %v9613_v39  ;;  %v9619_v56 = vld [vmem:[#allocation59_spill] sm:$0xff]  ;;  %v9620_v39 = vld [vmem:[#allocation128_spill] sm:$0xff]  ;;  %v9624_v15 = vld [vmem:[#allocation142_spill] sm:$0xff] }
 0x510   : > { %3396 = vst [vmem:[%s7321_s15 + $0x1c8] sm:$0xff] %v3204_v11  ;;  %v2987_v11 = vmul.f32 %v9607_v55, %v2759_v33  ;;  %v2766_v33 = vmul.f32 %v7291_v24, %v9614_v34  ;;  %v2991_v26 = vmul.f32 %v9607_v55, %v2763_v37  ;;  %v2770_v37 = vmul.f32 %v7291_v24, %v9618_v52  ;;  %v9621_v34 = vld [vmem:[#allocation130_spill] sm:$0xff]  ;;  %v9625_v52 = vld [vmem:[#allocation115_spill] sm:$0xff] }
 0x511   : > { %3397 = vst [vmem:[%s7321_s15 + $0x1d0] sm:$0xff] %v3205_v48  ;;  %v2988_v48 = vmul.f32 %v9607_v55, %v2760_v32  ;;  %v2767_v32 = vmul.f32 %v7291_v24, %v9615_v21  ;;  %v9622_v21 = vld [vmem:[#allocation134_spill] sm:$0xff] }
 0x512   : > { %3398 = vst [vmem:[%s7321_s15 + $0x1d8] sm:$0xff] %v3206_v6  ;;  %v3213_v6 = vadd.f32 %v7289_v8, %v2985_v23  ;;  %v2992_v23 = vmul.f32 %v9607_v55, %v2764_v14  ;;  %v2771_v14 = vmul.f32 %v7291_v24, %v9619_v56  ;;  %v9626_v56 = vld [vmem:[#allocation17_spill] sm:$0xff] }
 0x513   : > { %3399 = vst [vmem:[%s7321_s15 + $0x1e0] sm:$0xff] %v3207_v25  ;;  %v3214_v25 = vadd.f32 %v7289_v8, %v2986_v0  ;;  %v2993_v0 = vmul.f32 %v9607_v55, %v2765_v1  ;;  %v2772_v1 = vmul.f32 %v7291_v24, %v9620_v39  ;;  %v9627_v39 = vld [vmem:[#allocation127_spill] sm:$0xff] }
 0x514   : > { %3400 = vst [vmem:[%s7321_s15 + $0x1e8] sm:$0xff] %v3208_v51  ;;  %v3215_v51 = vadd.f32 %v7289_v8, %v2987_v11  ;;  %v2994_v11 = vmul.f32 %v9607_v55, %v2766_v33  ;;  %v2773_v33 = vmul.f32 %v7291_v24, %v9621_v34  ;;  %v9628_v34 = vld [vmem:[#allocation182_spill] sm:$0xff] }
 0x515   : > { %3401 = vst [vmem:[%s7321_s15 + $0x1f0] sm:$0xff] %v3209_v41  ;;  %v3216_v41 = vadd.f32 %v7289_v8, %v2988_v48  ;;  %v2995_v48 = vmul.f32 %v9607_v55, %v2767_v32  ;;  %v2774_v32 = vmul.f32 %v7291_v24, %v9622_v21  ;;  %v9629_v21 = vld [vmem:[#allocation183_spill] sm:$0xff] }
 0x516   : > { %3402 = vst [vmem:[%s7321_s15 + $0x1f8] sm:$0xff] %v3210_v19  ;;  %v3217_v19 = vadd.f32 %v7289_v8, %v2989_v36  ;;  %v2996_v36 = vmul.f32 %v9607_v55, %v2768_v57  ;;  %v2775_v57 = vmul.f32 %v7291_v24, %v9623_v42  ;;  %v2782_v42 = vmul.f32 %v7291_v24, %v9383_v18 }
 0x517   : > { %3403 = vst [vmem:[%s7321_s15 + $0x200] sm:$0xff] %v3211_v12  ;;  %v3218_v12 = vadd.f32 %v7289_v8, %v2990_v5  ;;  %v2997_v5 = vmul.f32 %v9607_v55, %v2769_v50  ;;  %v2776_v50 = vmul.f32 %v7291_v24, %v9624_v15 }
 0x518   : > { %3404 = vst [vmem:[%s7321_s15 + $0x208] sm:$0xff] %v3212_v43  ;;  %v3219_v43 = vadd.f32 %v7289_v8, %v2991_v26  ;;  %v2998_v26 = vmul.f32 %v9607_v55, %v2770_v37  ;;  %v2777_v37 = vmul.f32 %v7291_v24, %v9625_v52  ;;  %v2785_v52 = vmul.f32 %v7291_v24, %v9489_v60 }
 0x519   : > { %3405 = vst [vmem:[%s7321_s15 + $0x210] sm:$0xff] %v3213_v6  ;;  %v3220_v6 = vadd.f32 %v7289_v8, %v2992_v23  ;;  %v2999_v23 = vmul.f32 %v9607_v55, %v2771_v14  ;;  %v2778_v14 = vmul.f32 %v7291_v24, %v9626_v56  ;;  %v9630_v56 = vld [vmem:[#allocation75_spill] sm:$0xff] }
 0x51a   : > { %3406 = vst [vmem:[%s7321_s15 + $0x218] sm:$0xff] %v3214_v25  ;;  %v3221_v25 = vadd.f32 %v7289_v8, %v2993_v0  ;;  %v3000_v0 = vmul.f32 %v9607_v55, %v2772_v1  ;;  %v2779_v1 = vmul.f32 %v7291_v24, %v9627_v39 }
 0x51b   : > { %3407 = vst [vmem:[%s7321_s15 + $0x220] sm:$0xff] %v3215_v51  ;;  %v3222_v51 = vadd.f32 %v7289_v8, %v2994_v11  ;;  %v3001_v11 = vmul.f32 %v9607_v55, %v2773_v33  ;;  %v2780_v33 = vmul.f32 %v7291_v24, %v9628_v34  ;;  %v3013_v34 = vmul.f32 %v9607_v55, %v2785_v52 }
 0x51c   : > { %3408 = vst [vmem:[%s7321_s15 + $0x228] sm:$0xff] %v3216_v41  ;;  %v3223_v41 = vadd.f32 %v7289_v8, %v2995_v48  ;;  %v3002_v48 = vmul.f32 %v9607_v55, %v2774_v32  ;;  %v2781_v32 = vmul.f32 %v7291_v24, %v9629_v21  ;;  %v3007_v15 = vmul.f32 %v9607_v55, %v2779_v1 }
 0x51d   : > { %3409 = vst [vmem:[%s7321_s15 + $0x230] sm:$0xff] %v3217_v19  ;;  %v3224_v19 = vadd.f32 %v7289_v8, %v2996_v36  ;;  %v3003_v36 = vmul.f32 %v9607_v55, %v2775_v57  ;;  %v3006_v57 = vmul.f32 %v9607_v55, %v2778_v14  ;;  %v3008_v18 = vmul.f32 %v9607_v55, %v2780_v33 }
 0x51e   : > { %3410 = vst [vmem:[%s7321_s15 + $0x238] sm:$0xff] %v3218_v12  ;;  %v3225_v12 = vadd.f32 %v7289_v8, %v2997_v5  ;;  %v3004_v5 = vmul.f32 %v9607_v55, %v2776_v50  ;;  %v2787_v14 = vmul.f32 %v7291_v24, %v9630_v56  ;;  %v2799_v56 = vmul.f32 %v7291_v24, %v9401_v46 }
 0x51f   : > { %3411 = vst [vmem:[%s7321_s15 + $0x240] sm:$0xff] %v3219_v43  ;;  %v3226_v43 = vadd.f32 %v7289_v8, %v2998_v26  ;;  %v3005_v26 = vmul.f32 %v9607_v55, %v2777_v37  ;;  %v3231_v50 = vadd.f32 %v7289_v8, %v3003_v36  ;;  %v3236_v1 = vadd.f32 %v7289_v8, %v3008_v18  ;;  %v9632_v36 = vld [vmem:[#allocation79_spill] sm:$0xff] }
 0x520   : > { %3412 = vst [vmem:[%s7321_s15 + $0x248] sm:$0xff] %v3220_v6  ;;  %v3227_v6 = vadd.f32 %v7289_v8, %v2999_v23  ;;  %v3230_v23 = vadd.f32 %v7289_v8, %v3002_v48  ;;  %v3235_v48 = vadd.f32 %v7289_v8, %v3007_v15  ;;  %v3241_v15 = vadd.f32 %v7289_v8, %v3013_v34 }
 0x521   : > { %3413 = vst [vmem:[%s7321_s15 + $0x250] sm:$0xff] %v3221_v25  ;;  %v3228_v25 = vadd.f32 %v7289_v8, %v3000_v0  ;;  %v2784_v0 = vmul.f32 %v7291_v24, %v9481_v7  ;;  %v3233_v37 = vadd.f32 %v7289_v8, %v3005_v26  ;;  %v3010_v7 = vmul.f32 %v9607_v55, %v2782_v42 }
 0x522   : > { %3414 = vst [vmem:[%s7321_s15 + $0x258] sm:$0xff] %v3222_v51  ;;  %v3229_v51 = vadd.f32 %v7289_v8, %v3001_v11  ;;  %v2786_v11 = vmul.f32 %v7291_v24, %v9496_v16  ;;  %v2791_v26 = vmul.f32 %v7291_v24, %v9384_v13  ;;  %v2804_v34 = vmul.f32 %v7291_v24, %v9420_v38 }
 0x523   : > { %3415 = vst [vmem:[%s7321_s15 + $0x260] sm:$0xff] %v3223_v41  ;;  %v2783_v41 = vmul.f32 %v7291_v24, %v9480_v59  ;;  %v3009_v59 = vmul.f32 %v9607_v55, %v2781_v32  ;;  %v3012_v16 = vmul.f32 %v9607_v55, %v2784_v0  ;;  %v3238_v32 = vadd.f32 %v7289_v8, %v3010_v7 }
 0x524   : > { %3416 = vst [vmem:[%s7321_s15 + $0x268] sm:$0xff] %v3224_v19  ;;  %v3232_v19 = vadd.f32 %v7289_v8, %v3004_v5  ;;  %v9633_v5 = vld [vmem:[#allocation85_spill] sm:$0xff]  ;;  %v3014_v21 = vmul.f32 %v9607_v55, %v2786_v11  ;;  %v2798_v7 = vmul.f32 %v7291_v24, %v9399_v31 }
 0x525   : > { %3417 = vst [vmem:[%s7321_s15 + $0x270] sm:$0xff] %v3225_v12  ;;  %v3234_v12 = vadd.f32 %v7289_v8, %v3006_v57  ;;  %v3011_v60 = vmul.f32 %v9607_v55, %v2783_v41  ;;  %v3237_v33 = vadd.f32 %v7289_v8, %v3009_v59  ;;  %v2792_v57 = vmul.f32 %v7291_v24, %v9386_v30 }
 0x526   : > { %3418 = vst [vmem:[%s7321_s15 + $0x278] sm:$0xff] %v3226_v43  ;;  %v9631_v43 = vld [vmem:[#allocation76_spill] sm:$0xff]  ;;  %v3240_v55 = vadd.f32 %v7289_v8, %v3012_v16  ;;  %v2793_v41 = vmul.f32 %v7291_v24, %v9388_v28  ;;  %v2794_v30 = vmul.f32 %v7291_v24, %v9390_v20  ;;  %v3242_v18 = vadd.f32 %v7289_v8, %v3014_v21 }
 0x527   : > { %3419 = vst [vmem:[%s7321_s15 + $0x280] sm:$0xff] %v3227_v6  ;;  %v2788_v39 = vmul.f32 %v7291_v24, %v9631_v43  ;;  %v2789_v6 = vmul.f32 %v7291_v24, %v9632_v36  ;;  %v3239_v42 = vadd.f32 %v7289_v8, %v3011_v60  ;;  %v2795_v28 = vmul.f32 %v7291_v24, %v9392_v9 }
 0x528   : > { %3420 = vst [vmem:[%s7321_s15 + $0x288] sm:$0xff] %v3228_v25  ;;  %v2790_v25 = vmul.f32 %v7291_v24, %v9633_v5  ;;  %v2796_v59 = vmul.f32 %v7291_v24, %v9394_v61  ;;  %v3020_v20 = vmul.f32 %v7287_v53, %v2792_v57  ;;  %v2797_v8 = vmul.f32 %v7291_v24, %v9396_v2 }
 0x529   : > { %3421 = vst [vmem:[%s7321_s15 + $0x290] sm:$0xff] %v3229_v51  ;;  %v3015_v51 = vmul.f32 %v7287_v53, %v2787_v14  ;;  %v3017_v13 = vmul.f32 %v7287_v53, %v2789_v6  ;;  %v3021_v9 = vmul.f32 %v7287_v53, %v2793_v41  ;;  %v3022_v61 = vmul.f32 %v7287_v53, %v2794_v30 }
 0x52a   : > { %3422 = vst [vmem:[%s7321_s15 + $0x298] sm:$0xff] %v3230_v23  ;;  %v3016_v23 = vmul.f32 %v7287_v53, %v2788_v39  ;;  %v3018_v0 = vmul.f32 %v7287_v53, %v2790_v25  ;;  %v3023_v2 = vmul.f32 %v7287_v53, %v2795_v28  ;;  %v2800_v60 = vmul.f32 %v7291_v24, %v9404_v40 }
 0x52b   : > { %3423 = vst [vmem:[%s7321_s15 + $0x2a0] sm:$0xff] %v3231_v50  ;;  %v7795_v50 = vpop.permute.xlu0 %3134  ;;  %v3024_v31 = vmul.f32 %v7287_v53, %v2796_v59  ;;  %v2801_v43 = vmul.f32 %v7291_v24, %v9406_v44  ;;  %v3025_v46 = vmul.f32 %v7287_v53, %v2797_v8  ;;  %v2802_v16 = vmul.f32 %v7291_v24, %v9409_v54 }
 0x52c   : > { %3424 = vst [vmem:[%s7321_s15 + $0x2a8] sm:$0xff] %v3232_v19  ;;  %v3019_v19 = vmul.f32 %v7287_v53, %v2791_v26  ;;  %v3243_v52 = vadd.f32 %v7795_v50, %v3015_v51  ;;  %v3245_v11 = vadd.f32 %v7795_v50, %v3017_v13  ;;  %v3249_v39 = vadd.f32 %v7795_v50, %v3021_v9 }
 0x52d   : > { %3425 = vst [vmem:[%s7321_s15 + $0x2b0] sm:$0xff] %v3233_v37  ;;  %v3244_v37 = vadd.f32 %v7795_v50, %v3016_v23  ;;  %v3026_v40 = vmul.f32 %v7287_v53, %v2798_v7  ;;  %v2803_v36 = vmul.f32 %v7291_v24, %v9414_v4  ;;  %v3027_v44 = vmul.f32 %v7287_v53, %v2799_v56 }
 0x52e   : > { %3426 = vst [vmem:[%s7321_s15 + $0x2b8] sm:$0xff] %v3234_v12  ;;  %v3246_v12 = vadd.f32 %v7795_v50, %v3018_v0  ;;  %v3247_v14 = vadd.f32 %v7795_v50, %v3019_v19  ;;  %v3251_v6 = vadd.f32 %v7795_v50, %v3023_v2  ;;  %v3028_v54 = vmul.f32 %v7287_v53, %v2800_v60  ;;  %v9635_v2 = vld [vmem:[#allocation81_spill] sm:$0xff] }
 0x52f   : > { %3427 = vst [vmem:[%s7321_s15 + $0x2c0] sm:$0xff] %v3235_v48  ;;  %v3248_v48 = vadd.f32 %v7795_v50, %v3020_v20  ;;  %v2805_v5 = vmul.f32 %v7291_v24, %v9425_v63  ;;  %v3029_v4 = vmul.f32 %v7287_v53, %v2801_v43  ;;  %v3253_v25 = vadd.f32 %v7795_v50, %v3025_v46 }
 0x530   : > { %3428 = vst [vmem:[%s7321_s15 + $0x2c8] sm:$0xff] %v3236_v1  ;;  %v3250_v1 = vadd.f32 %v7795_v50, %v3022_v61  ;;  %v2806_v21 = vmul.f32 %v7291_v24, %v9431_v35  ;;  %v3030_v38 = vmul.f32 %v7287_v53, %v2802_v16  ;;  %v2807_v26 = vmul.f32 %v7291_v24, %v9436_v3  ;;  %v9634_v61 = vld [vmem:[#allocation102_spill] sm:$0xff] }
 0x531   : > { %3429 = vst [vmem:[%s7321_s15 + $0x2d0] sm:$0xff] %v3237_v33  ;;  %v3252_v33 = vadd.f32 %v7795_v50, %v3024_v31  ;;  %v3031_v63 = vmul.f32 %v7287_v53, %v2803_v36  ;;  %v3255_v51 = vadd.f32 %v7795_v50, %v3027_v44  ;;  %v3032_v35 = vmul.f32 %v7287_v53, %v2804_v34  ;;  %v9636_v31 = vld [vmem:[#allocation82_spill] sm:$0xff]  ;;  %v9638_v36 = vld [vmem:[#allocation89_spill] sm:$0xff] }
 0x532   : > { %3430 = vst [vmem:[%s7321_s15 + $0x2d8] sm:$0xff] %v3238_v32  ;;  %v3254_v32 = vadd.f32 %v7795_v50, %v3026_v40  ;;  %v3256_v57 = vadd.f32 %v7795_v50, %v3028_v54  ;;  %v2809_v23 = vmul.f32 %v7291_v24, %v9447_v17  ;;  %v3033_v3 = vmul.f32 %v7287_v53, %v2805_v5  ;;  %v9639_v54 = vld [vmem:[#allocation105_spill] sm:$0xff] }
 0x533   : > { %3431 = vst [vmem:[%s7321_s15 + $0x2e0] sm:$0xff] %v3239_v42  ;;  %v2808_v42 = vmul.f32 %v7291_v24, %v9442_v22  ;;  %v2810_v41 = vmul.f32 %v7291_v24, %v9453_v10  ;;  %v3034_v22 = vmul.f32 %v7287_v53, %v2806_v21  ;;  %v3258_v13 = vadd.f32 %v7795_v50, %v3030_v38  ;;  %v9640_v5 = vld [vmem:[#allocation197_spill] sm:$0xff] }
 0x534   : > { %3432 = vst [vmem:[%s7321_s15 + $0x2e8] sm:$0xff] %v3240_v55  ;;  %v3257_v55 = vadd.f32 %v7795_v50, %v3029_v4  ;;  %v3035_v17 = vmul.f32 %v7287_v53, %v2807_v26  ;;  %v3259_v30 = vadd.f32 %v7795_v50, %v3031_v63  ;;  %v2812_v0 = vmul.f32 %v7291_v24, %v9464_v47  ;;  %v9641_v21 = vld [vmem:[#allocation109_spill] sm:$0xff]  ;;  %v9642_v26 = vld [vmem:[#allocation2_spill] sm:$0xff] }
 0x535   : > { %3433 = vst [vmem:[%s7321_s15 + $0x2f0] sm:$0xff] %v3241_v15  ;;  %v2811_v15 = vmul.f32 %v7291_v24, %v9458_v27  ;;  %v3036_v10 = vmul.f32 %v7287_v53, %v2808_v42  ;;  %v2813_v28 = vmul.f32 %v7291_v24, %v9469_v58  ;;  %v3037_v27 = vmul.f32 %v7287_v53, %v2809_v23 }
 0x536   : > { %3434 = vst [vmem:[%s7321_s15 + $0x2f8] sm:$0xff] %v3242_v18  ;;  %v3260_v18 = vadd.f32 %v7795_v50, %v3032_v35  ;;  %v3261_v19 = vadd.f32 %v7795_v50, %v3033_v3  ;;  %v3038_v47 = vmul.f32 %v7287_v53, %v2810_v41  ;;  %v3262_v59 = vadd.f32 %v7795_v50, %v3034_v22  ;;  %v7957_v35 = vpop.permute.xlu2 %3139  ;;  %v9644_v41 = vld [vmem:[#allocation19_spill] sm:$0xff] }
 0x537   : > { %3435 = vst [vmem:[%s7321_s15 + $0x300] sm:$0xff] %v3243_v52  ;;  %v2814_v52 = vmul.f32 %v7291_v24, %v9475_v45  ;;  %v2815_v20 = vmul.f32 %v7291_v24, %v9485_v49  ;;  %v3039_v58 = vmul.f32 %v7287_v53, %v2811_v15  ;;  %v2816_v8 = vmul.f32 %v7291_v24, %v9486_v29 }
 0x538   : > { %3436 = vst [vmem:[%s7321_s15 + $0x308] sm:$0xff] %v3244_v37  ;;  %v3263_v37 = vadd.f32 %v7795_v50, %v3035_v17  ;;  %v3040_v45 = vmul.f32 %v7287_v53, %v2812_v0  ;;  %v3264_v9 = vadd.f32 %v7795_v50, %v3036_v10  ;;  %v3041_v49 = vmul.f32 %v7287_v53, %v2813_v28  ;;  %v9645_v17 = vld [vmem:[#allocation113_spill] sm:$0xff] }
 0x539   : > { %3437 = vst [vmem:[%s7321_s15 + $0x310] sm:$0xff] %v3245_v11  ;;  %v2817_v11 = vmul.f32 %v7291_v24, %v9506_v62  ;;  %v3265_v7 = vadd.f32 %v7795_v50, %v3037_v27  ;;  %v3042_v29 = vmul.f32 %v7287_v53, %v2814_v52  ;;  %v3266_v56 = vadd.f32 %v7795_v50, %v3038_v47 }
 0x53a   : > { %3438 = vst [vmem:[%s7321_s15 + $0x318] sm:$0xff] %v3246_v12  ;;  %v2818_v12 = vmul.f32 %v7291_v24, %v9634_v61  ;;  %v3043_v62 = vmul.f32 %v7287_v53, %v2815_v20  ;;  %v3267_v60 = vadd.f32 %v7795_v50, %v3039_v58  ;;  %v3044_v43 = vmul.f32 %v7287_v53, %v2816_v8  ;;  %v9648_v20 = vld [vmem:[#allocation45_spill] sm:$0xff] }
 0x53b   : > { %3439 = vst [vmem:[%s7321_s15 + $0x320] sm:$0xff] %v3247_v14  ;;  %v2819_v14 = vmul.f32 %v7291_v24, %v9635_v2  ;;  %v3268_v46 = vadd.f32 %v7795_v50, %v3040_v45  ;;  %v3045_v40 = vmul.f32 %v7287_v53, %v2817_v11  ;;  %v2822_v44 = vmul.f32 %v7291_v24, %v9638_v36  ;;  %v9649_v45 = vld [vmem:[#allocation124_spill] sm:$0xff] }
 0x53c   : > { %3440 = vst [vmem:[%s7321_s15 + $0x328] sm:$0xff] %v3248_v48  ;;  %v2820_v48 = vmul.f32 %v7291_v24, %v9636_v31  ;;  %v3270_v34 = vadd.f32 %v7795_v50, %v3042_v29  ;;  %v2824_v38 = vmul.f32 %v7291_v24, %v9641_v21  ;;  %v2825_v63 = vmul.f32 %v7291_v24, %v9642_v26 }
 0x53d   : > { %3441 = vst [vmem:[%s7321_s15 + $0x330] sm:$0xff] %v3249_v39  ;;  %v9637_v39 = vld [vmem:[#allocation84_spill] sm:$0xff]  ;;  %v3047_v4 = vmul.f32 %v9640_v5, %v2819_v14  ;;  %v3273_v42 = vadd.f32 %v7795_v50, %v3045_v40  ;;  %v3050_v3 = vmul.f32 %v9640_v5, %v2822_v44  ;;  %v2827_v22 = vmul.f32 %v7291_v24, %v9644_v41 }
 0x53e   : > { %3442 = vst [vmem:[%s7321_s15 + $0x338] sm:$0xff] %v3250_v1  ;;  %v2821_v16 = vmul.f32 %v7291_v24, %v9637_v39  ;;  %v3269_v1 = vadd.f32 %v7795_v50, %v3041_v49  ;;  %v3052_v0 = vmul.f32 %v9640_v5, %v2824_v38  ;;  %v3053_v28 = vmul.f32 %v9640_v5, %v2825_v63 }
 0x53f   : > { %3443 = vst [vmem:[%s7321_s15 + $0x340] sm:$0xff] %v3251_v6  ;;  %v3046_v6 = vmul.f32 %v7287_v53, %v2818_v12  ;;  %v3272_v53 = vadd.f32 %v7795_v50, %v3044_v43  ;;  %v3275_v15 = vadd.f32 %v7957_v35, %v3047_v4  ;;  %v2831_v58 = vmul.f32 %v7291_v24, %v9648_v20 }
 0x540   : > { %3444 = vst [vmem:[%s7321_s15 + $0x348] sm:$0xff] %v3252_v33  ;;  %v2823_v33 = vmul.f32 %v7291_v24, %v9639_v54  ;;  %v3280_v49 = vadd.f32 %v7957_v35, %v3052_v0  ;;  %v3281_v29 = vadd.f32 %v7957_v35, %v3053_v28 }
 0x541   : > { %3445 = vst [vmem:[%s7321_s15 + $0x350] sm:$0xff] %v3253_v25  ;;  %v3271_v25 = vadd.f32 %v7795_v50, %v3043_v62 }
 0x542   : > { %3446 = vst [vmem:[%s7321_s15 + $0x358] sm:$0xff] %v3254_v32  ;;  %v3048_v32 = vmul.f32 %v9640_v5, %v2820_v48  ;;  %v3059_v48 = vmul.f32 %v9640_v5, %v2831_v58 }
 0x543   : > { %3447 = vst [vmem:[%s7321_s15 + $0x360] sm:$0xff] %v3255_v51  ;;  %v3049_v51 = vmul.f32 %v9640_v5, %v2821_v16 }
 0x544   : > { %3448 = vst [vmem:[%s7321_s15 + $0x368] sm:$0xff] %v3256_v57  ;;  %v9643_v57 = vld [vmem:[#allocation6_spill] sm:$0xff]  ;;  %v3276_v10 = vadd.f32 %v7957_v35, %v3048_v32  ;;  %v3287_v32 = vadd.f32 %v7957_v35, %v3059_v48 }
 0x545   : > { %3449 = vst [vmem:[%s7321_s15 + $0x370] sm:$0xff] %v3257_v55  ;;  %v2826_v23 = vmul.f32 %v7291_v24, %v9643_v57  ;;  %v3274_v55 = vadd.f32 %v7795_v50, %v3046_v6  ;;  %v9646_v50 = vld [vmem:[#allocation23_spill] sm:$0xff]  ;;  %v3277_v27 = vadd.f32 %v7957_v35, %v3049_v51 }
 0x546   : > { %3450 = vst [vmem:[%s7321_s15 + $0x378] sm:$0xff] %v3258_v13  ;;  %v3051_v13 = vmul.f32 %v9640_v5, %v2823_v33 }
 0x547   : > { %3451 = vst [vmem:[%s7321_s15 + $0x380] sm:$0xff] %v3259_v30  ;;  %v2828_v30 = vmul.f32 %v7291_v24, %v9645_v17  ;;  %v3054_v47 = vmul.f32 %v9640_v5, %v2826_v23 }
 0x548   : > { %3452 = vst [vmem:[%s7321_s15 + $0x388] sm:$0xff] %v3260_v18  ;;  %v2829_v18 = vmul.f32 %v7291_v24, %v9646_v50  ;;  %v3279_v8 = vadd.f32 %v7957_v35, %v3051_v13 }
 0x549   : > { %3453 = vst [vmem:[%s7321_s15 + $0x390] sm:$0xff] %v3261_v19  ;;  %v9647_v19 = vld [vmem:[#allocation29_spill] sm:$0xff]  ;;  %v3056_v11 = vmul.f32 %v9640_v5, %v2828_v30  ;;  %v3282_v62 = vadd.f32 %v7957_v35, %v3054_v47 }
 0x54a   : > { %3454 = vst [vmem:[%s7321_s15 + $0x398] sm:$0xff] %v3262_v59  ;;  %v2830_v52 = vmul.f32 %v7291_v24, %v9647_v19  ;;  %v3278_v59 = vadd.f32 %v7957_v35, %v3050_v3  ;;  %v3057_v12 = vmul.f32 %v9640_v5, %v2829_v18 }
 0x54b   : > { %3455 = vst [vmem:[%s7321_s15 + $0x3a0] sm:$0xff] %v3263_v37  ;;  %v3055_v37 = vmul.f32 %v9640_v5, %v2827_v22  ;;  %v3284_v40 = vadd.f32 %v7957_v35, %v3056_v11 }
 0x54c   : > { %3456 = vst [vmem:[%s7321_s15 + $0x3a8] sm:$0xff] %v3264_v9  ;;  %v2832_v9 = vmul.f32 %v7291_v24, %v9649_v45  ;;  %v3058_v14 = vmul.f32 %v9640_v5, %v2830_v52  ;;  %v3285_v6 = vadd.f32 %v7957_v35, %v3057_v12 }
 0x54d   : > { %3457 = vst [vmem:[%s7321_s15 + $0x3b0] sm:$0xff] %v3265_v7  ;;  %v9650_v7 = vld [vmem:[#allocation47_spill] sm:$0xff]  ;;  %v3283_v43 = vadd.f32 %v7957_v35, %v3055_v37 }
 0x54e   : > { %3458 = vst [vmem:[%s7321_s15 + $0x3b8] sm:$0xff] %v3266_v56  ;;  %v2833_v61 = vmul.f32 %v7291_v24, %v9650_v7  ;;  %v9651_v56 = vld [vmem:[#allocation60_spill] sm:$0xff]  ;;  %v3060_v16 = vmul.f32 %v9640_v5, %v2832_v9  ;;  %v3286_v4 = vadd.f32 %v7957_v35, %v3058_v14 }
 0x54f   : > { %3459 = vst [vmem:[%s7321_s15 + $0x3c0] sm:$0xff] %v3267_v60  ;;  %v2834_v2 = vmul.f32 %v7291_v24, %v9651_v56  ;;  %v9652_v60 = vld [vmem:[#allocation68_spill] sm:$0xff] }
 0x550   : > { %3460 = vst [vmem:[%s7321_s15 + $0x3c8] sm:$0xff] %v3268_v46  ;;  %v2835_v31 = vmul.f32 %v7291_v24, %v9652_v60  ;;  %v9653_v46 = vld [vmem:[#allocation132_spill] sm:$0xff]  ;;  %v3061_v44 = vmul.f32 %v9640_v5, %v2833_v61  ;;  %v3288_v51 = vadd.f32 %v7957_v35, %v3060_v16 }
 0x551   : > { %3461 = vst [vmem:[%s7321_s15 + $0x3d0] sm:$0xff] %v3269_v1  ;;  %v2836_v39 = vmul.f32 %v7291_v24, %v9653_v46  ;;  %v9654_v1 = vld [vmem:[#allocation133_spill] sm:$0xff]  ;;  %v3062_v33 = vmul.f32 %v9640_v5, %v2834_v2 }
 0x552   : > { %3462 = vst [vmem:[%s7321_s15 + $0x3d8] sm:$0xff] %v3270_v34  ;;  %v2837_v36 = vmul.f32 %v7291_v24, %v9654_v1  ;;  %v9655_v34 = vld [vmem:[#allocation136_spill] sm:$0xff]  ;;  %v3063_v38 = vmul.f32 %v9640_v5, %v2835_v31  ;;  %v3289_v3 = vadd.f32 %v7957_v35, %v3061_v44 }
 0x553   : > { %3463 = vst [vmem:[%s7321_s15 + $0x3e0] sm:$0xff] %v3271_v25  ;;  %v2838_v54 = vmul.f32 %v7291_v24, %v9655_v34  ;;  %v9656_v25 = vld [vmem:[#allocation26_spill] sm:$0xff]  ;;  %v3064_v63 = vmul.f32 %v9640_v5, %v2836_v39  ;;  %v3290_v13 = vadd.f32 %v7957_v35, %v3062_v33  ;;  %v9668_v39 = vld [vmem:[#allocation87_spill] sm:$0xff] }
 0x554   : > { %3464 = vst [vmem:[%s7321_s15 + $0x3e8] sm:$0xff] %v3272_v53  ;;  %v2839_v21 = vmul.f32 %v7291_v24, %v9656_v25  ;;  %v9657_v53 = vld [vmem:[#allocation33_spill] sm:$0xff]  ;;  %v3065_v23 = vmul.f32 %v9640_v5, %v2837_v36  ;;  %v3291_v0 = vadd.f32 %v7957_v35, %v3063_v38  ;;  %v2851_v16 = vmul.f32 %v7291_v24, %v9668_v39  ;;  %v9669_v36 = vld [vmem:[#allocation88_spill] sm:$0xff] }
 0x555   : > { %3465 = vst [vmem:[%s7321_s15 + $0x3f0] sm:$0xff] %v3273_v42  ;;  %v2840_v26 = vmul.f32 %v7291_v24, %v9657_v53  ;;  %v9658_v42 = vld [vmem:[#allocation41_spill] sm:$0xff]  ;;  %v3066_v22 = vmul.f32 %v9640_v5, %v2838_v54  ;;  %v3292_v28 = vadd.f32 %v7957_v35, %v3064_v63  ;;  %v2852_v44 = vmul.f32 %v7291_v24, %v9669_v36  ;;  %v9670_v54 = vld [vmem:[#allocation90_spill] sm:$0xff] }
 0x556   : > { %3466 = vst [vmem:[%s7321_s15 + $0x3f8] sm:$0xff] %v3274_v55  ;;  %v2841_v57 = vmul.f32 %v7291_v24, %v9658_v42  ;;  %v9659_v55 = vld [vmem:[#allocation48_spill] sm:$0xff]  ;;  %v3067_v30 = vmul.f32 %v9640_v5, %v2839_v21  ;;  %v3293_v47 = vadd.f32 %v7957_v35, %v3065_v23  ;;  %v2853_v33 = vmul.f32 %v7291_v24, %v9670_v54  ;;  %v9671_v21 = vld [vmem:[#allocation94_spill] sm:$0xff]  ;;  %v9673_v63 = vld [vmem:[#allocation213_spill] sm:$0xff] }
 0x557   : > { %3467 = vst [vmem:[%s7321_s15 + $0x400] sm:$0xff] %v3275_v15  ;;  %v2842_v41 = vmul.f32 %v7291_v24, %v9659_v55  ;;  %v9660_v15 = vld [vmem:[#allocation149_spill] sm:$0xff]  ;;  %v3068_v18 = vmul.f32 %v9640_v5, %v2840_v26  ;;  %v3294_v37 = vadd.f32 %v7957_v35, %v3066_v22  ;;  %v2854_v38 = vmul.f32 %v7291_v24, %v9671_v21  ;;  %v9672_v53 = vld [vmem:[#allocation110_spill] sm:$0xff] }
 0x558   : > { %3468 = vst [vmem:[%s7321_s15 + $0x408] sm:$0xff] %v3276_v10  ;;  %v2843_v17 = vmul.f32 %v7291_v24, %v9660_v15  ;;  %v9661_v10 = vld [vmem:[#allocation52_spill] sm:$0xff]  ;;  %v3069_v52 = vmul.f32 %v9640_v5, %v2841_v57  ;;  %v3295_v11 = vadd.f32 %v7957_v35, %v3067_v30  ;;  %v2855_v26 = vmul.f32 %v7291_v24, %v9672_v53  ;;  %v9675_v55 = vld [vmem:[#allocation10_spill] sm:$0xff]  ;;  %v8121_v15 = vpop.permute.xlu1 %3144 }
 0x559   : > { %3469 = vst [vmem:[%s7321_s15 + $0x410] sm:$0xff] %v3277_v27  ;;  %v2844_v50 = vmul.f32 %v7291_v24, %v9661_v10  ;;  %v9662_v27 = vld [vmem:[#allocation53_spill] sm:$0xff]  ;;  %v3070_v58 = vmul.f32 %v9640_v5, %v2842_v41  ;;  %v3296_v12 = vadd.f32 %v7957_v35, %v3068_v18  ;;  %v3080_v23 = vmul.f32 %v9673_v63, %v2852_v44  ;;  %v9677_v10 = vld [vmem:[#allocation114_spill] sm:$0xff]  ;;  %v9686_v44 = vld [vmem:[#allocation8_spill] sm:$0xff] }
 0x55a   : > { %3470 = vst [vmem:[%s7321_s15 + $0x418] sm:$0xff] %v3278_v59  ;;  %v2845_v19 = vmul.f32 %v7291_v24, %v9662_v27  ;;  %v9663_v59 = vld [vmem:[#allocation190_spill] sm:$0xff]  ;;  %v3071_v9 = vmul.f32 %v9640_v5, %v2843_v17  ;;  %v3297_v14 = vadd.f32 %v7957_v35, %v3069_v52  ;;  %v2857_v41 = vmul.f32 %v7291_v24, %v9675_v55  ;;  %v9676_v17 = vld [vmem:[#allocation11_spill] sm:$0xff] }
 0x55b   : > { %3471 = vst [vmem:[%s7321_s15 + $0x420] sm:$0xff] %v3279_v8  ;;  %v2846_v20 = vmul.f32 %v7291_v24, %v9663_v59  ;;  %v9664_v8 = vld [vmem:[#allocation191_spill] sm:$0xff]  ;;  %v3072_v61 = vmul.f32 %v9640_v5, %v2844_v50  ;;  %v3298_v48 = vadd.f32 %v7957_v35, %v3070_v58  ;;  %v3081_v22 = vmul.f32 %v9673_v63, %v2853_v33  ;;  %v9687_v33 = vld [vmem:[#allocation5_spill] sm:$0xff] }
 0x55c   : > { %3472 = vst [vmem:[%s7321_s15 + $0x428] sm:$0xff] %v3280_v49  ;;  %v2847_v45 = vmul.f32 %v7291_v24, %v9664_v8  ;;  %v9665_v49 = vld [vmem:[#allocation192_spill] sm:$0xff]  ;;  %v3073_v2 = vmul.f32 %v9640_v5, %v2845_v19  ;;  %v3299_v46 = vadd.f32 %v7957_v35, %v3071_v9  ;;  %v2858_v30 = vmul.f32 %v7291_v24, %v9676_v17 }
 0x55d   : > { %3473 = vst [vmem:[%s7321_s15 + $0x430] sm:$0xff] %v3281_v29  ;;  %v2848_v7 = vmul.f32 %v7291_v24, %v9665_v49  ;;  %v9666_v29 = vld [vmem:[#allocation193_spill] sm:$0xff]  ;;  %v3074_v31 = vmul.f32 %v9640_v5, %v2846_v20  ;;  %v3300_v1 = vadd.f32 %v7957_v35, %v3072_v61  ;;  %v2859_v50 = vmul.f32 %v7291_v24, %v9677_v10 }
 0x55e   : > { %3474 = vst [vmem:[%s7321_s15 + $0x438] sm:$0xff] %v3282_v62  ;;  %v2849_v56 = vmul.f32 %v7291_v24, %v9666_v29  ;;  %v9667_v62 = vld [vmem:[#allocation108_spill] sm:$0xff]  ;;  %v3301_v34 = vadd.f32 %v7957_v35, %v3073_v2  ;;  %v3083_v18 = vmul.f32 %v9673_v63, %v2855_v26  ;;  %v3308_v52 = vadd.f32 %v8121_v15, %v3080_v23 }
 0x55f   : > { %3475 = vst [vmem:[%s7321_s15 + $0x440] sm:$0xff] %v3283_v43  ;;  %v2850_v60 = vmul.f32 %v7291_v24, %v9667_v62  ;;  %v3075_v43 = vmul.f32 %v9640_v5, %v2847_v45  ;;  %v3302_v25 = vadd.f32 %v7957_v35, %v3074_v31  ;;  %v3085_v20 = vmul.f32 %v9673_v63, %v2857_v41  ;;  %v9690_v23 = vld [vmem:[#allocation112_spill] sm:$0xff] }
 0x560   : > { %3476 = vst [vmem:[%s7321_s15 + $0x448] sm:$0xff] %v3284_v40  ;;  %v3076_v40 = vmul.f32 %v9640_v5, %v2848_v7  ;;  %v3309_v58 = vadd.f32 %v8121_v15, %v3081_v22  ;;  %v3086_v45 = vmul.f32 %v9673_v63, %v2858_v30  ;;  %v3087_v7 = vmul.f32 %v9673_v63, %v2859_v50  ;;  %v9691_v22 = vld [vmem:[#allocation27_spill] sm:$0xff] }
 0x561   : > { %3477 = vst [vmem:[%s7321_s15 + $0x450] sm:$0xff] %v3285_v6  ;;  %v3077_v6 = vmul.f32 %v9640_v5, %v2849_v56  ;;  %v3311_v61 = vadd.f32 %v8121_v15, %v3083_v18  ;;  %v3313_v31 = vadd.f32 %v8121_v15, %v3085_v20 }
 0x562   : > { %3478 = vst [vmem:[%s7321_s15 + $0x458] sm:$0xff] %v3286_v4  ;;  %v3078_v4 = vmul.f32 %v9640_v5, %v2850_v60  ;;  %v3304_v42 = vadd.f32 %v7957_v35, %v3076_v40  ;;  %v9674_v5 = vld [vmem:[#allocation9_spill] sm:$0xff]  ;;  %v3314_v39 = vadd.f32 %v8121_v15, %v3086_v45  ;;  %v3315_v36 = vadd.f32 %v8121_v15, %v3087_v7 }
 0x563   : > { %3479 = vst [vmem:[%s7321_s15 + $0x460] sm:$0xff] %v3287_v32  ;;  %v3303_v32 = vadd.f32 %v7957_v35, %v3075_v43  ;;  %v2856_v57 = vmul.f32 %v7291_v24, %v9674_v5 }
 0x564   : > { %3480 = vst [vmem:[%s7321_s15 + $0x468] sm:$0xff] %v3288_v51  ;;  %v3079_v51 = vmul.f32 %v9673_v63, %v2851_v16  ;;  %v9685_v16 = vld [vmem:[#allocation146_spill] sm:$0xff] }
 0x565   : > { %3481 = vst [vmem:[%s7321_s15 + $0x470] sm:$0xff] %v3289_v3  ;;  %v3305_v3 = vadd.f32 %v7957_v35, %v3077_v6  ;;  %v3084_v19 = vmul.f32 %v9673_v63, %v2856_v57  ;;  %v2867_v40 = vmul.f32 %v7291_v24, %v9685_v16  ;;  %v2868_v6 = vmul.f32 %v7291_v24, %v9686_v44 }
 0x566   : > { %3482 = vst [vmem:[%s7321_s15 + $0x478] sm:$0xff] %v3290_v13  ;;  %v3306_v13 = vadd.f32 %v7957_v35, %v3078_v4  ;;  %v9678_v35 = vld [vmem:[#allocation30_spill] sm:$0xff]  ;;  %v2869_v4 = vmul.f32 %v7291_v24, %v9687_v33 }
 0x567   : > { %3483 = vst [vmem:[%s7321_s15 + $0x480] sm:$0xff] %v3291_v0  ;;  %v3082_v0 = vmul.f32 %v9673_v63, %v2854_v38  ;;  %v2860_v27 = vmul.f32 %v7291_v24, %v9678_v35  ;;  %v3312_v2 = vadd.f32 %v8121_v15, %v3084_v19  ;;  %v9688_v38 = vld [vmem:[#allocation15_spill] sm:$0xff]  ;;  %v3095_v5 = vmul.f32 %v9673_v63, %v2867_v40 }
 0x568   : > { %3484 = vst [vmem:[%s7321_s15 + $0x488] sm:$0xff] %v3292_v28  ;;  %v3307_v28 = vadd.f32 %v8121_v15, %v3079_v51  ;;  %v9689_v51 = vld [vmem:[#allocation28_spill] sm:$0xff]  ;;  %v3096_v55 = vmul.f32 %v9673_v63, %v2868_v6  ;;  %v3097_v17 = vmul.f32 %v9673_v63, %v2869_v4 }
 0x569   : > { %3485 = vst [vmem:[%s7321_s15 + $0x490] sm:$0xff] %v3293_v47  ;;  %v9679_v47 = vld [vmem:[#allocation32_spill] sm:$0xff]  ;;  %v3310_v9 = vadd.f32 %v8121_v15, %v3082_v0  ;;  %v3088_v56 = vmul.f32 %v9673_v63, %v2860_v27  ;;  %v9692_v0 = vld [vmem:[#allocation39_spill] sm:$0xff]  ;;  %v3323_v19 = vadd.f32 %v8121_v15, %v3095_v5 }
 0x56a   : > { %3486 = vst [vmem:[%s7321_s15 + $0x498] sm:$0xff] %v3294_v37  ;;  %v2861_v59 = vmul.f32 %v7291_v24, %v9679_v47  ;;  %v9680_v37 = vld [vmem:[#allocation118_spill] sm:$0xff]  ;;  %v2874_v10 = vmul.f32 %v7291_v24, %v9692_v0  ;;  %v3324_v20 = vadd.f32 %v8121_v15, %v3096_v55  ;;  %v3325_v45 = vadd.f32 %v8121_v15, %v3097_v17 }
 0x56b   : > { %3487 = vst [vmem:[%s7321_s15 + $0x4a0] sm:$0xff] %v3295_v11  ;;  %v2862_v8 = vmul.f32 %v7291_v24, %v9680_v37  ;;  %v9681_v11 = vld [vmem:[#allocation83_spill] sm:$0xff]  ;;  %v3316_v54 = vadd.f32 %v8121_v15, %v3088_v56 }
 0x56c   : > { %3488 = vst [vmem:[%s7321_s15 + $0x4a8] sm:$0xff] %v3296_v12  ;;  %v2863_v49 = vmul.f32 %v7291_v24, %v9681_v11  ;;  %v9682_v12 = vld [vmem:[#allocation194_spill] sm:$0xff]  ;;  %v3089_v60 = vmul.f32 %v9673_v63, %v2861_v59 }
 0x56d   : > { %3489 = vst [vmem:[%s7321_s15 + $0x4b0] sm:$0xff] %v3297_v14  ;;  %v2864_v29 = vmul.f32 %v7291_v24, %v9682_v12  ;;  %v9683_v14 = vld [vmem:[#allocation54_spill] sm:$0xff] }
 0x56e   : > { %3490 = vst [vmem:[%s7321_s15 + $0x4b8] sm:$0xff] %v3298_v48  ;;  %v2865_v62 = vmul.f32 %v7291_v24, %v9683_v14  ;;  %v9684_v48 = vld [vmem:[#allocation195_spill] sm:$0xff]  ;;  %v3317_v21 = vadd.f32 %v8121_v15, %v3089_v60 }
 0x56f   : > { %3491 = vst [vmem:[%s7321_s15 + $0x4c0] sm:$0xff] %v3299_v46  ;;  %v2866_v43 = vmul.f32 %v7291_v24, %v9684_v48  ;;  %v3090_v46 = vmul.f32 %v9673_v63, %v2862_v8 }
 0x570   : > { %3492 = vst [vmem:[%s7321_s15 + $0x4c8] sm:$0xff] %v3300_v1  ;;  %v3091_v1 = vmul.f32 %v9673_v63, %v2863_v49  ;;  %v3102_v49 = vmul.f32 %v9673_v63, %v2874_v10 }
 0x571   : > { %3493 = vst [vmem:[%s7321_s15 + $0x4d0] sm:$0xff] %v3301_v34  ;;  %v3092_v34 = vmul.f32 %v9673_v63, %v2864_v29  ;;  %v3094_v53 = vmul.f32 %v9673_v63, %v2866_v43  ;;  %v3318_v26 = vadd.f32 %v8121_v15, %v3090_v46 }
 0x572   : > { %3494 = vst [vmem:[%s7321_s15 + $0x4d8] sm:$0xff] %v3302_v25  ;;  %v3093_v25 = vmul.f32 %v9673_v63, %v2865_v62  ;;  %v3319_v57 = vadd.f32 %v8121_v15, %v3091_v1  ;;  %v3330_v1 = vadd.f32 %v8121_v15, %v3102_v49 }
 0x573   : > { %3495 = vst [vmem:[%s7321_s15 + $0x4e0] sm:$0xff] %v3303_v32  ;;  %v2870_v32 = vmul.f32 %v7291_v24, %v9688_v38  ;;  %v3320_v41 = vadd.f32 %v8121_v15, %v3092_v34  ;;  %v3322_v18 = vadd.f32 %v8121_v15, %v3094_v53 }
 0x574   : > { %3496 = vst [vmem:[%s7321_s15 + $0x4e8] sm:$0xff] %v3304_v42  ;;  %v2871_v42 = vmul.f32 %v7291_v24, %v9689_v51  ;;  %v3321_v30 = vadd.f32 %v8121_v15, %v3093_v25 }
 0x575   : > { %3497 = vst [vmem:[%s7321_s15 + $0x4f0] sm:$0xff] %v3305_v3  ;;  %v2872_v3 = vmul.f32 %v7291_v24, %v9690_v23  ;;  %v3098_v50 = vmul.f32 %v9673_v63, %v2870_v32 }
 0x576   : > { %3498 = vst [vmem:[%s7321_s15 + $0x4f8] sm:$0xff] %v3306_v13  ;;  %v2873_v13 = vmul.f32 %v7291_v24, %v9691_v22  ;;  %v3099_v27 = vmul.f32 %v9673_v63, %v2871_v42 }
 0x577   : > { %3499 = vst [vmem:[%s7321_s15 + $0x500] sm:$0xff] %v3307_v28  ;;  %v9693_v28 = vld [vmem:[#allocation50_spill] sm:$0xff]  ;;  %v3100_v59 = vmul.f32 %v9673_v63, %v2872_v3  ;;  %v3326_v7 = vadd.f32 %v8121_v15, %v3098_v50 }
 0x578   : > { %3500 = vst [vmem:[%s7321_s15 + $0x508] sm:$0xff] %v3308_v52  ;;  %v2875_v35 = vmul.f32 %v7291_v24, %v9693_v28  ;;  %v9694_v52 = vld [vmem:[#allocation56_spill] sm:$0xff]  ;;  %v3101_v8 = vmul.f32 %v9673_v63, %v2873_v13  ;;  %v3327_v56 = vadd.f32 %v8121_v15, %v3099_v27 }
 0x579   : > { %3501 = vst [vmem:[%s7321_s15 + $0x510] sm:$0xff] %v3309_v58  ;;  %v2876_v47 = vmul.f32 %v7291_v24, %v9694_v52  ;;  %v9695_v58 = vld [vmem:[#allocation57_spill] sm:$0xff]  ;;  %v3328_v60 = vadd.f32 %v8121_v15, %v3100_v59 }
 0x57a   : > { %3502 = vst [vmem:[%s7321_s15 + $0x518] sm:$0xff] %v3310_v9  ;;  %v2877_v37 = vmul.f32 %v7291_v24, %v9695_v58  ;;  %v9696_v9 = vld [vmem:[#allocation228_spill] sm:$0xff]  ;;  %v3103_v29 = vmul.f32 %v9673_v63, %v2875_v35  ;;  %v3329_v46 = vadd.f32 %v8121_v15, %v3101_v8 }
 0x57b   : > { %3503 = vst [vmem:[%s7321_s15 + $0x520] sm:$0xff] %v3311_v61  ;;  %v2878_v11 = vmul.f32 %v7291_v24, %v9696_v9  ;;  %v9697_v61 = vld [vmem:[#allocation196_spill] sm:$0xff]  ;;  %v3104_v62 = vmul.f32 %v9673_v63, %v2876_v47 }
 0x57c   : > { %3504 = vst [vmem:[%s7321_s15 + $0x528] sm:$0xff] %v3312_v2  ;;  %v2879_v12 = vmul.f32 %v7291_v24, %v9697_v61  ;;  %v9698_v2 = vld [vmem:[#allocation212_spill] sm:$0xff]  ;;  %v3105_v43 = vmul.f32 %v9673_v63, %v2877_v37  ;;  %v3331_v44 = vadd.f32 %v8121_v15, %v3103_v29 }
 0x57d   : > { %3505 = vst [vmem:[%s7321_s15 + $0x530] sm:$0xff] %v3313_v31  ;;  %v2880_v14 = vmul.f32 %v7291_v24, %v9698_v2  ;;  %v9699_v31 = vld [vmem:[#allocation61_spill] sm:$0xff]  ;;  %v3106_v40 = vmul.f32 %v9673_v63, %v2878_v11  ;;  %v3332_v34 = vadd.f32 %v8121_v15, %v3104_v62 }
 0x57e   : > { %3506 = vst [vmem:[%s7321_s15 + $0x538] sm:$0xff] %v3314_v39  ;;  %v2881_v48 = vmul.f32 %v7291_v24, %v9699_v31  ;;  %v9700_v39 = vld [vmem:[#allocation229_spill] sm:$0xff] }
 0x57f   : > { %3507 = vst [vmem:[%s7321_s15 + $0x540] sm:$0xff] %v3315_v36  ;;  %v2882_v16 = vmul.f32 %v7291_v24, %v9700_v39  ;;  %v3107_v36 = vmul.f32 %v9673_v63, %v2879_v12  ;;  %v3108_v6 = vmul.f32 %v9673_v63, %v2880_v14  ;;  %v3334_v4 = vadd.f32 %v8121_v15, %v3106_v40 }
 0x580   : > { %3508 = vst [vmem:[%s7321_s15 + $0x548] sm:$0xff] %v3316_v54  ;;  %v3109_v24 = vmul.f32 %v9673_v63, %v2881_v48  ;;  %v3333_v54 = vadd.f32 %v8121_v15, %v3105_v43 }
 0x581   : > { %3509 = vst [vmem:[%s7321_s15 + $0x550] sm:$0xff] %v3317_v21  ;;  %v3110_v33 = vmul.f32 %v9673_v63, %v2882_v16  ;;  %v3335_v25 = vadd.f32 %v8121_v15, %v3107_v36  ;;  %v3336_v21 = vadd.f32 %v8121_v15, %v3108_v6 }
 0x582   : > { %3510 = vst [vmem:[%s7321_s15 + $0x558] sm:$0xff] %v3318_v26  ;;  %v3337_v38 = vadd.f32 %v8121_v15, %v3109_v24 }
 0x583   : > { %3511 = vst [vmem:[%s7321_s15 + $0x560] sm:$0xff] %v3319_v57  ;;  %v3338_v32 = vadd.f32 %v8121_v15, %v3110_v33 }
 0x584   : > { %3512 = vst [vmem:[%s7321_s15 + $0x568] sm:$0xff] %v3320_v41 }
 0x585   : > { %3513 = vst [vmem:[%s7321_s15 + $0x570] sm:$0xff] %v3321_v30 }
 0x586   : > { %3514 = vst [vmem:[%s7321_s15 + $0x578] sm:$0xff] %v3322_v18 }
 0x587   : > { %3515 = vst [vmem:[%s7321_s15 + $0x580] sm:$0xff] %v3323_v19 }
 0x588   : > { %3516 = vst [vmem:[%s7321_s15 + $0x588] sm:$0xff] %v3324_v20 }
 0x589   : > { %3517 = vst [vmem:[%s7321_s15 + $0x590] sm:$0xff] %v3325_v45 }
 0x58a   : > { %3518 = vst [vmem:[%s7321_s15 + $0x598] sm:$0xff] %v3326_v7 }
 0x58b   : > { %3519 = vst [vmem:[%s7321_s15 + $0x5a0] sm:$0xff] %v3327_v56 }
 0x58c   : > { %3520 = vst [vmem:[%s7321_s15 + $0x5a8] sm:$0xff] %v3328_v60 }
 0x58d   : > { %3521 = vst [vmem:[%s7321_s15 + $0x5b0] sm:$0xff] %v3329_v46 }
 0x58e   : > { %3522 = vst [vmem:[%s7321_s15 + $0x5b8] sm:$0xff] %v3330_v1 }
 0x58f   : > { %3523 = vst [vmem:[%s7321_s15 + $0x5c0] sm:$0xff] %v3331_v44 }
 0x590   : > { %3524 = vst [vmem:[%s7321_s15 + $0x5c8] sm:$0xff] %v3332_v34 }
 0x591   : > { %3525 = vst [vmem:[%s7321_s15 + $0x5d0] sm:$0xff] %v3333_v54 }
 0x592   : > { %3526 = vst [vmem:[%s7321_s15 + $0x5d8] sm:$0xff] %v3334_v4 }
 0x593   : > { %3527 = vst [vmem:[%s7321_s15 + $0x5e0] sm:$0xff] %v3335_v25 }
 0x594   : > { %3528 = vst [vmem:[%s7321_s15 + $0x5e8] sm:$0xff] %v3336_v21 }
 0x595   : > { %3529 = vst [vmem:[%s7321_s15 + $0x5f0] sm:$0xff] %v3337_v38 }
 0x596   : > { %3530 = vst [vmem:[%s7321_s15 + $0x5f8] sm:$0xff] %v3338_v32 }
 0x597 PF: > { %s16_s21 = sadd.s32 1, %s3744_s21  }
 0x598   : > { %p13_p4 = scmp.ge.s32.totalorder %s16_s21, 4  }
 0x59a   :  { %15 = sbr.rel (!%p13_p4) target bundleno = 1 (0x1), region = 77 }

</bundles_post_ra>
